<compile_context>
chip_gen: v6e
topology: v6e:2x2x1
jax: 0.10.0
libtpu: 0.0.40
codegen_flags: <defaults>
</compile_context>

<pallas_src>
import functools

import jax
import jax.numpy as jnp
from jax import lax
from jax.experimental import pallas as pl
from jax.experimental.pallas import tpu as pltpu

BN_EPS = 1e-5


def _round_up(v, m):
    return ((v + m - 1) // m) * m


# --------------------------------------------------------------------------
# Kernels
# --------------------------------------------------------------------------
def _implicit_gemm(act_f32, w_ref, *, lrow, row_w, m_out):
    """3x3x3 valid conv as one GEMM on flattened-depth activations.

    act_f32 : (Cin_pad, L) f32, plane stride `lrow`, row stride `row_w`,
              with L >= m_out + 2*lrow + 2*row_w + 2 (slack columns).
    w_ref   : (Cout_pad, 27*Cin_pad) bf16, tap-major / channel-minor.
    Returns (Cout_pad, m_out) f32 (garbage at invalid columns; masked later).
    """
    slabs = []
    for kd in range(3):
        for kh in range(3):
            for kw in range(3):
                s = kd * lrow + kh * row_w + kw
                slabs.append(act_f32[:, s:s + m_out])
    # f32 slabs are aligned 8-sublane groups (Cin_pad % 8 == 0); cast the
    # assembled patch matrix to bf16 once, right before the MXU.
    patches = jnp.concatenate(slabs, axis=0).astype(w_ref.dtype)
    return jnp.dot(w_ref[...], patches, preferred_element_type=jnp.float32)


def _conv1_kernel(x_ref, w_ref, mask_ref, y_ref, sum_ref, ssq_ref,
                  *, lrow, row_w, m_out):
    acc = _implicit_gemm(x_ref[0], w_ref, lrow=lrow, row_w=row_w, m_out=m_out)
    y_ref[0] = acc.astype(y_ref.dtype)           # bf16 intermediate
    accv = acc * mask_ref[...]                   # zero out garbage columns
    sum_ref[0] = jnp.sum(accv, axis=1, keepdims=True)
    ssq_ref[0] = jnp.sum(accv * accv, axis=1, keepdims=True)


def _conv2_kernel(y1_ref, sc_ref, sh_ref, w_ref, mask_ref,
                  o_ref, sum_ref, ssq_ref, *, lrow, row_w, m_out):
    # BN1 + ReLU fused into conv2's input read (f32 elementwise).
    h = jnp.maximum(y1_ref[0].astype(jnp.float32) * sc_ref[...] + sh_ref[...],
                    0.0)
    acc = _implicit_gemm(h, w_ref, lrow=lrow, row_w=row_w, m_out=m_out)
    o_ref[0] = acc
    accv = acc * mask_ref[...]
    sum_ref[0] = jnp.sum(accv, axis=1, keepdims=True)
    ssq_ref[0] = jnp.sum(accv * accv, axis=1, keepdims=True)


def _bn_add_relu_kernel(y_ref, sc_ref, sh_ref, res_ref, o_ref):
    """BN2 (precomputed scale/shift) + residual (pre-padded to Cout) + ReLU."""
    y = y_ref[0] * sc_ref[...] + sh_ref[...] + res_ref[0]
    o_ref[0] = jnp.maximum(y, 0.0)


# --------------------------------------------------------------------------
# Wrapper
# --------------------------------------------------------------------------
def res_block_forward(x, params):
    """ResBlock.forward. x: (N, inplanes, D, H, W) f32 -> (N, planes, D-4, H-4, W-4)."""
    w1, g1, b1 = params["w1"], params["gamma1"], params["beta1"]
    w2, g2, b2 = params["w2"], params["gamma2"], params["beta2"]
    planes, inplanes = w1.shape[0], w1.shape[1]
    N, _, D, H, W = x.shape
    D1, H1, W1 = D - 2, H - 2, W - 2
    D2, H2, W2 = D - 4, H - 4, W - 4
    f32 = jnp.float32
    lrow = H * W

    ci = _round_up(inplanes, 8)        # conv1 input channels, sublane-aligned
    cm = _round_up(planes, 8)          # conv outputs / conv2 input channels
    shift_max = 2 * lrow + 2 * W + 2   # largest tap column shift

    # Flattened column counts (lane dims are multiples of 128).
    m2 = _round_up(D2 * lrow, 128)                        # conv2 output cols
    m1 = _round_up(max(D1 * lrow, m2 + shift_max), 128)   # conv1 output cols
    lx = _round_up(m1 + shift_max, 128)                   # padded input cols

    # (N, Cin, D, H, W) -> (N, ci, lx): flatten (D,H,W), zero-pad channels &
    # lanes.  No transpose anywhere: the channel axis is already the sublane.
    x_flat = jnp.pad(x.reshape(N, inplanes, D * lrow),
                     ((0, 0), (0, ci - inplanes), (0, lx - D * lrow)))

    def pack_weight(w, cin_pad):
        cout, cin = w.shape[0], w.shape[1]
        wp = jnp.pad(w, ((0, cm - cout), (0, cin_pad - cin),
                         (0, 0), (0, 0), (0, 0)))
        # (cm, cin_pad, 3,3,3) -> (cm, 3,3,3, cin_pad) -> (cm, 27*cin_pad)
        return jnp.transpose(wp, (0, 2, 3, 4, 1)).reshape(
            cm, 27 * cin_pad).astype(jnp.bfloat16)

    w1_2d = pack_weight(w1, ci)
    w2_2d = pack_weight(w2, cm)

    def valid_mask(m_cols, d_out, h_valid, w_valid):
        c = jnp.arange(m_cols)
        p = c % lrow
        ok = (c < d_out * lrow) & ((p // W) < h_valid) & ((p % W) < w_valid)
        return ok.astype(f32).reshape(1, m_cols)

    mask1 = valid_mask(m1, D1, H1, W1)
    mask2 = valid_mask(m2, D2, H2, W2)

    par = pltpu.CompilerParams(dimension_semantics=("parallel",))

    # ---- conv1 + per-n BN1 statistics --------------------------------------
    y1, s1, q1 = pl.pallas_call(
        functools.partial(_conv1_kernel, lrow=lrow, row_w=W, m_out=m1),
        grid=(N,),
        in_specs=[
            pl.BlockSpec((1, ci, lx), lambda n: (n, 0, 0)),
            pl.BlockSpec((cm, 27 * ci), lambda n: (0, 0)),
            pl.BlockSpec((1, m1), lambda n: (0, 0)),
        ],
        out_specs=(
            pl.BlockSpec((1, cm, m1), lambda n: (n, 0, 0)),
            pl.BlockSpec((1, cm, 1), lambda n: (n, 0, 0)),
            pl.BlockSpec((1, cm, 1), lambda n: (n, 0, 0)),
        ),
        out_shape=(
            jax.ShapeDtypeStruct((N, cm, m1), jnp.bfloat16),
            jax.ShapeDtypeStruct((N, cm, 1), f32),
            jax.ShapeDtypeStruct((N, cm, 1), f32),
        ),
        compiler_params=par,
    )(x_flat, w1_2d, mask1)

    def bn_scale_shift(s, q, cnt, g, b):
        mean = jnp.sum(s, axis=0) / cnt                       # (cm, 1)
        var = jnp.maximum(jnp.sum(q, axis=0) / cnt - mean * mean, 0.0)
        gp = jnp.pad(g, (0, cm - g.shape[0]),
                     constant_values=1.0).reshape(cm, 1)
        bp = jnp.pad(b, (0, cm - b.shape[0])).reshape(cm, 1)
        scale = gp * lax.rsqrt(var + BN_EPS)
        return scale, bp - mean * scale

    scale1, shift1 = bn_scale_shift(s1, q1, float(N * D1 * H1 * W1), g1, b1)

    # ---- conv2 (BN1+ReLU fused on its input) + per-n BN2 statistics --------
    y2, s2, q2 = pl.pallas_call(
        functools.partial(_conv2_kernel, lrow=lrow, row_w=W, m_out=m2),
        grid=(N,),
        in_specs=[
            pl.BlockSpec((1, cm, m1), lambda n: (n, 0, 0)),
            pl.BlockSpec((cm, 1), lambda n: (0, 0)),
            pl.BlockSpec((cm, 1), lambda n: (0, 0)),
            pl.BlockSpec((cm, 27 * cm), lambda n: (0, 0)),
            pl.BlockSpec((1, m2), lambda n: (0, 0)),
        ],
        out_specs=(
            pl.BlockSpec((1, cm, m2), lambda n: (n, 0, 0)),
            pl.BlockSpec((1, cm, 1), lambda n: (n, 0, 0)),
            pl.BlockSpec((1, cm, 1), lambda n: (n, 0, 0)),
        ),
        out_shape=(
            jax.ShapeDtypeStruct((N, cm, m2), f32),
            jax.ShapeDtypeStruct((N, cm, 1), f32),
            jax.ShapeDtypeStruct((N, cm, 1), f32),
        ),
        compiler_params=par,
    )(y1, scale1, shift1, w2_2d, mask2)

    scale2, shift2 = bn_scale_shift(s2, q2, float(N * D2 * H2 * W2), g2, b2)

    # Residual: cropped input, zero-padded to `cm` channels and to the same
    # flattened (row stride W, plane stride lrow) layout -> one full-shape add.
    xc = x[:, :, 2:2 + D2, 2:2 + H2, 2:2 + W2]
    xc = jnp.pad(xc, ((0, 0), (0, cm - inplanes), (0, 0),
                      (0, H - H2), (0, W - W2)))
    res = jnp.pad(xc.reshape(N, cm, D2 * lrow),
                  ((0, 0), (0, 0), (0, m2 - D2 * lrow)))

    # ---- BN2 + residual + ReLU ----------------------------------------------
    y_out = pl.pallas_call(
        _bn_add_relu_kernel,
        grid=(N,),
        in_specs=[
            pl.BlockSpec((1, cm, m2), lambda n: (n, 0, 0)),
            pl.BlockSpec((cm, 1), lambda n: (0, 0)),
            pl.BlockSpec((cm, 1), lambda n: (0, 0)),
            pl.BlockSpec((1, cm, m2), lambda n: (n, 0, 0)),
        ],
        out_specs=pl.BlockSpec((1, cm, m2), lambda n: (n, 0, 0)),
        out_shape=jax.ShapeDtypeStruct((N, cm, m2), f32),
        compiler_params=par,
    )(y2, scale2, shift2, res)

    # Epilogue: crop garbage channels/columns, reshape back to NCDHW (no
    # transpose -- the channel axis never moved).
    y = y_out[:, :planes, :D2 * lrow].reshape(N, planes, D2, H, W)
    return y[:, :, :, :H2, :W2]


# --------------------------------------------------------------------------
# Pure-JAX reference (literal translation of the PyTorch forward, train-mode BN)
# --------------------------------------------------------------------------
def ref_forward(x, params):
    w1, g1, b1 = params["w1"], params["gamma1"], params["beta1"]
    w2, g2, b2 = params["w2"], params["gamma2"], params["beta2"]
    inplanes = w1.shape[1]
    dn = ("NCDHW", "OIDHW", "NCDHW")
    conv = functools.partial(lax.conv_general_dilated,
                             window_strides=(1, 1, 1), padding="VALID",
                             dimension_numbers=dn,
                             precision=lax.Precision.HIGHEST)

    def bn(y, g, b):
        mean = jnp.mean(y, axis=(0, 2, 3, 4), keepdims=True)
        var = jnp.mean((y - mean) ** 2, axis=(0, 2, 3, 4), keepdims=True)
        g = g.reshape(1, -1, 1, 1, 1)
        b = b.reshape(1, -1, 1, 1, 1)
        return (y - mean) * lax.rsqrt(var + BN_EPS) * g + b

    y = jax.nn.relu(bn(conv(x, w1), g1, b1))
    y = bn(conv(y, w2), g2, b2)
    xc = x[:, :, 2:-2, 2:-2, 2:-2]
    y = y.at[:, :inplanes].add(xc)
    return jax.nn.relu(y)


if __name__ == "__main__":
    key = jax.random.PRNGKey(0)
    N, inplanes, planes = 2, 4, 8
    D = H = W = 12

    ks = jax.random.split(key, 7)
    bound1 = 1.0 / (inplanes * 27) ** 0.5
    bound2 = 1.0 / (planes * 27) ** 0.5
    params = {
        "w1": jax.random.uniform(ks[0], (planes, inplanes, 3, 3, 3),
                                 jnp.float32, -bound1, bound1),
        "gamma1": jax.random.uniform(ks[1], (planes,), jnp.float32, 0.5, 1.5),
        "beta1": 0.1 * jax.random.normal(ks[2], (planes,), jnp.float32),
        "w2": jax.random.uniform(ks[3], (planes, planes, 3, 3, 3),
                                 jnp.float32, -bound2, bound2),
        "gamma2": jax.random.uniform(ks[4], (planes,), jnp.float32, 0.5, 1.5),
        "beta2": 0.1 * jax.random.normal(ks[5], (planes,), jnp.float32),
    }
    x = jax.random.normal(ks[6], (N, inplanes, D, H, W), jnp.float32)

    out = jax.block_until_ready(jax.jit(res_block_forward)(x, params))
    assert out.shape == (N, planes, D - 4, H - 4, W - 4), out.shape

    # Reference uses f32 HIGHEST; the kernel feeds bf16 to the MXU (f32 accum)
    # and stores the conv1 intermediate in bf16, so allow bf16-level tolerance.
    ref = ref_forward(x, params)
    max_err = float(jnp.max(jnp.abs(out - ref)))
    assert max_err < 5e-2, f"mismatch vs reference: max abs err {max_err}"

    print("KERNEL_OK")
</pallas_src>

<mosaic_0001>
module attributes {stable_mosaic.version = 11 : i64} {
  func.func @_conv1_kernel(%arg0: i32, %arg1: memref<1x8x1920xf32, #tpu.memory_space<vmem>>, %arg2: memref<8x216xbf16, #tpu.memory_space<vmem>>, %arg3: memref<1x1536xf32, #tpu.memory_space<vmem>>, %arg4: memref<1x8x1536xbf16, #tpu.memory_space<vmem>>, %arg5: memref<1x8x1xf32, #tpu.memory_space<vmem>>, %arg6: memref<1x8x1xf32, #tpu.memory_space<vmem>>) attributes {dimension_semantics = [#tpu.dimension_semantics<parallel>], iteration_bounds = array<i64: 2>, scalar_prefetch = 0 : i64, scratch_operands = 0 : i64, tpu.core_type = #tpu.core_type<tc>, window_params = [{transform_indices = @transform_0, window_bounds = array<i64: 1, 8, 1920>}, {pipeline_mode = #tpu.pipeline_mode<synchronous>, transform_indices = @transform_1, window_bounds = array<i64: 8, 216>}, {pipeline_mode = #tpu.pipeline_mode<synchronous>, transform_indices = @transform_2, window_bounds = array<i64: 1, 1536>}, {transform_indices = @transform_3, window_bounds = array<i64: 1, 8, 1536>}, {transform_indices = @transform_4, window_bounds = array<i64: 1, 8, 1>}, {transform_indices = @transform_5, window_bounds = array<i64: 1, 8, 1>}]} {
    %c0 = arith.constant 0 : index
    %c0_0 = arith.constant 0 : index
    %c0_1 = arith.constant 0 : index
    %0 = vector.load %arg1[%c0, %c0_0, %c0_1] : memref<1x8x1920xf32, #tpu.memory_space<vmem>>, vector<1x8x1920xf32>
    %1 = vector.shape_cast %0 : vector<1x8x1920xf32> to vector<8x1920xf32>
    %2 = vector.extract_strided_slice %1 {offsets = [0, 0], sizes = [8, 1536], strides = [1, 1]} : vector<8x1920xf32> to vector<8x1536xf32>
    %3 = vector.extract_strided_slice %1 {offsets = [0, 1], sizes = [8, 1536], strides = [1, 1]} : vector<8x1920xf32> to vector<8x1536xf32>
    %4 = vector.extract_strided_slice %1 {offsets = [0, 2], sizes = [8, 1536], strides = [1, 1]} : vector<8x1920xf32> to vector<8x1536xf32>
    %5 = vector.extract_strided_slice %1 {offsets = [0, 12], sizes = [8, 1536], strides = [1, 1]} : vector<8x1920xf32> to vector<8x1536xf32>
    %6 = vector.extract_strided_slice %1 {offsets = [0, 13], sizes = [8, 1536], strides = [1, 1]} : vector<8x1920xf32> to vector<8x1536xf32>
    %7 = vector.extract_strided_slice %1 {offsets = [0, 14], sizes = [8, 1536], strides = [1, 1]} : vector<8x1920xf32> to vector<8x1536xf32>
    %8 = vector.extract_strided_slice %1 {offsets = [0, 24], sizes = [8, 1536], strides = [1, 1]} : vector<8x1920xf32> to vector<8x1536xf32>
    %9 = vector.extract_strided_slice %1 {offsets = [0, 25], sizes = [8, 1536], strides = [1, 1]} : vector<8x1920xf32> to vector<8x1536xf32>
    %10 = vector.extract_strided_slice %1 {offsets = [0, 26], sizes = [8, 1536], strides = [1, 1]} : vector<8x1920xf32> to vector<8x1536xf32>
    %11 = vector.extract_strided_slice %1 {offsets = [0, 144], sizes = [8, 1536], strides = [1, 1]} : vector<8x1920xf32> to vector<8x1536xf32>
    %12 = vector.extract_strided_slice %1 {offsets = [0, 145], sizes = [8, 1536], strides = [1, 1]} : vector<8x1920xf32> to vector<8x1536xf32>
    %13 = vector.extract_strided_slice %1 {offsets = [0, 146], sizes = [8, 1536], strides = [1, 1]} : vector<8x1920xf32> to vector<8x1536xf32>
    %14 = vector.extract_strided_slice %1 {offsets = [0, 156], sizes = [8, 1536], strides = [1, 1]} : vector<8x1920xf32> to vector<8x1536xf32>
    %15 = vector.extract_strided_slice %1 {offsets = [0, 157], sizes = [8, 1536], strides = [1, 1]} : vector<8x1920xf32> to vector<8x1536xf32>
    %16 = vector.extract_strided_slice %1 {offsets = [0, 158], sizes = [8, 1536], strides = [1, 1]} : vector<8x1920xf32> to vector<8x1536xf32>
    %17 = vector.extract_strided_slice %1 {offsets = [0, 168], sizes = [8, 1536], strides = [1, 1]} : vector<8x1920xf32> to vector<8x1536xf32>
    %18 = vector.extract_strided_slice %1 {offsets = [0, 169], sizes = [8, 1536], strides = [1, 1]} : vector<8x1920xf32> to vector<8x1536xf32>
    %19 = vector.extract_strided_slice %1 {offsets = [0, 170], sizes = [8, 1536], strides = [1, 1]} : vector<8x1920xf32> to vector<8x1536xf32>
    %20 = vector.extract_strided_slice %1 {offsets = [0, 288], sizes = [8, 1536], strides = [1, 1]} : vector<8x1920xf32> to vector<8x1536xf32>
    %21 = vector.extract_strided_slice %1 {offsets = [0, 289], sizes = [8, 1536], strides = [1, 1]} : vector<8x1920xf32> to vector<8x1536xf32>
    %22 = vector.extract_strided_slice %1 {offsets = [0, 290], sizes = [8, 1536], strides = [1, 1]} : vector<8x1920xf32> to vector<8x1536xf32>
    %23 = vector.extract_strided_slice %1 {offsets = [0, 300], sizes = [8, 1536], strides = [1, 1]} : vector<8x1920xf32> to vector<8x1536xf32>
    %24 = vector.extract_strided_slice %1 {offsets = [0, 301], sizes = [8, 1536], strides = [1, 1]} : vector<8x1920xf32> to vector<8x1536xf32>
    %25 = vector.extract_strided_slice %1 {offsets = [0, 302], sizes = [8, 1536], strides = [1, 1]} : vector<8x1920xf32> to vector<8x1536xf32>
    %26 = vector.extract_strided_slice %1 {offsets = [0, 312], sizes = [8, 1536], strides = [1, 1]} : vector<8x1920xf32> to vector<8x1536xf32>
    %27 = vector.extract_strided_slice %1 {offsets = [0, 313], sizes = [8, 1536], strides = [1, 1]} : vector<8x1920xf32> to vector<8x1536xf32>
    %28 = vector.extract_strided_slice %1 {offsets = [0, 314], sizes = [8, 1536], strides = [1, 1]} : vector<8x1920xf32> to vector<8x1536xf32>
    %29 = tpu.concatenate %2, %3, %4, %5, %6, %7, %8, %9, %10, %11, %12, %13, %14, %15, %16, %17 in 0 : vector<8x1536xf32>, vector<8x1536xf32>, vector<8x1536xf32>, vector<8x1536xf32>, vector<8x1536xf32>, vector<8x1536xf32>, vector<8x1536xf32>, vector<8x1536xf32>, vector<8x1536xf32>, vector<8x1536xf32>, vector<8x1536xf32>, vector<8x1536xf32>, vector<8x1536xf32>, vector<8x1536xf32>, vector<8x1536xf32>, vector<8x1536xf32> -> vector<128x1536xf32>
    %30 = tpu.concatenate %18, %19, %20, %21, %22, %23, %24, %25, %26, %27, %28 in 0 : vector<8x1536xf32>, vector<8x1536xf32>, vector<8x1536xf32>, vector<8x1536xf32>, vector<8x1536xf32>, vector<8x1536xf32>, vector<8x1536xf32>, vector<8x1536xf32>, vector<8x1536xf32>, vector<8x1536xf32>, vector<8x1536xf32> -> vector<88x1536xf32>
    %31 = tpu.concatenate %29, %30 in 0 : vector<128x1536xf32>, vector<88x1536xf32> -> vector<216x1536xf32>
    %32 = arith.truncf %31 : vector<216x1536xf32> to vector<216x1536xbf16>
    %c0_2 = arith.constant 0 : index
    %c0_3 = arith.constant 0 : index
    %33 = vector.load %arg2[%c0_2, %c0_3] : memref<8x216xbf16, #tpu.memory_space<vmem>>, vector<8x216xbf16>
    %cst = arith.constant dense<0.000000e+00> : vector<8x1536xf32>
    %34 = tpu.matmul %33, %32, %cst {dimension_numbers = #tpu.dot_dimension_numbers<[1], [0], [0], [1], [0, 0, 1, 1], [], []>} : vector<8x216xbf16>, vector<216x1536xbf16>, vector<8x1536xf32> -> vector<8x1536xf32>
    %35 = arith.truncf %34 : vector<8x1536xf32> to vector<8x1536xbf16>
    %c0_4 = arith.constant 0 : index
    %c0_5 = arith.constant 0 : index
    %c0_6 = arith.constant 0 : index
    %36 = vector.load %arg4[%c0_4, %c0_5, %c0_6] : memref<1x8x1536xbf16, #tpu.memory_space<vmem>>, vector<1x8x1536xbf16>
    %37 = vector.shape_cast %36 : vector<1x8x1536xbf16> to vector<8x1536xbf16>
    %38 = vector.shape_cast %35 : vector<8x1536xbf16> to vector<1x8x1536xbf16>
    tpu.vector_store %arg4[%c0_4, %c0_5, %c0_6], %38 {strides = array<i32>} : memref<1x8x1536xbf16, #tpu.memory_space<vmem>>, vector<1x8x1536xbf16>,
    %c0_7 = arith.constant 0 : index
    %c0_8 = arith.constant 0 : index
    %39 = vector.load %arg3[%c0_7, %c0_8] : memref<1x1536xf32, #tpu.memory_space<vmem>>, vector<1x1536xf32>
    %40 = vector.broadcast %39 : vector<1x1536xf32> to vector<8x1536xf32>
    %41 = arith.mulf %34, %40 : vector<8x1536xf32>
    %cst_9 = arith.constant dense<0.000000e+00> : vector<8xf32>
    %42 = vector.multi_reduction <add>, %41, %cst_9 [1] : vector<8x1536xf32> to vector<8xf32>
    %43 = vector.shape_cast %42 : vector<8xf32> to vector<8x1xf32>
    %c0_10 = arith.constant 0 : index
    %c0_11 = arith.constant 0 : index
    %c0_12 = arith.constant 0 : index
    %44 = vector.load %arg5[%c0_10, %c0_11, %c0_12] : memref<1x8x1xf32, #tpu.memory_space<vmem>>, vector<1x8x1xf32>
    %45 = vector.shape_cast %44 : vector<1x8x1xf32> to vector<8x1xf32>
    %46 = vector.shape_cast %43 : vector<8x1xf32> to vector<1x8x1xf32>
    tpu.vector_store %arg5[%c0_10, %c0_11, %c0_12], %46 {strides = array<i32>} : memref<1x8x1xf32, #tpu.memory_space<vmem>>, vector<1x8x1xf32>,
    %47 = arith.mulf %41, %41 : vector<8x1536xf32>
    %cst_13 = arith.constant dense<0.000000e+00> : vector<8xf32>
    %48 = vector.multi_reduction <add>, %47, %cst_13 [1] : vector<8x1536xf32> to vector<8xf32>
    %49 = vector.shape_cast %48 : vector<8xf32> to vector<8x1xf32>
    %c0_14 = arith.constant 0 : index
    %c0_15 = arith.constant 0 : index
    %c0_16 = arith.constant 0 : index
    %50 = vector.load %arg6[%c0_14, %c0_15, %c0_16] : memref<1x8x1xf32, #tpu.memory_space<vmem>>, vector<1x8x1xf32>
    %51 = vector.shape_cast %50 : vector<1x8x1xf32> to vector<8x1xf32>
    %52 = vector.shape_cast %49 : vector<8x1xf32> to vector<1x8x1xf32>
    tpu.vector_store %arg6[%c0_14, %c0_15, %c0_16], %52 {strides = array<i32>} : memref<1x8x1xf32, #tpu.memory_space<vmem>>, vector<1x8x1xf32>,
    return
  }
  func.func @transform_0(%arg0: i32) -> (i32, i32, i32) {
    %c0_i32 = arith.constant 0 : i32
    %c0_i32_0 = arith.constant 0 : i32
    %c0_i32_1 = arith.constant 0 : i32
    return %arg0, %c0_i32, %c0_i32_0 : i32, i32, i32
  }
  func.func @transform_1(%arg0: i32) -> (i32, i32) {
    %c0_i32 = arith.constant 0 : i32
    %c0_i32_0 = arith.constant 0 : i32
    %c0_i32_1 = arith.constant 0 : i32
    return %c0_i32, %c0_i32_0 : i32, i32
  }
  func.func @transform_2(%arg0: i32) -> (i32, i32) {
    %c0_i32 = arith.constant 0 : i32
    %c0_i32_0 = arith.constant 0 : i32
    %c0_i32_1 = arith.constant 0 : i32
    return %c0_i32, %c0_i32_0 : i32, i32
  }
  func.func @transform_3(%arg0: i32) -> (i32, i32, i32) {
    %c0_i32 = arith.constant 0 : i32
    %c0_i32_0 = arith.constant 0 : i32
    %c0_i32_1 = arith.constant 0 : i32
    return %arg0, %c0_i32, %c0_i32_0 : i32, i32, i32
  }
  func.func @transform_4(%arg0: i32) -> (i32, i32, i32) {
    %c0_i32 = arith.constant 0 : i32
    %c0_i32_0 = arith.constant 0 : i32
    %c0_i32_1 = arith.constant 0 : i32
    return %arg0, %c0_i32, %c0_i32_0 : i32, i32, i32
  }
  func.func @transform_5(%arg0: i32) -> (i32, i32, i32) {
    %c0_i32 = arith.constant 0 : i32
    %c0_i32_0 = arith.constant 0 : i32
    %c0_i32_1 = arith.constant 0 : i32
    return %arg0, %c0_i32, %c0_i32_0 : i32, i32, i32
  }
}

module attributes {stable_mosaic.version = 11 : i64} {
  func.func @_conv2_kernel(%arg0: i32, %arg1: memref<1x8x1536xbf16, #tpu.memory_space<vmem>>, %arg2: memref<8x1xf32, #tpu.memory_space<vmem>>, %arg3: memref<8x1xf32, #tpu.memory_space<vmem>>, %arg4: memref<8x216xbf16, #tpu.memory_space<vmem>>, %arg5: memref<1x1152xf32, #tpu.memory_space<vmem>>, %arg6: memref<1x8x1152xf32, #tpu.memory_space<vmem>>, %arg7: memref<1x8x1xf32, #tpu.memory_space<vmem>>, %arg8: memref<1x8x1xf32, #tpu.memory_space<vmem>>) attributes {dimension_semantics = [#tpu.dimension_semantics<parallel>], iteration_bounds = array<i64: 2>, scalar_prefetch = 0 : i64, scratch_operands = 0 : i64, tpu.core_type = #tpu.core_type<tc>, window_params = [{transform_indices = @transform_0, window_bounds = array<i64: 1, 8, 1536>}, {pipeline_mode = #tpu.pipeline_mode<synchronous>, transform_indices = @transform_1, window_bounds = array<i64: 8, 1>}, {pipeline_mode = #tpu.pipeline_mode<synchronous>, transform_indices = @transform_2, window_bounds = array<i64: 8, 1>}, {pipeline_mode = #tpu.pipeline_mode<synchronous>, transform_indices = @transform_3, window_bounds = array<i64: 8, 216>}, {pipeline_mode = #tpu.pipeline_mode<synchronous>, transform_indices = @transform_4, window_bounds = array<i64: 1, 1152>}, {transform_indices = @transform_5, window_bounds = array<i64: 1, 8, 1152>}, {transform_indices = @transform_6, window_bounds = array<i64: 1, 8, 1>}, {transform_indices = @transform_7, window_bounds = array<i64: 1, 8, 1>}]} {
    %c0 = arith.constant 0 : index
    %c0_0 = arith.constant 0 : index
    %c0_1 = arith.constant 0 : index
    %0 = vector.load %arg1[%c0, %c0_0, %c0_1] : memref<1x8x1536xbf16, #tpu.memory_space<vmem>>, vector<1x8x1536xbf16>
    %1 = vector.shape_cast %0 : vector<1x8x1536xbf16> to vector<8x1536xbf16>
    %2 = arith.extf %1 : vector<8x1536xbf16> to vector<8x1536xf32>
    %c0_2 = arith.constant 0 : index
    %c0_3 = arith.constant 0 : index
    %3 = vector.load %arg2[%c0_2, %c0_3] : memref<8x1xf32, #tpu.memory_space<vmem>>, vector<8x1xf32>
    %4 = vector.broadcast %3 : vector<8x1xf32> to vector<8x1536xf32>
    %5 = arith.mulf %2, %4 : vector<8x1536xf32>
    %c0_4 = arith.constant 0 : index
    %c0_5 = arith.constant 0 : index
    %6 = vector.load %arg3[%c0_4, %c0_5] : memref<8x1xf32, #tpu.memory_space<vmem>>, vector<8x1xf32>
    %7 = vector.broadcast %6 : vector<8x1xf32> to vector<8x1536xf32>
    %8 = arith.addf %5, %7 : vector<8x1536xf32>
    %cst = arith.constant 0.000000e+00 : f32
    %9 = vector.broadcast %cst : f32 to vector<8x1536xf32>
    %10 = arith.maximumf %8, %9 : vector<8x1536xf32>
    %11 = vector.extract_strided_slice %10 {offsets = [0, 0], sizes = [8, 1152], strides = [1, 1]} : vector<8x1536xf32> to vector<8x1152xf32>
    %12 = vector.extract_strided_slice %10 {offsets = [0, 1], sizes = [8, 1152], strides = [1, 1]} : vector<8x1536xf32> to vector<8x1152xf32>
    %13 = vector.extract_strided_slice %10 {offsets = [0, 2], sizes = [8, 1152], strides = [1, 1]} : vector<8x1536xf32> to vector<8x1152xf32>
    %14 = vector.extract_strided_slice %10 {offsets = [0, 12], sizes = [8, 1152], strides = [1, 1]} : vector<8x1536xf32> to vector<8x1152xf32>
    %15 = vector.extract_strided_slice %10 {offsets = [0, 13], sizes = [8, 1152], strides = [1, 1]} : vector<8x1536xf32> to vector<8x1152xf32>
    %16 = vector.extract_strided_slice %10 {offsets = [0, 14], sizes = [8, 1152], strides = [1, 1]} : vector<8x1536xf32> to vector<8x1152xf32>
    %17 = vector.extract_strided_slice %10 {offsets = [0, 24], sizes = [8, 1152], strides = [1, 1]} : vector<8x1536xf32> to vector<8x1152xf32>
    %18 = vector.extract_strided_slice %10 {offsets = [0, 25], sizes = [8, 1152], strides = [1, 1]} : vector<8x1536xf32> to vector<8x1152xf32>
    %19 = vector.extract_strided_slice %10 {offsets = [0, 26], sizes = [8, 1152], strides = [1, 1]} : vector<8x1536xf32> to vector<8x1152xf32>
    %20 = vector.extract_strided_slice %10 {offsets = [0, 144], sizes = [8, 1152], strides = [1, 1]} : vector<8x1536xf32> to vector<8x1152xf32>
    %21 = vector.extract_strided_slice %10 {offsets = [0, 145], sizes = [8, 1152], strides = [1, 1]} : vector<8x1536xf32> to vector<8x1152xf32>
    %22 = vector.extract_strided_slice %10 {offsets = [0, 146], sizes = [8, 1152], strides = [1, 1]} : vector<8x1536xf32> to vector<8x1152xf32>
    %23 = vector.extract_strided_slice %10 {offsets = [0, 156], sizes = [8, 1152], strides = [1, 1]} : vector<8x1536xf32> to vector<8x1152xf32>
    %24 = vector.extract_strided_slice %10 {offsets = [0, 157], sizes = [8, 1152], strides = [1, 1]} : vector<8x1536xf32> to vector<8x1152xf32>
    %25 = vector.extract_strided_slice %10 {offsets = [0, 158], sizes = [8, 1152], strides = [1, 1]} : vector<8x1536xf32> to vector<8x1152xf32>
    %26 = vector.extract_strided_slice %10 {offsets = [0, 168], sizes = [8, 1152], strides = [1, 1]} : vector<8x1536xf32> to vector<8x1152xf32>
    %27 = vector.extract_strided_slice %10 {offsets = [0, 169], sizes = [8, 1152], strides = [1, 1]} : vector<8x1536xf32> to vector<8x1152xf32>
    %28 = vector.extract_strided_slice %10 {offsets = [0, 170], sizes = [8, 1152], strides = [1, 1]} : vector<8x1536xf32> to vector<8x1152xf32>
    %29 = vector.extract_strided_slice %10 {offsets = [0, 288], sizes = [8, 1152], strides = [1, 1]} : vector<8x1536xf32> to vector<8x1152xf32>
    %30 = vector.extract_strided_slice %10 {offsets = [0, 289], sizes = [8, 1152], strides = [1, 1]} : vector<8x1536xf32> to vector<8x1152xf32>
    %31 = vector.extract_strided_slice %10 {offsets = [0, 290], sizes = [8, 1152], strides = [1, 1]} : vector<8x1536xf32> to vector<8x1152xf32>
    %32 = vector.extract_strided_slice %10 {offsets = [0, 300], sizes = [8, 1152], strides = [1, 1]} : vector<8x1536xf32> to vector<8x1152xf32>
    %33 = vector.extract_strided_slice %10 {offsets = [0, 301], sizes = [8, 1152], strides = [1, 1]} : vector<8x1536xf32> to vector<8x1152xf32>
    %34 = vector.extract_strided_slice %10 {offsets = [0, 302], sizes = [8, 1152], strides = [1, 1]} : vector<8x1536xf32> to vector<8x1152xf32>
    %35 = vector.extract_strided_slice %10 {offsets = [0, 312], sizes = [8, 1152], strides = [1, 1]} : vector<8x1536xf32> to vector<8x1152xf32>
    %36 = vector.extract_strided_slice %10 {offsets = [0, 313], sizes = [8, 1152], strides = [1, 1]} : vector<8x1536xf32> to vector<8x1152xf32>
    %37 = vector.extract_strided_slice %10 {offsets = [0, 314], sizes = [8, 1152], strides = [1, 1]} : vector<8x1536xf32> to vector<8x1152xf32>
    %38 = tpu.concatenate %11, %12, %13, %14, %15, %16, %17, %18, %19, %20, %21, %22, %23, %24, %25, %26 in 0 : vector<8x1152xf32>, vector<8x1152xf32>, vector<8x1152xf32>, vector<8x1152xf32>, vector<8x1152xf32>, vector<8x1152xf32>, vector<8x1152xf32>, vector<8x1152xf32>, vector<8x1152xf32>, vector<8x1152xf32>, vector<8x1152xf32>, vector<8x1152xf32>, vector<8x1152xf32>, vector<8x1152xf32>, vector<8x1152xf32>, vector<8x1152xf32> -> vector<128x1152xf32>
    %39 = tpu.concatenate %27, %28, %29, %30, %31, %32, %33, %34, %35, %36, %37 in 0 : vector<8x1152xf32>, vector<8x1152xf32>, vector<8x1152xf32>, vector<8x1152xf32>, vector<8x1152xf32>, vector<8x1152xf32>, vector<8x1152xf32>, vector<8x1152xf32>, vector<8x1152xf32>, vector<8x1152xf32>, vector<8x1152xf32> -> vector<88x1152xf32>
    %40 = tpu.concatenate %38, %39 in 0 : vector<128x1152xf32>, vector<88x1152xf32> -> vector<216x1152xf32>
    %41 = arith.truncf %40 : vector<216x1152xf32> to vector<216x1152xbf16>
    %c0_6 = arith.constant 0 : index
    %c0_7 = arith.constant 0 : index
    %42 = vector.load %arg4[%c0_6, %c0_7] : memref<8x216xbf16, #tpu.memory_space<vmem>>, vector<8x216xbf16>
    %cst_8 = arith.constant dense<0.000000e+00> : vector<8x1152xf32>
    %43 = tpu.matmul %42, %41, %cst_8 {dimension_numbers = #tpu.dot_dimension_numbers<[1], [0], [0], [1], [0, 0, 1, 1], [], []>} : vector<8x216xbf16>, vector<216x1152xbf16>, vector<8x1152xf32> -> vector<8x1152xf32>
    %c0_9 = arith.constant 0 : index
    %c0_10 = arith.constant 0 : index
    %c0_11 = arith.constant 0 : index
    %44 = vector.load %arg6[%c0_9, %c0_10, %c0_11] : memref<1x8x1152xf32, #tpu.memory_space<vmem>>, vector<1x8x1152xf32>
    %45 = vector.shape_cast %44 : vector<1x8x1152xf32> to vector<8x1152xf32>
    %46 = vector.shape_cast %43 : vector<8x1152xf32> to vector<1x8x1152xf32>
    tpu.vector_store %arg6[%c0_9, %c0_10, %c0_11], %46 {strides = array<i32>} : memref<1x8x1152xf32, #tpu.memory_space<vmem>>, vector<1x8x1152xf32>,
    %c0_12 = arith.constant 0 : index
    %c0_13 = arith.constant 0 : index
    %47 = vector.load %arg5[%c0_12, %c0_13] : memref<1x1152xf32, #tpu.memory_space<vmem>>, vector<1x1152xf32>
    %48 = vector.broadcast %47 : vector<1x1152xf32> to vector<8x1152xf32>
    %49 = arith.mulf %43, %48 : vector<8x1152xf32>
    %cst_14 = arith.constant dense<0.000000e+00> : vector<8xf32>
    %50 = vector.multi_reduction <add>, %49, %cst_14 [1] : vector<8x1152xf32> to vector<8xf32>
    %51 = vector.shape_cast %50 : vector<8xf32> to vector<8x1xf32>
    %c0_15 = arith.constant 0 : index
    %c0_16 = arith.constant 0 : index
    %c0_17 = arith.constant 0 : index
    %52 = vector.load %arg7[%c0_15, %c0_16, %c0_17] : memref<1x8x1xf32, #tpu.memory_space<vmem>>, vector<1x8x1xf32>
    %53 = vector.shape_cast %52 : vector<1x8x1xf32> to vector<8x1xf32>
    %54 = vector.shape_cast %51 : vector<8x1xf32> to vector<1x8x1xf32>
    tpu.vector_store %arg7[%c0_15, %c0_16, %c0_17], %54 {strides = array<i32>} : memref<1x8x1xf32, #tpu.memory_space<vmem>>, vector<1x8x1xf32>,
    %55 = arith.mulf %49, %49 : vector<8x1152xf32>
    %cst_18 = arith.constant dense<0.000000e+00> : vector<8xf32>
    %56 = vector.multi_reduction <add>, %55, %cst_18 [1] : vector<8x1152xf32> to vector<8xf32>
    %57 = vector.shape_cast %56 : vector<8xf32> to vector<8x1xf32>
    %c0_19 = arith.constant 0 : index
    %c0_20 = arith.constant 0 : index
    %c0_21 = arith.constant 0 : index
    %58 = vector.load %arg8[%c0_19, %c0_20, %c0_21] : memref<1x8x1xf32, #tpu.memory_space<vmem>>, vector<1x8x1xf32>
    %59 = vector.shape_cast %58 : vector<1x8x1xf32> to vector<8x1xf32>
    %60 = vector.shape_cast %57 : vector<8x1xf32> to vector<1x8x1xf32>
    tpu.vector_store %arg8[%c0_19, %c0_20, %c0_21], %60 {strides = array<i32>} : memref<1x8x1xf32, #tpu.memory_space<vmem>>, vector<1x8x1xf32>,
    return
  }
  func.func @transform_0(%arg0: i32) -> (i32, i32, i32) {
    %c0_i32 = arith.constant 0 : i32
    %c0_i32_0 = arith.constant 0 : i32
    %c0_i32_1 = arith.constant 0 : i32
    return %arg0, %c0_i32, %c0_i32_0 : i32, i32, i32
  }
  func.func @transform_1(%arg0: i32) -> (i32, i32) {
    %c0_i32 = arith.constant 0 : i32
    %c0_i32_0 = arith.constant 0 : i32
    %c0_i32_1 = arith.constant 0 : i32
    return %c0_i32, %c0_i32_0 : i32, i32
  }
  func.func @transform_2(%arg0: i32) -> (i32, i32) {
    %c0_i32 = arith.constant 0 : i32
    %c0_i32_0 = arith.constant 0 : i32
    %c0_i32_1 = arith.constant 0 : i32
    return %c0_i32, %c0_i32_0 : i32, i32
  }
  func.func @transform_3(%arg0: i32) -> (i32, i32) {
    %c0_i32 = arith.constant 0 : i32
    %c0_i32_0 = arith.constant 0 : i32
    %c0_i32_1 = arith.constant 0 : i32
    return %c0_i32, %c0_i32_0 : i32, i32
  }
  func.func @transform_4(%arg0: i32) -> (i32, i32) {
    %c0_i32 = arith.constant 0 : i32
    %c0_i32_0 = arith.constant 0 : i32
    %c0_i32_1 = arith.constant 0 : i32
    return %c0_i32, %c0_i32_0 : i32, i32
  }
  func.func @transform_5(%arg0: i32) -> (i32, i32, i32) {
    %c0_i32 = arith.constant 0 : i32
    %c0_i32_0 = arith.constant 0 : i32
    %c0_i32_1 = arith.constant 0 : i32
    return %arg0, %c0_i32, %c0_i32_0 : i32, i32, i32
  }
  func.func @transform_6(%arg0: i32) -> (i32, i32, i32) {
    %c0_i32 = arith.constant 0 : i32
    %c0_i32_0 = arith.constant 0 : i32
    %c0_i32_1 = arith.constant 0 : i32
    return %arg0, %c0_i32, %c0_i32_0 : i32, i32, i32
  }
  func.func @transform_7(%arg0: i32) -> (i32, i32, i32) {
    %c0_i32 = arith.constant 0 : i32
    %c0_i32_0 = arith.constant 0 : i32
    %c0_i32_1 = arith.constant 0 : i32
    return %arg0, %c0_i32, %c0_i32_0 : i32, i32, i32
  }
}

module attributes {stable_mosaic.version = 11 : i64} {
  func.func @_bn_add_relu_kernel(%arg0: i32, %arg1: memref<1x8x1152xf32, #tpu.memory_space<vmem>>, %arg2: memref<8x1xf32, #tpu.memory_space<vmem>>, %arg3: memref<8x1xf32, #tpu.memory_space<vmem>>, %arg4: memref<1x8x1152xf32, #tpu.memory_space<vmem>>, %arg5: memref<1x8x1152xf32, #tpu.memory_space<vmem>>) attributes {dimension_semantics = [#tpu.dimension_semantics<parallel>], iteration_bounds = array<i64: 2>, scalar_prefetch = 0 : i64, scratch_operands = 0 : i64, tpu.core_type = #tpu.core_type<tc>, window_params = [{transform_indices = @transform_0, window_bounds = array<i64: 1, 8, 1152>}, {pipeline_mode = #tpu.pipeline_mode<synchronous>, transform_indices = @transform_1, window_bounds = array<i64: 8, 1>}, {pipeline_mode = #tpu.pipeline_mode<synchronous>, transform_indices = @transform_2, window_bounds = array<i64: 8, 1>}, {transform_indices = @transform_3, window_bounds = array<i64: 1, 8, 1152>}, {transform_indices = @transform_4, window_bounds = array<i64: 1, 8, 1152>}]} {
    %c0 = arith.constant 0 : index
    %c0_0 = arith.constant 0 : index
    %c0_1 = arith.constant 0 : index
    %0 = vector.load %arg1[%c0, %c0_0, %c0_1] : memref<1x8x1152xf32, #tpu.memory_space<vmem>>, vector<1x8x1152xf32>
    %1 = vector.shape_cast %0 : vector<1x8x1152xf32> to vector<8x1152xf32>
    %c0_2 = arith.constant 0 : index
    %c0_3 = arith.constant 0 : index
    %2 = vector.load %arg2[%c0_2, %c0_3] : memref<8x1xf32, #tpu.memory_space<vmem>>, vector<8x1xf32>
    %3 = vector.broadcast %2 : vector<8x1xf32> to vector<8x1152xf32>
    %4 = arith.mulf %1, %3 : vector<8x1152xf32>
    %c0_4 = arith.constant 0 : index
    %c0_5 = arith.constant 0 : index
    %5 = vector.load %arg3[%c0_4, %c0_5] : memref<8x1xf32, #tpu.memory_space<vmem>>, vector<8x1xf32>
    %6 = vector.broadcast %5 : vector<8x1xf32> to vector<8x1152xf32>
    %7 = arith.addf %4, %6 : vector<8x1152xf32>
    %c0_6 = arith.constant 0 : index
    %c0_7 = arith.constant 0 : index
    %c0_8 = arith.constant 0 : index
    %8 = vector.load %arg4[%c0_6, %c0_7, %c0_8] : memref<1x8x1152xf32, #tpu.memory_space<vmem>>, vector<1x8x1152xf32>
    %9 = vector.shape_cast %8 : vector<1x8x1152xf32> to vector<8x1152xf32>
    %10 = arith.addf %7, %9 : vector<8x1152xf32>
    %cst = arith.constant 0.000000e+00 : f32
    %11 = vector.broadcast %cst : f32 to vector<8x1152xf32>
    %12 = arith.maximumf %10, %11 : vector<8x1152xf32>
    %c0_9 = arith.constant 0 : index
    %c0_10 = arith.constant 0 : index
    %c0_11 = arith.constant 0 : index
    %13 = vector.load %arg5[%c0_9, %c0_10, %c0_11] : memref<1x8x1152xf32, #tpu.memory_space<vmem>>, vector<1x8x1152xf32>
    %14 = vector.shape_cast %13 : vector<1x8x1152xf32> to vector<8x1152xf32>
    %15 = vector.shape_cast %12 : vector<8x1152xf32> to vector<1x8x1152xf32>
    tpu.vector_store %arg5[%c0_9, %c0_10, %c0_11], %15 {strides = array<i32>} : memref<1x8x1152xf32, #tpu.memory_space<vmem>>, vector<1x8x1152xf32>,
    return
  }
  func.func @transform_0(%arg0: i32) -> (i32, i32, i32) {
    %c0_i32 = arith.constant 0 : i32
    %c0_i32_0 = arith.constant 0 : i32
    %c0_i32_1 = arith.constant 0 : i32
    return %arg0, %c0_i32, %c0_i32_0 : i32, i32, i32
  }
  func.func @transform_1(%arg0: i32) -> (i32, i32) {
    %c0_i32 = arith.constant 0 : i32
    %c0_i32_0 = arith.constant 0 : i32
    %c0_i32_1 = arith.constant 0 : i32
    return %c0_i32, %c0_i32_0 : i32, i32
  }
  func.func @transform_2(%arg0: i32) -> (i32, i32) {
    %c0_i32 = arith.constant 0 : i32
    %c0_i32_0 = arith.constant 0 : i32
    %c0_i32_1 = arith.constant 0 : i32
    return %c0_i32, %c0_i32_0 : i32, i32
  }
  func.func @transform_3(%arg0: i32) -> (i32, i32, i32) {
    %c0_i32 = arith.constant 0 : i32
    %c0_i32_0 = arith.constant 0 : i32
    %c0_i32_1 = arith.constant 0 : i32
    return %arg0, %c0_i32, %c0_i32_0 : i32, i32, i32
  }
  func.func @transform_4(%arg0: i32) -> (i32, i32, i32) {
    %c0_i32 = arith.constant 0 : i32
    %c0_i32_0 = arith.constant 0 : i32
    %c0_i32_1 = arith.constant 0 : i32
    return %arg0, %c0_i32, %c0_i32_0 : i32, i32, i32
  }
}

</mosaic_0001>

<bundles_post_ra>
// kernel: res_block_forward.3
= control target key start
LH: loop header
LB: loop body
LE: loop exit
PB: predicated region body
PF: predicated region fallthrough
CT: control target
= control target key end

     0   :  { %s3808_s18 = smov 0   ;;  %s6622_s0 = inlined_call_operand.vmem [shape: f32[2,8,1920], index: 0, kind: input, shape index: {}]   ;;  %s6623_s1 = inlined_call_operand.vmem [shape: bf16[8,216], index: 1, kind: input, shape index: {}]   ;;  %s6624_s2 = inlined_call_operand.vmem [shape: f32[1,1536], index: 2, kind: input, shape index: {}]   ;;  %s6625_s3 = inlined_call_operand.vmem [shape: bf16[2,8,1536], index: 3, kind: output, shape index: {0}]   ;;  %s6626_s4 = inlined_call_operand.vmem [shape: f32[2,8,1], index: 4, kind: output, shape index: {1}]   ;;  %s6627_s5 = inlined_call_operand.vmem [shape: f32[2,8,1], index: 5, kind: output, shape index: {2}]  }
   0x1 LB: > { %s2624_s19 = sadd.s32 4294967295, %s3753_s18   ;;  %p2628_p0 = scmp.ge.s32.totalorder %s3753_s18, 1  ;;  %s3753_s18 = sphi %s3808_s18, %s16_s18  }
   0x2   : > { %p192_p1 = scmp.lt.s32.totalorder %s3753_s18, 3 }
   0x4   : > { %p193_p2 = pnand %p2628_p0, %p192_p1 }
   0x6   : > { %196 = sbr.rel (%p193_p2) target bundleno = 1100 (0x44c), region = 32 }
   0xb   : > { %p228_p3 = scmp.lt.s32.totalorder %s2624_s19, 1  ;;  %s3755_s24 = smov 127   ;;  %vm6810_vm0 = vcmask 1039360   ;;  %vm6807_vm1 = vcmask 1031168   ;;  %vm6808_vm2 = vcmask 949248   ;;  %vm6811_vm3 = vcmask 941056  }
   0xc   : > { %s3756_s25 = smov 126   ;;  %s3757_s26 = smov 116   ;;  %vm505_vm4 = vcmask 932864   ;;  %vm556_vm5 = vcmask 850944   ;;  %vm607_vm6 = vcmask 842752   ;;  %vm658_vm7 = vcmask 834560  }
   0xd   : > { %s7440_s19 = smov (!%p228_p3, %s2624_s19), 1  ;;  %s3758_s27 = smov 115   ;;  %vm710_vm8 = vcmask 916480   ;;  %vm6796_vm9 = vcmask 908288   ;;  %vm812_vm10 = vcmask 900096   ;;  %vm863_vm11 = vcmask 818176  }
   0xe   : > { %s2661_s20 = smul.u32 120, %s7440_s19  ;;  %s3759_s28 = smov 114   ;;  %vm914_vm12 = vcmask 809984   ;;  %vm6804_vm13 = vcmask 924672   ;;  %vm1227_vm14 = vcmask 1014784   ;;  %vm1266_vm15 = vcmask 1006592  }
   0xf   : > { %s3760_s29 = smov 104   ;;  %s3761_s30 = smov 103  }
  0x10   : > { %s3822_s23 = scalar_lea.vmem %s6622_s0, %s2661_s20  ;;  %s3762_s6 = smov 102  }
  0x11   : > { %v3825_v0 = vld [vmem:[%s3822_s23 + $0x20] sm:$0xff]  ;;  %v3828_v1 = vld [vmem:[%s3822_s23 + $0x28] sm:$0xff]  ;;  %v3839_v5 = vld [vmem:[%s3822_s23 + $0x30] sm:$0xff]  ;;  %s3763_s7 = smov 112   ;;  %s3764_s8 = smov 111  }
  0x12   : > { %v247_v2 = vld [vmem:[%s3822_s23] sm:$0xff]  ;;  %v3833_v3 = vpack.i.bf16 %v3828_v1, %v3825_v0  ;;  %v3836_v4 = vld [vmem:[%s3822_s23 + $0x8] sm:$0xff]  ;;  %v3842_v6 = vld [vmem:[%s3822_s23 + $0x38] sm:$0xff]  ;;  %v3960_v24 = vpack.i.bf16 %v3839_v5, %v3828_v1  ;;  %s3765_s9 = smov 110   ;;  %s3766_s10 = smov 100  }
  0x13   : > { %v3845_v7 = vpack.i.bf16 %v3836_v4, %v247_v2  ;;  %v3848_v8 = vld [vmem:[%s3822_s23 + $0x10] sm:$0xff]  ;;  %v3851_v9 = vld [vmem:[%s3822_s23 + $0x18] sm:$0xff]  ;;  %v3856_v10 = vpack.i.bf16 %v3842_v6, %v3839_v5  ;;  %v3870_v14 = vld [vmem:[%s3822_s23 + $0x40] sm:$0xff]  ;;  %s3767_s11 = smov 99   ;;  %s3768_s12 = smov 98  }
  0x14   : > { %2705 = vrot.lane.b32.xlu1 %v3833_v3, %s3755_s24  ;;  %v3861_v11 = vpack.i.bf16 %v3851_v9, %v3848_v8  ;;  %v3864_v12 = vld [vmem:[%s3822_s23 + $0x50] sm:$0xff]  ;;  %v3867_v13 = vld [vmem:[%s3822_s23 + $0x58] sm:$0xff]  ;;  %v3873_v15 = vld [vmem:[%s3822_s23 + $0x48] sm:$0xff]  ;;  %v3945_v21 = vpack.i.bf16 %v3825_v0, %v3851_v9  ;;  %v3950_v22 = vpack.i.bf16 %v3848_v8, %v3836_v4  ;;  %v3955_v23 = vpack.i.bf16 %v3870_v14, %v3842_v6  ;;  %s3769_s13 = smov 113   ;;  %s3770_s14 = smov 124  }
  0x15   : > { %2695 = vrot.lane.b32.xlu0 %v3845_v7, %s3755_s24  ;;  %v3878_v16 = vpack.i.bf16 %v3867_v13, %v3864_v12  ;;  %v3883_v17 = vpack.i.bf16 %v3873_v15, %v3870_v14  ;;  %v3886_v18 = vld [vmem:[%s3822_s23 + $0x60] sm:$0xff]  ;;  %v3889_v19 = vld [vmem:[%s3822_s23 + $0x68] sm:$0xff]  ;;  %v3974_v28 = vpack.i.bf16 %v3864_v12, %v3873_v15  ;;  %v261_v30 = vld [vmem:[%s3822_s23 + $0x70] sm:$0xff]  ;;  %s3771_s15 = smov 123   ;;  %s3772_s16 = smov 7  }
  0x16   : > { %v2724_v20 = vpack.i.bf16 %v3889_v19, %v3886_v18  ;;  %v3969_v27 = vpack.i.bf16 %v3886_v18, %v3867_v13  ;;  %v2969_v35 = vpack.i.bf16 %v261_v30, %v3889_v19  ;;  %s3773_s17 = smov 125   ;;  %s3774_s20 = smov 9  }
  0x17   : > { %s3775_s21 = smov 8   ;;  %s3776_s22 = smov 88  }
  0x18   : > { %2710 = vrot.lane.b32.xlu1 %v3856_v10, %s3755_s24 }
  0x19   : > { %2700 = vrot.lane.b32.xlu0 %v3861_v11, %s3755_s24 }
  0x1c   : > { %2720 = vrot.lane.b32.xlu1 %v3878_v16, %s3755_s24 }
  0x1d   : > { %2715 = vrot.lane.b32.xlu0 %v3883_v17, %s3755_s24 }
  0x20   : > { %2730 = vrot.lane.b32.xlu1 %v3845_v7, %s3756_s25 }
  0x21   : > { %2725 = vrot.lane.b32.xlu0 %v2724_v20, %s3755_s24  ;;  %s3777_s24 = smov 87  }
  0x24   : > { %2740 = vrot.lane.b32.xlu1 %v3833_v3, %s3756_s25 }
  0x25   : > { %2735 = vrot.lane.b32.xlu0 %v3861_v11, %s3756_s25 }
  0x28   : > { %2750 = vrot.lane.b32.xlu1 %v3883_v17, %s3756_s25 }
  0x29   : > { %2745 = vrot.lane.b32.xlu0 %v3856_v10, %s3756_s25 }
  0x2c   : > { %350 = vrot.lane.b32.xlu1 %v3886_v18, %s3756_s25 }
  0x2d   : > { %2755 = vrot.lane.b32.xlu0 %v3878_v16, %s3756_s25 }
  0x30   : > { %2765 = vrot.lane.b32.xlu1 %v3861_v11, %s3757_s26 }
  0x31   : > { %2760 = vrot.lane.b32.xlu0 %v3845_v7, %s3757_s26 }
  0x34   : > { %2775 = vrot.lane.b32.xlu1 %v3856_v10, %s3757_s26 }
  0x35   : > { %2770 = vrot.lane.b32.xlu0 %v3833_v3, %s3757_s26 }
  0x38   : > { %2785 = vrot.lane.b32.xlu1 %v3878_v16, %s3757_s26 }
  0x39   : > { %2780 = vrot.lane.b32.xlu0 %v3883_v17, %s3757_s26 }
  0x3c   : > { %2790 = vrot.lane.b32.xlu1 %v3845_v7, %s3758_s27 }
  0x3d   : > { %401 = vrot.lane.b32.xlu0 %v3886_v18, %s3757_s26 }
  0x40   : > { %2800 = vrot.lane.b32.xlu1 %v3833_v3, %s3758_s27 }
  0x41   : > { %2795 = vrot.lane.b32.xlu0 %v3861_v11, %s3758_s27 }
  0x44   : > { %2810 = vrot.lane.b32.xlu1 %v3883_v17, %s3758_s27 }
  0x45   : > { %2805 = vrot.lane.b32.xlu0 %v3856_v10, %s3758_s27 }
  0x48   : > { %452 = vrot.lane.b32.xlu1 %v3886_v18, %s3758_s27 }
  0x49   : > { %2815 = vrot.lane.b32.xlu0 %v3878_v16, %s3758_s27 }
  0x4c   : > { %2825 = vrot.lane.b32.xlu1 %v3861_v11, %s3759_s28 }
  0x4d   : > { %2820 = vrot.lane.b32.xlu0 %v3845_v7, %s3759_s28 }
  0x50   : > { %2835 = vrot.lane.b32.xlu1 %v3856_v10, %s3759_s28 }
  0x51   : > { %2830 = vrot.lane.b32.xlu0 %v3833_v3, %s3759_s28 }
  0x54   : > { %2845 = vrot.lane.b32.xlu1 %v3878_v16, %s3759_s28 }
  0x55   : > { %2840 = vrot.lane.b32.xlu0 %v3883_v17, %s3759_s28 }
  0x58   : > { %2850 = vrot.lane.b32.xlu1 %v3845_v7, %s3760_s29 }
  0x59   : > { %503 = vrot.lane.b32.xlu0 %v3886_v18, %s3759_s28  ;;  %s2662_s28 = smul.u32 48, %s7440_s19 }
  0x5c   : > { %2860 = vrot.lane.b32.xlu1 %v3833_v3, %s3760_s29 }
  0x5d   : > { %2855 = vrot.lane.b32.xlu0 %v3861_v11, %s3760_s29 }
  0x60   : > { %2870 = vrot.lane.b32.xlu1 %v3883_v17, %s3760_s29 }
  0x61   : > { %2865 = vrot.lane.b32.xlu0 %v3856_v10, %s3760_s29 }
  0x64   : > { %554 = vrot.lane.b32.xlu1 %v3886_v18, %s3760_s29 }
  0x65   : > { %2875 = vrot.lane.b32.xlu0 %v3878_v16, %s3760_s29 }
  0x68   : > { %2885 = vrot.lane.b32.xlu1 %v3861_v11, %s3761_s30 }
  0x69   : > { %2880 = vrot.lane.b32.xlu0 %v3845_v7, %s3761_s30 }
  0x6c   : > { %2895 = vrot.lane.b32.xlu1 %v3856_v10, %s3761_s30 }
  0x6d   : > { %2890 = vrot.lane.b32.xlu0 %v3833_v3, %s3761_s30 }
  0x70   : > { %2905 = vrot.lane.b32.xlu1 %v3878_v16, %s3761_s30 }
  0x71   : > { %2900 = vrot.lane.b32.xlu0 %v3883_v17, %s3761_s30 }
  0x74   : > { %2910 = vrot.lane.b32.xlu1 %v3845_v7, %s3762_s6 }
  0x75   : > { %605 = vrot.lane.b32.xlu0 %v3886_v18, %s3761_s30 }
  0x78   : > { %2920 = vrot.lane.b32.xlu1 %v3833_v3, %s3762_s6 }
  0x79   : > { %2915 = vrot.lane.b32.xlu0 %v3861_v11, %s3762_s6 }
  0x7c   : > { %2930 = vrot.lane.b32.xlu1 %v3883_v17, %s3762_s6 }
  0x7d   : > { %2925 = vrot.lane.b32.xlu0 %v3856_v10, %s3762_s6 }
  0x80   : > { %656 = vrot.lane.b32.xlu1 %v3886_v18, %s3762_s6 }
  0x81   : > { %2935 = vrot.lane.b32.xlu0 %v3878_v16, %s3762_s6  ;;  %s6552_s6 = scalar_lea.vmem %s6625_s3, %s2662_s28 }
  0x84   : > { %2945 = vrot.lane.b32.xlu1 %v3945_v21, %s3763_s7 }
  0x85   : > { %2940 = vrot.lane.b32.xlu0 %v3950_v22, %s3763_s7 }
  0x86   : > { %v3962_v25 = vpop.permute.xlu1 %2705 }
  0x87   : > { %6886 = vst [vmem:[#allocation2_spill] sm:$0xff] %v3962_v25  ;;  %v3964_v26 = vpop.permute.xlu0 %2695 }
  0x88   : > { %6887 = vst [vmem:[#allocation3_spill] sm:$0xff] %v3964_v26  ;;  %2955 = vrot.lane.b32.xlu1 %v3955_v23, %s3763_s7 }
  0x89   : > { %2950 = vrot.lane.b32.xlu0 %v3960_v24, %s3763_s7 }
  0x8a   : > { %v3976_v29 = vpop.permute.xlu1 %2710 }
  0x8b   : > { %6888 = vst [vmem:[#allocation4_spill] sm:$0xff] %v3976_v29  ;;  %v6630_v31 = vunpack.i.h.bf16 %v3976_v29  ;;  %v6631_v32 = vunpack.i.l.bf16 %v3976_v29  ;;  %v3981_v33 = vpop.permute.xlu0 %2700 }
  0x8c   : > { %6889 = vst [vmem:[#allocation5_spill] sm:$0xff] %v3981_v33  ;;  %2965 = vrot.lane.b32.xlu1 %v3969_v27, %s3763_s7 }
  0x8d   : > { %v3989_v34 = vsel %vm6810_vm0, %v6631_v32, %v6630_v31  ;;  %2960 = vrot.lane.b32.xlu0 %v3974_v28, %s3763_s7 }
  0x8e   : > { %6890 = vst [vmem:[#allocation6_spill] sm:$0xff] %v3989_v34  ;;  %v3993_v36 = vpop.permute.xlu1 %2720 }
  0x8f   : > { %6891 = vst [vmem:[#allocation7_spill] sm:$0xff] %v3993_v36  ;;  %v6628_v37 = vunpack.i.h.bf16 %v3993_v36  ;;  %v6629_v38 = vunpack.i.l.bf16 %v3993_v36  ;;  %v3997_v39 = vpop.permute.xlu0 %2715 }
  0x90   : > { %6892 = vst [vmem:[#allocation8_spill] sm:$0xff] %v3997_v39  ;;  %2975 = vrot.lane.b32.xlu1 %v3950_v22, %s3764_s8 }
  0x91   : > { %v4005_v40 = vsel %vm6810_vm0, %v6629_v38, %v6628_v37  ;;  %2970 = vrot.lane.b32.xlu0 %v2969_v35, %s3763_s7 }
  0x92   : > { %6893 = vst [vmem:[#allocation9_spill] sm:$0xff] %v4005_v40  ;;  %v4007_v41 = vpop.permute.xlu1 %2730 }
  0x93   : > { %6894 = vst [vmem:[#allocation10_spill] sm:$0xff] %v4007_v41  ;;  %v4009_v42 = vpop.permute.xlu0 %2725 }
  0x94   : > { %6895 = vst [vmem:[#allocation11_spill] sm:$0xff] %v4009_v42  ;;  %2985 = vrot.lane.b32.xlu1 %v3960_v24, %s3764_s8 }
  0x95   : > { %2980 = vrot.lane.b32.xlu0 %v3945_v21, %s3764_s8 }
  0x96   : > { %v4013_v43 = vpop.permute.xlu1 %2740 }
  0x97   : > { %6896 = vst [vmem:[#allocation12_spill] sm:$0xff] %v4013_v43  ;;  %v2743_v44 = vunpack.i.h.bf16 %v4013_v43  ;;  %v6632_v45 = vunpack.i.l.bf16 %v4013_v43  ;;  %v4017_v46 = vpop.permute.xlu0 %2735 }
  0x98   : > { %6897 = vst [vmem:[#allocation13_spill] sm:$0xff] %v4017_v46  ;;  %2995 = vrot.lane.b32.xlu1 %v3974_v28, %s3764_s8 }
  0x99   : > { %v4023_v47 = vsel %vm6807_vm1, %v6632_v45, %v2743_v44  ;;  %2990 = vrot.lane.b32.xlu0 %v3955_v23, %s3764_s8 }
  0x9a   : > { %6898 = vst [vmem:[#allocation14_spill] sm:$0xff] %v4023_v47  ;;  %v2751_v48 = vpop.permute.xlu1 %2750 }
  0x9b   : > { %v2753_v49 = vunpack.i.h.bf16 %v2751_v48  ;;  %v2752_v50 = vunpack.i.l.bf16 %v2751_v48  ;;  %v2746_v51 = vpop.permute.xlu0 %2745 }
  0x9c   : > { %3005 = vrot.lane.b32.xlu1 %v2969_v35, %s3764_s8  ;;  %v2748_v57 = vunpack.i.h.bf16 %v2746_v51  ;;  %v2747_v58 = vunpack.i.l.bf16 %v2746_v51 }
  0x9d   : > { %v4027_v52 = vsel %vm6807_vm1, %v2752_v50, %v2753_v49  ;;  %3000 = vrot.lane.b32.xlu0 %v3969_v27, %s3764_s8 }
  0x9e   : > { %6899 = vst [vmem:[#allocation15_spill] sm:$0xff] %v4027_v52  ;;  %v351_v53 = vpop.permute.xlu1 %350  ;;  %v4049_v5 = vsel %vm6807_vm1, %v2747_v58, %v2748_v57  ;;  %v4062_v14 = vsel %vm6807_vm1, %v2743_v44, %v2747_v58 }
  0x9f   : > { %v2756_v54 = vpop.permute.xlu0 %2755  ;;  %6903 = vst [vmem:[#allocation19_spill] sm:$0xff] %v4049_v5  ;;  %6906 = vst [vmem:[#allocation22_spill] sm:$0xff] %v4062_v14 }
  0xa0   : > { %3015 = vrot.lane.b32.xlu1 %v3945_v21, %s3765_s9  ;;  %v2758_v6 = vunpack.i.h.bf16 %v2756_v54  ;;  %v2757_v7 = vunpack.i.l.bf16 %v2756_v54 }
  0xa1   : > { %3010 = vrot.lane.b32.xlu0 %v3950_v22, %s3765_s9 }
  0xa2   : > { %v4034_v55 = vpop.permute.xlu1 %2765  ;;  %v4076_v54 = vsel %vm6807_vm1, %v2757_v7, %v2758_v6 }
  0xa3   : > { %6900 = vst [vmem:[#allocation16_spill] sm:$0xff] %v4034_v55  ;;  %v4036_v56 = vpop.permute.xlu0 %2760  ;;  %6908 = vst [vmem:[#allocation24_spill] sm:$0xff] %v4076_v54 }
  0xa4   : > { %6901 = vst [vmem:[#allocation17_spill] sm:$0xff] %v4036_v56  ;;  %3025 = vrot.lane.b32.xlu1 %v3955_v23, %s3765_s9 }
  0xa5   : > { %3020 = vrot.lane.b32.xlu0 %v3960_v24, %s3765_s9 }
  0xa6   : > { %v2776_v59 = vpop.permute.xlu1 %2775 }
  0xa7   : > { %v2778_v60 = vunpack.i.h.bf16 %v2776_v59  ;;  %v2777_v61 = vunpack.i.l.bf16 %v2776_v59  ;;  %v4042_v62 = vpop.permute.xlu0 %2770  ;;  %v4084_v59 = vsel %vm6807_vm1, %v2748_v57, %v2752_v50  ;;  %v4107_v57 = vsel %vm6807_vm1, %v2758_v6, %v351_v53 }
  0xa8   : > { %6902 = vst [vmem:[#allocation18_spill] sm:$0xff] %v4042_v62  ;;  %v2773_v63 = vunpack.i.h.bf16 %v4042_v62  ;;  %v6633_v2 = vunpack.i.l.bf16 %v4042_v62  ;;  %3035 = vrot.lane.b32.xlu1 %v3969_v27, %s3765_s9  ;;  %6910 = vst [vmem:[#allocation26_spill] sm:$0xff] %v4084_v59 }
  0xa9   : > { %v4052_v9 = vsel %vm6808_vm2, %v2777_v61, %v2778_v60  ;;  %3030 = vrot.lane.b32.xlu0 %v3974_v28, %s3765_s9  ;;  %6916 = vst [vmem:[#allocation32_spill] sm:$0xff] %v4107_v57 }
  0xaa   : > { %6904 = vst [vmem:[#allocation20_spill] sm:$0xff] %v4052_v9  ;;  %v4059_v12 = vsel %vm6808_vm2, %v6633_v2, %v2773_v63  ;;  %v2786_v13 = vpop.permute.xlu1 %2785  ;;  %v4065_v15 = vsel %vm6808_vm2, %v2773_v63, %v2777_v61  ;;  %v4087_v61 = vsel %vm6807_vm1, %v2753_v49, %v2757_v7  ;;  %vm965_vm1 = vcmask 801792  }
  0xab   : > { %6905 = vst [vmem:[#allocation21_spill] sm:$0xff] %v4059_v12  ;;  %6907 = vst [vmem:[#allocation23_spill] sm:$0xff] %v4065_v15  ;;  %v2788_v18 = vunpack.i.h.bf16 %v2786_v13  ;;  %v2787_v20 = vunpack.i.l.bf16 %v2786_v13  ;;  %v2781_v30 = vpop.permute.xlu0 %2780 }
  0xac   : > { %v2783_v48 = vunpack.i.h.bf16 %v2781_v30  ;;  %v2782_v51 = vunpack.i.l.bf16 %v2781_v30  ;;  %3040 = vrot.lane.b32.xlu1 %v3950_v22, %s3766_s10  ;;  %6911 = vst [vmem:[#allocation27_spill] sm:$0xff] %v4087_v61 }
  0xad   : > { %v4079_v58 = vsel %vm6808_vm2, %v2787_v20, %v2788_v18  ;;  %810 = vrot.lane.b32.xlu0 %v3889_v19, %s3765_s9  ;;  %s2631_s9 = sshll.u32 %s7440_s19, 3 }
  0xae   : > { %6909 = vst [vmem:[#allocation25_spill] sm:$0xff] %v4079_v58  ;;  %v4090_v63 = vsel %vm6808_vm2, %v2782_v51, %v2783_v48  ;;  %v4092_v13 = vpop.permute.xlu1 %2790  ;;  %v4095_v30 = vsel %vm6808_vm2, %v2778_v60, %v2782_v51  ;;  %v4098_v37 = vsel %vm6808_vm2, %v2783_v48, %v2787_v20 }
  0xaf   : > { %6912 = vst [vmem:[#allocation28_spill] sm:$0xff] %v4090_v63  ;;  %6913 = vst [vmem:[#allocation29_spill] sm:$0xff] %v4092_v13  ;;  %v402_v44 = vpop.permute.xlu0 %401 }
  0xb0   : > { %6914 = vst [vmem:[#allocation30_spill] sm:$0xff] %v4095_v30  ;;  %6915 = vst [vmem:[#allocation31_spill] sm:$0xff] %v4098_v37  ;;  %v4110_v7 = vsel %vm6808_vm2, %v2788_v18, %v402_v44  ;;  %3050 = vrot.lane.b32.xlu1 %v3960_v24, %s3766_s10 }
  0xb1   : > { %6917 = vst [vmem:[#allocation33_spill] sm:$0xff] %v4110_v7  ;;  %3045 = vrot.lane.b32.xlu0 %v3945_v21, %s3766_s10 }
  0xb2   : > { %v4120_v48 = vpop.permute.xlu1 %2800 }
  0xb3   : > { %6918 = vst [vmem:[#allocation34_spill] sm:$0xff] %v4120_v48  ;;  %v2803_v53 = vunpack.i.h.bf16 %v4120_v48  ;;  %v6634_v6 = vunpack.i.l.bf16 %v4120_v48  ;;  %v4124_v18 = vpop.permute.xlu0 %2795 }
  0xb4   : > { %6919 = vst [vmem:[#allocation35_spill] sm:$0xff] %v4124_v18  ;;  %3060 = vrot.lane.b32.xlu1 %v3974_v28, %s3766_s10 }
  0xb5   : > { %v4131_v51 = vsel %vm6811_vm3, %v6634_v6, %v2803_v53  ;;  %3055 = vrot.lane.b32.xlu0 %v3955_v23, %s3766_s10 }
  0xb6   : > { %6920 = vst [vmem:[#allocation36_spill] sm:$0xff] %v4131_v51  ;;  %v2811_v44 = vpop.permute.xlu1 %2810 }
  0xb7   : > { %v2813_v16 = vunpack.i.h.bf16 %v2811_v44  ;;  %v2812_v20 = vunpack.i.l.bf16 %v2811_v44  ;;  %v2806_v60 = vpop.permute.xlu0 %2805 }
  0xb8   : > { %861 = vrot.lane.b32.xlu1 %v3889_v19, %s3766_s10  ;;  %v2808_v31 = vunpack.i.h.bf16 %v2806_v60  ;;  %v2807_v32 = vunpack.i.l.bf16 %v2806_v60 }
  0xb9   : > { %v4138_v49 = vsel %vm6811_vm3, %v2812_v20, %v2813_v16  ;;  %3065 = vrot.lane.b32.xlu0 %v3969_v27, %s3766_s10 }
  0xba   : > { %6921 = vst [vmem:[#allocation37_spill] sm:$0xff] %v4138_v49  ;;  %v453_v50 = vpop.permute.xlu1 %452  ;;  %v4161_v7 = vsel %vm6811_vm3, %v2807_v32, %v2808_v31  ;;  %v4179_v5 = vsel %vm6811_vm3, %v2803_v53, %v2807_v32  ;;  %v4196_v32 = vsel %vm6811_vm3, %v2808_v31, %v2812_v20 }
  0xbb   : > { %v2816_v35 = vpop.permute.xlu0 %2815  ;;  %6924 = vst [vmem:[#allocation40_spill] sm:$0xff] %v4161_v7  ;;  %6928 = vst [vmem:[#allocation44_spill] sm:$0xff] %v4179_v5 }
  0xbc   : > { %3075 = vrot.lane.b32.xlu1 %v3945_v21, %s3767_s11  ;;  %v2818_v60 = vunpack.i.h.bf16 %v2816_v35  ;;  %v2817_v52 = vunpack.i.l.bf16 %v2816_v35  ;;  %6931 = vst [vmem:[#allocation47_spill] sm:$0xff] %v4196_v32 }
  0xbd   : > { %3070 = vrot.lane.b32.xlu0 %v3950_v22, %s3767_s11 }
  0xbe   : > { %v4146_v44 = vpop.permute.xlu1 %2825  ;;  %v4214_v31 = vsel %vm6811_vm3, %v2813_v16, %v2817_v52  ;;  %v4217_v20 = vsel %vm6811_vm3, %v2818_v60, %v453_v50 }
  0xbf   : > { %6922 = vst [vmem:[#allocation38_spill] sm:$0xff] %v4146_v44  ;;  %v4148_v38 = vpop.permute.xlu0 %2820  ;;  %6935 = vst [vmem:[#allocation51_spill] sm:$0xff] %v4214_v31  ;;  %v7036_v46 = vunpack.i.l.bf16 %v4146_v44 }
  0xc0   : > { %3085 = vrot.lane.b32.xlu1 %v3955_v23, %s3767_s11  ;;  %6936 = vst [vmem:[#allocation52_spill] sm:$0xff] %v4217_v20 }
  0xc1   : > { %3080 = vrot.lane.b32.xlu0 %v3960_v24, %s3767_s11 }
  0xc2   : > { %v2836_v45 = vpop.permute.xlu1 %2835 }
  0xc3   : > { %v2838_v2 = vunpack.i.h.bf16 %v2836_v45  ;;  %v2837_v6 = vunpack.i.l.bf16 %v2836_v45  ;;  %v4154_v54 = vpop.permute.xlu0 %2830 }
  0xc4   : > { %6923 = vst [vmem:[#allocation39_spill] sm:$0xff] %v4154_v54  ;;  %v2833_v58 = vunpack.i.h.bf16 %v4154_v54  ;;  %v6648_v57 = vunpack.i.l.bf16 %v4154_v54  ;;  %3095 = vrot.lane.b32.xlu1 %v3969_v27, %s3767_s11 }
  0xc5   : > { %v4164_v63 = vsel %vm505_vm4, %v2837_v6, %v2838_v2  ;;  %3090 = vrot.lane.b32.xlu0 %v3974_v28, %s3767_s11 }
  0xc6   : > { %6925 = vst [vmem:[#allocation41_spill] sm:$0xff] %v4164_v63  ;;  %v4171_v45 = vsel %vm505_vm4, %v6648_v57, %v2833_v58  ;;  %v2846_v61 = vpop.permute.xlu1 %2845  ;;  %v4174_v37 = vsel %vm505_vm4, %v2833_v58, %v2837_v6  ;;  %v4188_v6 = vsel %vm6811_vm3, %v2817_v52, %v2818_v60 }
  0xc7   : > { %6926 = vst [vmem:[#allocation42_spill] sm:$0xff] %v4171_v45  ;;  %6927 = vst [vmem:[#allocation43_spill] sm:$0xff] %v4174_v37  ;;  %v2848_v40 = vunpack.i.h.bf16 %v2846_v61  ;;  %v2847_v35 = vunpack.i.l.bf16 %v2846_v61  ;;  %v2841_v42 = vpop.permute.xlu0 %2840 }
  0xc8   : > { %v2843_v9 = vunpack.i.h.bf16 %v2841_v42  ;;  %v2842_v59 = vunpack.i.l.bf16 %v2841_v42  ;;  %3100 = vrot.lane.b32.xlu1 %v3950_v22, %s3768_s12  ;;  %6929 = vst [vmem:[#allocation45_spill] sm:$0xff] %v4188_v6 }
  0xc9   : > { %v4191_v61 = vsel %vm505_vm4, %v2847_v35, %v2848_v40  ;;  %912 = vrot.lane.b32.xlu0 %v3889_v19, %s3767_s11 }
  0xca   : > { %6930 = vst [vmem:[#allocation46_spill] sm:$0xff] %v4191_v61  ;;  %v4199_v22 = vsel %vm505_vm4, %v2842_v59, %v2843_v9  ;;  %v4201_v42 = vpop.permute.xlu1 %2850  ;;  %v4204_v53 = vsel %vm505_vm4, %v2838_v2, %v2842_v59  ;;  %v4207_v27 = vsel %vm505_vm4, %v2843_v9, %v2847_v35 }
  0xcb   : > { %6932 = vst [vmem:[#allocation48_spill] sm:$0xff] %v4199_v22  ;;  %6933 = vst [vmem:[#allocation49_spill] sm:$0xff] %v4204_v53  ;;  %v504_v57 = vpop.permute.xlu0 %503 }
  0xcc   : > { %6934 = vst [vmem:[#allocation50_spill] sm:$0xff] %v4207_v27  ;;  %v4220_v30 = vsel %vm505_vm4, %v2848_v40, %v504_v57  ;;  %3110 = vrot.lane.b32.xlu1 %v3960_v24, %s3768_s12  ;;  %v4242_v57 = vpack.i.bf16 %v3848_v8, %v3828_v1 }
  0xcd   : > { %6937 = vst [vmem:[#allocation53_spill] sm:$0xff] %v4220_v30  ;;  %3105 = vrot.lane.b32.xlu0 %v3945_v21, %s3768_s12 }
  0xce   : > { %v4232_v52 = vpop.permute.xlu1 %2860 }
  0xcf   : > { %6938 = vst [vmem:[#allocation54_spill] sm:$0xff] %v4232_v52  ;;  %v2863_v40 = vunpack.i.h.bf16 %v4232_v52  ;;  %v6650_v16 = vunpack.i.l.bf16 %v4232_v52  ;;  %v4236_v50 = vpop.permute.xlu0 %2855 }
  0xd0   : > { %3120 = vrot.lane.b32.xlu1 %v3974_v28, %s3768_s12 }
  0xd1   : > { %v4247_v60 = vsel %vm556_vm5, %v6650_v16, %v2863_v40  ;;  %3115 = vrot.lane.b32.xlu0 %v3955_v23, %s3768_s12 }
  0xd2   : > { %6939 = vst [vmem:[#allocation55_spill] sm:$0xff] %v4247_v60  ;;  %v2871_v35 = vpop.permute.xlu1 %2870 }
  0xd3   : > { %v2873_v58 = vunpack.i.h.bf16 %v2871_v35  ;;  %v2872_v59 = vunpack.i.l.bf16 %v2871_v35  ;;  %v2866_v9 = vpop.permute.xlu0 %2865 }
  0xd4   : > { %3130 = vrot.lane.b32.xlu1 %v4242_v57, %s3769_s13  ;;  %v2867_v2 = vunpack.i.l.bf16 %v2866_v9  ;;  %v2868_v16 = vunpack.i.h.bf16 %v2866_v9 }
  0xd5   : > { %v4254_v28 = vsel %vm556_vm5, %v2872_v59, %v2873_v58  ;;  %3125 = vrot.lane.b32.xlu0 %v3945_v21, %s3769_s13 }
  0xd6   : > { %6940 = vst [vmem:[#allocation56_spill] sm:$0xff] %v4254_v28  ;;  %v555_v1 = vpop.permute.xlu1 %554  ;;  %v4287_v7 = vsel %vm556_vm5, %v2863_v40, %v2867_v2 }
  0xd7   : > { %v2876_v8 = vpop.permute.xlu0 %2875  ;;  %6944 = vst [vmem:[#allocation60_spill] sm:$0xff] %v4287_v7 }
  0xd8   : > { %3140 = vrot.lane.b32.xlu1 %v4242_v57, %s3770_s14  ;;  %v2878_v22 = vunpack.i.h.bf16 %v2876_v8  ;;  %v2877_v31 = vunpack.i.l.bf16 %v2876_v8  ;;  %v4293_v8 = vsel %vm556_vm5, %v2867_v2, %v2868_v16 }
  0xd9   : > { %3135 = vrot.lane.b32.xlu0 %v3945_v21, %s3770_s14  ;;  %6946 = vst [vmem:[#allocation62_spill] sm:$0xff] %v4293_v8 }
  0xda   : > { %v4262_v23 = vpop.permute.xlu1 %2885 }
  0xdb   : > { %v4264_v35 = vpop.permute.xlu0 %2880 }
  0xdc   : > { %3150 = vrot.lane.b32.xlu1 %v4242_v57, %s3771_s15 }
  0xdd   : > { %3145 = vrot.lane.b32.xlu0 %v3945_v21, %s3771_s15 }
  0xde   : > { %v2896_v19 = vpop.permute.xlu1 %2895 }
  0xdf   : > { %v2898_v6 = vunpack.i.h.bf16 %v2896_v19  ;;  %v2897_v61 = vunpack.i.l.bf16 %v2896_v19  ;;  %v4270_v20 = vpop.permute.xlu0 %2890 }
  0xe0   : > { %6941 = vst [vmem:[#allocation57_spill] sm:$0xff] %v4270_v20  ;;  %v2893_v30 = vunpack.i.h.bf16 %v4270_v20  ;;  %v6667_v49 = vunpack.i.l.bf16 %v4270_v20  ;;  %3160 = vrot.lane.b32.xlu1 %v3861_v11, %s3772_s16 }
  0xe1   : > { %v4277_v27 = vsel %vm607_vm6, %v2897_v61, %v2898_v6  ;;  %3155 = vrot.lane.b32.xlu0 %v3856_v10, %s3769_s13 }
  0xe2   : > { %6942 = vst [vmem:[#allocation58_spill] sm:$0xff] %v4277_v27  ;;  %v4284_v19 = vsel %vm607_vm6, %v6667_v49, %v2893_v30  ;;  %v2906_v9 = vpop.permute.xlu1 %2905  ;;  %v4290_v63 = vsel %vm607_vm6, %v2893_v30, %v2897_v61  ;;  %v4304_v61 = vsel %vm556_vm5, %v2877_v31, %v2878_v22 }
  0xe3   : > { %6943 = vst [vmem:[#allocation59_spill] sm:$0xff] %v4284_v19  ;;  %6945 = vst [vmem:[#allocation61_spill] sm:$0xff] %v4290_v63  ;;  %v2908_v47 = vunpack.i.h.bf16 %v2906_v9  ;;  %v2907_v12 = vunpack.i.l.bf16 %v2906_v9  ;;  %v2901_v32 = vpop.permute.xlu0 %2900 }
  0xe4   : > { %v2903_v14 = vunpack.i.h.bf16 %v2901_v32  ;;  %v2902_v15 = vunpack.i.l.bf16 %v2901_v32  ;;  %3170 = vrot.lane.b32.xlu1 %v3945_v21, %s3773_s17  ;;  %6947 = vst [vmem:[#allocation63_spill] sm:$0xff] %v4304_v61  ;;  %v4312_v32 = vsel %vm556_vm5, %v2868_v16, %v2872_v59  ;;  %v4315_v21 = vsel %vm556_vm5, %v2873_v58, %v2877_v31 }
  0xe5   : > { %v4307_v2 = vsel %vm607_vm6, %v2907_v12, %v2908_v47  ;;  %3165 = vrot.lane.b32.xlu0 %v3833_v3, %s3772_s16  ;;  %6949 = vst [vmem:[#allocation65_spill] sm:$0xff] %v4312_v32  ;;  %6950 = vst [vmem:[#allocation66_spill] sm:$0xff] %v4315_v21  ;;  %v4335_v31 = vsel %vm556_vm5, %v2878_v22, %v555_v1 }
  0xe6   : > { %6948 = vst [vmem:[#allocation64_spill] sm:$0xff] %v4307_v2  ;;  %v4318_v9 = vsel %vm607_vm6, %v2902_v15, %v2903_v14  ;;  %v4320_v40 = vpop.permute.xlu1 %2910  ;;  %v4323_v30 = vsel %vm607_vm6, %v2898_v6, %v2902_v15  ;;  %v4326_v53 = vsel %vm607_vm6, %v2903_v14, %v2907_v12  ;;  %6954 = vst [vmem:[#allocation70_spill] sm:$0xff] %v4335_v31 }
  0xe7   : > { %6951 = vst [vmem:[#allocation67_spill] sm:$0xff] %v4318_v9  ;;  %6952 = vst [vmem:[#allocation68_spill] sm:$0xff] %v4323_v30  ;;  %v606_v8 = vpop.permute.xlu0 %605 }
  0xe8   : > { %6953 = vst [vmem:[#allocation69_spill] sm:$0xff] %v4326_v53  ;;  %v4338_v16 = vsel %vm607_vm6, %v2908_v47, %v606_v8  ;;  %3180 = vrot.lane.b32.xlu1 %v3856_v10, %s3770_s14 }
  0xe9   : > { %6955 = vst [vmem:[#allocation71_spill] sm:$0xff] %v4338_v16  ;;  %3175 = vrot.lane.b32.xlu0 %v4242_v57, %s3773_s17 }
  0xea   : > { %v4348_v15 = vpop.permute.xlu1 %2920 }
  0xeb   : > { %6956 = vst [vmem:[#allocation72_spill] sm:$0xff] %v4348_v15  ;;  %v6669_v6 = vunpack.i.h.bf16 %v4348_v15  ;;  %v6670_v22 = vunpack.i.l.bf16 %v4348_v15  ;;  %v4352_v47 = vpop.permute.xlu0 %2915 }
  0xec   : > { %3190 = vrot.lane.b32.xlu1 %v3861_v11, %s3774_s20 }
  0xed   : > { %v4361_v1 = vsel %vm658_vm7, %v6670_v22, %v6669_v6  ;;  %3185 = vrot.lane.b32.xlu0 %v3856_v10, %s3771_s15 }
  0xee   : > { %6957 = vst [vmem:[#allocation73_spill] sm:$0xff] %v4361_v1  ;;  %v4365_v57 = vpop.permute.xlu1 %2930 }
  0xef   : > { %6958 = vst [vmem:[#allocation74_spill] sm:$0xff] %v4365_v57  ;;  %v6671_v8 = vunpack.i.h.bf16 %v4365_v57  ;;  %v2932_v49 = vunpack.i.l.bf16 %v4365_v57  ;;  %v4369_v14 = vpop.permute.xlu0 %2925 }
  0xf0   : > { %6959 = vst [vmem:[#allocation75_spill] sm:$0xff] %v4369_v14  ;;  %3200 = vrot.lane.b32.xlu1 %v3861_v11, %s3775_s21 }
  0xf1   : > { %v4376_v12 = vsel %vm658_vm7, %v2932_v49, %v6671_v8  ;;  %3195 = vrot.lane.b32.xlu0 %v3833_v3, %s3774_s20 }
  0xf2   : > { %6960 = vst [vmem:[#allocation76_spill] sm:$0xff] %v4376_v12  ;;  %v657_v58 = vpop.permute.xlu1 %656 }
  0xf3   : > { %v4380_v59 = vpop.permute.xlu0 %2935 }
  0xf4   : > { %6961 = vst [vmem:[#allocation77_spill] sm:$0xff] %v4380_v59  ;;  %3210 = vrot.lane.b32.xlu1 %v3856_v10, %s3772_s16 }
  0xf5   : > { %3205 = vrot.lane.b32.xlu0 %v3833_v3, %s3775_s21  ;;  %v3234_v3 = vpack.i.bf16 %v3825_v0, %v3836_v4 }
  0xf6   : > { %v4386_v6 = vpop.permute.xlu1 %2945 }
  0xf7   : > { %v4388_v22 = vpop.permute.xlu0 %2940 }
  0xf8   : > { %3220 = vrot.lane.b32.xlu1 %v3856_v10, %s3774_s20 }
  0xf9   : > { %3215 = vrot.lane.b32.xlu0 %v3856_v10, %s3773_s17 }
  0xfa   : > { %v4394_v8 = vpop.permute.xlu1 %2955 }
  0xfb   : > { %6962 = vst [vmem:[#allocation78_spill] sm:$0xff] %v4394_v8  ;;  %v4396_v61 = vpop.permute.xlu0 %2950 }
  0xfc   : > { %v6680_v2 = vunpack.i.h.bf16 %v4396_v61  ;;  %v6681_v31 = vunpack.i.l.bf16 %v4396_v61  ;;  %3230 = vrot.lane.b32.xlu1 %v3861_v11, %s3776_s22  ;;  %v6984_v7 = vunpack.i.l.bf16 %v4396_v61 }
  0xfd   : > { %3225 = vrot.lane.b32.xlu0 %v3856_v10, %s3775_s21  ;;  %v6687_v10 = vunpack.i.h.bf16 %v4394_v8 }
  0xfe   : > { %v4412_v28 = vsel %vm710_vm8, %v6681_v31, %v6680_v2  ;;  %v4414_v9 = vpop.permute.xlu1 %2965 }
  0xff   : > { %6963 = vst [vmem:[#allocation79_spill] sm:$0xff] %v4412_v28  ;;  %6964 = vst [vmem:[#allocation80_spill] sm:$0xff] %v4414_v9  ;;  %v2968_v11 = vunpack.i.h.bf16 %v4414_v9  ;;  %v6682_v21 = vunpack.i.l.bf16 %v4414_v9  ;;  %v4418_v53 = vpop.permute.xlu0 %2960 }
 0x100   : > { %6965 = vst [vmem:[#allocation81_spill] sm:$0xff] %v4418_v53  ;;  %v6686_v0 = vunpack.i.l.bf16 %v4418_v53  ;;  %3240 = vrot.lane.b32.xlu1 %v3960_v24, %s3776_s22  ;;  %v6968_v24 = vunpack.i.h.bf16 %v4369_v14 }
 0x101   : > { %v4427_v4 = vsel %vm710_vm8, %v6682_v21, %v2968_v11  ;;  %3235 = vrot.lane.b32.xlu0 %v3234_v3, %s3776_s22 }
 0x102   : > { %6966 = vst [vmem:[#allocation82_spill] sm:$0xff] %v4427_v4  ;;  %v4436_v31 = vsel %vm710_vm8, %v6687_v10, %v6686_v0  ;;  %v2976_v16 = vpop.permute.xlu1 %2975  ;;  %v4441_v12 = vsel %vm658_vm7, %v6968_v24, %v2932_v49  ;;  %v6972_v49 = vunpack.i.h.bf16 %v4380_v59  ;;  %v3728_v4 = vld [vmem:[%s3822_s23 + $0x50] sm:$0xff] }
 0x103   : > { %6967 = vst [vmem:[#allocation83_spill] sm:$0xff] %v4436_v31  ;;  %6969 = vst [vmem:[#allocation84_spill] sm:$0xff] %v4441_v12  ;;  %v2978_v21 = vunpack.i.h.bf16 %v2976_v16  ;;  %v2977_v57 = vunpack.i.l.bf16 %v2976_v16  ;;  %v4443_v27 = vpop.permute.xlu0 %2970 }
 0x104   : > { %6970 = vst [vmem:[#allocation85_spill] sm:$0xff] %v4443_v27  ;;  %v6692_v2 = vunpack.i.l.bf16 %v4443_v27  ;;  %v4459_v16 = vsel %vm658_vm7, %v6972_v49, %v657_v58 }
 0x105   : > { %v4449_v51 = vsel %vm6796_vm9, %v2977_v57, %v2978_v21  ;;  %6973 = vst [vmem:[#allocation87_spill] sm:$0xff] %v4459_v16 }
 0x106   : > { %v4454_v0 = vsel %vm710_vm8, %v2968_v11, %v6692_v2  ;;  %v2986_v10 = vpop.permute.xlu1 %2985 }
 0x107   : > { %6971 = vst [vmem:[#allocation86_spill] sm:$0xff] %v4454_v0  ;;  %v2987_v24 = vunpack.i.l.bf16 %v2986_v10  ;;  %v2981_v45 = vpop.permute.xlu0 %2980  ;;  %v2988_v3 = vunpack.i.h.bf16 %v2986_v10 }
 0x108   : > { %v2983_v32 = vunpack.i.h.bf16 %v2981_v45  ;;  %v2982_v30 = vunpack.i.l.bf16 %v2981_v45 }
 0x109   : > { %v4508_v12 = vsel %vm6796_vm9, %v2987_v24, %v2988_v3 }
 0x10a   : > { %v4464_v57 = vsel %vm6796_vm9, %v2983_v32, %v2987_v24  ;;  %v4467_v5 = vsel %vm6796_vm9, %v2978_v21, %v2982_v30  ;;  %v4470_v11 = vsel %vm6796_vm9, %v2982_v30, %v2983_v32  ;;  %v4472_v2 = vpop.permute.xlu1 %2995  ;;  %6982 = vst [vmem:[#allocation96_spill] sm:$0xff] %v4508_v12 }
 0x10b   : > { %6974 = vst [vmem:[#allocation88_spill] sm:$0xff] %v4470_v11  ;;  %6975 = vst [vmem:[#allocation89_spill] sm:$0xff] %v4472_v2  ;;  %v6699_v58 = vunpack.i.h.bf16 %v4472_v2  ;;  %v6700_v49 = vunpack.i.l.bf16 %v4472_v2  ;;  %v4476_v59 = vpop.permute.xlu0 %2990  ;;  %v3244_v45 = vpack.i.bf16 %v4470_v11, %v4467_v5 }
 0x10c   : > { %6976 = vst [vmem:[#allocation90_spill] sm:$0xff] %v4476_v59  ;;  %v6702_v16 = vunpack.i.h.bf16 %v4476_v59  ;;  %v2992_v21 = vunpack.i.l.bf16 %v4476_v59 }
 0x10d   : > { %v4487_v30 = vsel %vm6796_vm9, %v6700_v49, %v6699_v58  ;;  %3245 = vrot.lane.b32.xlu0 %v3244_v45, %s3777_s24  ;;  %v6707_v49 = vunpack.i.h.bf16 %v4386_v6 }
 0x10e   : > { %6977 = vst [vmem:[#allocation91_spill] sm:$0xff] %v4487_v30  ;;  %v4491_v32 = vsel %vm6796_vm9, %v2988_v3, %v2992_v21  ;;  %v4496_v10 = vsel %vm6796_vm9, %v2992_v21, %v6702_v16  ;;  %v4498_v37 = vpop.permute.xlu1 %3005 }
 0x10f   : > { %6978 = vst [vmem:[#allocation92_spill] sm:$0xff] %v4491_v32  ;;  %6979 = vst [vmem:[#allocation93_spill] sm:$0xff] %v4496_v10  ;;  %v6705_v19 = vunpack.i.h.bf16 %v4498_v37  ;;  %v6706_v58 = vunpack.i.l.bf16 %v4498_v37  ;;  %v4504_v45 = vpop.permute.xlu0 %3000  ;;  %v4526_v3 = vsel %vm710_vm8, %v6707_v49, %v6984_v7  ;;  %v4548_v49 = vld [vmem:[%s3822_s23 + $0x48] sm:$0xff] }
 0x110   : > { %6980 = vst [vmem:[#allocation94_spill] sm:$0xff] %v4498_v37  ;;  %6981 = vst [vmem:[#allocation95_spill] sm:$0xff] %v4504_v45  ;;  %v6708_v21 = vunpack.i.h.bf16 %v4504_v45  ;;  %v6709_v16 = vunpack.i.l.bf16 %v4504_v45  ;;  %v3264_v7 = vpack.i.bf16 %v4508_v12, %v4526_v3  ;;  %v3729_v37 = vld [vmem:[%s3822_s23 + $0x58] sm:$0xff] }
 0x111   : > { %v4517_v60 = vsel %vm6796_vm9, %v6706_v58, %v6705_v19  ;;  %3255 = vrot.lane.b32.xlu0 %v3883_v17, %s3769_s13  ;;  %6985 = vst [vmem:[#allocation98_spill] sm:$0xff] %v4526_v3  ;;  %v4545_v58 = vld [vmem:[%s3822_s23 + $0x40] sm:$0xff]  ;;  %6988 = vst [vmem:[#allocation101_spill] sm:$0xff] %v4548_v49  ;;  %v4571_v14 = vpack.i.bf16 %v3729_v37, %v3728_v4 }
 0x112   : > { %6983 = vst [vmem:[#allocation97_spill] sm:$0xff] %v4517_v60  ;;  %v4533_v24 = vsel %vm6796_vm9, %v6709_v16, %v6708_v21  ;;  %v4535_v63 = vpop.permute.xlu1 %3015  ;;  %6987 = vst [vmem:[#allocation100_spill] sm:$0xff] %v4545_v58  ;;  %v4552_v21 = vpack.i.bf16 %v4548_v49, %v4545_v58  ;;  %vm1149_vm9 = vcmask 56320  }
 0x113   : > { %6986 = vst [vmem:[#allocation99_spill] sm:$0xff] %v4533_v24  ;;  %v4539_v17 = vpop.permute.xlu0 %3010 }
 0x115   : > { %3265 = vrot.lane.b32.xlu0 %v3264_v7, %s3777_s24 }
 0x116   : > { %v4554_v16 = vpop.permute.xlu1 %3025 }
 0x117   : > { %6989 = vst [vmem:[#allocation102_spill] sm:$0xff] %v4554_v16  ;;  %v6724_v19 = vunpack.i.h.bf16 %v4554_v16  ;;  %v3027_v27 = vunpack.i.l.bf16 %v4554_v16  ;;  %v4558_v0 = vpop.permute.xlu0 %3020 }
 0x118   : > { %v3023_v60 = vunpack.i.h.bf16 %v4558_v0  ;;  %v6729_v7 = vunpack.i.l.bf16 %v4558_v0 }
 0x119   : > { %v4565_v1 = vsel %vm812_vm10, %v3027_v27, %v6724_v19  ;;  %3275 = vrot.lane.b32.xlu0 %v4552_v21, %s3770_s14 }
 0x11a   : > { %6990 = vst [vmem:[#allocation103_spill] sm:$0xff] %v4565_v1  ;;  %v4576_v36 = vsel %vm812_vm10, %v6729_v7, %v3023_v60  ;;  %v4578_v34 = vpop.permute.xlu1 %3035  ;;  %v4581_v39 = vsel %vm812_vm10, %v3023_v60, %v3027_v27 }
 0x11b   : > { %6991 = vst [vmem:[#allocation104_spill] sm:$0xff] %v4576_v36  ;;  %6992 = vst [vmem:[#allocation105_spill] sm:$0xff] %v4578_v34  ;;  %v6731_v16 = vunpack.i.h.bf16 %v4578_v34  ;;  %v6732_v9 = vunpack.i.l.bf16 %v4578_v34  ;;  %v4587_v53 = vpop.permute.xlu0 %3030 }
 0x11c   : > { %6993 = vst [vmem:[#allocation106_spill] sm:$0xff] %v4581_v39  ;;  %6994 = vst [vmem:[#allocation107_spill] sm:$0xff] %v4587_v53  ;;  %v6737_v4 = vunpack.i.h.bf16 %v4587_v53  ;;  %v6738_v7 = vunpack.i.l.bf16 %v4587_v53 }
 0x11d   : > { %v4600_v60 = vsel %vm812_vm10, %v6732_v9, %v6731_v16  ;;  %3285 = vrot.lane.b32.xlu0 %v4571_v14, %s3769_s13 }
 0x11e   : > { %6995 = vst [vmem:[#allocation108_spill] sm:$0xff] %v4600_v60  ;;  %v4609_v19 = vsel %vm812_vm10, %v6738_v7, %v6737_v4  ;;  %v4611_v37 = vpop.permute.xlu1 %3040 }
 0x11f   : > { %6996 = vst [vmem:[#allocation109_spill] sm:$0xff] %v4609_v19  ;;  %v4615_v1 = vpop.permute.xlu0 %810 }
 0x120   : > { %6997 = vst [vmem:[#allocation110_spill] sm:$0xff] %v4615_v1 }
 0x122   : > { %v4619_v9 = vpop.permute.xlu1 %3050 }
 0x123   : > { %v3053_v34 = vunpack.i.h.bf16 %v4619_v9  ;;  %v6754_v12 = vunpack.i.l.bf16 %v4619_v9  ;;  %v4623_v36 = vpop.permute.xlu0 %3045 }
 0x125   : > { %v4628_v4 = vsel %vm863_vm11, %v6754_v12, %v3053_v34 }
 0x126   : > { %6998 = vst [vmem:[#allocation111_spill] sm:$0xff] %v4628_v4  ;;  %v3061_v27 = vpop.permute.xlu1 %3060 }
 0x127   : > { %v3063_v7 = vunpack.i.h.bf16 %v3061_v27  ;;  %v3062_v60 = vunpack.i.l.bf16 %v3061_v27  ;;  %v3056_v1 = vpop.permute.xlu0 %3055 }
 0x128   : > { %v3058_v31 = vunpack.i.h.bf16 %v3056_v1  ;;  %v3057_v30 = vunpack.i.l.bf16 %v3056_v1 }
 0x129   : > { %v4631_v16 = vsel %vm863_vm11, %v3062_v60, %v3063_v7 }
 0x12a   : > { %6999 = vst [vmem:[#allocation112_spill] sm:$0xff] %v4631_v16  ;;  %v862_v19 = vpop.permute.xlu1 %861  ;;  %v4642_v10 = vsel %vm863_vm11, %v3057_v30, %v3058_v31  ;;  %v4653_v62 = vsel %vm863_vm11, %v3053_v34, %v3057_v30  ;;  %v4671_v30 = vsel %vm863_vm11, %v3058_v31, %v3062_v60 }
 0x12b   : > { %v3066_v53 = vpop.permute.xlu0 %3065  ;;  %7000 = vst [vmem:[#allocation113_spill] sm:$0xff] %v4642_v10  ;;  %7003 = vst [vmem:[#allocation116_spill] sm:$0xff] %v4653_v62 }
 0x12c   : > { %v3068_v29 = vunpack.i.h.bf16 %v3066_v53  ;;  %v3067_v58 = vunpack.i.l.bf16 %v3066_v53  ;;  %7007 = vst [vmem:[#allocation120_spill] sm:$0xff] %v4671_v30 }
 0x12e   : > { %v4633_v39 = vpop.permute.xlu1 %3075  ;;  %v4665_v34 = vsel %vm863_vm11, %v3067_v58, %v3068_v29 }
 0x12f   : > { %v4635_v24 = vpop.permute.xlu0 %3070  ;;  %7005 = vst [vmem:[#allocation118_spill] sm:$0xff] %v4665_v34 }
 0x132   : > { %v3086_v49 = vpop.permute.xlu1 %3085 }
 0x133   : > { %v3088_v45 = vunpack.i.h.bf16 %v3086_v49  ;;  %v3087_v59 = vunpack.i.l.bf16 %v3086_v49  ;;  %v4637_v12 = vpop.permute.xlu0 %3080 }
 0x134   : > { %v3083_v27 = vunpack.i.h.bf16 %v4637_v12  ;;  %v6772_v2 = vunpack.i.l.bf16 %v4637_v12 }
 0x135   : > { %v4645_v43 = vsel %vm914_vm12, %v3087_v59, %v3088_v45 }
 0x136   : > { %7001 = vst [vmem:[#allocation114_spill] sm:$0xff] %v4645_v43  ;;  %v4650_v1 = vsel %vm914_vm12, %v6772_v2, %v3083_v27  ;;  %v3096_v49 = vpop.permute.xlu1 %3095  ;;  %v4656_v48 = vsel %vm914_vm12, %v3083_v27, %v3087_v59  ;;  %v4674_v27 = vsel %vm863_vm11, %v3063_v7, %v3067_v58  ;;  %v4694_v7 = vsel %vm863_vm11, %v3068_v29, %v862_v19 }
 0x137   : > { %7002 = vst [vmem:[#allocation115_spill] sm:$0xff] %v4650_v1  ;;  %7004 = vst [vmem:[#allocation117_spill] sm:$0xff] %v4656_v48  ;;  %v3098_v52 = vunpack.i.h.bf16 %v3096_v49  ;;  %v3097_v53 = vunpack.i.l.bf16 %v3096_v49  ;;  %v3091_v3 = vpop.permute.xlu0 %3090 }
 0x138   : > { %v3093_v15 = vunpack.i.h.bf16 %v3091_v3  ;;  %v3092_v20 = vunpack.i.l.bf16 %v3091_v3  ;;  %7008 = vst [vmem:[#allocation121_spill] sm:$0xff] %v4674_v27  ;;  %7012 = vst [vmem:[#allocation125_spill] sm:$0xff] %v4694_v7 }
 0x139   : > { %v4668_v59 = vsel %vm914_vm12, %v3097_v53, %v3098_v52 }
 0x13a   : > { %7006 = vst [vmem:[#allocation119_spill] sm:$0xff] %v4668_v59  ;;  %v4677_v49 = vsel %vm914_vm12, %v3092_v20, %v3093_v15  ;;  %v4679_v54 = vpop.permute.xlu1 %3100  ;;  %v4682_v3 = vsel %vm914_vm12, %v3088_v45, %v3092_v20  ;;  %v4685_v2 = vsel %vm914_vm12, %v3093_v15, %v3097_v53  ;;  %v2947_v20 = vunpack.i.l.bf16 %v4386_v6 }
 0x13b   : > { %7009 = vst [vmem:[#allocation122_spill] sm:$0xff] %v4677_v49  ;;  %7010 = vst [vmem:[#allocation123_spill] sm:$0xff] %v4682_v3  ;;  %v913_v10 = vpop.permute.xlu0 %912 }
 0x13c   : > { %7011 = vst [vmem:[#allocation124_spill] sm:$0xff] %v4685_v2  ;;  %v4697_v60 = vsel %vm914_vm12, %v3098_v52, %v913_v10 }
 0x13d   : > { %7013 = vst [vmem:[#allocation126_spill] sm:$0xff] %v4697_v60 }
 0x13e   : > { %v4703_v45 = vpop.permute.xlu1 %3110 }
 0x13f   : > { %v4705_v53 = vpop.permute.xlu0 %3105  ;;  %v7058_v44 = vunpack.i.h.bf16 %v4703_v45 }
 0x142   : > { %v4707_v11 = vpop.permute.xlu1 %3120 }
 0x143   : > { %7014 = vst [vmem:[#allocation127_spill] sm:$0xff] %v4707_v11  ;;  %v4709_v31 = vpop.permute.xlu0 %3115  ;;  %v2792_v11 = vunpack.i.l.bf16 %v4092_v13 }
 0x144   : > { %7015 = vst [vmem:[#allocation128_spill] sm:$0xff] %v4709_v31 }
 0x146   : > { %v4711_v58 = vpop.permute.xlu1 %3130 }
 0x147   : > { %v3126_v29 = vpop.permute.xlu0 %3125  ;;  %v6784_v52 = vunpack.i.l.bf16 %v4711_v58  ;;  %v3133_v60 = vunpack.i.h.bf16 %v4711_v58 }
 0x148   : > { %v3128_v19 = vunpack.i.h.bf16 %v3126_v29  ;;  %v3127_v10 = vunpack.i.l.bf16 %v3126_v29  ;;  %v7016_v29 = vunpack.i.h.bf16 %v4386_v6 }
 0x14a   : > { %v1307_v15 = vsel %vm6804_vm13, %v3127_v10, %v3128_v19  ;;  %v4716_v34 = vpop.permute.xlu1 %3140  ;;  %v1308_v16 = vsel %vm6804_vm13, %v3128_v19, %v6784_v52  ;;  %v4730_v27 = vsel %vm710_vm8, %v2947_v20, %v7016_v29  ;;  %v1306_v19 = vsel %vm6804_vm13, %v3133_v60, %v3127_v10 }
 0x14b   : > { %v4718_v59 = vpop.permute.xlu0 %3135  ;;  %v3249_v7 = vpack.i.bf16 %v1307_v15, %v4464_v57  ;;  %v6788_v49 = vunpack.i.l.bf16 %v4716_v34  ;;  %v3259_v30 = vpack.i.bf16 %v4730_v27, %v1308_v16  ;;  %v3269_v16 = vpack.i.bf16 %v1306_v19, %v4491_v32 }
 0x14c   : > { %v3138_v2 = vunpack.i.h.bf16 %v4718_v59  ;;  %v3143_v48 = vunpack.i.h.bf16 %v4716_v34 }
 0x14d   : > { %3250 = vrot.lane.b32.xlu1 %v3249_v7, %s3777_s24 }
 0x14e   : > { %v4733_v43 = vpop.permute.xlu1 %3150  ;;  %v1230_v7 = vsel %vm1227_vm14, %v3138_v2, %v6788_v49  ;;  %v3137_v49 = vunpack.i.l.bf16 %v4718_v59 }
 0x14f   : > { %v4735_v15 = vpop.permute.xlu0 %3145 }
 0x150   : > { %v3148_v6 = vunpack.i.h.bf16 %v4735_v15  ;;  %v3147_v29 = vunpack.i.l.bf16 %v4735_v15 }
 0x151   : > { %3260 = vrot.lane.b32.xlu1 %v3259_v30, %s3777_s24 }
 0x152   : > { %v1268_v52 = vsel %vm1266_vm15, %v3147_v29, %v3148_v6  ;;  %v4746_v3 = vpop.permute.xlu1 %3160 }
 0x153   : > { %v4749_v1 = vpop.permute.xlu0 %3155  ;;  %v3294_v60 = vpack.i.bf16 %v1268_v52, %v1230_v7 }
 0x154   : > { %7017 = vst [vmem:[#allocation129_spill] sm:$0xff] %v4749_v1  ;;  %v6791_v62 = vunpack.i.h.bf16 %v4749_v1  ;;  %v3157_v15 = vunpack.i.l.bf16 %v4749_v1 }
 0x155   : > { %3270 = vrot.lane.b32.xlu1 %v3269_v16, %s3777_s24  ;;  %3295 = vrot.lane.b32.xlu0 %v3294_v60, %s3777_s24  ;;  %v7018_v16 = vunpack.i.l.bf16 %v3962_v25  ;;  %v7019_v60 = vunpack.i.h.bf16 %v3981_v33 }
 0x156   : > { %v1310_v4 = vsel %vm6804_vm13, %v3157_v15, %v6791_v62  ;;  %v4762_v19 = vpop.permute.xlu1 %3170  ;;  %v1229_v62 = vsel %vm1227_vm14, %v3137_v49, %v3138_v2  ;;  %v7021_v2 = vunpack.i.h.bf16 %v4388_v22 }
 0x157   : > { %v4766_v7 = vpop.permute.xlu0 %3165  ;;  %v3304_v10 = vpack.i.bf16 %v4412_v28, %v1310_v4  ;;  %v4774_v30 = vsel %vm6810_vm0, %v7019_v60, %v7018_v16  ;;  %v3153_v28 = vunpack.i.h.bf16 %v4733_v43  ;;  %v7023_v16 = vunpack.i.l.bf16 %v4733_v43 }
 0x158   : > { %7020 = vst [vmem:[#allocation130_spill] sm:$0xff] %v4774_v30  ;;  %v4791_v32 = vsel %vm710_vm8, %v7021_v2, %v2947_v20  ;;  %v7024_v2 = vunpack.i.l.bf16 %v4711_v58  ;;  %v7032_v58 = vunpack.i.l.bf16 %v4746_v3  ;;  %vm1071_vm0 = vcmask 72704  }
 0x159   : > { %3280 = vrot.lane.b32.xlu1 %v4552_v21, %s3771_s15  ;;  %3305 = vrot.lane.b32.xlu0 %v3304_v10, %s3777_s24  ;;  %v3289_v4 = vpack.i.bf16 %v1229_v62, %v4791_v32  ;;  %v1269_v60 = vsel %vm1266_vm15, %v3148_v6, %v7023_v16  ;;  %v7025_v62 = vunpack.i.h.bf16 %v4092_v13  ;;  %v7027_v6 = vunpack.i.l.bf16 %v4034_v55 }
 0x15a   : > { %v4793_v52 = vpop.permute.xlu1 %3180  ;;  %v1309_v59 = vsel %vm6804_vm13, %v7024_v2, %v3157_v15  ;;  %v7028_v16 = vunpack.i.h.bf16 %v4036_v56  ;;  %v1267_v25 = vsel %vm1266_vm15, %v3153_v28, %v3147_v29  ;;  %v3173_v2 = vunpack.i.h.bf16 %v4762_v19 }
 0x15b   : > { %7022 = vst [vmem:[#allocation131_spill] sm:$0xff] %v4793_v52  ;;  %v4798_v10 = vpop.permute.xlu0 %3175  ;;  %v4815_v1 = vsel %vm6811_vm3, %v2792_v11, %v7025_v62  ;;  %v2852_v11 = vunpack.i.l.bf16 %v4201_v42  ;;  %v1228_v62 = vsel %vm1227_vm14, %v3143_v48, %v3137_v49  ;;  %vm1188_vm13 = vcmask 1022976  }
 0x15c   : > { %7026 = vst [vmem:[#allocation132_spill] sm:$0xff] %v4815_v1  ;;  %v4822_v20 = vsel %vm6808_vm2, %v7028_v16, %v7027_v6  ;;  %v3299_v6 = vpack.i.bf16 %v1309_v59, %v1269_v60  ;;  %v7031_v16 = vunpack.i.h.bf16 %v4746_v3  ;;  %v7033_v59 = vunpack.i.l.bf16 %v4394_v8 }
 0x15d   : > { %3315 = vrot.lane.b32.xlu0 %v4552_v21, %s3772_s16  ;;  %3290 = vrot.lane.b32.xlu1 %v3289_v4, %s3777_s24  ;;  %7029 = vst [vmem:[#allocation133_spill] sm:$0xff] %v4822_v20  ;;  %v6809_v4 = vunpack.i.l.bf16 %v4793_v52  ;;  %v7034_v60 = vunpack.i.h.bf16 %v4396_v61  ;;  %v7037_v28 = vunpack.i.h.bf16 %v4148_v38  ;;  %v7039_v61 = vunpack.i.h.bf16 %v4201_v42 }
 0x15e   : > { %v4828_v31 = vpop.permute.xlu1 %3190  ;;  %v1150_v15 = vsel %vm1149_vm9, %v7032_v58, %v7031_v16  ;;  %v7041_v8 = vunpack.i.l.bf16 %v4716_v34  ;;  %v7044_v34 = vunpack.i.h.bf16 %v4264_v35  ;;  %vm1016_vm2 = vcmask 719872  }
 0x15f   : > { %v4833_v41 = vpop.permute.xlu0 %3185  ;;  %v4856_v58 = vsel %vm710_vm8, %v7034_v60, %v7033_v59  ;;  %v4865_v48 = vsel %vm505_vm4, %v7037_v28, %v7036_v46  ;;  %v3334_v29 = vpack.i.bf16 %v1150_v15, %v1267_v25  ;;  %v4874_v59 = vsel %vm556_vm5, %v2852_v11, %v7039_v61 }
 0x160   : > { %7030 = vst [vmem:[#allocation134_spill] sm:$0xff] %v4833_v41  ;;  %7035 = vst [vmem:[#allocation135_spill] sm:$0xff] %v4856_v58  ;;  %v3309_v20 = vpack.i.bf16 %v1228_v62, %v4856_v58  ;;  %v1231_v46 = vsel %vm1227_vm14, %v7041_v8, %v6809_v4  ;;  %v7042_v28 = vunpack.i.l.bf16 %v4798_v10  ;;  %v6812_v25 = vunpack.i.h.bf16 %v4833_v41 }
 0x161   : > { %3325 = vrot.lane.b32.xlu0 %v4571_v14, %s3770_s14  ;;  %3300 = vrot.lane.b32.xlu1 %v3299_v6, %s3777_s24  ;;  %7038 = vst [vmem:[#allocation136_spill] sm:$0xff] %v4865_v48  ;;  %7040 = vst [vmem:[#allocation137_spill] sm:$0xff] %v4874_v59  ;;  %v7043_v11 = vunpack.i.l.bf16 %v4262_v23  ;;  %v3187_v60 = vunpack.i.l.bf16 %v4833_v41  ;;  %vm1110_vm3 = vcmask 64512   ;;  %v7046_v58 = vunpack.i.l.bf16 %v4746_v3 }
 0x162   : > { %v4858_v16 = vpop.permute.xlu1 %3200  ;;  %v1191_v6 = vsel %vm1188_vm13, %v3173_v2, %v7042_v28  ;;  %v7047_v4 = vunpack.i.l.bf16 %v4762_v19  ;;  %v7048_v1 = vunpack.i.l.bf16 %v4766_v7  ;;  %v7049_v28 = vunpack.i.h.bf16 %v4746_v3 }
 0x163   : > { %v4868_v49 = vpop.permute.xlu0 %3195  ;;  %v4895_v8 = vsel %vm607_vm6, %v7044_v34, %v7043_v11  ;;  %v1271_v11 = vsel %vm1266_vm15, %v3187_v60, %v6812_v25  ;;  %v3112_v3 = vunpack.i.l.bf16 %v4703_v45  ;;  %v3072_v30 = vunpack.i.l.bf16 %v4635_v24 }
 0x164   : > { %v3354_v41 = vpack.i.bf16 %v7046_v58, %v1271_v11  ;;  %v1190_v25 = vsel %vm1188_vm13, %v7047_v4, %v3173_v2  ;;  %v1151_v61 = vsel %vm1149_vm9, %v7049_v28, %v7048_v1  ;;  %v3107_v58 = vunpack.i.l.bf16 %v4705_v53 }
 0x165   : > { %3335 = vrot.lane.b32.xlu0 %v3334_v29, %s3777_s24  ;;  %3310 = vrot.lane.b32.xlu1 %v3309_v20, %s3777_s24  ;;  %v3344_v29 = vpack.i.bf16 %v1231_v46, %v1191_v6  ;;  %v3103_v20 = vunpack.i.h.bf16 %v4679_v54  ;;  %v7050_v11 = vunpack.i.l.bf16 %v4633_v39  ;;  %v7051_v2 = vunpack.i.h.bf16 %v4635_v24 }
 0x166   : > { %v4900_v15 = vpop.permute.xlu1 %3210  ;;  %v7053_v46 = vunpack.i.l.bf16 %v4793_v52  ;;  %v7054_v1 = vunpack.i.l.bf16 %v4733_v43  ;;  %v6827_v28 = vunpack.i.h.bf16 %v4858_v16  ;;  %v6832_v18 = vunpack.i.l.bf16 %v4868_v49 }
 0x167   : > { %v4902_v62 = vpop.permute.xlu0 %3205  ;;  %v4949_v4 = vsel %vm914_vm12, %v7051_v2, %v7050_v11  ;;  %v3339_v11 = vpack.i.bf16 %v1190_v25, %v1151_v61  ;;  %v6834_v2 = vunpack.i.h.bf16 %v4828_v31  ;;  %v7055_v61 = vunpack.i.l.bf16 %v4637_v12 }
 0x168   : > { %v7056_v43 = vunpack.i.h.bf16 %v4633_v39 }
 0x169   : > { %3345 = vrot.lane.b32.xlu0 %v3344_v29, %s3777_s24  ;;  %3320 = vrot.lane.b32.xlu1 %v4552_v21, %s3773_s17 }
 0x16a   : > { %v4919_v34 = vpop.permute.xlu1 %3220 }
 0x16b   : > { %7045 = vst [vmem:[#allocation138_spill] sm:$0xff] %v4919_v34  ;;  %v4924_v29 = vpop.permute.xlu0 %3215  ;;  %v3102_v34 = vunpack.i.l.bf16 %v4679_v54  ;;  %v3108_v54 = vunpack.i.h.bf16 %v4705_v53  ;;  %v1270_v53 = vsel %vm1266_vm15, %v7054_v1, %v3187_v60  ;;  %v918_v60 = vsel %vm914_vm12, %v7056_v43, %v7055_v61 }
 0x16c   : > { %v4995_v61 = vsel %vm965_vm1, %v3112_v3, %v7058_v44 }
 0x16d   : > { %3355 = vrot.lane.b32.xlu0 %v3354_v41, %s3777_s24  ;;  %3330 = vrot.lane.b32.xlu1 %v4571_v14, %s3771_s15  ;;  %v7052_v41 = vunpack.i.h.bf16 %v4793_v52  ;;  %v966_v12 = vsel %vm965_vm1, %v3102_v34, %v3103_v20  ;;  %v3217_v34 = vunpack.i.l.bf16 %v4924_v29 }
 0x16e   : > { %v3231_v6 = vpop.permute.xlu1 %3230 }
 0x16f   : > { %v1232_v33 = vsel %vm1227_vm14, %v7053_v46, %v7052_v41  ;;  %v3233_v26 = vunpack.i.h.bf16 %v3231_v6  ;;  %v3232_v48 = vunpack.i.l.bf16 %v3231_v6  ;;  %v4960_v13 = vpop.permute.xlu0 %3225  ;;  %v967_v6 = vsel %vm965_vm1, %v3103_v20, %v3107_v58 }
 0x170   : > { %v7057_v46 = vunpack.i.l.bf16 %v4858_v16  ;;  %v1073_v41 = vsel %vm1071_vm0, %v6834_v2, %v6832_v18  ;;  %v3349_v59 = vpack.i.bf16 %v1270_v53, %v1232_v33  ;;  %v969_v18 = vsel %vm965_vm1, %v3108_v54, %v3112_v3 }
 0x171   : > { %3365 = vrot.lane.b32.xlu0 %v4552_v21, %s3775_s21  ;;  %3340 = vrot.lane.b32.xlu1 %v3339_v11, %s3777_s24  ;;  %v1018_v25 = vsel %vm1016_vm2, %v3232_v48, %v3233_v26  ;;  %v7059_v2 = vunpack.i.l.bf16 %v4623_v36  ;;  %v7060_v20 = vunpack.i.h.bf16 %v4611_v37 }
 0x172   : > { %v1111_v1 = vsel %vm1110_vm3, %v7057_v46, %v6827_v28  ;;  %v4989_v11 = vpop.permute.xlu1 %3240  ;;  %v1960_v52 = vpack.c.bf16 %v1018_v25, %v967_v6  ;;  %v968_v6 = vsel %vm965_vm1, %v3107_v58, %v3108_v54 }
 0x173   : > { %v6833_v43 = vunpack.i.h.bf16 %v4989_v11  ;;  %v3242_v46 = vunpack.i.l.bf16 %v4989_v11  ;;  %v3236_v28 = vpop.permute.xlu0 %3235  ;;  %v3384_v33 = vpack.i.bf16 %v1111_v1, %v1073_v41  ;;  %v7064_v41 = vunpack.i.l.bf16 %v4535_v63 }
 0x174   : > { %v3238_v56 = vunpack.i.h.bf16 %v3236_v28  ;;  %v3237_v55 = vunpack.i.l.bf16 %v3236_v28  ;;  %2090 = vmatprep.subr.bf16.mxu0 %v1960_v52  ;;  %v3212_v28 = vunpack.i.l.bf16 %v4900_v15 }
 0x175   : > { %v5006_v44 = vsel %vm1016_vm2, %v3242_v46, %v6833_v43  ;;  %3375 = vrot.lane.b32.xlu0 %v4571_v14, %s3773_s17  ;;  %3350 = vrot.lane.b32.xlu1 %v3349_v59, %s3777_s24  ;;  %v865_v59 = vsel %vm863_vm11, %v7060_v20, %v7059_v2  ;;  %v3192_v2 = vunpack.i.l.bf16 %v4828_v31 }
 0x176   : > { %v1017_v52 = vsel %vm1016_vm2, %v3237_v55, %v3232_v48  ;;  %v1020_v3 = vsel %vm1016_vm2, %v3238_v56, %v3242_v46  ;;  %v1019_v58 = vsel %vm1016_vm2, %v3233_v26, %v3238_v56  ;;  %v7061_v55 = vunpack.i.l.bf16 %v4619_v9 }
 0x177   : > { %v1959_v53 = vpack.c.bf16 %v1017_v52, %v966_v12  ;;  %v1962_v25 = vpack.c.bf16 %v1020_v3, %v969_v18  ;;  %v1961_v43 = vpack.c.bf16 %v1019_v58, %v968_v6  ;;  %v7062_v48 = vunpack.i.h.bf16 %v4623_v36 }
 0x178   : > { %v7063_v56 = vunpack.i.h.bf16 %v4635_v24  ;;  %v7065_v18 = vunpack.i.h.bf16 %v4539_v17  ;;  %v3178_v46 = vunpack.i.h.bf16 %v4798_v10  ;;  %v7066_v9 = vunpack.i.l.bf16 %v4798_v10 }
 0x179   : > { %v867_v26 = vsel %vm863_vm11, %v7062_v48, %v7061_v55  ;;  %2091 = vmatpush1.bf16.msra.mxu0 %v1959_v53  ;;  %2131 = vmatprep.subr.bf16.mxu1 %v1962_v25  ;;  %v1948_v24 = vpack.c.bf16 %v4949_v4, %v865_v59  ;;  %v7067_v52 = vunpack.i.h.bf16 %v4611_v37  ;;  %v7068_v3 = vunpack.i.l.bf16 %v4611_v37 }
 0x17a   : > { %v915_v1 = vsel %vm914_vm12, %v3072_v30, %v7063_v56  ;;  %v814_v12 = vsel %vm812_vm10, %v7065_v18, %v7064_v41  ;;  %v1192_v6 = vsel %vm1188_vm13, %v7066_v9, %v3217_v34  ;;  %v2917_v30 = vunpack.i.l.bf16 %v4352_v47  ;;  %3385 = vrot.lane.b32.xlu0 %v3384_v33, %s3777_s24  ;;  %3360 = vrot.lane.b32.xlu1 %v4552_v21, %s3774_s20 }
 0x17b   : > { %v1950_v20 = vpack.c.bf16 %v918_v60, %v867_v26  ;;  %v864_v10 = vsel %vm863_vm11, %v7068_v3, %v7067_v52  ;;  %v7069_v58 = vunpack.i.h.bf16 %v4633_v39  ;;  %v7070_v53 = vunpack.i.l.bf16 %v4633_v39  ;;  %2092 = vmatprep.subr.bf16.mxu0 %v1948_v24  ;;  %2132 = vmatpush1.bf16.msra.mxu1 %v1961_v43 }
 0x17c   : > { %v2942_v25 = vunpack.i.l.bf16 %v4388_v22  ;;  %v7071_v33 = vunpack.i.h.bf16 %v4766_v7  ;;  %v1947_v60 = vpack.c.bf16 %v915_v1, %v864_v10  ;;  %v7072_v37 = vunpack.i.l.bf16 %v4558_v0 }
 0x17d   : > { %v917_v4 = vsel %vm914_vm12, %v7070_v53, %v7069_v58  ;;  %v7073_v59 = vunpack.i.h.bf16 %v4535_v63  ;;  %2133 = vmatprep.subr.bf16.mxu1 %v1950_v20  ;;  %v1936_v48 = vpack.c.bf16 %v814_v12, %v4467_v5  ;;  %v7074_v26 = vunpack.i.h.bf16 %v4623_v36  ;;  %v7082_v53 = vld [vmem:[#allocation57_spill] sm:$0xff] }
 0x17e   : > { %v1153_v21 = vsel %vm1149_vm9, %v7071_v33, %v3212_v28  ;;  %v7075_v56 = vunpack.i.l.bf16 %v4623_v36  ;;  %v7076_v43 = vunpack.i.l.bf16 %v4539_v17  ;;  %v7077_v1 = vunpack.i.l.bf16 %v4762_v19  ;;  %2093 = vmatpush1.bf16.msra.mxu0 %v1947_v60  ;;  %3370 = vrot.lane.b32.xlu1 %v4571_v14, %s3772_s16  ;;  %v7085_v60 = vld [vmem:[#allocation72_spill] sm:$0xff] }
 0x17f   : > { %v816_v55 = vsel %vm812_vm10, %v7073_v59, %v7072_v37  ;;  %v3394_v39 = vpack.i.bf16 %v1192_v6, %v1153_v21  ;;  %v7078_v6 = vunpack.i.h.bf16 %v4828_v31  ;;  %v3207_v36 = vunpack.i.l.bf16 %v4902_v62  ;;  %2094 = vmatprep.subr.bf16.mxu0 %v1936_v48  ;;  %v7110_v31 = vld [vmem:[#allocation39_spill] sm:$0xff] }
 0x180   : > { %v866_v41 = vsel %vm863_vm11, %v7075_v56, %v7074_v26  ;;  %v813_v0 = vsel %vm812_vm10, %v7076_v43, %v7065_v18  ;;  %v1189_v9 = vsel %vm1188_vm13, %v3178_v46, %v7077_v1  ;;  %v2912_v24 = vunpack.i.l.bf16 %v4320_v40  ;;  %v7092_v43 = vld [vmem:[#allocation88_spill] sm:$0xff] }
 0x181   : > { %v1072_v5 = vsel %vm1071_vm0, %v3192_v2, %v7078_v6  ;;  %v1949_v12 = vpack.c.bf16 %v917_v4, %v866_v41  ;;  %3395 = vrot.lane.b32.xlu0 %v3394_v39, %s3777_s24  ;;  %v1938_v17 = vpack.c.bf16 %v816_v55, %v4464_v57  ;;  %v7079_v19 = vmov %v7073_v59 }
 0x182   : > { %v7080_v46 = vunpack.i.l.bf16 %v4535_v63  ;;  %v6838_v52 = vunpack.i.h.bf16 %v4924_v29  ;;  %v1935_v3 = vpack.c.bf16 %v813_v0, %v4449_v51  ;;  %v7081_v10 = vunpack.i.h.bf16 %v4320_v40 }
 0x183   : > { %2134 = vmatpush1.bf16.msra.mxu1 %v1949_v12  ;;  %v7083_v4 = vunpack.i.l.bf16 %v7082_v53  ;;  %v7084_v57 = vunpack.i.h.bf16 %v4262_v23  ;;  %v3379_v63 = vpack.i.bf16 %v1072_v5, %v1189_v9  ;;  %v7086_v37 = vunpack.i.l.bf16 %v7085_v60  ;;  %v7094_v9 = vld [vmem:[#allocation98_spill] sm:$0xff] }
 0x184   : > { %v815_v20 = vsel %vm812_vm10, %v7080_v46, %v7079_v19  ;;  %v660_v58 = vsel %vm658_vm7, %v7081_v10, %v2917_v30  ;;  %2135 = vmatprep.subr.bf16.mxu1 %v1938_v17  ;;  %v7087_v59 = vunpack.i.h.bf16 %v4352_v47  ;;  %v7088_v55 = vunpack.i.h.bf16 %v4388_v22  ;;  %2095 = vmatpush1.bf16.msra.mxu0 %v1935_v3  ;;  %v7102_v47 = vld [vmem:[#allocation54_spill] sm:$0xff] }
 0x185   : > { %v611_v33 = vsel %vm607_vm6, %v7084_v57, %v7083_v4  ;;  %v1924_v21 = vpack.c.bf16 %v4791_v32, %v660_v58  ;;  %v7089_v48 = vunpack.i.h.bf16 %v4766_v7  ;;  %v7090_v26 = vunpack.i.l.bf16 %v4766_v7  ;;  %3405 = vrot.lane.b32.xlu0 %v4571_v14, %s3774_s20  ;;  %3380 = vrot.lane.b32.xlu1 %v3379_v63, %s3777_s24 }
 0x186   : > { %v662_v51 = vsel %vm658_vm7, %v7087_v59, %v7086_v37  ;;  %v711_v39 = vsel %vm710_vm8, %v2942_v25, %v7088_v55  ;;  %v3198_v41 = vunpack.i.h.bf16 %v4868_v49  ;;  %v7091_v32 = vunpack.i.h.bf16 %v4858_v16  ;;  %v5131_v25 = vld [vmem:[%s3822_s23 + $0x10] sm:$0xff] }
 0x187   : > { %v1152_v56 = vsel %vm1149_vm9, %v7090_v26, %v7089_v48  ;;  %v1937_v0 = vpack.c.bf16 %v815_v20, %v7092_v43  ;;  %v2822_v22 = vunpack.i.l.bf16 %v4148_v38  ;;  %v7093_v1 = vunpack.i.l.bf16 %v4858_v16  ;;  %2096 = vmatprep.subr.bf16.mxu0 %v1924_v21  ;;  %v5150_v20 = vpop.permute.xlu0 %3245 }
 0x188   : > { %v1112_v18 = vsel %vm1110_vm3, %v7091_v32, %v3207_v36  ;;  %v1926_v6 = vpack.c.bf16 %v7094_v9, %v662_v51  ;;  %v7095_v5 = vmov %v7081_v10  ;;  %v3208_v17 = vunpack.i.h.bf16 %v4902_v62 }
 0x189   : > { %v3414_v7 = vpack.i.bf16 %v5131_v25, %v7093_v1  ;;  %v659_v12 = vsel %vm658_vm7, %v2912_v24, %v7095_v5  ;;  %v1193_v16 = vsel %vm1188_vm13, %v3217_v34, %v6838_v52  ;;  %v6836_v19 = vunpack.i.l.bf16 %v4960_v13  ;;  %2136 = vmatpush1.bf16.msra.mxu1 %v1937_v0  ;;  %v7112_v0 = vld [vmem:[#allocation38_spill] sm:$0xff] }
 0x18a   : > { %v1923_v46 = vpack.c.bf16 %v711_v39, %v659_v12  ;;  %2137 = vmatprep.subr.bf16.mxu1 %v1926_v6  ;;  %v3389_v3 = vpack.i.bf16 %v1152_v56, %v1112_v18  ;;  %v7096_v40 = vunpack.i.l.bf16 %v4236_v50  ;;  %v7097_v24 = vunpack.i.h.bf16 %v4201_v42  ;;  %v7108_v56 = vld [vmem:[#allocation17_spill] sm:$0xff]  ;;  %v7115_v6 = vld [vmem:[#allocation35_spill] sm:$0xff] }
 0x18b   : > { %v7098_v58 = vmov %v7087_v59  ;;  %v7099_v34 = vunpack.i.h.bf16 %v4264_v35  ;;  %v7100_v4 = vunpack.i.l.bf16 %v4264_v35  ;;  %v7101_v63 = vunpack.i.l.bf16 %v4868_v49  ;;  %v7105_v35 = vld [vmem:[#allocation16_spill] sm:$0xff]  ;;  %3415 = vrot.lane.b32.xlu0 %v3414_v7, %s3777_s24  ;;  %v7114_v7 = vld [vmem:[#allocation130_spill] sm:$0xff]  ;;  %v7117_v12 = vld [vmem:[#allocation29_spill] sm:$0xff] }
 0x18c   : > { %v558_v10 = vsel %vm556_vm5, %v7097_v24, %v7096_v40  ;;  %v661_v53 = vsel %vm658_vm7, %v2917_v30, %v7098_v58  ;;  %2097 = vmatpush1.bf16.msra.mxu0 %v1923_v46  ;;  %v7103_v59 = vunpack.i.l.bf16 %v7102_v47  ;;  %v7104_v30 = vunpack.i.h.bf16 %v4236_v50  ;;  %3390 = vrot.lane.b32.xlu1 %v3389_v3, %s3777_s24 }
 0x18d   : > { %v608_v57 = vsel %vm607_vm6, %v7100_v4, %v7099_v34  ;;  %v1074_v21 = vsel %vm1071_vm0, %v7101_v63, %v3198_v41  ;;  %v1912_v42 = vpack.c.bf16 %v4895_v8, %v558_v10  ;;  %v1925_v37 = vpack.c.bf16 %v4730_v27, %v661_v53  ;;  %v7122_v53 = vld [vmem:[#allocation136_spill] sm:$0xff] }
 0x18e   : > { %v560_v51 = vsel %vm556_vm5, %v7104_v30, %v7103_v59  ;;  %v2768_v55 = vunpack.i.h.bf16 %v7105_v35  ;;  %v3399_v48 = vpack.i.bf16 %v3192_v2, %v1193_v16  ;;  %v7106_v8 = vunpack.i.h.bf16 %v4262_v23  ;;  %v7129_v59 = vld [vmem:[#allocation3_spill] sm:$0xff] }
 0x18f   : > { %v1914_v39 = vpack.c.bf16 %v611_v33, %v560_v51  ;;  %v7107_v27 = vunpack.i.l.bf16 %v4262_v23  ;;  %v2762_v32 = vunpack.i.l.bf16 %v7108_v56  ;;  %v1114_v18 = vsel %vm1110_vm3, %v3208_v17, %v6836_v19  ;;  %2098 = vmatprep.subr.bf16.mxu0 %v1912_v42  ;;  %2138 = vmatpush1.bf16.msra.mxu1 %v1925_v37  ;;  %v7109_v33 = vld [vmem:[#allocation137_spill] sm:$0xff]  ;;  %v3731_v51 = vld [vmem:[%s3822_s23 + $0x8] sm:$0xff] }
 0x190   : > { %v1911_v43 = vpack.c.bf16 %v608_v57, %v7109_v33  ;;  %v7111_v2 = vunpack.i.l.bf16 %v7110_v31  ;;  %v7113_v1 = vunpack.i.h.bf16 %v7112_v0  ;;  %v3424_v9 = vpack.i.bf16 %v1074_v21, %v7114_v7  ;;  %v7123_v57 = vld [vmem:[#allocation34_spill] sm:$0xff]  ;;  %3400 = vrot.lane.b32.xlu1 %v3399_v48, %s3777_s24 }
 0x191   : > { %v610_v26 = vsel %vm607_vm6, %v7107_v27, %v7106_v8  ;;  %2139 = vmatprep.subr.bf16.mxu1 %v1914_v39  ;;  %v7116_v5 = vunpack.i.l.bf16 %v7115_v6  ;;  %v7118_v16 = vunpack.i.h.bf16 %v7117_v12  ;;  %vm7119_vm6 = vcmask 941056   ;;  %v7130_v8 = vld [vmem:[#allocation5_spill] sm:$0xff] }
 0x192   : > { %v509_v23 = vsel %vm505_vm4, %v7113_v1, %v7111_v2  ;;  %v7120_v3 = vmov %v7104_v30  ;;  %v7121_v10 = vunpack.i.h.bf16 %v4148_v38  ;;  %2099 = vmatpush1.bf16.msra.mxu0 %v1911_v43  ;;  %v7124_v63 = vunpack.i.l.bf16 %v7123_v57  ;;  %vm7126_vm11 = vmmov %vm7119_vm6  ;;  %v5225_v30 = vpop.permute.xlu0 %3255  ;;  %3425 = vrot.lane.b32.xlu0 %v3424_v9, %s3777_s24  ;;  %v7134_v43 = vld [vmem:[#allocation138_spill] sm:$0xff]  ;;  %v7135_v2 = vld [vmem:[#allocation132_spill] sm:$0xff] }
 0x193   : > { %v456_v46 = vsel %vm7119_vm6, %v7118_v16, %v7116_v5  ;;  %v559_v24 = vsel %vm556_vm5, %v7096_v40, %v7120_v3  ;;  %v7125_v21 = vunpack.i.h.bf16 %v7115_v6  ;;  %v7127_v37 = vmov %v7113_v1  ;;  %v7136_v1 = vld [vmem:[#allocation18_spill] sm:$0xff] }
 0x194   : > { %v506_v58 = vsel %vm505_vm4, %v2822_v22, %v7121_v10  ;;  %v1900_v34 = vpack.c.bf16 %v7122_v53, %v456_v46  ;;  %v1913_v4 = vpack.c.bf16 %v610_v26, %v559_v24  ;;  %v7128_v50 = vunpack.i.l.bf16 %v7112_v0  ;;  %v7141_v5 = vld [vmem:[#allocation10_spill] sm:$0xff]  ;;  %3410 = vrot.lane.b32.xlu1 %v4571_v14, %s3775_s21 }
 0x195   : > { %v458_v42 = vsel %vm7126_vm11, %v7125_v21, %v7124_v63  ;;  %v2697_v38 = vunpack.i.l.bf16 %v7129_v59  ;;  %v3434_v39 = vpack.i.bf16 %v3731_v51, %v1114_v18  ;;  %v7131_v27 = vunpack.i.h.bf16 %v7130_v8 }
 0x196   : > { %v508_v47 = vsel %vm505_vm4, %v7128_v50, %v7127_v37  ;;  %v1902_v22 = vpack.c.bf16 %v509_v23, %v458_v42  ;;  %v7132_v26 = vunpack.i.l.bf16 %v7130_v8  ;;  %vm7133_vm5 = vcmask 1039360   ;;  %2100 = vmatprep.subr.bf16.mxu0 %v1900_v34  ;;  %2140 = vmatpush1.bf16.msra.mxu1 %v1913_v4  ;;  %v7139_v23 = vld [vmem:[#allocation13_spill] sm:$0xff]  ;;  %v7158_v8 = vld [vmem:[#allocation100_spill] sm:$0xff] }
 0x197   : > { %v6837_v31 = vunpack.i.l.bf16 %v7134_v43  ;;  %v1899_v0 = vpack.c.bf16 %v506_v58, %v7135_v2  ;;  %v7137_v48 = vunpack.i.l.bf16 %v7136_v1  ;;  %vm7138_vm4 = vcmask 949248   ;;  %v7150_v4 = vld [vmem:[#allocation133_spill] sm:$0xff]  ;;  %3435 = vrot.lane.b32.xlu0 %v3434_v39, %s3777_s24 }
 0x198   : > { %v304_v33 = vsel %vm7133_vm5, %v7132_v26, %v7131_v27  ;;  %2141 = vmatprep.subr.bf16.mxu1 %v1902_v22  ;;  %v7140_v18 = vunpack.i.l.bf16 %v7139_v23  ;;  %v7142_v12 = vunpack.i.h.bf16 %v7141_v5  ;;  %vm7143_vm12 = vcmask 1031168   ;;  %vm7147_vm11 = vmmov %vm7138_vm4 }
 0x199   : > { %v407_v9 = vsel %vm7138_vm4, %v2768_v55, %v7137_v48  ;;  %v7144_v46 = vmov %v7125_v21  ;;  %v7145_v3 = vunpack.i.l.bf16 %v7115_v6  ;;  %v7146_v24 = vunpack.i.h.bf16 %v7108_v56  ;;  %2101 = vmatpush1.bf16.msra.mxu0 %v1899_v0  ;;  %v7151_v21 = vld [vmem:[#allocation12_spill] sm:$0xff]  ;;  %vm7154_vm4 = vmmov %vm7143_vm12  ;;  %v7161_v0 = vld [vmem:[#allocation2_spill] sm:$0xff] }
 0x19a   : > { %v354_v16 = vsel %vm7143_vm12, %v7142_v12, %v7140_v18  ;;  %v7148_v58 = vmov %v7132_v26  ;;  %v7149_v53 = vunpack.i.h.bf16 %v7129_v59  ;;  %v7152_v42 = vunpack.i.l.bf16 %v7151_v21  ;;  %vm7157_vm12 = vmmov %vm7154_vm4  ;;  %v3734_v59 = vld [vmem:[%s3822_s23] sm:$0xff] }
 0x19b   : > { %v457_v40 = vsel %vm7119_vm6, %v7145_v3, %v7144_v46  ;;  %v404_v10 = vsel %vm7147_vm11, %v2762_v32, %v7146_v24  ;;  %v1888_v57 = vpack.c.bf16 %v7150_v4, %v354_v16  ;;  %v7153_v6 = vunpack.i.h.bf16 %v7139_v23  ;;  %vm7160_vm6 = vmmov %vm7147_vm11  ;;  %v7166_v3 = vld [vmem:[#allocation4_spill] sm:$0xff]  ;;  %v7169_v24 = vld [vmem:[#allocation93_spill] sm:$0xff] }
 0x19c   : > { %v303_v34 = vsel %vm7133_vm5, %v7149_v53, %v7148_v58  ;;  %v1901_v63 = vpack.c.bf16 %v508_v47, %v457_v40  ;;  %v7155_v56 = vmov %v7142_v12  ;;  %v7156_v32 = vunpack.i.l.bf16 %v7141_v5  ;;  %v5273_v47 = vld [vmem:[%s3822_s23 + $0x38] sm:$0xff]  ;;  %vm7164_vm11 = vmmov %vm7154_vm4 }
 0x19d   : > { %v356_v37 = vsel %vm7154_vm4, %v7153_v6, %v7152_v42  ;;  %v3444_v27 = vpack.i.bf16 %v7158_v8, %v5273_v47  ;;  %v7159_v26 = vunpack.i.l.bf16 %v7105_v35  ;;  %v2708_v1 = vunpack.i.h.bf16 %v7161_v0  ;;  %2102 = vmatprep.subr.bf16.mxu0 %v1888_v57  ;;  %v5291_v35 = vpop.permute.xlu0 %3265  ;;  %vm7168_vm4 = vmmov %vm7133_vm5  ;;  %v7173_v42 = vld [vmem:[#allocation89_spill] sm:$0xff] }
 0x19e   : > { %v353_v50 = vsel %vm7157_vm12, %v7156_v32, %v7155_v56  ;;  %v1890_v22 = vpack.c.bf16 %v407_v9, %v356_v37  ;;  %v1113_v14 = vsel %vm1110_vm3, %v3207_v36, %v3208_v17  ;;  %v1075_v39 = vsel %vm1071_vm0, %v3198_v41, %v6837_v31  ;;  %2142 = vmatpush1.bf16.msra.mxu1 %v1901_v63  ;;  %v7175_v37 = vld [vmem:[#allocation90_spill] sm:$0xff] }
 0x19f   : > { %v406_v2 = vsel %vm7160_vm6, %v7159_v26, %v2768_v55  ;;  %v1887_v48 = vpack.c.bf16 %v404_v10, %v353_v50  ;;  %v3733_v55 = vld [vmem:[%s3822_s23 + $0x18] sm:$0xff]  ;;  %v7162_v18 = vmov %v7153_v6  ;;  %v7163_v62 = vunpack.i.l.bf16 %v7139_v23  ;;  %3445 = vrot.lane.b32.xlu0 %v3444_v27, %s3776_s22  ;;  %v5342_v50 = vld [vmem:[%s3822_s23 + $0x20] sm:$0xff] }
 0x1a0   : > { %2143 = vmatprep.subr.bf16.mxu1 %v1890_v22  ;;  %v3419_v9 = vpack.i.bf16 %v304_v33, %v3733_v55  ;;  %v7165_v17 = vmov %v7149_v53  ;;  %v3257_v41 = vunpack.i.l.bf16 %v5225_v30  ;;  %v1876_v5 = vpack.c.bf16 %v303_v34, %v3731_v51  ;;  %v5315_v51 = vld [vmem:[%s6623_s1] sm:$0xff]  ;;  %v7170_v53 = vld [vmem:[#allocation129_spill] sm:$0xff] }
 0x1a1   : > { %v355_v36 = vsel %vm7164_vm11, %v7163_v62, %v7162_v18  ;;  %v302_v49 = vsel %vm7133_vm5, %v2697_v38, %v7165_v17  ;;  %2103 = vmatpush1.bf16.msra.mxu0 %v1887_v48  ;;  %v1878_v16 = vpack.c.bf16 %v7114_v7, %v3733_v55  ;;  %v3429_v46 = vpack.i.bf16 %v1113_v14, %v1075_v39  ;;  %v5328_v21 = vpop.permute.xlu0 %3275  ;;  %vm7179_vm11 = vmmov %vm7168_vm4  ;;  %v5368_v39 = vld [vmem:[%s3822_s23 + $0x28] sm:$0xff] }
 0x1a2   : > { %v1889_v12 = vpack.c.bf16 %v406_v2, %v355_v36  ;;  %3420 = vrot.lane.b32.xlu1 %v3419_v9, %s3777_s24  ;;  %v7167_v23 = vunpack.i.l.bf16 %v7166_v3  ;;  %2104 = vmatprep.subr.bf16.mxu0 %v1876_v5  ;;  %v1875_v38 = vpack.c.bf16 %v302_v49, %v3734_v59  ;;  %v5321_v10 = vcombine.high %v5315_v51, %v5315_v51  ;;  %v7184_v55 = vld [vmem:[#allocation131_spill] sm:$0xff]  ;;  %v7191_v5 = vld [vmem:[#allocation101_spill] sm:$0xff] }
 0x1a3   : > { %v3258_v58 = vunpack.i.h.bf16 %v5225_v30  ;;  %v7171_v4 = vunpack.i.h.bf16 %v7170_v53  ;;  %vm7172_vm12 = vcmask 924672   ;;  %v1877_v63 = vpack.c.bf16 %v304_v33, %v5131_v25  ;;  %v7186_v62 = vld [vmem:[#allocation95_spill] sm:$0xff] }
 0x1a4   : > { %v5309_v40 = vsel %vm7168_vm4, %v2708_v1, %v7167_v23  ;;  %2144 = vmatpush1.bf16.msra.mxu1 %v1889_v12  ;;  %v7174_v6 = vunpack.i.l.bf16 %v7173_v42  ;;  %v7176_v56 = vunpack.i.h.bf16 %v7175_v37  ;;  %vm7177_vm6 = vcmask 908288   ;;  %2636 = vmatprep.mubr.msk.bf16.mxu0 %vm1016_vm2, %v5321_v10  ;;  %vm7180_vm5 = vmmov %vm7172_vm12  ;;  %v5391_v12 = vld [vmem:[%s3822_s23 + $0x60] sm:$0xff]  ;;  %v7192_v23 = vld [vmem:[#allocation91_spill] sm:$0xff] }
 0x1a5   : > { %2145 = vmatprep.subr.bf16.mxu1 %v1878_v16  ;;  %v3454_v7 = vpack.i.bf16 %v7169_v24, %v5309_v40  ;;  %v1311_v57 = vsel %vm7172_vm12, %v7171_v4, %v3257_v41  ;;  %2105 = vmatpush1.bf16.msra.mxu0 %v1875_v38  ;;  %v3439_v25 = vpack.i.bf16 %v5342_v50, %v303_v34  ;;  %v7178_v22 = vunpack.i.l.bf16 %v7161_v0  ;;  %v7181_v34 = vld [vmem:[#allocation78_spill] sm:$0xff]  ;;  %vm7189_vm4 = vmmov %vm7177_vm6  ;;  %v5394_v16 = vld [vmem:[%s3822_s23 + $0x68] sm:$0xff] }
 0x1a6   : > { %3430 = vrot.lane.b32.xlu1 %v3429_v46, %s3777_s24  ;;  %v5337_v32 = vsel %vm7177_vm6, %v7176_v56, %v7174_v6  ;;  %2638 = vmatprep.mubr.msk.bf16.mxu1 %vm1016_vm2, %v5321_v10  ;;  %v1312_v27 = vsel %vm7180_vm5, %v3257_v41, %v3258_v58  ;;  %v3277_v26 = vunpack.i.l.bf16 %v5328_v21  ;;  %v7182_v2 = vunpack.i.h.bf16 %v7181_v34  ;;  %v7193_v59 = vld [vmem:[#allocation83_spill] sm:$0xff] }
 0x1a7   : > { %3455 = vrot.lane.b32.xlu0 %v3454_v7, %s3777_s24  ;;  %v3459_v33 = vpack.i.bf16 %v1311_v57, %v5337_v32  ;;  %v5351_v8 = vsel %vm7179_vm11, %v7178_v22, %v2708_v1  ;;  %v7183_v14 = vunpack.i.l.bf16 %v7181_v34  ;;  %v7185_v9 = vunpack.i.h.bf16 %v7184_v55  ;;  %v5411_v7 = vld [vmem:[%s3822_s23 + $0x70] sm:$0xff]  ;;  %vm7196_vm11 = vmmov %vm7180_vm5 }
 0x1a8   : > { %2146 = vmatpush1.bf16.msra.mxu1 %v1877_v63  ;;  %v3449_v48 = vpack.i.bf16 %v5351_v8, %v5368_v39  ;;  %v7187_v36 = vunpack.i.l.bf16 %v7186_v62  ;;  %v7188_v17 = vunpack.i.h.bf16 %v7173_v42  ;;  %v5398_v46 = vpack.i.bf16 %v5394_v16, %v5391_v12 }
 0x1a9   : > { %v5364_v0 = vsel %vm710_vm8, %v7183_v14, %v7182_v2  ;;  %v1233_v18 = vsel %vm1227_vm14, %v7185_v9, %v3277_v26  ;;  %v7194_v38 = vpack.i.bf16 %v7192_v23, %v7193_v59  ;;  %v3248_v53 = vunpack.i.h.bf16 %v5150_v20 }
 0x1aa   : > { %3440 = vrot.lane.b32.xlu1 %v3439_v25, %s3777_s24  ;;  %v3469_v1 = vpack.i.bf16 %v5364_v0, %v1312_v27  ;;  %v5384_v49 = vsel %vm7189_vm4, %v7188_v17, %v7187_v36  ;;  %v3247_v4 = vunpack.i.l.bf16 %v5150_v20  ;;  %vm1610_vm12 = vcmask 711680   ;;  %v5420_v25 = vpop.permute.xlu0 %3285 }
 0x1ab   : > { %3460 = vrot.lane.b32.xlu0 %v3459_v33, %s3777_s24  ;;  %7190 = vst [vmem:[#allocation57_spill] sm:$0xff] %v5384_v49  ;;  %v3479_v41 = vpack.i.bf16 %v1233_v18, %v5384_v49  ;;  %vm2053_vm6 = vcmask 1043456   ;;  %v3268_v56 = vunpack.i.h.bf16 %v5291_v35  ;;  %v3267_v27 = vunpack.i.l.bf16 %v5291_v35 }
 0x1ac   : > { %v1731_v57 = vsel %vm1610_vm12, %v3247_v4, %v3248_v53  ;;  %vm7221_vm4 = vcmask 1039360  }
 0x1ad   : > { %v2031_v6 = vpack.c.bf16 %v1731_v57, %v1731_v57 }
 0x1ae   : > { %3450 = vrot.lane.b32.xlu1 %v3449_v48, %s3777_s24 }
 0x1af   : > { %3470 = vrot.lane.b32.xlu0 %v3469_v1, %s3777_s24  ;;  %v2055_v14 = vsel %vm2053_vm6, %v2031_v6, 0  ;;  %v3287_v6 = vunpack.i.l.bf16 %v5420_v25 }
 0x1b2   : > { %1006 = vrot.lane.b32.xlu1 %v7191_v5, %s3776_s22 }
 0x1b3   : > { %3480 = vrot.lane.b32.xlu0 %v3479_v41, %s3777_s24  ;;  %v6843_v41 = vunpack.i.h.bf16 %v5328_v21 }
 0x1b6   : > { %3465 = vrot.lane.b32.xlu1 %v5398_v46, %s3769_s13 }
 0x1b7   : > { %3490 = vrot.lane.b32.xlu0 %v5398_v46, %s3771_s15 }
 0x1ba   : > { %3475 = vrot.lane.b32.xlu1 %v7194_v38, %s3777_s24 }
 0x1be   : > { %3485 = vrot.lane.b32.xlu1 %v5398_v46, %s3770_s14 }
 0x1bf   : > { %v3251_v63 = vpop.permute.xlu1 %3250 }
 0x1c0   : > { %v3252_v42 = vunpack.i.l.bf16 %v3251_v63  ;;  %v3253_v34 = vunpack.i.h.bf16 %v3251_v63 }
 0x1c2   : > { %1303 = vrot.lane.b32.xlu1 %v5411_v7, %s3769_s13  ;;  %v1732_v37 = vsel %vm1610_vm12, %v3248_v53, %v3252_v42  ;;  %v1733_v55 = vsel %vm1610_vm12, %v3252_v42, %v3268_v56  ;;  %v6844_v53 = vunpack.i.h.bf16 %v4900_v15  ;;  %v6839_v42 = vunpack.i.h.bf16 %v5420_v25 }
 0x1c3   : > { %v5422_v33 = vpop.permute.xlu1 %3260  ;;  %v2032_v22 = vpack.c.bf16 %v1732_v37, %v1732_v37  ;;  %v2033_v5 = vpack.c.bf16 %v1733_v55, %v1733_v55  ;;  %v1313_v55 = vsel %vm7196_vm11, %v3258_v58, %v3287_v6  ;;  %vm7233_vm11 = vmmov %vm7221_vm4 }
 0x1c4   : > { %v3263_v20 = vunpack.i.h.bf16 %v5422_v33  ;;  %v3262_v2 = vunpack.i.l.bf16 %v5422_v33  ;;  %v1154_v30 = vsel %vm1149_vm9, %v3212_v28, %v6844_v53  ;;  %v1314_v58 = vsel %vm7180_vm5, %v3287_v6, %v6839_v42  ;;  %vm7240_vm5 = vmmov %vm7221_vm4 }
 0x1c5   : > { %2635 = vmatprep.subr.msk.bf16.mxu0 %vm2053_vm6, %v2032_v22 }
 0x1c6   : > { %2111 = vmatpush2.bf16.msra.mxu0 %v2055_v14  ;;  %v1708_v1 = vsel %vm1610_vm12, %v3253_v34, %v3262_v2  ;;  %v1720_v48 = vsel %vm1610_vm12, %v3263_v20, %v3267_v27  ;;  %v7195_v14 = vld [vmem:[#allocation81_spill] sm:$0xff] }
 0x1c7   : > { %v5436_v9 = vpop.permute.xlu1 %3270  ;;  %v5438_v18 = vpop.permute.xlu0 %3295  ;;  %v2020_v36 = vpack.c.bf16 %v1720_v48, %v1708_v1  ;;  %v2963_v1 = vunpack.i.h.bf16 %v7195_v14  ;;  %v2061_v48 = vsel %vm2053_vm6, %v2033_v5, 0 }
 0x1c8   : > { %v6835_v17 = vunpack.i.l.bf16 %v5436_v9 }
 0x1c9   : > { %2112 = vmatprep.subr.bf16.mxu0 %v2020_v36  ;;  %v3273_v36 = vunpack.i.h.bf16 %v5436_v9 }
 0x1ca   : > { %v1734_v38 = vsel %vm1610_vm12, %v3268_v56, %v6835_v17  ;;  %v1234_v56 = vsel %vm1227_vm14, %v3277_v26, %v6843_v41 }
 0x1cb   : > { %v5446_v4 = vpop.permute.xlu1 %3280  ;;  %v5448_v57 = vpop.permute.xlu0 %3305  ;;  %v2034_v63 = vpack.c.bf16 %v1734_v38, %v1734_v38  ;;  %v7197_v38 = vld [vmem:[#allocation134_spill] sm:$0xff] }
 0x1cc   : > { %v6842_v37 = vunpack.i.h.bf16 %v5446_v4  ;;  %v3282_v22 = vunpack.i.l.bf16 %v5446_v4  ;;  %v7198_v17 = vunpack.i.h.bf16 %v7197_v38  ;;  %v7199_v38 = vld [vmem:[#allocation80_spill] sm:$0xff] }
 0x1cd   : > { %2637 = vmatprep.subr.msk.bf16.mxu1 %vm2053_vm6, %v2034_v63  ;;  %v7200_v52 = vunpack.i.l.bf16 %v7199_v38 }
 0x1ce   : > { %v1272_v54 = vsel %vm1266_vm15, %v7198_v17, %v3282_v22  ;;  %v1273_v19 = vsel %vm1266_vm15, %v3282_v22, %v6842_v37  ;;  %2152 = vmatpush2.bf16.msra.mxu1 %v2061_v48 }
 0x1cf   : > { %v5472_v26 = vpop.permute.xlu0 %3315  ;;  %v3291_v63 = vpop.permute.xlu1 %3290  ;;  %v3494_v31 = vpack.i.bf16 %v1272_v54, %v1234_v56  ;;  %v3499_v5 = vpack.i.bf16 %v1313_v55, %v1273_v19  ;;  %v5485_v22 = vsel %vm710_vm8, %v2963_v1, %v7200_v52  ;;  %v7202_v54 = vunpack.i.l.bf16 %v7195_v14 }
 0x1d0   : > { %v3292_v17 = vunpack.i.l.bf16 %v3291_v63  ;;  %7201 = vst [vmem:[#allocation72_spill] sm:$0xff] %v5485_v22  ;;  %v3293_v28 = vunpack.i.h.bf16 %v3291_v63  ;;  %v1707_v56 = vsel %vm1610_vm12, %v3273_v36, %v3253_v34  ;;  %v6841_v14 = vunpack.i.l.bf16 %v5438_v18 }
 0x1d1   : > { %3495 = vrot.lane.b32.xlu0 %v3494_v31, %s3777_s24  ;;  %3500 = vrot.lane.b32.xlu1 %v3499_v5, %s3777_s24  ;;  %v5492_v19 = vsel %vm710_vm8, %v7202_v54, %v2963_v1  ;;  %v3509_v31 = vpack.i.bf16 %v1154_v30, %v5485_v22  ;;  %v3298_v5 = vunpack.i.h.bf16 %v5438_v18  ;;  %v6845_v36 = vunpack.i.l.bf16 %v5448_v57 }
 0x1d2   : > { %7203 = vst [vmem:[#allocation88_spill] sm:$0xff] %v5492_v19  ;;  %v1719_v6 = vsel %vm1610_vm12, %v3292_v17, %v3263_v20  ;;  %v3504_v52 = vpack.i.bf16 %v5492_v19, %v1314_v58  ;;  %v1684_v34 = vsel %vm1610_vm12, %v3293_v28, %v6841_v14  ;;  %v3308_v54 = vunpack.i.h.bf16 %v5448_v57 }
 0x1d3   : > { %v5496_v48 = vpop.permute.xlu0 %3325  ;;  %v5498_v55 = vpop.permute.xlu1 %3300  ;;  %v2019_v38 = vpack.c.bf16 %v1719_v6, %v1707_v56  ;;  %v7204_v33 = vunpack.i.l.bf16 %v5472_v26 }
 0x1d4   : > { %v6840_v1 = vunpack.i.l.bf16 %v5498_v55  ;;  %v3303_v63 = vunpack.i.h.bf16 %v5498_v55 }
 0x1d5   : > { %3505 = vrot.lane.b32.xlu0 %v3504_v52, %s3777_s24  ;;  %3510 = vrot.lane.b32.xlu1 %v3509_v31, %s3777_s24 }
 0x1d6   : > { %2113 = vmatpush2.bf16.msra.mxu0 %v2019_v38  ;;  %v1696_v20 = vsel %vm1610_vm12, %v3298_v5, %v6840_v1  ;;  %v3327_v38 = vunpack.i.l.bf16 %v5496_v48  ;;  %v1709_v14 = vsel %vm1610_vm12, %v3262_v2, %v3303_v63  ;;  %v7205_v2 = vunpack.i.h.bf16 %v4900_v15 }
 0x1d7   : > { %v5515_v30 = vpop.permute.xlu0 %3335  ;;  %v5517_v58 = vpop.permute.xlu1 %3310  ;;  %v2008_v17 = vpack.c.bf16 %v1696_v20, %v1684_v34  ;;  %v1710_v34 = vsel %vm1610_vm12, %v3303_v63, %v6845_v36 }
 0x1d8   : > { %v3337_v56 = vunpack.i.l.bf16 %v5515_v30  ;;  %v3313_v6 = vunpack.i.h.bf16 %v5517_v58  ;;  %v6848_v52 = vunpack.i.l.bf16 %v5517_v58  ;;  %v1155_v63 = vsel %vm1149_vm9, %v7205_v2, %v7204_v33 }
 0x1d9   : > { %3515 = vrot.lane.b32.xlu0 %v5398_v46, %s3772_s16  ;;  %3520 = vrot.lane.b32.xlu1 %v5398_v46, %s3773_s17  ;;  %v7209_v33 = vunpack.i.h.bf16 %v5446_v4 }
 0x1da   : > { %2114 = vmatprep.subr.bf16.mxu0 %v2008_v17  ;;  %v1722_v20 = vsel %vm1610_vm12, %v3308_v54, %v6848_v52  ;;  %v1683_v42 = vsel %vm1610_vm12, %v3313_v6, %v3293_v28  ;;  %v1695_v1 = vsel %vm1610_vm12, %v3337_v56, %v3298_v5  ;;  %v1721_v28 = vsel %vm1610_vm12, %v3267_v27, %v3308_v54 }
 0x1db   : > { %v5540_v37 = vpop.permute.xlu0 %3345  ;;  %v5542_v41 = vpop.permute.xlu1 %3320  ;;  %v2022_v53 = vpack.c.bf16 %v1722_v20, %v1710_v34  ;;  %v2007_v31 = vpack.c.bf16 %v1695_v1, %v1683_v42  ;;  %v3223_v5 = vunpack.i.h.bf16 %v7134_v43  ;;  %v2021_v42 = vpack.c.bf16 %v1721_v28, %v1709_v14 }
 0x1dc   : > { %v6855_v17 = vunpack.i.h.bf16 %v5542_v41  ;;  %v3322_v36 = vunpack.i.l.bf16 %v5542_v41  ;;  %v6846_v1 = vunpack.i.h.bf16 %v5496_v48  ;;  %v7206_v56 = vunpack.i.h.bf16 %v5328_v21 }
 0x1dd   : > { %1225 = vrot.lane.b32.xlu0 %v5411_v7, %s3770_s14  ;;  %2153 = vmatprep.subr.bf16.mxu1 %v2022_v53  ;;  %v7207_v54 = vunpack.i.h.bf16 %v4924_v29  ;;  %v7208_v29 = vunpack.i.l.bf16 %v7134_v43  ;;  %v7214_v43 = vunpack.i.h.bf16 %v5542_v41 }
 0x1de   : > { %v1235_v35 = vsel %vm1227_vm14, %v7206_v56, %v3327_v38  ;;  %v1195_v27 = vsel %vm1188_vm13, %v3322_v36, %v6855_v17  ;;  %1264 = vrot.lane.b32.xlu1 %v5411_v7, %s3771_s15  ;;  %2115 = vmatpush2.bf16.msra.mxu0 %v2007_v31  ;;  %v1236_v31 = vsel %vm1227_vm14, %v3327_v38, %v6846_v1  ;;  %v6849_v38 = vunpack.i.l.bf16 %v5540_v37  ;;  %s245_s15 = scalar_lea.vmem %s6627_s5, %s2631_s9 }
 0x1df   : > { %v1194_v15 = vsel %vm1188_vm13, %v7207_v54, %v3322_v36  ;;  %v3529_v53 = vpack.i.bf16 %v1235_v35, %v1195_v27  ;;  %2154 = vmatpush2.bf16.msra.mxu1 %v2021_v42  ;;  %v5569_v6 = vpop.permute.xlu0 %3355  ;;  %v5571_v21 = vpop.permute.xlu1 %3330  ;;  %v1076_v36 = vsel %vm1071_vm0, %v7208_v29, %v3223_v5  ;;  %v6852_v27 = vunpack.i.h.bf16 %v5515_v30 }
 0x1e0   : > { %v3524_v14 = vpack.i.bf16 %v1194_v15, %v1155_v63  ;;  %v6847_v34 = vunpack.i.h.bf16 %v5571_v21  ;;  %v3332_v20 = vunpack.i.l.bf16 %v5571_v21 }
 0x1e2   : > { %3525 = vrot.lane.b32.xlu0 %v3524_v14, %s3777_s24  ;;  %v1275_v28 = vsel %vm1266_vm15, %v3332_v20, %v6847_v34  ;;  %v1274_v2 = vsel %vm1266_vm15, %v7209_v33, %v3332_v20  ;;  %3530 = vrot.lane.b32.xlu1 %v3529_v53, %s3777_s24  ;;  %v3348_v14 = vunpack.i.h.bf16 %v5540_v37 }
 0x1e3   : > { %v3539_v63 = vpack.i.bf16 %v1076_v36, %v1275_v28  ;;  %v3534_v42 = vpack.i.bf16 %v1274_v2, %v1236_v31  ;;  %v5591_v56 = vpop.permute.xlu0 %3365  ;;  %v5593_v35 = vpop.permute.xlu1 %3340  ;;  %v6854_v31 = vunpack.i.l.bf16 %v5569_v6 }
 0x1e4   : > { %v6851_v54 = vunpack.i.h.bf16 %v5593_v35  ;;  %v6850_v15 = vunpack.i.l.bf16 %v5593_v35  ;;  %v6858_v2 = vunpack.i.l.bf16 %v5591_v56 }
 0x1e6   : > { %3535 = vrot.lane.b32.xlu0 %v3534_v42, %s3777_s24  ;;  %3540 = vrot.lane.b32.xlu1 %v3539_v63, %s3777_s24  ;;  %v1660_v4 = vsel %vm1610_vm12, %v6852_v27, %v6850_v15  ;;  %v1672_v53 = vsel %vm1610_vm12, %v6851_v54, %v6849_v38  ;;  %v3228_v63 = vunpack.i.h.bf16 %v4960_v13  ;;  %v3318_v42 = vunpack.i.h.bf16 %v5472_v26 }
 0x1e7   : > { %v5612_v20 = vpop.permute.xlu0 %3375  ;;  %v5614_v29 = vpop.permute.xlu1 %3350  ;;  %v1996_v36 = vpack.c.bf16 %v1672_v53, %v1660_v4  ;;  %v7211_v38 = vunpack.i.l.bf16 %v5498_v55  ;;  %v7212_v55 = vunpack.i.l.bf16 %v4960_v13 }
 0x1e8   : > { %v3353_v28 = vunpack.i.h.bf16 %v5614_v29  ;;  %v6853_v33 = vunpack.i.l.bf16 %v5614_v29  ;;  %v6856_v1 = vunpack.i.h.bf16 %v5612_v20  ;;  %v3377_v17 = vunpack.i.l.bf16 %v5612_v20 }
 0x1e9   : > { %2116 = vmatprep.subr.bf16.mxu0 %v1996_v36  ;;  %v7210_v36 = vunpack.i.l.bf16 %v5438_v18 }
 0x1ea   : > { %3545 = vrot.lane.b32.xlu0 %v5398_v46, %s3774_s20  ;;  %3550 = vrot.lane.b32.xlu1 %v5398_v46, %s3775_s21  ;;  %v1686_v4 = vsel %vm1610_vm12, %v3348_v14, %v6853_v33  ;;  %v1698_v53 = vsel %vm1610_vm12, %v3353_v28, %v6854_v31  ;;  %v1697_v15 = vsel %vm1610_vm12, %v7211_v38, %v3353_v28  ;;  %v7213_v38 = vunpack.i.l.bf16 %v5472_v26 }
 0x1eb   : > { %v2010_v34 = vpack.c.bf16 %v1698_v53, %v1686_v4  ;;  %v1685_v52 = vsel %vm1610_vm12, %v7210_v36, %v3348_v14  ;;  %v1116_v31 = vsel %vm1110_vm3, %v3228_v63, %v6858_v2  ;;  %v1197_v14 = vsel %vm1188_vm13, %v3377_v17, %v6856_v1 }
 0x1ec   : > { %v5639_v54 = vpop.permute.xlu0 %3385  ;;  %v5641_v27 = vpop.permute.xlu1 %3360  ;;  %v2009_v33 = vpack.c.bf16 %v1697_v15, %v1685_v52  ;;  %v1115_v52 = vsel %vm1110_vm3, %v7212_v55, %v3228_v63  ;;  %v1156_v15 = vsel %vm1149_vm9, %v7213_v38, %v3318_v42  ;;  %v3358_v26 = vunpack.i.h.bf16 %v5569_v6  ;;  %v5671_v63 = vld [vmem:[%s3822_s23 + $0x30] sm:$0xff] }
 0x1ed   : > { %v3362_v18 = vunpack.i.l.bf16 %v5641_v27  ;;  %2155 = vmatprep.subr.bf16.mxu1 %v2010_v34  ;;  %v3559_v28 = vpack.i.bf16 %v1156_v15, %v1116_v31  ;;  %v3569_v36 = vpack.i.bf16 %v5671_v63, %v1197_v14  ;;  %v3363_v15 = vunpack.i.h.bf16 %v5641_v27 }
 0x1ee   : > { %1147 = vrot.lane.b32.xlu0 %v5411_v7, %s3772_s16  ;;  %1186 = vrot.lane.b32.xlu1 %v5411_v7, %s3773_s17  ;;  %v3388_v41 = vunpack.i.h.bf16 %v5639_v54 }
 0x1ef   : > { %2156 = vmatpush2.bf16.msra.mxu1 %v2009_v33  ;;  %v1077_v34 = vsel %vm1071_vm0, %v3223_v5, %v3362_v18  ;;  %v1196_v5 = vsel %vm1188_vm13, %v7214_v43, %v3377_v17  ;;  %v7217_v17 = vunpack.i.h.bf16 %v5515_v30  ;;  %v6864_v43 = vunpack.i.l.bf16 %v5639_v54 }
 0x1f0   : > { %v3554_v4 = vpack.i.bf16 %v1115_v52, %v1077_v34  ;;  %v5666_v33 = vpop.permute.xlu1 %3370  ;;  %v1078_v30 = vsel %vm1071_vm0, %v3362_v18, %v3363_v15 }
 0x1f1   : > { %v6857_v13 = vunpack.i.l.bf16 %v5666_v33 }
 0x1f2   : > { %3555 = vrot.lane.b32.xlu0 %v3554_v4, %s3777_s24  ;;  %3560 = vrot.lane.b32.xlu1 %v3559_v28, %s3777_s24  ;;  %v7216_v28 = vld [vmem:[#allocation8_spill] sm:$0xff] }
 0x1f3   : > { %v5664_v53 = vpop.permute.xlu0 %3395  ;;  %v1157_v31 = vsel %vm1149_vm9, %v3318_v42, %v6857_v13  ;;  %v6862_v1 = vunpack.i.l.bf16 %v7216_v28  ;;  %v1659_v42 = vsel %vm1610_vm12, %v3358_v26, %v7217_v17  ;;  %v3368_v17 = vunpack.i.h.bf16 %v5591_v56 }
 0x1f4   : > { %v3564_v55 = vpack.i.bf16 %v1196_v5, %v1157_v31  ;;  %v7218_v5 = vunpack.i.h.bf16 %v5593_v35  ;;  %v3398_v23 = vunpack.i.h.bf16 %v5664_v53 }
 0x1f6   : > { %3565 = vrot.lane.b32.xlu0 %v3564_v55, %s3777_s24  ;;  %3570 = vrot.lane.b32.xlu1 %v3569_v36, %s3777_s24 }
 0x1f7   : > { %v5682_v52 = vpop.permute.xlu0 %3405  ;;  %v3381_v38 = vpop.permute.xlu1 %3380 }
 0x1f8   : > { %7215 = vst [vmem:[#allocation98_spill] sm:$0xff] %v5682_v52  ;;  %v6859_v14 = vunpack.i.h.bf16 %v5682_v52  ;;  %v3407_v34 = vunpack.i.l.bf16 %v5682_v52  ;;  %v3382_v4 = vunpack.i.l.bf16 %v3381_v38  ;;  %v3383_v27 = vunpack.i.h.bf16 %v3381_v38 }
 0x1fa   : > { %v1671_v31 = vsel %vm1610_vm12, %v3382_v4, %v7218_v5  ;;  %v5701_v13 = vsel %vm1071_vm0, %v3407_v34, %v6859_v14  ;;  %1069 = vrot.lane.b32.xlu0 %v5411_v7, %s3774_s20  ;;  %1108 = vrot.lane.b32.xlu1 %v5411_v7, %s3775_s21  ;;  %v7219_v4 = vld [vmem:[#allocation6_spill] sm:$0xff]  ;;  %v1636_v14 = vsel %vm1610_vm12, %v3383_v27, %v6864_v43 }
 0x1fb   : > { %v1995_v36 = vpack.c.bf16 %v1671_v31, %v1659_v42  ;;  %v3574_v5 = vpack.i.bf16 %v7219_v4, %v5273_v47  ;;  %v7220_v42 = vunpack.i.h.bf16 %v7166_v3 }
 0x1fd   : > { %v5703_v2 = vpop.permute.xlu0 %3415  ;;  %v5722_v18 = vsel %vm7221_vm4, %v7220_v42, %v6862_v1  ;;  %2117 = vmatpush2.bf16.msra.mxu0 %v1995_v36  ;;  %v1079_v36 = vsel %vm1071_vm0, %v3363_v15, %v3407_v34  ;;  %vm7260_vm4 = vcmask 908288  }
 0x1fe   : > { %v5705_v55 = vpop.permute.xlu1 %3390  ;;  %v3417_v26 = vunpack.i.l.bf16 %v5703_v2  ;;  %v3579_v19 = vpack.i.bf16 %v1078_v30, %v5722_v18  ;;  %3575 = vrot.lane.b32.xlu0 %v3574_v5, %s3777_s24 }
 0x1ff   : > { %v6866_v38 = vunpack.i.l.bf16 %v5705_v55  ;;  %v3393_v31 = vunpack.i.h.bf16 %v5705_v55 }
 0x200   : > { %v1647_v52 = vsel %vm1610_vm12, %v3417_v26, %v3388_v41  ;;  %3580 = vrot.lane.b32.xlu1 %v3579_v19, %s3777_s24 }
 0x201   : > { %v1648_v7 = vsel %vm1610_vm12, %v3388_v41, %v6866_v38  ;;  %v7223_v38 = vunpack.i.l.bf16 %v5591_v56  ;;  %v7225_v56 = vunpack.i.l.bf16 %v5593_v35 }
 0x202   : > { %v5734_v22 = vpop.permute.xlu1 %3400  ;;  %v1984_v1 = vpack.c.bf16 %v1648_v7, %v1636_v14  ;;  %v7224_v14 = vunpack.i.l.bf16 %v5664_v53 }
 0x203   : > { %7222 = vst [vmem:[#allocation54_spill] sm:$0xff] %v5734_v22  ;;  %v3403_v49 = vunpack.i.h.bf16 %v5734_v22  ;;  %v6868_v43 = vunpack.i.l.bf16 %v5734_v22  ;;  %v1117_v30 = vsel %vm1110_vm3, %v7223_v38, %v3368_v17  ;;  %v1661_v41 = vsel %vm1610_vm12, %v7225_v56, %v3393_v31 }
 0x204   : > { %v5736_v42 = vpop.permute.xlu0 %3425  ;;  %2118 = vmatprep.subr.bf16.mxu0 %v1984_v1  ;;  %v1662_v15 = vsel %vm1610_vm12, %v3393_v31, %v7224_v14  ;;  %v3584_v26 = vpack.i.bf16 %v1117_v30, %v1079_v36  ;;  %v7228_v14 = vunpack.i.l.bf16 %v5540_v37  ;;  %v5769_v36 = vld [vmem:[%s3822_s23 + $0x58] sm:$0xff] }
 0x205   : > { %v1635_v3 = vsel %vm1610_vm12, %v3403_v49, %v3383_v27  ;;  %v1674_v34 = vsel %vm1610_vm12, %v3398_v23, %v6868_v43  ;;  %v2718_v27 = vunpack.i.h.bf16 %v7216_v28  ;;  %7229 = vst [vmem:[#allocation137_spill] sm:$0xff] %v5769_v36  ;;  %v6870_v56 = vunpack.i.l.bf16 %v5736_v42 }
 0x206   : > { %v5757_v38 = vpop.permute.xlu1 %3410  ;;  %v1983_v49 = vpack.c.bf16 %v1647_v52, %v1635_v3  ;;  %v1998_v1 = vpack.c.bf16 %v1674_v34, %v1662_v15  ;;  %v1673_v35 = vsel %vm1610_vm12, %v7228_v14, %v3398_v23  ;;  %3585 = vrot.lane.b32.xlu0 %v3584_v26, %s3777_s24  ;;  %v3594_v52 = vpack.i.bf16 %v5391_v12, %v5769_v36  ;;  %v5781_v23 = vld [vmem:[%s3822_s23 + $0x40] sm:$0xff] }
 0x207   : > { %7226 = vst [vmem:[#allocation16_spill] sm:$0xff] %v5757_v38  ;;  %v6867_v5 = vunpack.i.h.bf16 %v5757_v38  ;;  %v3412_v7 = vunpack.i.l.bf16 %v5757_v38  ;;  %v1997_v31 = vpack.c.bf16 %v1673_v35, %v1661_v41  ;;  %v3418_v3 = vunpack.i.h.bf16 %v5703_v2  ;;  %7231 = vst [vmem:[#allocation38_spill] sm:$0xff] %v5781_v23 }
 0x208   : > { %2119 = vmatpush2.bf16.msra.mxu0 %v1983_v49  ;;  %2157 = vmatprep.subr.bf16.mxu1 %v1998_v1  ;;  %v7232_v2 = vunpack.i.l.bf16 %v7216_v28  ;;  %v5799_v49 = vld [vmem:[%s3822_s23 + $0x50] sm:$0xff]  ;;  %v3428_v28 = vunpack.i.h.bf16 %v5736_v42 }
 0x209   : > { %v5759_v19 = vpop.permute.xlu0 %3435  ;;  %v1118_v30 = vsel %vm1110_vm3, %v3368_v17, %v3412_v7  ;;  %v5778_v37 = vsel %vm1110_vm3, %v3412_v7, %v6867_v5  ;;  %2158 = vmatpush2.bf16.msra.mxu1 %v1997_v31  ;;  %7235 = vst [vmem:[#allocation35_spill] sm:$0xff] %v5799_v49  ;;  %v3599_v1 = vpack.i.bf16 %v5769_v36, %v5799_v49  ;;  %v7241_v49 = vld [vmem:[#allocation128_spill] sm:$0xff] }
 0x20a   : > { %7227 = vst [vmem:[#allocation17_spill] sm:$0xff] %v5759_v19  ;;  %7230 = vst [vmem:[#allocation39_spill] sm:$0xff] %v5778_v37  ;;  %v3589_v15 = vpack.i.bf16 %v5781_v23, %v1118_v30  ;;  %v5791_v17 = vsel %vm7233_vm11, %v7232_v2, %v2718_v27  ;;  %3595 = vrot.lane.b32.xlu0 %v3594_v52, %s3768_s12  ;;  %v5814_v30 = vld [vmem:[%s3822_s23 + $0x48] sm:$0xff]  ;;  %v3438_v2 = vunpack.i.h.bf16 %v5759_v19  ;;  %v3117_v38 = vunpack.i.l.bf16 %v7241_v49 }
 0x20b   : > { %7234 = vst [vmem:[#allocation130_spill] sm:$0xff] %v5791_v17  ;;  %7237 = vst [vmem:[#allocation136_spill] sm:$0xff] %v5814_v30  ;;  %v7238_v23 = vld [vmem:[#allocation7_spill] sm:$0xff]  ;;  %vm7264_vm11 = vcmask 924672  }
 0x20c   : > { %3590 = vrot.lane.b32.xlu1 %v3589_v15, %s3777_s24  ;;  %v3604_v15 = vpack.i.bf16 %v5791_v17, %v5814_v30  ;;  %v7243_v30 = vunpack.i.l.bf16 %v5639_v54 }
 0x20e   : > { %3605 = vrot.lane.b32.xlu0 %v3604_v15, %s3777_s24 }
 0x210   : > { %3600 = vrot.lane.b32.xlu1 %v3599_v1, %s3776_s22 }
 0x211   : > { %v5784_v34 = vpop.permute.xlu0 %3445 }
 0x212   : > { %v3447_v5 = vunpack.i.l.bf16 %v5784_v34  ;;  %963 = vrot.lane.b32.xlu0 %v5394_v16, %s3768_s12  ;;  %s241_s12 = scalar_lea.vmem %s6626_s4, %s2631_s9 }
 0x214   : > { %v5786_v12 = vpop.permute.xlu1 %3420 }
 0x215   : > { %v3423_v41 = vunpack.i.h.bf16 %v5786_v12  ;;  %v3422_v26 = vunpack.i.l.bf16 %v5786_v12 }
 0x217   : > { %v1612_v14 = vsel %vm1610_vm12, %v3418_v3, %v3422_v26  ;;  %v1624_v35 = vsel %vm1610_vm12, %v3423_v41, %v6870_v56  ;;  %v7239_v56 = vunpack.i.l.bf16 %v7238_v23 }
 0x218   : > { %v5811_v52 = vpop.permute.xlu1 %3430  ;;  %v1972_v12 = vpack.c.bf16 %v1624_v35, %v1612_v14  ;;  %v7242_v35 = vunpack.i.l.bf16 %v5759_v19  ;;  %v1611_v19 = vsel %vm1610_vm12, %v3438_v2, %v3418_v3 }
 0x219   : > { %v5809_v31 = vpop.permute.xlu0 %3455  ;;  %7236 = vst [vmem:[#allocation29_spill] sm:$0xff] %v5811_v52  ;;  %v3433_v43 = vunpack.i.h.bf16 %v5811_v52  ;;  %v6879_v7 = vunpack.i.l.bf16 %v5811_v52  ;;  %v5825_v36 = vsel %vm7240_vm5, %v2718_v27, %v7239_v56  ;;  %v1637_v27 = vsel %vm1610_vm12, %v7243_v30, %v3428_v28  ;;  %v7245_v52 = vld [vmem:[#allocation99_spill] sm:$0xff]  ;;  %vm7266_vm5 = vmmov %vm7264_vm11 }
 0x21a   : > { %2120 = vmatprep.subr.bf16.mxu0 %v1972_v12  ;;  %v7244_v56 = vunpack.i.l.bf16 %v5705_v55  ;;  %v3609_v37 = vpack.i.bf16 %v7245_v52, %v5825_v36 }
 0x21b   : > { %v1638_v14 = vsel %vm1610_vm12, %v3428_v28, %v6879_v7  ;;  %v1650_v17 = vsel %vm1610_vm12, %v3433_v43, %v7242_v35  ;;  %v7246_v35 = vunpack.i.h.bf16 %v4989_v11  ;;  %v3118_v11 = vunpack.i.h.bf16 %v7241_v49 }
 0x21c   : > { %v1649_v23 = vsel %vm1610_vm12, %v7244_v56, %v3433_v43  ;;  %v3441_v1 = vpop.permute.xlu1 %3440  ;;  %v1986_v12 = vpack.c.bf16 %v1650_v17, %v1638_v14  ;;  %3610 = vrot.lane.b32.xlu1 %v3609_v37, %s3777_s24  ;;  %v7247_v43 = vld [vmem:[#allocation127_spill] sm:$0xff]  ;;  %v3448_v49 = vunpack.i.h.bf16 %v5784_v34  ;;  %v7249_v56 = vunpack.i.l.bf16 %v5448_v57 }
 0x21d   : > { %v5842_v15 = vpop.permute.xlu0 %3460  ;;  %v1985_v7 = vpack.c.bf16 %v1649_v23, %v1637_v27  ;;  %v3442_v22 = vunpack.i.l.bf16 %v3441_v1  ;;  %v1022_v54 = vsel %vm1016_vm2, %v7246_v35, %v3447_v5  ;;  %v3443_v55 = vunpack.i.h.bf16 %v3441_v1  ;;  %v7299_v35 = vld [vmem:[#allocation60_spill] sm:$0xff] }
 0x21e   : > { %v3463_v28 = vunpack.i.h.bf16 %v5842_v15  ;;  %2159 = vmatprep.subr.bf16.mxu1 %v1986_v12  ;;  %v6882_v30 = vunpack.i.l.bf16 %v7247_v43  ;;  %v7248_v23 = vunpack.i.h.bf16 %v4703_v45  ;;  %v7250_v1 = vunpack.i.l.bf16 %v5517_v58 }
 0x21f   : > { %2160 = vmatpush2.bf16.msra.mxu1 %v1985_v7  ;;  %v1623_v17 = vsel %vm1610_vm12, %v3442_v22, %v3423_v41  ;;  %v5866_v7 = vcombine.low %v5315_v51, %v5315_v51  ;;  %v6883_v22 = vunpack.i.l.bf16 %v5809_v31  ;;  %v1613_v51 = vsel %vm1610_vm12, %v3422_v26, %v3443_v55 }
 0x220   : > { %v971_v14 = vsel %vm965_vm1, %v7248_v23, %v3117_v38  ;;  %v5862_v2 = vpop.permute.xlu1 %3450  ;;  %v1971_v27 = vpack.c.bf16 %v1623_v17, %v1611_v19  ;;  %v5878_v19 = vsel %vm1610_vm12, %v7249_v56, %v3463_v28  ;;  %3615 = vrot.lane.b32.xlu1 %v5398_v46, %s3776_s22  ;;  %v7251_v46 = vunpack.i.l.bf16 %v5736_v42  ;;  %v7254_v56 = vld [vmem:[#allocation116_spill] sm:$0xff] }
 0x221   : > { %v5860_v3 = vpop.permute.xlu0 %3470  ;;  %v1964_v37 = vpack.c.bf16 %v1022_v54, %v971_v14  ;;  %v3453_v41 = vunpack.i.h.bf16 %v5862_v2  ;;  %v6884_v16 = vunpack.i.l.bf16 %v5862_v2  ;;  %v1023_v42 = vsel %vm1016_vm2, %v3447_v5, %v3448_v49 }
 0x222   : > { %v3473_v45 = vunpack.i.h.bf16 %v5860_v3  ;;  %2121 = vmatpush2.bf16.msra.mxu0 %v1971_v27 }
 0x223   : > { %2172 = vmatprep.subr.bf16.mxu0 %v1964_v37  ;;  %v1614_v57 = vsel %vm1610_vm12, %v3443_v55, %v6884_v16  ;;  %v1626_v34 = vsel %vm1610_vm12, %v3453_v41, %v6883_v22  ;;  %v1625_v26 = vsel %vm1610_vm12, %v7251_v46, %v3453_v41  ;;  %v973_v55 = vsel %vm965_vm1, %v3118_v11, %v6882_v30  ;;  %v7253_v41 = vld [vmem:[#allocation117_spill] sm:$0xff]  ;;  %v7276_v22 = vld [vmem:[#allocation120_spill] sm:$0xff] }
 0x224   : > { %v5888_v12 = vsel %vm1610_vm12, %v7250_v1, %v3473_v45  ;;  %v5901_v58 = vpop.permute.xlu1 %1006  ;;  %v1974_v54 = vpack.c.bf16 %v1626_v34, %v1614_v57  ;;  %v1973_v17 = vpack.c.bf16 %v1625_v26, %v1613_v51  ;;  %v7252_v37 = vpack.c.bf16 %v5006_v44, %v4995_v61  ;;  %v7256_v34 = vld [vmem:[#allocation75_spill] sm:$0xff] }
 0x225   : > { %v5903_v23 = vpop.permute.xlu0 %3480  ;;  %v1024_v14 = vsel %vm1016_vm2, %v3448_v49, %v5901_v58  ;;  %2123 = vmatmul.mubr.bf16.vlgmr.msra.gmra.mxu0 %v5866_v7  ;;  %v7255_v51 = vpack.c.bf16 %v7253_v41, %v7254_v56  ;;  %v972_v1 = vsel %vm965_vm1, %v3117_v38, %v3118_v11  ;;  %v2927_v5 = vunpack.i.l.bf16 %v7256_v34  ;;  %v7267_v41 = vld [vmem:[#allocation106_spill] sm:$0xff]  ;;  %v7268_v56 = vld [vmem:[#allocation92_spill] sm:$0xff] }
 0x226   : > { %v1966_v27 = vpack.c.bf16 %v1024_v14, %v973_v55  ;;  %2161 = vmatprep.subr.bf16.mxu1 %v1974_v54  ;;  %2173 = vmatpush1.bf16.msra.mxu0 %v7252_v37  ;;  %v1965_v49 = vpack.c.bf16 %v1023_v42, %v972_v1  ;;  %v7257_v54 = vld [vmem:[#allocation94_spill] sm:$0xff]  ;;  %v7259_v44 = vunpack.i.h.bf16 %v7186_v62  ;;  %v7261_v55 = vld [vmem:[#allocation115_spill] sm:$0xff]  ;;  %v7265_v42 = vunpack.i.h.bf16 %v5420_v25 }
 0x227   : > { %2162 = vmatpush2.bf16.msra.mxu1 %v1973_v17  ;;  %2174 = vmatprep.subr.bf16.mxu0 %v7255_v51  ;;  %v7258_v61 = vunpack.i.l.bf16 %v7257_v54  ;;  %v7262_v14 = vld [vmem:[#allocation111_spill] sm:$0xff]  ;;  %v7269_v62 = vpack.c.bf16 %v7267_v41, %v7268_v56  ;;  %v7297_v16 = vunpack.i.h.bf16 %v7257_v54 }
 0x228   : > { %v3466_v57 = vpop.permute.xlu1 %3465  ;;  %2213 = vmatprep.subr.bf16.mxu1 %v1966_v27  ;;  %2640 = vmatprep.mubr.msk.bf16.mxu0 %vm1016_vm2, %v5321_v10  ;;  %v7263_v38 = vpack.c.bf16 %v7261_v55, %v7262_v14  ;;  %v7270_v51 = vld [vmem:[#allocation107_spill] sm:$0xff]  ;;  %v7274_v55 = vld [vmem:[#allocation82_spill] sm:$0xff] }
 0x229   : > { %v3468_v46 = vunpack.i.h.bf16 %v3466_v57  ;;  %v3467_v26 = vunpack.i.l.bf16 %v3466_v57  ;;  %v5927_v17 = vsel %vm7260_vm4, %v7259_v44, %v7258_v61  ;;  %v5933_v11 = vpop.permute.xlu0 %3490  ;;  %v7271_v1 = vunpack.i.l.bf16 %v7270_v51  ;;  %v7272_v57 = vld [vmem:[#allocation102_spill] sm:$0xff]  ;;  %v7275_v25 = vld [vmem:[#allocation123_spill] sm:$0xff]  ;;  %vm7303_vm4 = vmmov %vm7266_vm5 }
 0x22a   : > { %2175 = vmatpush1.bf16.msra.mxu0 %v7263_v38  ;;  %2164 = vmatmul.mubr.bf16.vlgmr.msra.gmra.mxu1 %v5866_v7  ;;  %v7273_v61 = vunpack.i.h.bf16 %v7272_v57  ;;  %v3492_v41 = vunpack.i.l.bf16 %v5933_v11  ;;  %v7305_v54 = vld [vmem:[#allocation59_spill] sm:$0xff] }
 0x22b   : > { %v1316_v27 = vsel %vm7264_vm11, %v3467_v26, %v3468_v46  ;;  %v1315_v37 = vsel %vm7266_vm5, %v7265_v42, %v3467_v26  ;;  %2176 = vmatprep.subr.bf16.mxu0 %v7269_v62  ;;  %2214 = vmatpush1.bf16.msra.mxu1 %v1965_v49  ;;  %v7277_v26 = vpack.c.bf16 %v7275_v25, %v7276_v22  ;;  %v7278_v49 = vunpack.i.h.bf16 %v7085_v60  ;;  %v7280_v62 = vld [vmem:[#allocation104_spill] sm:$0xff]  ;;  %v7284_v60 = vld [vmem:[#allocation113_spill] sm:$0xff] }
 0x22c   : > { %v820_v44 = vsel %vm812_vm10, %v7273_v61, %v7271_v1  ;;  %v3624_v14 = vpack.i.bf16 %v7274_v55, %v1316_v27  ;;  %v3619_v38 = vpack.i.bf16 %v1315_v37, %v5927_v17  ;;  %v5949_v30 = vpop.permute.xlu1 %3475  ;;  %2642 = vmatprep.mubr.msk.bf16.mxu1 %vm1016_vm2, %v5321_v10  ;;  %v7279_v27 = vld [vmem:[#allocation135_spill] sm:$0xff]  ;;  %v3493_v22 = vunpack.i.h.bf16 %v5933_v11  ;;  %v7281_v1 = vld [vmem:[#allocation96_spill] sm:$0xff]  ;;  %v7283_v61 = vld [vmem:[#allocation114_spill] sm:$0xff] }
 0x22d   : > { %2215 = vmatprep.subr.bf16.mxu1 %v7277_v26  ;;  %v664_v42 = vsel %vm658_vm7, %v7278_v49, %v2927_v5  ;;  %v1942_v56 = vpack.c.bf16 %v820_v44, %v5337_v32  ;;  %v7282_v57 = vpack.c.bf16 %v7280_v62, %v7281_v1  ;;  %v7285_v25 = vpack.c.bf16 %v7283_v61, %v7284_v60  ;;  %v7286_v49 = vld [vmem:[#allocation73_spill] sm:$0xff]  ;;  %v7287_v32 = vld [vmem:[#allocation79_spill] sm:$0xff]  ;;  %v7290_v1 = vld [vmem:[#allocation86_spill] sm:$0xff] }
 0x22e   : > { %3625 = vrot.lane.b32.xlu1 %v3624_v14, %s3777_s24  ;;  %3620 = vrot.lane.b32.xlu0 %v3619_v38, %s3777_s24  ;;  %v1928_v37 = vpack.c.bf16 %v7279_v27, %v664_v42  ;;  %v1927_v44 = vpack.c.bf16 %v7287_v32, %v7286_v49  ;;  %v7288_v42 = vunpack.i.h.bf16 %v5571_v21  ;;  %v7289_v62 = vld [vmem:[#allocation97_spill] sm:$0xff]  ;;  %v7293_v60 = vunpack.i.h.bf16 %v5496_v48  ;;  %v7294_v49 = vld [vmem:[#allocation103_spill] sm:$0xff] }
 0x22f   : > { %2177 = vmatpush1.bf16.msra.mxu0 %v7282_v57  ;;  %2216 = vmatpush1.bf16.msra.mxu1 %v7285_v25  ;;  %v7291_v57 = vpack.i.bf16 %v7289_v62, %v7290_v1  ;;  %v7295_v21 = vpack.c.bf16 %v7294_v49, %v7169_v24  ;;  %v1277_v32 = vsel %vm1266_vm15, %v3492_v41, %v3493_v22  ;;  %v7298_v48 = vld [vmem:[#allocation61_spill] sm:$0xff]  ;;  %v7301_v24 = vld [vmem:[#allocation84_spill] sm:$0xff]  ;;  %v3373_v49 = vunpack.i.h.bf16 %v5666_v33 }
 0x230   : > { %2178 = vmatprep.subr.bf16.mxu0 %v1928_v37  ;;  %v5971_v26 = vpop.permute.xlu1 %3485  ;;  %2217 = vmatprep.subr.bf16.mxu1 %v1942_v56  ;;  %v1276_v27 = vsel %vm1266_vm15, %v7288_v42, %v3492_v41  ;;  %v7292_v37 = vld [vmem:[#allocation85_spill] sm:$0xff]  ;;  %v7296_v42 = vunpack.i.h.bf16 %v7256_v34 }
 0x231   : > { %v6885_v14 = vunpack.i.h.bf16 %v5971_v26  ;;  %v3487_v38 = vunpack.i.l.bf16 %v5971_v26  ;;  %v2973_v61 = vunpack.i.h.bf16 %v7292_v37 }
 0x232   : > { %3630 = vrot.lane.b32.xlu0 %v7291_v57, %s3777_s24  ;;  %v665_v62 = vsel %vm658_vm7, %v2927_v5, %v7296_v42 }
 0x233   : > { %v1238_v56 = vsel %vm1227_vm14, %v3487_v38, %v6885_v14  ;;  %v1237_v25 = vsel %vm1227_vm14, %v7293_v60, %v3487_v38  ;;  %2179 = vmatpush1.bf16.msra.mxu0 %v1927_v44  ;;  %2218 = vmatpush1.bf16.msra.mxu1 %v7295_v21  ;;  %v7300_v38 = vpack.c.bf16 %v7298_v48, %v7299_v35  ;;  %v7309_v21 = vld [vmem:[#allocation44_spill] sm:$0xff]  ;;  %v7315_v48 = vld [vmem:[#allocation42_spill] sm:$0xff] }
 0x234   : > { %v3639_v57 = vpack.i.bf16 %v1276_v27, %v1238_v56  ;;  %v3634_v14 = vpack.i.bf16 %v1237_v25, %v7297_v16  ;;  %v1304_v44 = vpop.permute.xlu1 %1303  ;;  %v7302_v60 = vpack.c.bf16 %v7193_v59, %v7301_v24  ;;  %v1929_v34 = vpack.c.bf16 %v5364_v0, %v665_v62  ;;  %v7306_v27 = vld [vmem:[#allocation55_spill] sm:$0xff]  ;;  %v7311_v0 = vld [vmem:[#allocation68_spill] sm:$0xff]  ;;  %v7318_v24 = vld [vmem:[#allocation58_spill] sm:$0xff] }
 0x235   : > { %2180 = vmatprep.subr.bf16.mxu0 %v7300_v38  ;;  %v1317_v41 = vsel %vm7303_vm4, %v3468_v46, %v1304_v44  ;;  %v7304_v16 = vunpack.i.l.bf16 %v7292_v37  ;;  %v7307_v56 = vpack.c.bf16 %v7305_v54, %v7306_v27  ;;  %v7308_v25 = vld [vmem:[#allocation43_spill] sm:$0xff]  ;;  %v3458_v62 = vunpack.i.h.bf16 %v5809_v31  ;;  %v7316_v38 = vld [vmem:[#allocation36_spill] sm:$0xff] }
 0x236   : > { %2219 = vmatprep.subr.bf16.mxu1 %v7302_v60  ;;  %v3644_v5 = vpack.i.bf16 %v1317_v41, %v1277_v32  ;;  %3635 = vrot.lane.b32.xlu1 %v3634_v14, %s3777_s24  ;;  %v7310_v46 = vpack.c.bf16 %v7308_v25, %v7309_v21  ;;  %v7312_v32 = vld [vmem:[#allocation65_spill] sm:$0xff]  ;;  %v7314_v14 = vunpack.i.l.bf16 %v5666_v33  ;;  %v7319_v60 = vld [vmem:[#allocation62_spill] sm:$0xff]  ;;  %v7325_v27 = vld [vmem:[#allocation47_spill] sm:$0xff]  ;;  %v3478_v21 = vunpack.i.h.bf16 %v5949_v30 }
 0x237   : > { %3640 = vrot.lane.b32.xlu0 %v3639_v57, %s3777_s24  ;;  %v1320_v35 = vsel %vm710_vm8, %v7304_v16, %v2973_v61  ;;  %2181 = vmatpush1.bf16.msra.mxu0 %v7307_v56  ;;  %v7313_v42 = vpack.c.bf16 %v7311_v0, %v7312_v32  ;;  %v3462_v57 = vunpack.i.l.bf16 %v5842_v15  ;;  %v7320_v41 = vpack.c.bf16 %v7318_v24, %v7319_v60  ;;  %v7321_v16 = vld [vmem:[#allocation23_spill] sm:$0xff]  ;;  %v7328_v0 = vld [vmem:[#allocation14_spill] sm:$0xff] }
 0x238   : > { %2220 = vmatpush1.bf16.msra.mxu1 %v1929_v34  ;;  %v3649_v59 = vpack.i.bf16 %v1320_v35, %v1304_v44  ;;  %2182 = vmatprep.subr.bf16.mxu0 %v7310_v46  ;;  %v1158_v37 = vsel %vm1149_vm9, %v7314_v14, %v3373_v49  ;;  %v7317_v44 = vpack.c.bf16 %v7315_v48, %v7316_v38  ;;  %v7322_v35 = vld [vmem:[#allocation22_spill] sm:$0xff]  ;;  %v3477_v46 = vunpack.i.l.bf16 %v5949_v30  ;;  %v7331_v14 = vld [vmem:[#allocation40_spill] sm:$0xff] }
 0x239   : > { %2221 = vmatprep.subr.bf16.mxu1 %v7313_v42  ;;  %v3654_v34 = vpack.i.bf16 %v1158_v37, %v2973_v61  ;;  %v7323_v54 = vpack.c.bf16 %v7321_v16, %v7322_v35  ;;  %v1736_v25 = vsel %vm1610_vm12, %v3458_v62, %v3462_v57  ;;  %v7327_v61 = vld [vmem:[#allocation21_spill] sm:$0xff]  ;;  %v7333_v48 = vunpack.i.l.bf16 %v5436_v9  ;;  %v7338_v35 = vld [vmem:[#allocation19_spill] sm:$0xff] }
 0x23a   : > { %3645 = vrot.lane.b32.xlu1 %v3644_v5, %s3777_s24  ;;  %v7324_v5 = vld [vmem:[#allocation49_spill] sm:$0xff]  ;;  %v7329_v32 = vpack.c.bf16 %v7327_v61, %v7328_v0  ;;  %v3472_v24 = vunpack.i.l.bf16 %v5860_v3  ;;  %v3482_v30 = vunpack.i.l.bf16 %v5903_v23  ;;  %v1879_v60 = vpack.c.bf16 %v5351_v8, %v5342_v50 }
 0x23b   : > { %3650 = vrot.lane.b32.xlu0 %v3649_v59, %s3777_s24  ;;  %2183 = vmatpush1.bf16.msra.mxu0 %v7317_v44  ;;  %v7326_v56 = vpack.c.bf16 %v7324_v5, %v7325_v27  ;;  %v1880_v59 = vpack.c.bf16 %v5309_v40, %v5368_v39  ;;  %v7330_v42 = vld [vmem:[#allocation41_spill] sm:$0xff]  ;;  %v1735_v38 = vsel %vm1610_vm12, %v7333_v48, %v3458_v62  ;;  %v7334_v40 = vld [vmem:[#allocation30_spill] sm:$0xff]  ;;  %v7337_v62 = vld [vmem:[#allocation20_spill] sm:$0xff]  ;;  %vm7357_vm8 = vcmask 1039360  }
 0x23c   : > { %2222 = vmatpush1.bf16.msra.mxu1 %v7320_v41  ;;  %2184 = vmatprep.subr.bf16.mxu0 %v7323_v54  ;;  %v7332_v37 = vpack.c.bf16 %v7330_v42, %v7331_v14  ;;  %v7335_v39 = vld [vmem:[#allocation26_spill] sm:$0xff]  ;;  %v2036_v41 = vpack.c.bf16 %v1736_v25, %v1736_v25  ;;  %v2035_v16 = vpack.c.bf16 %v1735_v38, %v1735_v38 }
 0x23d   : > { %2223 = vmatprep.subr.bf16.mxu1 %v7326_v56  ;;  %v7336_v44 = vpack.c.bf16 %v7334_v40, %v7335_v39  ;;  %v1738_v9 = vsel %vm1610_vm12, %v3478_v21, %v3482_v30  ;;  %v7339_v54 = vpack.c.bf16 %v7337_v62, %v7338_v35  ;;  %v1724_v5 = vsel %vm1610_vm12, %v3473_v45, %v3477_v46 }
 0x23e   : > { %3655 = vrot.lane.b32.xlu1 %v3654_v34, %s3777_s24  ;;  %v1882_v34 = vpack.c.bf16 %v5722_v18, %v5273_v47  ;;  %v1737_v50 = vsel %vm1610_vm12, %v3462_v57, %v3478_v21  ;;  %v1712_v47 = vsel %vm1610_vm12, %v3463_v28, %v3472_v24  ;;  %v1881_v8 = vpack.c.bf16 %v7219_v4, %v5671_v63 }
 0x23f   : > { %2185 = vmatpush1.bf16.msra.mxu0 %v7329_v32  ;;  %v2038_v18 = vpack.c.bf16 %v1738_v9, %v1738_v9  ;;  %v2067_v27 = vsel %vm2053_vm6, %v2035_v16, 0  ;;  %v2024_v56 = vpack.c.bf16 %v1724_v5, %v1712_v47  ;;  %v7340_v15 = vpack.c.bf16 %v5888_v12, %v5878_v19 }
 0x240   : > { %2224 = vmatpush1.bf16.msra.mxu1 %v7332_v37  ;;  %2186 = vmatprep.subr.bf16.mxu0 %v1880_v59  ;;  %v2037_v59 = vpack.c.bf16 %v1737_v50, %v1737_v50  ;;  %v3483_v28 = vunpack.i.h.bf16 %v5903_v23  ;;  %v7341_v21 = vunpack.i.l.bf16 %v5614_v29  ;;  %v7342_v19 = vunpack.i.l.bf16 %v5569_v6  ;;  %v7429_v23 = vld [vmem:[#allocation130_spill] sm:$0xff] }
 0x241   : > { %2225 = vmatprep.subr.bf16.mxu1 %v7336_v44  ;;  %v7343_v5 = vunpack.i.h.bf16 %v5612_v20 }
 0x242   : > { %v2073_v3 = vsel %vm2053_vm6, %v2037_v59, 0  ;;  %v1687_v61 = vsel %vm1610_vm12, %v7341_v21, %v3483_v28 }
 0x243   : > { %2187 = vmatpush1.bf16.msra.mxu0 %v1879_v60  ;;  %v6093_v63 = vpop.permute.xlu0 %3495  ;;  %v6095_v4 = vpop.permute.xlu1 %3500 }
 0x244   : > { %2226 = vmatpush1.bf16.msra.mxu1 %v7339_v54  ;;  %2639 = vmatprep.subr.msk.bf16.mxu0 %vm2053_vm6, %v2036_v41  ;;  %v3498_v45 = vunpack.i.h.bf16 %v6093_v63  ;;  %v3497_v57 = vunpack.i.l.bf16 %v6093_v63  ;;  %v3502_v25 = vunpack.i.l.bf16 %v6095_v4  ;;  %v3503_v0 = vunpack.i.h.bf16 %v6095_v4 }
 0x245   : > { %2227 = vmatprep.subr.bf16.mxu1 %v1882_v34 }
 0x246   : > { %v1699_v12 = vsel %vm1610_vm12, %v7342_v19, %v3498_v45  ;;  %v1688_v32 = vsel %vm1610_vm12, %v3483_v28, %v3497_v57  ;;  %v1700_v42 = vsel %vm1610_vm12, %v3498_v45, %v3502_v25  ;;  %v1713_v39 = vsel %vm1610_vm12, %v3472_v24, %v3503_v0  ;;  %v7346_v19 = vld [vmem:[#allocation54_spill] sm:$0xff] }
 0x247   : > { %2193 = vmatpush2.bf16.msra.mxu0 %v2067_v27  ;;  %v2011_v14 = vpack.c.bf16 %v1699_v12, %v1687_v61  ;;  %v6113_v37 = vpop.permute.xlu0 %3505  ;;  %v6115_v29 = vpop.permute.xlu1 %3510  ;;  %v2012_v48 = vpack.c.bf16 %v1700_v42, %v1688_v32  ;;  %v7344_v27 = vunpack.i.h.bf16 %v5971_v26  ;;  %v7347_v12 = vunpack.i.l.bf16 %v7346_v19 }
 0x248   : > { %2228 = vmatpush1.bf16.msra.mxu1 %v1881_v8  ;;  %2194 = vmatprep.subr.bf16.mxu0 %v2024_v56  ;;  %v3508_v6 = vunpack.i.h.bf16 %v6113_v37  ;;  %v3507_v38 = vunpack.i.l.bf16 %v6113_v37  ;;  %v3512_v40 = vunpack.i.l.bf16 %v6115_v29  ;;  %v3513_v20 = vunpack.i.h.bf16 %v6115_v29 }
 0x249   : > { %2641 = vmatprep.subr.msk.bf16.mxu1 %vm2053_vm6, %v2038_v18 }
 0x24a   : > { %v1725_v44 = vsel %vm1610_vm12, %v3477_v46, %v3508_v6  ;;  %v1714_v60 = vsel %vm1610_vm12, %v3503_v0, %v3507_v38  ;;  %v1726_v41 = vsel %vm1610_vm12, %v3508_v6, %v3512_v40 }
 0x24b   : > { %2195 = vmatpush2.bf16.msra.mxu0 %v7340_v15  ;;  %v2025_v34 = vpack.c.bf16 %v1725_v44, %v1713_v39  ;;  %v6128_v16 = vpop.permute.xlu0 %3515  ;;  %v6130_v9 = vpop.permute.xlu1 %3520  ;;  %v2026_v62 = vpack.c.bf16 %v1726_v41, %v1714_v60 }
 0x24c   : > { %2234 = vmatpush2.bf16.msra.mxu1 %v2073_v3  ;;  %2196 = vmatprep.subr.bf16.mxu0 %v2012_v48  ;;  %v3517_v35 = vunpack.i.l.bf16 %v6128_v16  ;;  %v3523_v24 = vunpack.i.h.bf16 %v6130_v9  ;;  %v3522_v46 = vunpack.i.l.bf16 %v6130_v9 }
 0x24d   : > { %2235 = vmatprep.subr.bf16.mxu1 %v2026_v62  ;;  %v3518_v62 = vunpack.i.h.bf16 %v6128_v16 }
 0x24e   : > { %v1159_v54 = vsel %vm1149_vm9, %v3373_v49, %v3517_v35  ;;  %v1198_v50 = vsel %vm1188_vm13, %v7343_v5, %v3522_v46  ;;  %v1199_v18 = vsel %vm1188_vm13, %v3522_v46, %v3523_v24 }
 0x24f   : > { %2197 = vmatpush2.bf16.msra.mxu0 %v2011_v14  ;;  %v3659_v47 = vpack.i.bf16 %v1198_v50, %v1159_v54  ;;  %v1226_v8 = vpop.permute.xlu0 %1225  ;;  %v7348_v50 = vld [vmem:[#allocation98_spill] sm:$0xff]  ;;  %v1160_v16 = vsel %vm1149_vm9, %v3517_v35, %v3518_v62 }
 0x250   : > { %2236 = vmatpush2.bf16.msra.mxu1 %v2025_v34  ;;  %v1239_v56 = vsel %vm1227_vm14, %v7344_v27, %v1226_v8  ;;  %v1265_v59 = vpop.permute.xlu1 %1264 }
 0x251   : > { %v3664_v3 = vpack.i.bf16 %v1239_v56, %v1199_v18  ;;  %v1278_v33 = vsel %vm1266_vm15, %v3493_v22, %v1265_v59  ;;  %3660 = vrot.lane.b32.xlu0 %v3659_v47, %s3777_s24  ;;  %v3674_v21 = vpack.i.bf16 %v5701_v13, %v1265_v59  ;;  %v7345_v22 = vunpack.i.l.bf16 %v5664_v53  ;;  %v7350_v18 = vld [vmem:[#allocation39_spill] sm:$0xff]  ;;  %v7351_v56 = vld [vmem:[#allocation16_spill] sm:$0xff] }
 0x252   : > { %v3669_v49 = vpack.i.bf16 %v1278_v33, %v1226_v8  ;;  %v7349_v47 = vunpack.i.h.bf16 %v7348_v50  ;;  %v7352_v59 = vunpack.i.h.bf16 %v7351_v56  ;;  %v7362_v50 = vld [vmem:[#allocation17_spill] sm:$0xff] }
 0x253   : > { %3665 = vrot.lane.b32.xlu1 %v3664_v3, %s3777_s24  ;;  %v1663_v61 = vsel %vm1610_vm12, %v7345_v22, %v3513_v20 }
 0x254   : > { %v6150_v15 = vpop.permute.xlu0 %3525  ;;  %v6155_v45 = vpop.permute.xlu1 %3530 }
 0x255   : > { %v3528_v28 = vunpack.i.h.bf16 %v6150_v15  ;;  %v3527_v26 = vunpack.i.l.bf16 %v6150_v15  ;;  %v3532_v11 = vunpack.i.l.bf16 %v6155_v45  ;;  %3670 = vrot.lane.b32.xlu0 %v3669_v49, %s3777_s24  ;;  %v3533_v32 = vunpack.i.h.bf16 %v6155_v45 }
 0x257   : > { %v1675_v0 = vsel %vm1610_vm12, %v7347_v12, %v3528_v28  ;;  %v1664_v42 = vsel %vm1610_vm12, %v3513_v20, %v3527_v26  ;;  %3675 = vrot.lane.b32.xlu1 %v3674_v21, %s3777_s24  ;;  %v1676_v53 = vsel %vm1610_vm12, %v3528_v28, %v3532_v11  ;;  %v1689_v41 = vsel %vm1610_vm12, %v3497_v57, %v3533_v32 }
 0x258   : > { %v1999_v14 = vpack.c.bf16 %v1675_v0, %v1663_v61  ;;  %v6170_v13 = vpop.permute.xlu0 %3535  ;;  %v6178_v39 = vpop.permute.xlu1 %3540  ;;  %v2000_v44 = vpack.c.bf16 %v1676_v53, %v1664_v42  ;;  %v7353_v61 = vld [vmem:[#allocation11_spill] sm:$0xff] }
 0x259   : > { %v3538_v48 = vunpack.i.h.bf16 %v6170_v13  ;;  %v3537_v6 = vunpack.i.l.bf16 %v6170_v13  ;;  %v3542_v60 = vunpack.i.l.bf16 %v6178_v39  ;;  %v2727_v35 = vunpack.i.l.bf16 %v7353_v61  ;;  %v7354_v0 = vld [vmem:[#allocation35_spill] sm:$0xff] }
 0x25a   : > { %2198 = vmatprep.subr.bf16.mxu0 %v2000_v44  ;;  %v3543_v19 = vunpack.i.h.bf16 %v6178_v39 }
 0x25b   : > { %v1701_v34 = vsel %vm1610_vm12, %v3502_v25, %v3538_v48  ;;  %v1690_v9 = vsel %vm1610_vm12, %v3533_v32, %v3537_v6  ;;  %2199 = vmatpush2.bf16.msra.mxu0 %v1999_v14  ;;  %v1702_v63 = vsel %vm1610_vm12, %v3538_v48, %v3542_v60 }
 0x25c   : > { %v2013_v46 = vpack.c.bf16 %v1701_v34, %v1689_v41  ;;  %v6191_v54 = vpop.permute.xlu0 %3545  ;;  %v3551_v4 = vpop.permute.xlu1 %3550  ;;  %v2014_v5 = vpack.c.bf16 %v1702_v63, %v1690_v9  ;;  %v7355_v41 = vld [vmem:[#allocation7_spill] sm:$0xff]  ;;  %v7360_v63 = vld [vmem:[#allocation137_spill] sm:$0xff] }
 0x25d   : > { %v3547_v57 = vunpack.i.l.bf16 %v6191_v54  ;;  %v3552_v25 = vunpack.i.l.bf16 %v3551_v4  ;;  %v3548_v21 = vunpack.i.h.bf16 %v6191_v54  ;;  %v7356_v34 = vunpack.i.h.bf16 %v7355_v41 }
 0x25e   : > { %2237 = vmatprep.subr.bf16.mxu1 %v2014_v5 }
 0x25f   : > { %v1081_v8 = vsel %vm1071_vm0, %v7349_v47, %v3547_v57  ;;  %v1120_v3 = vsel %vm1110_vm3, %v7352_v59, %v3552_v25  ;;  %2238 = vmatpush2.bf16.msra.mxu1 %v2013_v46  ;;  %v1082_v53 = vsel %vm1071_vm0, %v3547_v57, %v3548_v21  ;;  %v6225_v9 = vsel %vm7357_vm8, %v7356_v34, %v2727_v35  ;;  %v7361_v57 = vld [vmem:[#allocation9_spill] sm:$0xff] }
 0x260   : > { %v3679_v27 = vpack.i.bf16 %v7350_v18, %v1081_v8  ;;  %v1148_v33 = vpop.permute.xlu0 %1147  ;;  %v3684_v20 = vpack.i.bf16 %v1160_v16, %v1120_v3  ;;  %v1187_v28 = vpop.permute.xlu1 %1186  ;;  %v3699_v5 = vpack.i.bf16 %v7361_v57, %v7360_v63  ;;  %v7363_v47 = vunpack.i.l.bf16 %v7362_v50 }
 0x261   : > { %v1161_v49 = vsel %vm1149_vm9, %v3518_v62, %v1148_v33  ;;  %v1200_v22 = vsel %vm1188_vm13, %v3523_v24, %v1187_v28  ;;  %v3694_v32 = vpack.i.bf16 %v7354_v0, %v1187_v28  ;;  %v7358_v62 = vld [vmem:[#allocation29_spill] sm:$0xff]  ;;  %v3704_v56 = vpack.i.bf16 %v1082_v53, %v6225_v9  ;;  %vm7364_vm9 = vmmov %vm7357_vm8 }
 0x262   : > { %3680 = vrot.lane.b32.xlu0 %v3679_v27, %s3777_s24  ;;  %3685 = vrot.lane.b32.xlu1 %v3684_v20, %s3777_s24  ;;  %v3689_v12 = vpack.i.bf16 %v1200_v22, %v1161_v49  ;;  %v7359_v46 = vunpack.i.l.bf16 %v7358_v62  ;;  %v3553_v49 = vunpack.i.h.bf16 %v3551_v4 }
 0x264   : > { %v6213_v42 = vpop.permute.xlu0 %3555  ;;  %v6215_v14 = vpop.permute.xlu1 %3560  ;;  %v1639_v54 = vsel %vm1610_vm12, %v7359_v46, %v3543_v19  ;;  %v3745_v46 = vld [vmem:[%s3822_s23 + $0x60] sm:$0xff] }
 0x265   : > { %v3558_v48 = vunpack.i.h.bf16 %v6213_v42  ;;  %v3557_v24 = vunpack.i.l.bf16 %v6213_v42  ;;  %v3562_v44 = vunpack.i.l.bf16 %v6215_v14  ;;  %v3563_v16 = vunpack.i.h.bf16 %v6215_v14 }
 0x266   : > { %3690 = vrot.lane.b32.xlu0 %v3689_v12, %s3777_s24  ;;  %3695 = vrot.lane.b32.xlu1 %v3694_v32, %s3777_s24 }
 0x267   : > { %v1651_v8 = vsel %vm1610_vm12, %v7363_v47, %v3558_v48  ;;  %v1640_v18 = vsel %vm1610_vm12, %v3543_v19, %v3557_v24  ;;  %v1652_v27 = vsel %vm1610_vm12, %v3558_v48, %v3562_v44  ;;  %v2728_v19 = vunpack.i.h.bf16 %v7353_v61 }
 0x268   : > { %v1987_v59 = vpack.c.bf16 %v1651_v8, %v1639_v54  ;;  %v6244_v3 = vpop.permute.xlu0 %3565  ;;  %v6246_v33 = vpop.permute.xlu1 %3570  ;;  %v1988_v20 = vpack.c.bf16 %v1652_v27, %v1640_v18  ;;  %v1665_v32 = vsel %vm1610_vm12, %v3527_v26, %v3563_v16  ;;  %v1121_v26 = vsel %vm1110_vm3, %v3552_v25, %v3553_v49  ;;  %v3746_v18 = vld [vmem:[%s3822_s23 + $0x68] sm:$0xff] }
 0x269   : > { %v3568_v28 = vunpack.i.h.bf16 %v6244_v3  ;;  %v3567_v22 = vunpack.i.l.bf16 %v6244_v3  ;;  %v3572_v12 = vunpack.i.l.bf16 %v6246_v33  ;;  %v3573_v50 = vunpack.i.h.bf16 %v6246_v33 }
 0x26a   : > { %3700 = vrot.lane.b32.xlu0 %v3699_v5, %s3777_s24  ;;  %3705 = vrot.lane.b32.xlu1 %v3704_v56, %s3777_s24  ;;  %v1043_v5 = vsel %vm7364_vm9, %v2727_v35, %v2728_v19  ;;  %v7365_v56 = vunpack.i.l.bf16 %v5862_v2 }
 0x26b   : > { %2200 = vmatprep.subr.bf16.mxu0 %v1988_v20  ;;  %v1677_v4 = vsel %vm1610_vm12, %v3532_v11, %v3568_v28  ;;  %v1666_v53 = vsel %vm1610_vm12, %v3563_v16, %v3567_v22  ;;  %v1678_v61 = vsel %vm1610_vm12, %v3568_v28, %v3572_v12  ;;  %v3719_v27 = vpack.i.bf16 %v1043_v5, %v3746_v18 }
 0x26c   : > { %2201 = vmatpush2.bf16.msra.mxu0 %v1987_v59  ;;  %v2001_v48 = vpack.c.bf16 %v1677_v4, %v1665_v32  ;;  %v1070_v41 = vpop.permute.xlu0 %1069  ;;  %v1109_v34 = vpop.permute.xlu1 %1108  ;;  %v2002_v62 = vpack.c.bf16 %v1678_v61, %v1666_v53  ;;  %v1615_v35 = vsel %vm1610_vm12, %v7365_v56, %v3573_v50  ;;  %v7366_v59 = vunpack.i.l.bf16 %v5809_v31 }
 0x26d   : > { %v1083_v15 = vsel %vm1071_vm0, %v3548_v21, %v1070_v41  ;;  %v1122_v45 = vsel %vm1110_vm3, %v3553_v49, %v1109_v34  ;;  %vm2479_vm0 = vcmask 7168  }
 0x26e   : > { %v3709_v11 = vpack.i.bf16 %v1121_v26, %v1083_v15  ;;  %v3714_v54 = vpack.i.bf16 %v3745_v46, %v1122_v45  ;;  %2239 = vmatprep.subr.bf16.mxu1 %v2002_v62  ;;  %v3123_v62 = vunpack.i.h.bf16 %v7247_v43 }
 0x26f   : > { %2240 = vmatpush2.bf16.msra.mxu1 %v2001_v48 }
 0x270   : > { %v6272_v47 = vpop.permute.xlu0 %3575  ;;  %3715 = vrot.lane.b32.xlu1 %v3714_v54, %s3777_s24  ;;  %3710 = vrot.lane.b32.xlu0 %v3709_v11, %s3777_s24 }
 0x271   : > { %v3578_v25 = vunpack.i.h.bf16 %v6272_v47  ;;  %v3577_v21 = vunpack.i.l.bf16 %v6272_v47  ;;  %v7367_v47 = vunpack.i.l.bf16 %v7247_v43 }
 0x272   : > { %v3581_v8 = vpop.permute.xlu1 %3580 }
 0x273   : > { %v3582_v16 = vunpack.i.l.bf16 %v3581_v8  ;;  %v1627_v20 = vsel %vm1610_vm12, %v7366_v59, %v3578_v25  ;;  %v1616_v49 = vsel %vm1610_vm12, %v3573_v50, %v3577_v21  ;;  %v3583_v31 = vunpack.i.h.bf16 %v3581_v8 }
 0x274   : > { %v1975_v32 = vpack.c.bf16 %v1627_v20, %v1615_v35  ;;  %1374 = vrot.lane.b32.xlu1 %v2728_v19, %s3777_s24  ;;  %3720 = vrot.lane.b32.xlu0 %v3719_v27, %s3777_s24  ;;  %v974_v8 = vsel %vm965_vm1, %v7367_v47, %v3123_v62 }
 0x275   : > { %v1628_v28 = vsel %vm1610_vm12, %v3578_v25, %v3582_v16  ;;  %v1641_v14 = vsel %vm1610_vm12, %v3557_v24, %v3583_v31 }
 0x276   : > { %v1976_v53 = vpack.c.bf16 %v1628_v28, %v1616_v49 }
 0x278   : > { %v6287_v4 = vpop.permute.xlu0 %3585  ;;  %2202 = vmatprep.subr.bf16.mxu0 %v1976_v53 }
 0x279   : > { %v3588_v2 = vunpack.i.h.bf16 %v6287_v4  ;;  %v3587_v61 = vunpack.i.l.bf16 %v6287_v4  ;;  %2203 = vmatpush2.bf16.msra.mxu0 %v1975_v32 }
 0x27b   : > { %v1653_v19 = vsel %vm1610_vm12, %v3562_v44, %v3588_v2  ;;  %v1642_v26 = vsel %vm1610_vm12, %v3583_v31, %v3587_v61 }
 0x27c   : > { %v3596_v48 = vpop.permute.xlu0 %3595  ;;  %2205 = vmatmul.mubr.bf16.vlgmr.msra.gmra.mxu0 %v5866_v7  ;;  %v1989_v54 = vpack.c.bf16 %v1653_v19, %v1641_v14  ;;  %v7371_v19 = vld [vmem:[#allocation77_spill] sm:$0xff] }
 0x27d   : > { %v3597_v15 = vunpack.i.l.bf16 %v3596_v48  ;;  %2644 = vmatprep.mubr.msk.bf16.mxu0 %vm1016_vm2, %v5321_v10  ;;  %v3598_v56 = vunpack.i.h.bf16 %v3596_v48  ;;  %v7370_v48 = vunpack.i.h.bf16 %v7270_v51  ;;  %v7375_v51 = vld [vmem:[#allocation57_spill] sm:$0xff] }
 0x27e   : > { %v6293_v41 = vpop.permute.xlu1 %3590 }
 0x27f   : > { %v3592_v34 = vunpack.i.l.bf16 %v6293_v41  ;;  %v975_v24 = vsel %vm965_vm1, %v3123_v62, %v3597_v15  ;;  %v3593_v35 = vunpack.i.h.bf16 %v6293_v41 }
 0x280   : > { %v6312_v11 = vpop.permute.xlu0 %3605 }
 0x281   : > { %v1654_v45 = vsel %vm1610_vm12, %v3588_v2, %v3592_v34  ;;  %v3608_v25 = vunpack.i.h.bf16 %v6312_v11  ;;  %v3607_v18 = vunpack.i.l.bf16 %v6312_v11  ;;  %v7368_v2 = vld [vmem:[#allocation105_spill] sm:$0xff] }
 0x282   : > { %v3601_v44 = vpop.permute.xlu1 %3600  ;;  %v1990_v46 = vpack.c.bf16 %v1654_v45, %v1642_v26  ;;  %v7369_v31 = vunpack.i.l.bf16 %v7368_v2  ;;  %v2937_v26 = vunpack.i.l.bf16 %v7371_v19  ;;  %v1617_v45 = vsel %vm1610_vm12, %v3577_v21, %v3593_v35  ;;  %v7376_v21 = vld [vmem:[#allocation122_spill] sm:$0xff] }
 0x283   : > { %v3603_v5 = vunpack.i.h.bf16 %v3601_v44  ;;  %v3602_v50 = vunpack.i.l.bf16 %v3601_v44  ;;  %v1629_v28 = vsel %vm1610_vm12, %v3582_v16, %v3608_v25  ;;  %v976_v16 = vsel %vm965_vm1, %v3597_v15, %v3598_v56  ;;  %v7372_v44 = vld [vmem:[#allocation124_spill] sm:$0xff] }
 0x284   : > { %2241 = vmatprep.subr.bf16.mxu1 %v1990_v46  ;;  %v964_v32 = vpop.permute.xlu0 %963  ;;  %v822_v62 = vsel %vm812_vm10, %v7370_v48, %v7369_v31  ;;  %v7373_v46 = vld [vmem:[#allocation121_spill] sm:$0xff]  ;;  %v1977_v47 = vpack.c.bf16 %v1629_v28, %v1617_v45  ;;  %v7379_v28 = vld [vmem:[#allocation74_spill] sm:$0xff]  ;;  %v7383_v48 = vunpack.i.h.bf16 %v7368_v2 }
 0x285   : > { %v1025_v42 = vsel %vm1016_vm2, %v5901_v58, %v3602_v50  ;;  %2242 = vmatpush2.bf16.msra.mxu1 %v1989_v54  ;;  %v1026_v27 = vsel %vm1016_vm2, %v3602_v50, %v3603_v5  ;;  %v1618_v58 = vsel %vm1610_vm12, %v3593_v35, %v3607_v18  ;;  %v7374_v54 = vpack.c.bf16 %v7372_v44, %v7373_v46  ;;  %v7377_v35 = vld [vmem:[#allocation112_spill] sm:$0xff]  ;;  %v7384_v45 = vld [vmem:[#allocation109_spill] sm:$0xff] }
 0x286   : > { %v1967_v59 = vpack.c.bf16 %v1025_v42, %v974_v8  ;;  %v1968_v20 = vpack.c.bf16 %v1026_v27, %v975_v24  ;;  %v977_v42 = vsel %vm965_vm1, %v3598_v56, %v964_v32  ;;  %v1944_v24 = vpack.c.bf16 %v822_v62, %v7375_v51  ;;  %v7381_v56 = vld [vmem:[#allocation72_spill] sm:$0xff]  ;;  %v7388_v46 = vld [vmem:[#allocation125_spill] sm:$0xff] }
 0x288   : > { %2254 = vmatprep.subr.bf16.mxu0 %v1968_v20 }
 0x289   : > { %2255 = vmatpush1.bf16.msra.mxu0 %v1967_v59  ;;  %v7378_v59 = vpack.c.bf16 %v7376_v21, %v7377_v35  ;;  %v7398_v35 = vld [vmem:[#allocation67_spill] sm:$0xff] }
 0x28a   : > { %2256 = vmatprep.subr.bf16.mxu0 %v7374_v54 }
 0x28d   : > { %2257 = vmatpush1.bf16.msra.mxu0 %v7378_v59  ;;  %v7399_v59 = vld [vmem:[#allocation56_spill] sm:$0xff] }
 0x28e   : > { %v6324_v43 = vpop.permute.xlu1 %3610  ;;  %2258 = vmatprep.subr.bf16.mxu0 %v1944_v24 }
 0x28f   : > { %v3612_v49 = vunpack.i.l.bf16 %v6324_v43 }
 0x291   : > { %v1630_v53 = vsel %vm1610_vm12, %v3608_v25, %v3612_v49 }
 0x292   : > { %v3616_v14 = vpop.permute.xlu1 %3615  ;;  %v1978_v50 = vpack.c.bf16 %v1630_v53, %v1618_v58  ;;  %v7380_v58 = vunpack.i.h.bf16 %v7379_v28 }
 0x293   : > { %v3618_v8 = vunpack.i.h.bf16 %v3616_v14  ;;  %v3617_v25 = vunpack.i.l.bf16 %v3616_v14  ;;  %v7385_v14 = vld [vmem:[#allocation91_spill] sm:$0xff] }
 0x294   : > { %2243 = vmatprep.subr.bf16.mxu1 %v1978_v50  ;;  %v668_v53 = vsel %vm658_vm7, %v7380_v58, %v2937_v26  ;;  %v7386_v44 = vpack.c.bf16 %v7384_v45, %v7385_v14  ;;  %v7390_v50 = vld [vmem:[#allocation76_spill] sm:$0xff] }
 0x295   : > { %v1027_v27 = vsel %vm1016_vm2, %v3603_v5, %v3617_v25  ;;  %v1028_v15 = vsel %vm1016_vm2, %v3617_v25, %v3618_v8  ;;  %2244 = vmatpush2.bf16.msra.mxu1 %v1977_v47  ;;  %v1932_v32 = vpack.c.bf16 %v7381_v56, %v668_v53  ;;  %v7382_v5 = vld [vmem:[#allocation110_spill] sm:$0xff]  ;;  %v7391_v47 = vld [vmem:[#allocation88_spill] sm:$0xff]  ;;  %v7392_v25 = vld [vmem:[#allocation119_spill] sm:$0xff] }
 0x296   : > { %v1969_v20 = vpack.c.bf16 %v1027_v27, %v976_v16  ;;  %v1970_v31 = vpack.c.bf16 %v1028_v15, %v977_v42  ;;  %v824_v62 = vsel %vm812_vm10, %v7383_v48, %v7382_v5  ;;  %2259 = vmatpush1.bf16.msra.mxu0 %v7386_v44  ;;  %v7387_v16 = vld [vmem:[#allocation126_spill] sm:$0xff]  ;;  %v1931_v8 = vpack.c.bf16 %v7391_v47, %v7390_v50  ;;  %v7395_v27 = vld [vmem:[#allocation69_spill] sm:$0xff]  ;;  %v7405_v56 = vld [vmem:[#allocation51_spill] sm:$0xff] }
 0x297   : > { %2260 = vmatprep.subr.bf16.mxu0 %v1932_v32  ;;  %v7389_v54 = vpack.c.bf16 %v7387_v16, %v7388_v46  ;;  %v1946_v2 = vpack.c.bf16 %v824_v62, %v5927_v17  ;;  %v7393_v42 = vld [vmem:[#allocation118_spill] sm:$0xff]  ;;  %v7403_v17 = vunpack.i.h.bf16 %v7371_v19  ;;  %v7407_v5 = vld [vmem:[#allocation87_spill] sm:$0xff]  ;;  %v7409_v19 = vld [vmem:[#allocation48_spill] sm:$0xff] }
 0x298   : > { %2246 = vmatmul.mubr.bf16.vlgmr.msra.gmra.mxu1 %v5866_v7  ;;  %2295 = vmatprep.subr.bf16.mxu1 %v1970_v31  ;;  %v7394_v51 = vpack.c.bf16 %v7392_v25, %v7393_v42  ;;  %v7396_v15 = vld [vmem:[#allocation66_spill] sm:$0xff]  ;;  %v7401_v31 = vld [vmem:[#allocation108_spill] sm:$0xff]  ;;  %v7408_v48 = vpack.c.bf16 %v7290_v1, %v7407_v5  ;;  %v7410_v44 = vld [vmem:[#allocation37_spill] sm:$0xff] }
 0x299   : > { %2296 = vmatpush1.bf16.msra.mxu1 %v1969_v20  ;;  %2646 = vmatprep.mubr.msk.bf16.mxu1 %vm1016_vm2, %v5321_v10  ;;  %v7397_v21 = vpack.c.bf16 %v7395_v27, %v7396_v15  ;;  %v7400_v20 = vpack.c.bf16 %v7398_v35, %v7399_v59  ;;  %v7402_v10 = vpack.c.bf16 %v7401_v31, %v7245_v52  ;;  %v7404_v53 = vld [vmem:[#allocation50_spill] sm:$0xff]  ;;  %v3613_v52 = vunpack.i.h.bf16 %v6324_v43  ;;  %v7412_v46 = vld [vmem:[#allocation31_spill] sm:$0xff] }
 0x29a   : > { %2297 = vmatprep.subr.bf16.mxu1 %v7389_v54  ;;  %2261 = vmatpush1.bf16.msra.mxu0 %v1931_v8  ;;  %v669_v28 = vsel %vm658_vm7, %v2937_v26, %v7403_v17  ;;  %v7406_v32 = vpack.c.bf16 %v7404_v53, %v7405_v56  ;;  %v7411_v26 = vpack.c.bf16 %v7409_v19, %v7410_v44  ;;  %v7413_v54 = vld [vmem:[#allocation27_spill] sm:$0xff]  ;;  %v7416_v1 = vld [vmem:[#allocation70_spill] sm:$0xff]  ;;  %v7425_v53 = vld [vmem:[#allocation53_spill] sm:$0xff] }
 0x29b   : > { %2262 = vmatprep.subr.bf16.mxu0 %v7397_v21  ;;  %v1933_v62 = vpack.c.bf16 %v7274_v55, %v669_v28  ;;  %v7414_v50 = vpack.c.bf16 %v7412_v46, %v7413_v54  ;;  %v7415_v47 = vld [vmem:[#allocation71_spill] sm:$0xff]  ;;  %v7418_v55 = vld [vmem:[#allocation136_spill] sm:$0xff]  ;;  %v7431_v44 = vld [vmem:[#allocation45_spill] sm:$0xff] }
 0x29c   : > { %v7417_v8 = vpack.c.bf16 %v7415_v47, %v7416_v1  ;;  %v7420_v27 = vld [vmem:[#allocation15_spill] sm:$0xff]  ;;  %v7422_v21 = vld [vmem:[#allocation64_spill] sm:$0xff]  ;;  %v7433_v47 = vld [vmem:[#allocation33_spill] sm:$0xff] }
 0x29d   : > { %2298 = vmatpush1.bf16.msra.mxu1 %v7394_v51  ;;  %v7419_v51 = vld [vmem:[#allocation28_spill] sm:$0xff]  ;;  %v7423_v35 = vld [vmem:[#allocation63_spill] sm:$0xff] }
 0x29e   : > { %2299 = vmatprep.subr.bf16.mxu1 %v1946_v2  ;;  %2263 = vmatpush1.bf16.msra.mxu0 %v7400_v20  ;;  %v1884_v2 = vpack.c.bf16 %v5825_v36, %v7418_v55  ;;  %v7421_v15 = vpack.c.bf16 %v7419_v51, %v7420_v27  ;;  %v7424_v59 = vpack.c.bf16 %v7422_v21, %v7423_v35  ;;  %v7426_v56 = vld [vmem:[#allocation52_spill] sm:$0xff]  ;;  %v7436_v35 = vld [vmem:[#allocation25_spill] sm:$0xff] }
 0x29f   : > { %2264 = vmatprep.subr.bf16.mxu0 %v7406_v32  ;;  %v1739_v20 = vsel %vm1610_vm12, %v3482_v30, %v3613_v52  ;;  %v7427_v32 = vpack.c.bf16 %v7425_v53, %v7426_v56  ;;  %v7434_v1 = vld [vmem:[#allocation32_spill] sm:$0xff]  ;;  %v1886_v27 = vpack.c.bf16 %v6225_v9, %v7360_v63 }
 0x2a0   : > { %v3621_v24 = vpop.permute.xlu0 %3620  ;;  %v6387_v58 = vpop.permute.xlu1 %3625 }
 0x2a1   : > { %2300 = vmatpush1.bf16.msra.mxu1 %v7402_v10  ;;  %v3622_v14 = vunpack.i.l.bf16 %v3621_v24  ;;  %v3628_v31 = vunpack.i.h.bf16 %v6387_v58  ;;  %v3627_v36 = vunpack.i.l.bf16 %v6387_v58  ;;  %v3623_v10 = vunpack.i.h.bf16 %v3621_v24  ;;  %v7430_v24 = vld [vmem:[#allocation46_spill] sm:$0xff] }
 0x2a2   : > { %2301 = vmatprep.subr.bf16.mxu1 %v7408_v48  ;;  %2265 = vmatpush1.bf16.msra.mxu0 %v7411_v26  ;;  %v7428_v48 = vld [vmem:[#allocation38_spill] sm:$0xff]  ;;  %v7432_v26 = vpack.c.bf16 %v7430_v24, %v7431_v44 }
 0x2a3   : > { %2266 = vmatprep.subr.bf16.mxu0 %v7414_v50  ;;  %v1740_v25 = vsel %vm1610_vm12, %v3613_v52, %v3622_v14  ;;  %v2039_v52 = vpack.c.bf16 %v1739_v20, %v1739_v20  ;;  %v1727_v54 = vsel %vm1610_vm12, %v3512_v40, %v3628_v31  ;;  %v1716_v55 = vsel %vm1610_vm12, %v3623_v10, %v3627_v36 }
 0x2a4   : > { %v6396_v45 = vpop.permute.xlu0 %3630  ;;  %v2040_v30 = vpack.c.bf16 %v1740_v25, %v1740_v25 }
 0x2a5   : > { %2302 = vmatpush1.bf16.msra.mxu1 %v1933_v62  ;;  %v3632_v42 = vunpack.i.l.bf16 %v6396_v45  ;;  %v3633_v5 = vunpack.i.h.bf16 %v6396_v45  ;;  %v1883_v62 = vpack.c.bf16 %v7429_v23, %v7428_v48  ;;  %v1715_v45 = vsel %vm1610_vm12, %v3507_v38, %v3623_v10 }
 0x2a6   : > { %2303 = vmatprep.subr.bf16.mxu1 %v7417_v8  ;;  %2267 = vmatpush1.bf16.msra.mxu0 %v7421_v15  ;;  %v7435_v8 = vpack.c.bf16 %v7433_v47, %v7434_v1  ;;  %v2079_v37 = vsel %vm2053_vm6, %v2039_v52, 0 }
 0x2a7   : > { %2268 = vmatprep.subr.bf16.mxu0 %v1884_v2  ;;  %v1728_v46 = vsel %vm1610_vm12, %v3628_v31, %v3632_v42  ;;  %v1741_v40 = vsel %vm1610_vm12, %v3622_v14, %v3633_v5  ;;  %v2027_v14 = vpack.c.bf16 %v1727_v54, %v1715_v45  ;;  %v1885_v31 = vpack.c.bf16 %v7361_v57, %v7354_v0 }
 0x2a8   : > { %v3636_v16 = vpop.permute.xlu1 %3635  ;;  %v2028_v38 = vpack.c.bf16 %v1728_v46, %v1716_v55  ;;  %v2041_v10 = vpack.c.bf16 %v1741_v40, %v1741_v40 }
 0x2a9   : > { %2304 = vmatpush1.bf16.msra.mxu1 %v7424_v59  ;;  %v6423_v17 = vpop.permute.xlu0 %3640  ;;  %v3637_v19 = vunpack.i.l.bf16 %v3636_v16  ;;  %v3638_v2 = vunpack.i.h.bf16 %v3636_v16  ;;  %v7437_v59 = vld [vmem:[#allocation24_spill] sm:$0xff] }
 0x2aa   : > { %2305 = vmatprep.subr.bf16.mxu1 %v7427_v32  ;;  %2269 = vmatpush1.bf16.msra.mxu0 %v1883_v62  ;;  %v3643_v25 = vunpack.i.h.bf16 %v6423_v17  ;;  %v3642_v29 = vunpack.i.l.bf16 %v6423_v17  ;;  %v7438_v16 = vpack.c.bf16 %v7436_v35, %v7437_v59 }
 0x2ab   : > { %2643 = vmatprep.subr.msk.bf16.mxu0 %vm2053_vm6, %v2040_v30  ;;  %v1742_v15 = vsel %vm1610_vm12, %v3633_v5, %v3637_v19  ;;  %v1691_v32 = vsel %vm1610_vm12, %v3537_v6, %v3638_v2  ;;  %v2085_v30 = vsel %vm2053_vm6, %v2041_v10, 0 }
 0x2ac   : > { %v6425_v28 = vpop.permute.xlu1 %3645  ;;  %v1692_v56 = vsel %vm1610_vm12, %v3638_v2, %v3642_v29  ;;  %v2042_v5 = vpack.c.bf16 %v1742_v15, %v1742_v15  ;;  %v1703_v48 = vsel %vm1610_vm12, %v3542_v60, %v3643_v25 }
 0x2ad   : > { %v3647_v58 = vunpack.i.l.bf16 %v6425_v28  ;;  %2306 = vmatpush1.bf16.msra.mxu1 %v7432_v26  ;;  %v3651_v51 = vpop.permute.xlu0 %3650  ;;  %v3648_v9 = vunpack.i.h.bf16 %v6425_v28  ;;  %v2015_v57 = vpack.c.bf16 %v1703_v48, %v1691_v32  ;;  %v6514_v28 = vld [vmem:[%s6624_s2] sm:$0xff] }
 0x2ae   : > { %2307 = vmatprep.subr.bf16.mxu1 %v7435_v8  ;;  %2275 = vmatpush2.bf16.msra.mxu0 %v2079_v37  ;;  %v3653_v63 = vunpack.i.h.bf16 %v3651_v51  ;;  %v3652_v53 = vunpack.i.l.bf16 %v3651_v51 }
 0x2af   : > { %v1704_v20 = vsel %vm1610_vm12, %v3643_v25, %v3647_v58  ;;  %2276 = vmatprep.subr.bf16.mxu0 %v2028_v38  ;;  %v1717_v13 = vsel %vm1610_vm12, %v3627_v36, %v3648_v9 }
 0x2b0   : > { %v3656_v50 = vpop.permute.xlu1 %3655  ;;  %v2016_v23 = vpack.c.bf16 %v1704_v20, %v1692_v56  ;;  %v1718_v62 = vsel %vm1610_vm12, %v3648_v9, %v3652_v53  ;;  %v1729_v6 = vsel %vm1610_vm12, %v3632_v42, %v3653_v63  ;;  %v2394_v42 = vlaneseq }
 0x2b1   : > { %v3657_v21 = vunpack.i.l.bf16 %v3656_v50  ;;  %2308 = vmatpush1.bf16.msra.mxu1 %v7438_v16  ;;  %v2029_v60 = vpack.c.bf16 %v1729_v6, %v1717_v13  ;;  %v3658_v44 = vunpack.i.h.bf16 %v3656_v50 }
 0x2b2   : > { %2309 = vmatprep.subr.bf16.mxu1 %v1886_v27  ;;  %2277 = vmatpush2.bf16.msra.mxu0 %v2027_v14  ;;  %v6500_v40 = vshrl.u32 %v2394_v42, 7 }
 0x2b3   : > { %v1730_v0 = vsel %vm1610_vm12, %v3653_v63, %v3657_v21  ;;  %2278 = vmatprep.subr.bf16.mxu0 %v2016_v23  ;;  %v1667_v8 = vsel %vm1610_vm12, %v3567_v22, %v3658_v44 }
 0x2b4   : > { %v2030_v39 = vpack.c.bf16 %v1730_v0, %v1718_v62  ;;  %v2396_v15 = vsub.s32 0, %v6500_v40  ;;  %v2400_v21 = vsub.s32 1, %v6500_v40  ;;  %v2408_v14 = vsub.s32 3, %v6500_v40 }
 0x2b5   : > { %2310 = vmatpush1.bf16.msra.mxu1 %v1885_v31 }
 0x2b6   : > { %2645 = vmatprep.subr.msk.bf16.mxu1 %vm2053_vm6, %v2042_v5  ;;  %2279 = vmatpush2.bf16.msra.mxu0 %v2015_v57  ;;  %v2397_v17 = vrot.slane %v6514_v28, %v2396_v15  ;;  %v2401_v63 = vrot.slane %v6514_v28, %v2400_v21  ;;  %v2409_v13 = vrot.slane %v6514_v28, %v2408_v14 }
 0x2b9   : > { %2316 = vmatpush2.bf16.msra.mxu1 %v2085_v30 }
 0x2ba   : > { %2317 = vmatprep.subr.bf16.mxu1 %v2030_v39 }
 0x2bd   : > { %2318 = vmatpush2.bf16.msra.mxu1 %v2029_v60 }
 0x2c3   : > { %v6480_v52 = vpop.permute.xlu0 %3660 }
 0x2c4   : > { %v3663_v19 = vunpack.i.h.bf16 %v6480_v52  ;;  %v3662_v24 = vunpack.i.l.bf16 %v6480_v52 }
 0x2c5   : > { %v6484_v26 = vpop.permute.xlu1 %3665 }
 0x2c6   : > { %v3667_v36 = vunpack.i.l.bf16 %v6484_v26  ;;  %v1679_v46 = vsel %vm1610_vm12, %v3572_v12, %v3663_v19  ;;  %v1668_v1 = vsel %vm1610_vm12, %v3658_v44, %v3662_v24  ;;  %v3668_v55 = vunpack.i.h.bf16 %v6484_v26 }
 0x2c7   : > { %v3671_v54 = vpop.permute.xlu0 %3670  ;;  %v2003_v12 = vpack.c.bf16 %v1679_v46, %v1667_v8 }
 0x2c8   : > { %v3673_v45 = vunpack.i.h.bf16 %v3671_v54  ;;  %v3672_v47 = vunpack.i.l.bf16 %v3671_v54  ;;  %v1680_v50 = vsel %vm1610_vm12, %v3663_v19, %v3667_v36  ;;  %v1693_v22 = vsel %vm1610_vm12, %v3642_v29, %v3668_v55 }
 0x2c9   : > { %v3676_v33 = vpop.permute.xlu1 %3675  ;;  %v2004_v2 = vpack.c.bf16 %v1680_v50, %v1668_v1  ;;  %v2404_v29 = vsub.s32 2, %v6500_v40 }
 0x2ca   : > { %v3677_v25 = vunpack.i.l.bf16 %v3676_v33  ;;  %v1705_v51 = vsel %vm1610_vm12, %v3647_v58, %v3673_v45  ;;  %v1694_v37 = vsel %vm1610_vm12, %v3668_v55, %v3672_v47  ;;  %v3678_v58 = vunpack.i.h.bf16 %v3676_v33 }
 0x2cb   : > { %2280 = vmatprep.subr.bf16.mxu0 %v2004_v2  ;;  %v2017_v27 = vpack.c.bf16 %v1705_v51, %v1693_v22  ;;  %v2405_v0 = vrot.slane %v6514_v28, %v2404_v29 }
 0x2cc   : > { %2281 = vmatpush2.bf16.msra.mxu0 %v2003_v12  ;;  %v1706_v3 = vsel %vm1610_vm12, %v3673_v45, %v3677_v25  ;;  %v1643_v31 = vsel %vm1610_vm12, %v3587_v61, %v3678_v58 }
 0x2cd   : > { %v2018_v38 = vpack.c.bf16 %v1706_v3, %v1694_v37 }
 0x2cf   : > { %2319 = vmatprep.subr.bf16.mxu1 %v2018_v38 }
 0x2d0   : > { %2320 = vmatpush2.bf16.msra.mxu1 %v2017_v27 }
 0x2d4   : > { %v6520_v35 = vpop.permute.xlu0 %3680  ;;  %v6523_v59 = vpop.permute.xlu1 %3685 }
 0x2d5   : > { %v3683_v16 = vunpack.i.h.bf16 %v6520_v35  ;;  %v3682_v20 = vunpack.i.l.bf16 %v6520_v35  ;;  %v3687_v10 = vunpack.i.l.bf16 %v6523_v59  ;;  %v3688_v53 = vunpack.i.h.bf16 %v6523_v59 }
 0x2d7   : > { %v1655_v56 = vsel %vm1610_vm12, %v3592_v34, %v3683_v16  ;;  %v1644_v32 = vsel %vm1610_vm12, %v3678_v58, %v3682_v20  ;;  %v1656_v48 = vsel %vm1610_vm12, %v3683_v16, %v3687_v10  ;;  %v1669_v44 = vsel %vm1610_vm12, %v3662_v24, %v3688_v53 }
 0x2d8   : > { %v1991_v5 = vpack.c.bf16 %v1655_v56, %v1643_v31  ;;  %v3691_v61 = vpop.permute.xlu0 %3690  ;;  %v3696_v57 = vpop.permute.xlu1 %3695  ;;  %v1992_v34 = vpack.c.bf16 %v1656_v48, %v1644_v32 }
 0x2d9   : > { %v3693_v41 = vunpack.i.h.bf16 %v3691_v61  ;;  %v3692_v62 = vunpack.i.l.bf16 %v3691_v61  ;;  %v3698_v6 = vunpack.i.h.bf16 %v3696_v57  ;;  %v3697_v30 = vunpack.i.l.bf16 %v3696_v57 }
 0x2da   : > { %2282 = vmatprep.subr.bf16.mxu0 %v1992_v34 }
 0x2db   : > { %v1681_v42 = vsel %vm1610_vm12, %v3667_v36, %v3693_v41  ;;  %v1670_v46 = vsel %vm1610_vm12, %v3688_v53, %v3692_v62  ;;  %2283 = vmatpush2.bf16.msra.mxu0 %v1991_v5  ;;  %v1682_v50 = vsel %vm1610_vm12, %v3693_v41, %v3697_v30  ;;  %v1619_v12 = vsel %vm1610_vm12, %v3607_v18, %v3698_v6 }
 0x2dc   : > { %v2005_v47 = vpack.c.bf16 %v1681_v42, %v1669_v44  ;;  %v3701_v1 = vpop.permute.xlu0 %3700  ;;  %v3706_v52 = vpop.permute.xlu1 %3705  ;;  %v2006_v2 = vpack.c.bf16 %v1682_v50, %v1670_v46  ;;  %v2412_v42 = vsub.s32 4, %v6500_v40  ;;  %v2416_v46 = vsub.s32 5, %v6500_v40 }
 0x2dd   : > { %v3703_v33 = vunpack.i.h.bf16 %v3701_v1  ;;  %v3702_v24 = vunpack.i.l.bf16 %v3701_v1  ;;  %v3707_v25 = vunpack.i.l.bf16 %v3706_v52  ;;  %v3708_v18 = vunpack.i.h.bf16 %v3706_v52 }
 0x2de   : > { %2321 = vmatprep.subr.bf16.mxu1 %v2006_v2 }
 0x2df   : > { %v1631_v3 = vsel %vm1610_vm12, %v3612_v49, %v3703_v33  ;;  %v1620_v22 = vsel %vm1610_vm12, %v3698_v6, %v3702_v24  ;;  %2322 = vmatpush2.bf16.msra.mxu1 %v2005_v47  ;;  %v1632_v16 = vsel %vm1610_vm12, %v3703_v33, %v3707_v25  ;;  %v1645_v48 = vsel %vm1610_vm12, %v3682_v20, %v3708_v18 }
 0x2e0   : > { %v1980_v31 = vpack.c.bf16 %v1632_v16, %v1620_v22 }
 0x2e2   : > { %v3716_v56 = vpop.permute.xlu1 %3715  ;;  %v3711_v49 = vpop.permute.xlu0 %3710  ;;  %2284 = vmatprep.subr.bf16.mxu0 %v1980_v31 }
 0x2e3   : > { %v3713_v5 = vunpack.i.h.bf16 %v3711_v49  ;;  %v3712_v61 = vunpack.i.l.bf16 %v3711_v49 }
 0x2e5   : > { %v2124_v9 = vpop.f32.mrf.mxu0  ;;  %v1657_v57 = vsel %vm1610_vm12, %v3687_v10, %v3713_v5  ;;  %v1646_v41 = vsel %vm1610_vm12, %v3708_v18, %v3712_v61 }
 0x2e6   : > { %v2454_v4 = vmul.f32 %v2397_v17, %v2124_v9  ;;  %v1979_v17 = vpack.c.bf16 %v1631_v3, %v1619_v12  ;;  %v1993_v34 = vpack.c.bf16 %v1657_v57, %v1645_v48  ;;  %v1375_v35 = vpop.permute.xlu1 %1374 }
 0x2e7   : > { %v2126_v23 = vpop.f32.mrf.mxu0 }
 0x2e8   : > { %v2655_v39 = vpack.c.bf16 %v2126_v23, %v2124_v9  ;;  %v2455_v60 = vmul.f32 %v2401_v63, %v2126_v23  ;;  %v2481_v54 = vmul.f32 %v2454_v4, %v2454_v4  ;;  %2285 = vmatpush2.bf16.msra.mxu0 %v1979_v17 }
 0x2e9   : > { %v2128_v19 = vpop.f32.mrf.mxu0 }
 0x2ea   : > { %v2165_v45 = vpop.f32.mrf.mxu1  ;;  %2384 = vst [vmem:[%s6552_s6] sm:$0xff] %v2655_v39  ;;  %v2466_v8 = vadd.f32 %v2455_v60, %v2454_v4  ;;  %v2482_v26 = vmul.f32 %v2455_v60, %v2455_v60  ;;  %v3717_v4 = vunpack.i.l.bf16 %v3716_v56 }
 0x2eb   : > { %v2129_v55 = vpop.f32.mrf.mxu0  ;;  %v2456_v51 = vmul.f32 %v2405_v0, %v2165_v45  ;;  %v3718_v0 = vunpack.i.h.bf16 %v3716_v56  ;;  %2287 = vmatmul.mubr.bf16.vlgmr.msra.gmra.mxu0 %v5866_v7  ;;  %v2391_v56 = vld [vmem:[%s6624_s2 + $0x8] sm:$0xf] }
 0x2ec   : > { %v2167_v36 = vpop.f32.mrf.mxu1  ;;  %v2493_v38 = vadd.f32 %v2482_v26, %v2481_v54  ;;  %v1658_v62 = vsel %vm1610_vm12, %v3713_v5, %v3717_v4  ;;  %v2413_v54 = vrot.slane %v6514_v28, %v2412_v42 }
 0x2ed   : > { %v2656_v37 = vpack.c.bf16 %v2167_v36, %v2165_v45  ;;  %v2457_v27 = vmul.f32 %v2409_v13, %v2167_v36  ;;  %v2467_v11 = vadd.f32 %v2466_v8, %v2456_v51  ;;  %v2483_v9 = vmul.f32 %v2456_v51, %v2456_v51  ;;  %v3721_v13 = vpop.permute.xlu0 %3720 }
 0x2ee   : > { %v2169_v58 = vpop.f32.mrf.mxu1  ;;  %v1994_v6 = vpack.c.bf16 %v1658_v62, %v1646_v41  ;;  %v3723_v30 = vunpack.i.h.bf16 %v3721_v13  ;;  %v3722_v39 = vunpack.i.l.bf16 %v3721_v13  ;;  %v1621_v20 = vsel %vm1610_vm12, %v3702_v24, %v3718_v0 }
 0x2ef   : > { %2385 = vst [vmem:[%s6552_s6 + $0x8] sm:$0xff] %v2656_v37  ;;  %v2484_v63 = vmul.f32 %v2457_v27, %v2457_v27  ;;  %v2468_v43 = vadd.f32 %v2467_v11, %v2457_v27  ;;  %v2494_v32 = vadd.f32 %v2493_v38, %v2483_v9  ;;  %v2417_v45 = vrot.slane %v6514_v28, %v2416_v46 }
 0x2f0   : > { %v2170_v53 = vpop.f32.mrf.mxu1  ;;  %2323 = vmatprep.subr.bf16.mxu1 %v1994_v6  ;;  %v1633_v60 = vsel %vm1610_vm12, %v3707_v25, %v3723_v30  ;;  %v1622_v59 = vsel %vm1610_vm12, %v3718_v0, %v3722_v39  ;;  %v1634_v10 = vsel %vm1610_vm12, %v3723_v30, %v1375_v35  ;;  %v2420_v25 = vsub.s32 6, %v6500_v40 }
 0x2f1   : > { %v2495_v23 = vadd.f32 %v2494_v32, %v2484_v63  ;;  %2324 = vmatpush2.bf16.msra.mxu1 %v1993_v34  ;;  %v1981_v19 = vpack.c.bf16 %v1633_v60, %v1621_v20  ;;  %v1982_v44 = vpack.c.bf16 %v1634_v10, %v1622_v59  ;;  %v2424_v51 = vsub.s32 7, %v6500_v40 }
 0x2f2   : > { %v2421_v37 = vrot.slane %v6514_v28, %v2420_v25  ;;  %v2433_v32 = vrot.slane %v2391_v56, %v2400_v21  ;;  %v2437_v62 = vrot.slane %v2391_v56, %v2404_v29 }
 0x2f3   : > { %2325 = vmatprep.subr.bf16.mxu1 %v1982_v44  ;;  %v2425_v3 = vrot.slane %v6514_v28, %v2424_v51  ;;  %v2429_v28 = vrot.slane %v2391_v56, %v2396_v15  ;;  %v2441_v15 = vrot.slane %v2391_v56, %v2408_v14 }
 0x2f5   : > { %2326 = vmatpush2.bf16.msra.mxu1 %v1981_v19 }
 0x2f8   : > { %2328 = vmatmul.mubr.bf16.vlgmr.msra.gmra.mxu1 %v5866_v7 }
 0x33c   : > { %v2206_v47 = vpop.f32.mrf.mxu0 }
 0x33d   : > { %v2458_v1 = vmul.f32 %v2413_v54, %v2206_v47 }
 0x33e   : > { %v2208_v50 = vpop.f32.mrf.mxu0 }
 0x33f   : > { %v2469_v8 = vadd.f32 %v2468_v43, %v2458_v1  ;;  %v2485_v55 = vmul.f32 %v2458_v1, %v2458_v1  ;;  %v2657_v52 = vpack.c.bf16 %v2208_v50, %v2206_v47  ;;  %v2459_v33 = vmul.f32 %v2417_v45, %v2208_v50 }
 0x340   : > { %v2210_v24 = vpop.f32.mrf.mxu0 }
 0x341   : > { %v2496_v2 = vadd.f32 %v2495_v23, %v2485_v55  ;;  %2386 = vst [vmem:[%s6552_s6 + $0x10] sm:$0xff] %v2657_v52  ;;  %v2470_v26 = vadd.f32 %v2469_v8, %v2459_v33  ;;  %v2486_v7 = vmul.f32 %v2459_v33, %v2459_v33 }
 0x342   : > { %v2211_v36 = vpop.f32.mrf.mxu0 }
 0x343   : > { %v2497_v12 = vadd.f32 %v2496_v2, %v2486_v7 }
 0x358   : > { %v2247_v22 = vpop.f32.mrf.mxu1 }
 0x359   : > { %v2460_v38 = vmul.f32 %v2421_v37, %v2247_v22 }
 0x35a   : > { %v2249_v27 = vpop.f32.mrf.mxu1 }
 0x35b   : > { %v2471_v58 = vadd.f32 %v2470_v26, %v2460_v38  ;;  %v2487_v17 = vmul.f32 %v2460_v38, %v2460_v38  ;;  %v2658_v16 = vpack.c.bf16 %v2249_v27, %v2247_v22  ;;  %v2461_v11 = vmul.f32 %v2425_v3, %v2249_v27 }
 0x35c   : > { %v2251_v18 = vpop.f32.mrf.mxu1 }
 0x35d   : > { %v2498_v31 = vadd.f32 %v2497_v12, %v2487_v17  ;;  %2387 = vst [vmem:[%s6552_s6 + $0x18] sm:$0xff] %v2658_v16  ;;  %v2472_v9 = vadd.f32 %v2471_v58, %v2461_v11  ;;  %v2488_v63 = vmul.f32 %v2461_v11, %v2461_v11 }
 0x35e   : > { %v2252_v53 = vpop.f32.mrf.mxu1 }
 0x35f   : > { %v2499_v43 = vadd.f32 %v2498_v31, %v2488_v63 }
 0x3ab   : > { %v2288_v49 = vpop.f32.mrf.mxu0 }
 0x3ac   : > { %v2462_v4 = vmul.f32 %v2429_v28, %v2288_v49 }
 0x3ad   : > { %v2290_v5 = vpop.f32.mrf.mxu0 }
 0x3ae   : > { %v2659_v61 = vpack.c.bf16 %v2290_v5, %v2288_v49  ;;  %v2489_v48 = vmul.f32 %v2462_v4, %v2462_v4  ;;  %v2463_v23 = vmul.f32 %v2433_v32, %v2290_v5  ;;  %v2473_v41 = vadd.f32 %v2472_v9, %v2462_v4 }
 0x3af   : > { %v2292_v0 = vpop.f32.mrf.mxu0 }
 0x3b0   : > { %2388 = vst [vmem:[%s6552_s6 + $0x20] sm:$0xff] %v2659_v61  ;;  %v2500_v34 = vadd.f32 %v2499_v43, %v2489_v48  ;;  %v2490_v13 = vmul.f32 %v2463_v23, %v2463_v23  ;;  %v2474_v21 = vadd.f32 %v2473_v41, %v2463_v23 }
 0x3b1   : > { %v2293_v57 = vpop.f32.mrf.mxu0 }
 0x3b2   : > { %v2501_v39 = vadd.f32 %v2500_v34, %v2490_v13 }
 0x3b8   : > { %v2329_v6 = vpop.f32.mrf.mxu1 }
 0x3b9   : > { %v2464_v30 = vmul.f32 %v2437_v62, %v2329_v6 }
 0x3ba   : > { %v2331_v35 = vpop.f32.mrf.mxu1 }
 0x3bb   : > { %v2475_v20 = vadd.f32 %v2474_v21, %v2464_v30  ;;  %v2491_v60 = vmul.f32 %v2464_v30, %v2464_v30  ;;  %v2660_v59 = vpack.c.bf16 %v2331_v35, %v2329_v6  ;;  %v2465_v10 = vmul.f32 %v2441_v15, %v2331_v35 }
 0x3bc   : > { %v2333_v19 = vpop.f32.mrf.mxu1 }
 0x3bd   : > { %v2502_v44 = vadd.f32 %v2501_v39, %v2491_v60  ;;  %2389 = vst [vmem:[%s6552_s6 + $0x28] sm:$0xff] %v2660_v59  ;;  %v2476_v42 = vadd.f32 %v2475_v20, %v2465_v10  ;;  %v2492_v29 = vmul.f32 %v2465_v10, %v2465_v10 }
 0x3be   : > { %v2334_v46 = vpop.f32.mrf.mxu1 }
 0x3bf   : > { %2477 = vadd.xlane.f32.xlu0 %v2476_v42  ;;  %v2503_v54 = vadd.f32 %v2502_v44, %v2492_v29 }
 0x3c1   : > { %2504 = vadd.xlane.f32.xlu1 %v2503_v54 }
 0x448   : > { %v2478_v40 = vpop.xlane.xlu0 %2477 }
 0x449   : > { %2480 = vst.msk [vmem:[%s241_s12] sm:$0xff] %vm2479_vm0, %v2478_v40 }
 0x44a   : > { %v2505_v14 = vpop.xlane.xlu1 %2504 }
 0x44b   : > { %2506 = vst.msk [vmem:[%s245_s15] sm:$0xff] %vm2479_vm0, %v2505_v14 }
 0x44c PF: > { %s16_s18 = sadd.s32 1, %s3753_s18  }
 0x44d   : > { %p13_p4 = scmp.ge.s32.totalorder %s16_s18, 4  }
 0x44f   :  { %15 = sbr.rel (!%p13_p4) target bundleno = 1 (0x1), region = 86 }

// kernel: res_block_forward.4
= control target key start
LH: loop header
LB: loop body
LE: loop exit
PB: predicated region body
PF: predicated region fallthrough
CT: control target
= control target key end

     0   :  { %s3118_s24 = smov 0   ;;  %s5109_s0 = inlined_call_operand.vmem [shape: bf16[2,8,1536], index: 0, kind: input, shape index: {}]   ;;  %s5110_s1 = inlined_call_operand.vmem [shape: f32[8,1], index: 1, kind: input, shape index: {}]   ;;  %s5111_s2 = inlined_call_operand.vmem [shape: f32[8,1], index: 2, kind: input, shape index: {}]   ;;  %s5112_s3 = inlined_call_operand.vmem [shape: bf16[8,216], index: 3, kind: input, shape index: {}]   ;;  %s5113_s4 = inlined_call_operand.vmem [shape: f32[1,1152], index: 4, kind: input, shape index: {}]   ;;  %s5114_s5 = inlined_call_operand.vmem [shape: f32[2,8,1152], index: 5, kind: output, shape index: {0}]   ;;  %s5115_s6 = inlined_call_operand.vmem [shape: f32[2,8,1], index: 6, kind: output, shape index: {1}]   ;;  %s5116_s7 = inlined_call_operand.vmem [shape: f32[2,8,1], index: 7, kind: output, shape index: {2}]  }
   0x1 LB: > { %s2186_s25 = sadd.s32 4294967295, %s3052_s24   ;;  %p2190_p0 = scmp.ge.s32.totalorder %s3052_s24, 1  ;;  %s3052_s24 = sphi %s3118_s24, %s18_s24  }
   0x2   : > { %p242_p1 = scmp.lt.s32.totalorder %s3052_s24, 3 }
   0x4   : > { %p243_p2 = pnand %p2190_p0, %p242_p1 }
   0x6   : > { %246 = sbr.rel (%p243_p2) target bundleno = 1047 (0x417), region = 40 }
   0xb   : > { %v319_v0 = vld [vmem:[%s5110_s1] sm:$0xff]  ;;  %v5117_v1 = vmov 0   ;;  %p282_p3 = scmp.lt.s32.totalorder %s2186_s25, 1  ;;  %s3055_s11 = smov 127   ;;  %vm5205_vm0 = vcmask 1031168   ;;  %vm5191_vm1 = vcmask 949248  }
   0xc   : > { %2243 = vset.pattern.permute.xlu0 %v5117_v1  ;;  %v337_v2 = vld [vmem:[%s5111_s2] sm:$0xff]  ;;  %s3056_s12 = smov 126   ;;  %s3057_s13 = smov 116   ;;  %vm5224_vm2 = vcmask 941056   ;;  %vm5223_vm3 = vcmask 932864   ;;  %vm592_vm4 = vcmask 850944  }
   0xd   : > { %322 = vperm.xlu0 %2243, %v319_v0   ;;  %s5599_s25 = smov (!%p282_p3, %s2186_s25), 1  ;;  %s3058_s14 = smov 115   ;;  %vm631_vm5 = vcmask 842752   ;;  %vm670_vm6 = vcmask 834560   ;;  %vm5226_vm7 = vcmask 908288   ;;  %vm5222_vm8 = vcmask 916480  }
   0xe   : > { %s2209_s30 = smul.u32 48, %s5599_s25  ;;  %s3059_s15 = smov 114   ;;  %vm5190_vm9 = vcmask 924672   ;;  %vm5195_vm10 = vcmask 1014784   ;;  %vm5201_vm11 = vcmask 1006592   ;;  %vm5207_vm12 = vcmask 1022976  }
   0xf   : > { %s3060_s16 = smov 104   ;;  %s3061_s17 = smov 103   ;;  %vm1047_vm13 = vcmask 56320   ;;  %vm987_vm14 = vcmask 72704   ;;  %vm397_vm15 = vcmask 1039360  }
  0x10   : > { %s3139_s10 = scalar_lea.vmem %s5109_s0, %s2209_s30  ;;  %s3062_s18 = smov 102  }
  0x11   : > { %340 = vperm.xlu0 %2243, %v337_v2   ;;  %v303_v3 = vld [vmem:[%s3139_s10 + $0x10] sm:$0xff]  ;;  %v305_v4 = vld [vmem:[%s3139_s10 + $0x20] sm:$0xff]  ;;  %v302_v5 = vld [vmem:[%s3139_s10 + $0x8] sm:$0xff]  ;;  %s3063_s19 = smov 111   ;;  %s3064_s20 = smov 112  }
  0x12   : > { %v311_v6 = vunpack.c.l.bf16 %v303_v3  ;;  %v312_v7 = vunpack.c.h.bf16 %v303_v3  ;;  %v315_v9 = vunpack.c.l.bf16 %v305_v4  ;;  %v316_v10 = vunpack.c.h.bf16 %v305_v4  ;;  %v301_v11 = vld [vmem:[%s3139_s10] sm:$0xff]  ;;  %v304_v12 = vld [vmem:[%s3139_s10 + $0x18] sm:$0xff]  ;;  %s3065_s21 = smov 113   ;;  %s3066_s22 = smov 124   ;;  %v3293_v61 = vld [vmem:[%s3139_s10 + $0x28] sm:$0xff] }
  0x13   : > { %v309_v13 = vunpack.c.l.bf16 %v302_v5  ;;  %v310_v14 = vunpack.c.h.bf16 %v302_v5  ;;  %v307_v17 = vunpack.c.l.bf16 %v301_v11  ;;  %v308_v18 = vunpack.c.h.bf16 %v301_v11  ;;  %s3067_s23 = smov 123   ;;  %s3068_s26 = smov 7  }
  0x14   : > { %v313_v22 = vunpack.c.l.bf16 %v304_v12  ;;  %v314_v25 = vunpack.c.h.bf16 %v304_v12  ;;  %s3069_s27 = smov 125   ;;  %s3070_s28 = smov 9   ;;  %v317_v0 = vunpack.c.l.bf16 %v3293_v61 }
  0x15   : > { %s3071_s29 = smov 8   ;;  %s3072_s30 = smov 98  }
  0x16   : > { %s3073_s8 = smov 100   ;;  %s3074_s9 = smov 88  }
  0x17   : > { %s3075_s10 = smov 110  }
  0x88   : > { %v3144_v8 = vpop.permute.xlu0 %322 }
  0x89   : > { %v329_v15 = vmul.f32 %v3144_v8, %v311_v6  ;;  %v330_v16 = vmul.f32 %v3144_v8, %v312_v7  ;;  %v333_v19 = vmul.f32 %v3144_v8, %v315_v9  ;;  %v334_v20 = vmul.f32 %v3144_v8, %v316_v10 }
  0x8a   : > { %v327_v26 = vmul.f32 %v3144_v8, %v309_v13  ;;  %v328_v29 = vmul.f32 %v3144_v8, %v310_v14  ;;  %v325_v31 = vmul.f32 %v3144_v8, %v307_v17  ;;  %v326_v32 = vmul.f32 %v3144_v8, %v308_v18 }
  0x8b   : > { %v331_v38 = vmul.f32 %v3144_v8, %v313_v22  ;;  %v332_v42 = vmul.f32 %v3144_v8, %v314_v25  ;;  %v335_v6 = vmul.f32 %v3144_v8, %v317_v0 }
  0x8c   : > { %v3152_v21 = vpop.permute.xlu0 %340 }
  0x8d   : > { %v347_v23 = vadd.f32 %v3152_v21, %v329_v15  ;;  %v348_v24 = vadd.f32 %v3152_v21, %v330_v16  ;;  %v351_v27 = vadd.f32 %v3152_v21, %v333_v19  ;;  %v3159_v28 = vadd.f32 %v3152_v21, %v334_v20 }
  0x8e   : > { %v345_v34 = vadd.f32 %v3152_v21, %v327_v26  ;;  %v346_v35 = vadd.f32 %v3152_v21, %v328_v29  ;;  %v3171_v36 = vadd.f32 %v3152_v21, %v325_v31  ;;  %v344_v37 = vadd.f32 %v3152_v21, %v326_v32 }
  0x8f   : > { %v3162_v30 = vmax.f32 %v347_v23, 0.0  ;;  %v3166_v33 = vmax.f32 %v348_v24, 0.0  ;;  %v3175_v39 = vmax.f32 %v351_v27, 0.0  ;;  %v364_v40 = vmax.f32 %v3159_v28, 0.0 }
  0x90   : > { %v5123_v43 = vmax.f32 %v3171_v36, 0.0  ;;  %v3184_v44 = vmax.f32 %v344_v37, 0.0  ;;  %v349_v45 = vadd.f32 %v3152_v21, %v331_v38  ;;  %v350_v46 = vadd.f32 %v3152_v21, %v332_v42 }
  0x91   : > { %5268 = vst [vmem:[#allocation2_spill] sm:$0xff] %v3162_v30  ;;  %5269 = vst [vmem:[#allocation3_spill] sm:$0xff] %v3166_v33  ;;  %v3180_v41 = vpack.i.bf16 %v3166_v33, %v3162_v30  ;;  %v3190_v47 = vmax.f32 %v345_v34, 0.0  ;;  %v3192_v48 = vmax.f32 %v346_v35, 0.0  ;;  %v3200_v50 = vpack.i.bf16 %v364_v40, %v3175_v39 }
  0x92   : > { %5270 = vst [vmem:[#allocation4_spill] sm:$0xff] %v3175_v39  ;;  %v2244_v49 = vpack.i.bf16 %v3184_v44, %v5123_v43  ;;  %v3205_v51 = vmax.f32 %v349_v45, 0.0  ;;  %v3207_v52 = vmax.f32 %v350_v46, 0.0  ;;  %v2544_v58 = vpack.i.bf16 %v3162_v30, %v3184_v44 }
  0x93   : > { %2255 = vrot.lane.b32.xlu0 %v3180_v41, %s3055_s11  ;;  %5271 = vst [vmem:[#allocation5_spill] sm:$0xff] %v3190_v47  ;;  %5272 = vst [vmem:[#allocation6_spill] sm:$0xff] %v3192_v48  ;;  %v3211_v53 = vpack.i.bf16 %v3192_v48, %v3190_v47  ;;  %v2454_v55 = vpack.i.bf16 %v3162_v30, %v3192_v48  ;;  %v2459_v56 = vpack.i.bf16 %v3190_v47, %v3166_v33 }
  0x94   : > { %5273 = vst [vmem:[#allocation7_spill] sm:$0xff] %v3200_v50  ;;  %2245 = vrot.lane.b32.xlu1 %v2244_v49, %s3055_s11  ;;  %5274 = vst [vmem:[#allocation8_spill] sm:$0xff] %v3205_v51  ;;  %v3218_v54 = vpack.i.bf16 %v3207_v52, %v3205_v51  ;;  %v353_v10 = vadd.f32 %v3152_v21, %v335_v6  ;;  %v2594_v17 = vpack.i.bf16 %v3175_v39, %v3207_v52 }
  0x95   : > { %5275 = vst [vmem:[#allocation9_spill] sm:$0xff] %v3207_v52  ;;  %v2579_v24 = vpack.i.bf16 %v3205_v51, %v3184_v44 }
  0x96   : > { %v3322_v13 = vmax.f32 %v353_v10, 0.0 }
  0x97   : > { %2265 = vrot.lane.b32.xlu0 %v3200_v50, %s3055_s11 }
  0x98   : > { %2250 = vrot.lane.b32.xlu1 %v3211_v53, %s3055_s11  ;;  %5280 = vst [vmem:[#allocation14_spill] sm:$0xff] %v3322_v13  ;;  %v2604_v29 = vpack.i.bf16 %v3322_v13, %v364_v40 }
  0x9b   : > { %2275 = vrot.lane.b32.xlu0 %v3211_v53, %s3056_s12 }
  0x9c   : > { %2260 = vrot.lane.b32.xlu1 %v3218_v54, %s3055_s11 }
  0x9f   : > { %2285 = vrot.lane.b32.xlu0 %v3218_v54, %s3056_s12 }
  0xa0   : > { %2270 = vrot.lane.b32.xlu1 %v2244_v49, %s3056_s12 }
  0xa3   : > { %2295 = vrot.lane.b32.xlu0 %v2244_v49, %s3057_s13 }
  0xa4   : > { %2280 = vrot.lane.b32.xlu1 %v3180_v41, %s3056_s12 }
  0xa7   : > { %2305 = vrot.lane.b32.xlu0 %v3180_v41, %s3057_s13 }
  0xa8   : > { %2290 = vrot.lane.b32.xlu1 %v3200_v50, %s3056_s12  ;;  %s3076_s12 = smov 99  }
  0xab   : > { %2315 = vrot.lane.b32.xlu0 %v3200_v50, %s3057_s13 }
  0xac   : > { %2300 = vrot.lane.b32.xlu1 %v3211_v53, %s3057_s13 }
  0xaf   : > { %2325 = vrot.lane.b32.xlu0 %v3211_v53, %s3058_s14 }
  0xb0   : > { %2310 = vrot.lane.b32.xlu1 %v3218_v54, %s3057_s13  ;;  %s3077_s13 = smov 87  }
  0xb3   : > { %2335 = vrot.lane.b32.xlu0 %v3218_v54, %s3058_s14 }
  0xb4   : > { %2320 = vrot.lane.b32.xlu1 %v2244_v49, %s3058_s14 }
  0xb7   : > { %2345 = vrot.lane.b32.xlu0 %v2244_v49, %s3059_s15 }
  0xb8   : > { %2330 = vrot.lane.b32.xlu1 %v3180_v41, %s3058_s14 }
  0xbb   : > { %2355 = vrot.lane.b32.xlu0 %v3180_v41, %s3059_s15 }
  0xbc   : > { %2340 = vrot.lane.b32.xlu1 %v3200_v50, %s3058_s14 }
  0xbf   : > { %2365 = vrot.lane.b32.xlu0 %v3200_v50, %s3059_s15 }
  0xc0   : > { %2350 = vrot.lane.b32.xlu1 %v3211_v53, %s3059_s15 }
  0xc3   : > { %2375 = vrot.lane.b32.xlu0 %v3211_v53, %s3060_s16 }
  0xc4   : > { %2360 = vrot.lane.b32.xlu1 %v3218_v54, %s3059_s15 }
  0xc7   : > { %2385 = vrot.lane.b32.xlu0 %v3218_v54, %s3060_s16 }
  0xc8   : > { %2370 = vrot.lane.b32.xlu1 %v2244_v49, %s3060_s16 }
  0xcb   : > { %2395 = vrot.lane.b32.xlu0 %v2244_v49, %s3061_s17 }
  0xcc   : > { %2380 = vrot.lane.b32.xlu1 %v3180_v41, %s3060_s16 }
  0xcf   : > { %2405 = vrot.lane.b32.xlu0 %v3180_v41, %s3061_s17 }
  0xd0   : > { %2390 = vrot.lane.b32.xlu1 %v3200_v50, %s3060_s16 }
  0xd3   : > { %2415 = vrot.lane.b32.xlu0 %v3200_v50, %s3061_s17 }
  0xd4   : > { %2400 = vrot.lane.b32.xlu1 %v3211_v53, %s3061_s17 }
  0xd7   : > { %2425 = vrot.lane.b32.xlu0 %v3211_v53, %s3062_s18 }
  0xd8   : > { %2410 = vrot.lane.b32.xlu1 %v3218_v54, %s3061_s17 }
  0xdb   : > { %2435 = vrot.lane.b32.xlu0 %v3218_v54, %s3062_s18 }
  0xdc   : > { %2420 = vrot.lane.b32.xlu1 %v2244_v49, %s3062_s18 }
  0xdf   : > { %2445 = vrot.lane.b32.xlu0 %v3211_v53, %s3063_s19 }
  0xe0   : > { %2430 = vrot.lane.b32.xlu1 %v3180_v41, %s3062_s18 }
  0xe3   : > { %2455 = vrot.lane.b32.xlu0 %v2454_v55, %s3064_s20 }
  0xe4   : > { %2440 = vrot.lane.b32.xlu1 %v3200_v50, %s3062_s18 }
  0xe7   : > { %2465 = vrot.lane.b32.xlu0 %v2454_v55, %s3065_s21 }
  0xe8   : > { %2450 = vrot.lane.b32.xlu1 %v3180_v41, %s3063_s19 }
  0xeb   : > { %2475 = vrot.lane.b32.xlu0 %v2454_v55, %s3066_s22 }
  0xec   : > { %2460 = vrot.lane.b32.xlu1 %v2459_v56, %s3064_s20 }
  0xef   : > { %2485 = vrot.lane.b32.xlu0 %v2454_v55, %s3067_s23 }
  0xf0   : > { %2470 = vrot.lane.b32.xlu1 %v2459_v56, %s3065_s21 }
  0xf3   : > { %2495 = vrot.lane.b32.xlu0 %v3211_v53, %s3068_s26 }
  0xf4   : > { %2480 = vrot.lane.b32.xlu1 %v2459_v56, %s3066_s22 }
  0xf7   : > { %2505 = vrot.lane.b32.xlu0 %v2454_v55, %s3069_s27 }
  0xf8   : > { %2490 = vrot.lane.b32.xlu1 %v2459_v56, %s3067_s23 }
  0xfb   : > { %2515 = vrot.lane.b32.xlu0 %v3211_v53, %s3070_s28 }
  0xfc   : > { %2500 = vrot.lane.b32.xlu1 %v3180_v41, %s3068_s26 }
  0xff   : > { %2525 = vrot.lane.b32.xlu0 %v3211_v53, %s3071_s29 }
 0x100   : > { %2510 = vrot.lane.b32.xlu1 %v2459_v56, %s3069_s27 }
 0x103   : > { %2535 = vrot.lane.b32.xlu0 %v3211_v53, %s3072_s30 }
 0x104   : > { %2520 = vrot.lane.b32.xlu1 %v3180_v41, %s3070_s28 }
 0x105   : > { %v3277_v57 = vpop.permute.xlu0 %2255 }
 0x106   : > { %v3284_v59 = vpop.permute.xlu1 %2245 }
 0x107   : > { %2545 = vrot.lane.b32.xlu0 %v2544_v58, %s3072_s30 }
 0x108   : > { %2530 = vrot.lane.b32.xlu1 %v3180_v41, %s3071_s29 }
 0x109   : > { %v3286_v60 = vpop.permute.xlu0 %2265 }
 0x10a   : > { %5276 = vst [vmem:[#allocation10_spill] sm:$0xff] %v3286_v60  ;;  %v3295_v62 = vpop.permute.xlu1 %2250 }
 0x10b   : > { %2555 = vrot.lane.b32.xlu0 %v3211_v53, %s3073_s8 }
 0x10c   : > { %2540 = vrot.lane.b32.xlu1 %v3211_v53, %s3074_s9 }
 0x10d   : > { %v3297_v63 = vpop.permute.xlu0 %2275 }
 0x10e   : > { %v3303_v2 = vpop.permute.xlu1 %2260 }
 0x10f   : > { %2565 = vrot.lane.b32.xlu0 %v2544_v58, %s3073_s8  ;;  %5277 = vst [vmem:[#allocation11_spill] sm:$0xff] %v3303_v2 }
 0x110   : > { %2550 = vrot.lane.b32.xlu1 %v2544_v58, %s3074_s9 }
 0x111   : > { %v2286_v3 = vpop.permute.xlu0 %2285 }
 0x112   : > { %v2288_v4 = vunpack.i.h.bf16 %v2286_v3  ;;  %v2287_v5 = vunpack.i.l.bf16 %v2286_v3  ;;  %v3312_v9 = vpop.permute.xlu1 %2270 }
 0x113   : > { %2575 = vrot.lane.b32.xlu0 %v3211_v53, %s3075_s10 }
 0x114   : > { %v3310_v7 = vsel %vm5205_vm0, %v2287_v5, %v2288_v4  ;;  %2560 = vrot.lane.b32.xlu1 %v3211_v53, %s3076_s12 }
 0x115   : > { %5278 = vst [vmem:[#allocation12_spill] sm:$0xff] %v3310_v7  ;;  %v3315_v11 = vpop.permute.xlu0 %2295 }
 0x116   : > { %v3320_v12 = vpop.permute.xlu1 %2280 }
 0x117   : > { %2585 = vrot.lane.b32.xlu0 %v2544_v58, %s3075_s10  ;;  %5279 = vst [vmem:[#allocation13_spill] sm:$0xff] %v3320_v12  ;;  %v2283_v14 = vunpack.i.h.bf16 %v3320_v12  ;;  %v5119_v15 = vunpack.i.l.bf16 %v3320_v12 }
 0x118   : > { %2570 = vrot.lane.b32.xlu1 %v2544_v58, %s3076_s12 }
 0x119   : > { %v3326_v16 = vpop.permute.xlu0 %2305  ;;  %v3336_v20 = vsel %vm5205_vm0, %v5119_v15, %v2283_v14  ;;  %v3369_v55 = vsel %vm5205_vm0, %v2283_v14, %v2287_v5 }
 0x11a   : > { %5281 = vst [vmem:[#allocation15_spill] sm:$0xff] %v3326_v16  ;;  %v2308_v18 = vunpack.i.h.bf16 %v3326_v16  ;;  %v5120_v19 = vunpack.i.l.bf16 %v3326_v16  ;;  %5282 = vst [vmem:[#allocation16_spill] sm:$0xff] %v3336_v20  ;;  %v2291_v23 = vpop.permute.xlu1 %2290 }
 0x11b   : > { %2595 = vrot.lane.b32.xlu0 %v2594_v17, %s3063_s19  ;;  %v2293_v25 = vunpack.i.h.bf16 %v2291_v23  ;;  %v2292_v26 = vunpack.i.l.bf16 %v2291_v23  ;;  %5286 = vst [vmem:[#allocation20_spill] sm:$0xff] %v3369_v55 }
 0x11c   : > { %v3342_v22 = vsel %vm5191_vm1, %v5120_v19, %v2308_v18  ;;  %2580 = vrot.lane.b32.xlu1 %v2579_v24, %s3063_s19 }
 0x11d   : > { %5283 = vst [vmem:[#allocation17_spill] sm:$0xff] %v3342_v22  ;;  %v2316_v27 = vpop.permute.xlu0 %2315  ;;  %v3354_v35 = vsel %vm5205_vm0, %v2292_v26, %v2293_v25  ;;  %v3380_v0 = vsel %vm5205_vm0, %v2288_v4, %v2292_v26  ;;  %vm866_vm0 = vcmask 809984  }
 0x11e   : > { %v2318_v32 = vunpack.i.h.bf16 %v2316_v27  ;;  %v2317_v34 = vunpack.i.l.bf16 %v2316_v27  ;;  %5284 = vst [vmem:[#allocation18_spill] sm:$0xff] %v3354_v35  ;;  %v3359_v38 = vpop.permute.xlu1 %2300  ;;  %5289 = vst [vmem:[#allocation23_spill] sm:$0xff] %v3380_v0 }
 0x11f   : > { %2605 = vrot.lane.b32.xlu0 %v2604_v29, %s3063_s19 }
 0x120   : > { %v3357_v37 = vsel %vm5191_vm1, %v2317_v34, %v2318_v32  ;;  %2590 = vrot.lane.b32.xlu1 %v2579_v24, %s3064_s20 }
 0x121   : > { %5285 = vst [vmem:[#allocation19_spill] sm:$0xff] %v3357_v37  ;;  %v3361_v28 = vpop.permute.xlu0 %2325 }
 0x122   : > { %v2311_v41 = vpop.permute.xlu1 %2310 }
 0x123   : > { %2615 = vrot.lane.b32.xlu0 %v2604_v29, %s3064_s20  ;;  %v2313_v42 = vunpack.i.h.bf16 %v2311_v41  ;;  %v2312_v45 = vunpack.i.l.bf16 %v2311_v41 }
 0x124   : > { %2600 = vrot.lane.b32.xlu1 %v2594_v17, %s3064_s20 }
 0x125   : > { %v2336_v46 = vpop.permute.xlu0 %2335  ;;  %v3372_v56 = vsel %vm5191_vm1, %v2312_v45, %v2313_v42  ;;  %v3377_v58 = vsel %vm5191_vm1, %v2308_v18, %v2312_v45  ;;  %v3383_v3 = vsel %vm5191_vm1, %v2313_v42, %v2317_v34  ;;  %vm905_vm1 = vcmask 801792  }
 0x126   : > { %v2338_v49 = vunpack.i.h.bf16 %v2336_v46  ;;  %v2337_v53 = vunpack.i.l.bf16 %v2336_v46  ;;  %5287 = vst [vmem:[#allocation21_spill] sm:$0xff] %v3372_v56  ;;  %5288 = vst [vmem:[#allocation22_spill] sm:$0xff] %v3377_v58  ;;  %v3388_v5 = vpop.permute.xlu1 %2320 }
 0x127   : > { %2625 = vrot.lane.b32.xlu0 %v3218_v54, %s3067_s23  ;;  %5290 = vst [vmem:[#allocation24_spill] sm:$0xff] %v3383_v3  ;;  %v318_v3 = vunpack.c.h.bf16 %v3293_v61 }
 0x128   : > { %v3386_v6 = vsel %vm5224_vm2, %v2337_v53, %v2338_v49  ;;  %2610 = vrot.lane.b32.xlu1 %v3218_v54, %s3065_s21 }
 0x129   : > { %5291 = vst [vmem:[#allocation25_spill] sm:$0xff] %v3386_v6  ;;  %v3396_v18 = vpop.permute.xlu0 %2345  ;;  %v336_v61 = vmul.f32 %v3144_v8, %v318_v3 }
 0x12a   : > { %v3402_v4 = vpop.permute.xlu1 %2330 }
 0x12b   : > { %2635 = vrot.lane.b32.xlu0 %v3218_v54, %s3068_s26  ;;  %5292 = vst [vmem:[#allocation26_spill] sm:$0xff] %v3402_v4  ;;  %v2333_v23 = vunpack.i.h.bf16 %v3402_v4  ;;  %v5121_v24 = vunpack.i.l.bf16 %v3402_v4 }
 0x12c   : > { %2620 = vrot.lane.b32.xlu1 %v3218_v54, %s3066_s22 }
 0x12d   : > { %v3406_v25 = vpop.permute.xlu0 %2355  ;;  %v3415_v29 = vsel %vm5224_vm2, %v5121_v24, %v2333_v23  ;;  %v3453_v10 = vsel %vm5224_vm2, %v2333_v23, %v2337_v53 }
 0x12e   : > { %5293 = vst [vmem:[#allocation27_spill] sm:$0xff] %v3406_v25  ;;  %v2358_v26 = vunpack.i.h.bf16 %v3406_v25  ;;  %v5122_v27 = vunpack.i.l.bf16 %v3406_v25  ;;  %5294 = vst [vmem:[#allocation28_spill] sm:$0xff] %v3415_v29  ;;  %v2341_v34 = vpop.permute.xlu1 %2340 }
 0x12f   : > { %2645 = vrot.lane.b32.xlu0 %v3200_v50, %s3066_s22  ;;  %v2343_v41 = vunpack.i.h.bf16 %v2341_v34  ;;  %v2342_v42 = vunpack.i.l.bf16 %v2341_v34  ;;  %5299 = vst [vmem:[#allocation33_spill] sm:$0xff] %v3453_v10 }
 0x130   : > { %v3422_v32 = vsel %vm5223_vm3, %v5122_v27, %v2358_v26  ;;  %2630 = vrot.lane.b32.xlu1 %v3200_v50, %s3065_s21 }
 0x131   : > { %5295 = vst [vmem:[#allocation29_spill] sm:$0xff] %v3422_v32  ;;  %v2366_v45 = vpop.permute.xlu0 %2365  ;;  %v3431_v14 = vsel %vm5224_vm2, %v2342_v42, %v2343_v41  ;;  %v3464_v27 = vsel %vm5224_vm2, %v2338_v49, %v2342_v42  ;;  %v2684_v49 = vpack.i.bf16 %v3205_v51, %v3166_v33 }
 0x132   : > { %v2368_v40 = vunpack.i.h.bf16 %v2366_v45  ;;  %v2367_v17 = vunpack.i.l.bf16 %v2366_v45  ;;  %5296 = vst [vmem:[#allocation30_spill] sm:$0xff] %v3431_v14  ;;  %v3436_v31 = vpop.permute.xlu1 %2350  ;;  %5302 = vst [vmem:[#allocation36_spill] sm:$0xff] %v3464_v27 }
 0x133   : > { %2660 = vrot.lane.b32.xlu0 %v3218_v54, %s3071_s29  ;;  %5298 = vst [vmem:[#allocation32_spill] sm:$0xff] %v3436_v31 }
 0x134   : > { %v3434_v1 = vsel %vm5223_vm3, %v2367_v17, %v2368_v40  ;;  %2640 = vrot.lane.b32.xlu1 %v3218_v54, %s3069_s27 }
 0x135   : > { %5297 = vst [vmem:[#allocation31_spill] sm:$0xff] %v3434_v1  ;;  %v3438_v34 = vpop.permute.xlu0 %2375 }
 0x136   : > { %v2361_v45 = vpop.permute.xlu1 %2360 }
 0x137   : > { %2670 = vrot.lane.b32.xlu0 %v3200_v50, %s3069_s27  ;;  %v2363_v46 = vunpack.i.h.bf16 %v2361_v45  ;;  %v2362_v41 = vunpack.i.l.bf16 %v2361_v45 }
 0x138   : > { %2650 = vrot.lane.b32.xlu1 %v3200_v50, %s3067_s23 }
 0x139   : > { %v3446_v15 = vpop.permute.xlu0 %2385  ;;  %v3456_v24 = vsel %vm5223_vm3, %v2362_v41, %v2363_v46  ;;  %v3461_v45 = vsel %vm5223_vm3, %v2358_v26, %v2362_v41  ;;  %v3467_v43 = vsel %vm5223_vm3, %v2363_v46, %v2367_v17 }
 0x13a   : > { %v2388_v40 = vunpack.i.h.bf16 %v3446_v15  ;;  %v2387_v19 = vunpack.i.l.bf16 %v3446_v15  ;;  %5300 = vst [vmem:[#allocation34_spill] sm:$0xff] %v3456_v24  ;;  %5301 = vst [vmem:[#allocation35_spill] sm:$0xff] %v3461_v45  ;;  %v3472_v53 = vpop.permute.xlu1 %2370 }
 0x13b   : > { %2675 = vrot.lane.b32.xlu0 %v3200_v50, %s3070_s28  ;;  %5303 = vst [vmem:[#allocation37_spill] sm:$0xff] %v3467_v43 }
 0x13c   : > { %v3470_v15 = vsel %vm592_vm4, %v2387_v19, %v2388_v40  ;;  %2655 = vrot.lane.b32.xlu1 %v3218_v54, %s3070_s28 }
 0x13d   : > { %5304 = vst [vmem:[#allocation38_spill] sm:$0xff] %v3470_v15  ;;  %v3480_v41 = vpop.permute.xlu0 %2395 }
 0x13e   : > { %v3487_v17 = vpop.permute.xlu1 %2380 }
 0x13f   : > { %2685 = vrot.lane.b32.xlu0 %v2684_v49, %s3072_s30  ;;  %5305 = vst [vmem:[#allocation39_spill] sm:$0xff] %v3487_v17  ;;  %v2383_v42 = vunpack.i.h.bf16 %v3487_v17  ;;  %v5131_v46 = vunpack.i.l.bf16 %v3487_v17 }
 0x140   : > { %2665 = vrot.lane.b32.xlu1 %v3200_v50, %s3068_s26 }
 0x141   : > { %v3491_v39 = vpop.permute.xlu0 %2405  ;;  %v3500_v54 = vsel %vm592_vm4, %v5131_v46, %v2383_v42 }
 0x142   : > { %5306 = vst [vmem:[#allocation40_spill] sm:$0xff] %v3491_v39  ;;  %v2408_v26 = vunpack.i.h.bf16 %v3491_v39  ;;  %v5134_v23 = vunpack.i.l.bf16 %v3491_v39  ;;  %5307 = vst [vmem:[#allocation41_spill] sm:$0xff] %v3500_v54  ;;  %v2391_v37 = vpop.permute.xlu1 %2390 }
 0x143   : > { %2700 = vrot.lane.b32.xlu0 %v2684_v49, %s3076_s12  ;;  %v2393_v14 = vunpack.i.h.bf16 %v2391_v37  ;;  %v2392_v1 = vunpack.i.l.bf16 %v2391_v37 }
 0x144   : > { %v3506_v35 = vsel %vm631_vm5, %v5134_v23, %v2408_v26  ;;  %2680 = vrot.lane.b32.xlu1 %v3200_v50, %s3071_s29 }
 0x145   : > { %5308 = vst [vmem:[#allocation42_spill] sm:$0xff] %v3506_v35  ;;  %v2416_v7 = vpop.permute.xlu0 %2415  ;;  %v3516_v23 = vsel %vm592_vm4, %v2392_v1, %v2393_v14 }
 0x146   : > { %v2418_v46 = vunpack.i.h.bf16 %v2416_v7  ;;  %v2417_v0 = vunpack.i.l.bf16 %v2416_v7  ;;  %5309 = vst [vmem:[#allocation43_spill] sm:$0xff] %v3516_v23  ;;  %v3521_v37 = vpop.permute.xlu1 %2400  ;;  %v3538_v23 = vsel %vm592_vm4, %v2383_v42, %v2387_v19 }
 0x147   : > { %936 = vrot.lane.b32.xlu0 %v3207_v52, %s3074_s9  ;;  %5312 = vst [vmem:[#allocation46_spill] sm:$0xff] %v3538_v23 }
 0x148   : > { %v3519_v6 = vsel %vm631_vm5, %v2417_v0, %v2418_v46  ;;  %2690 = vrot.lane.b32.xlu1 %v2684_v49, %s3074_s9  ;;  %v354_v46 = vadd.f32 %v3152_v21, %v336_v61  ;;  %v3549_v21 = vsel %vm592_vm4, %v2388_v40, %v2392_v1 }
 0x149   : > { %5310 = vst [vmem:[#allocation44_spill] sm:$0xff] %v3519_v6  ;;  %v3523_v24 = vpop.permute.xlu0 %2425  ;;  %5315 = vst [vmem:[#allocation49_spill] sm:$0xff] %v3549_v21 }
 0x14a   : > { %5311 = vst [vmem:[#allocation45_spill] sm:$0xff] %v3523_v24  ;;  %v2411_v7 = vpop.permute.xlu1 %2410  ;;  %v366_v40 = vmax.f32 %v354_v46, 0.0 }
 0x14b   : > { %819 = vrot.lane.b32.xlu0 %v3207_v52, %s3073_s8  ;;  %v2413_v14 = vunpack.i.h.bf16 %v2411_v7  ;;  %v2412_v27 = vunpack.i.l.bf16 %v2411_v7 }
 0x14c   : > { %2695 = vrot.lane.b32.xlu1 %v2684_v49, %s3073_s8 }
 0x14d   : > { %v3531_v43 = vpop.permute.xlu0 %2435  ;;  %v3541_v6 = vsel %vm631_vm5, %v2412_v27, %v2413_v14  ;;  %v3546_v8 = vsel %vm631_vm5, %v2408_v26, %v2412_v27  ;;  %v3552_v3 = vsel %vm631_vm5, %v2413_v14, %v2417_v0  ;;  %v3581_v27 = vpack.i.bf16 %v366_v40, %v3322_v13 }
 0x14e   : > { %v5142_v20 = vunpack.i.h.bf16 %v3531_v43  ;;  %v5143_v56 = vunpack.i.l.bf16 %v3531_v43  ;;  %5313 = vst [vmem:[#allocation47_spill] sm:$0xff] %v3541_v6  ;;  %5314 = vst [vmem:[#allocation48_spill] sm:$0xff] %v3546_v8  ;;  %v3561_v42 = vpop.permute.xlu1 %2420 }
 0x14f   : > { %780 = vrot.lane.b32.xlu0 %v3207_v52, %s3075_s10  ;;  %5316 = vst [vmem:[#allocation50_spill] sm:$0xff] %v3552_v3 }
 0x150   : > { %v3559_v19 = vsel %vm670_vm6, %v5143_v56, %v5142_v20  ;;  %897 = vrot.lane.b32.xlu1 %v3207_v52, %s3072_s30 }
 0x151   : > { %5317 = vst [vmem:[#allocation51_spill] sm:$0xff] %v3559_v19  ;;  %v3569_v0 = vpop.permute.xlu0 %2445 }
 0x152   : > { %v3574_v26 = vpop.permute.xlu1 %2430  ;;  %v2448_v56 = vunpack.i.h.bf16 %v3569_v0 }
 0x153   : > { %1177 = vrot.lane.b32.xlu0 %v366_v40, %s3064_s20  ;;  %v5146_v7 = vunpack.i.h.bf16 %v3574_v26  ;;  %v5145_v14 = vunpack.i.l.bf16 %v3574_v26 }
 0x154   : > { %2705 = vrot.lane.b32.xlu1 %v2684_v49, %s3075_s10  ;;  %v5152_v49 = vunpack.i.l.bf16 %v3569_v0 }
 0x155   : > { %v3578_v61 = vpop.permute.xlu0 %2455  ;;  %v3589_v46 = vsel %vm670_vm6, %v5145_v14, %v5146_v7 }
 0x156   : > { %v3593_v1 = vpop.permute.xlu1 %2440  ;;  %v3610_v6 = vsel %vm5226_vm7, %v5152_v49, %v2448_v56  ;;  %v2457_v49 = vunpack.i.l.bf16 %v3578_v61 }
 0x157   : > { %2715 = vrot.lane.b32.xlu0 %v3581_v27, %s3066_s22 }
 0x158   : > { %858 = vrot.lane.b32.xlu1 %v3207_v52, %s3076_s12 }
 0x159   : > { %v3595_v20 = vpop.permute.xlu0 %2465 }
 0x15a   : > { %v3601_v15 = vpop.permute.xlu1 %2450  ;;  %v2467_v50 = vunpack.i.l.bf16 %v3595_v20 }
 0x15b   : > { %v5153_v14 = vunpack.i.l.bf16 %v3601_v15  ;;  %v5324_v39 = vunpack.i.l.bf16 %v3601_v15 }
 0x15c   : > { %1180 = vrot.lane.b32.xlu1 %v366_v40, %s3063_s19  ;;  %v5165_v40 = vunpack.i.h.bf16 %v3578_v61 }
 0x15d   : > { %v3604_v7 = vpop.permute.xlu0 %2475  ;;  %v3615_v21 = vsel %vm5226_vm7, %v2448_v56, %v5153_v14  ;;  %v2468_v56 = vunpack.i.h.bf16 %v3595_v20 }
 0x15e   : > { %5318 = vst [vmem:[#allocation52_spill] sm:$0xff] %v3615_v21  ;;  %v3617_v3 = vpop.permute.xlu1 %2460  ;;  %v2729_v22 = vpack.i.bf16 %v3615_v21, %v3610_v6  ;;  %v2477_v29 = vunpack.i.l.bf16 %v3604_v7  ;;  %v5320_v35 = vunpack.i.h.bf16 %v3604_v7 }
 0x15f   : > { %v5321_v8 = vunpack.i.h.bf16 %v3617_v3 }
 0x160   : > { %2710 = vrot.lane.b32.xlu1 %v3581_v27, %s3065_s21  ;;  %2730 = vrot.lane.b32.xlu0 %v2729_v22, %s3077_s13  ;;  %v3642_v22 = vsel %vm5222_vm8, %v2457_v49, %v5165_v40  ;;  %v1109_v23 = vsel %vm5195_vm10, %v2477_v29, %v5320_v35 }
 0x161   : > { %v3621_v55 = vpop.permute.xlu0 %2485  ;;  %5319 = vst [vmem:[#allocation53_spill] sm:$0xff] %v3642_v22  ;;  %v3656_v12 = vsel %vm5222_vm8, %v5321_v8, %v2457_v49 }
 0x162   : > { %v3629_v14 = vpop.permute.xlu1 %2470  ;;  %v2749_v60 = vpack.i.bf16 %v1109_v23, %v3656_v12 }
 0x163   : > { %v5166_v10 = vunpack.i.l.bf16 %v3629_v14  ;;  %v2473_v13 = vunpack.i.h.bf16 %v3629_v14 }
 0x164   : > { %2720 = vrot.lane.b32.xlu1 %v3581_v27, %s3067_s23  ;;  %s2193_s23 = sshll.u32 %s5599_s25, 3 }
 0x165   : > { %v3635_v45 = vpop.permute.xlu0 %2495  ;;  %v1170_v58 = vsel %vm5190_vm9, %v2468_v56, %v5166_v10  ;;  %v1168_v33 = vsel %vm5190_vm9, %v2473_v13, %v2467_v50 }
 0x166   : > { %v3647_v54 = vpop.permute.xlu1 %2480  ;;  %v2739_v32 = vpack.i.bf16 %v3642_v22, %v1170_v58  ;;  %v2488_v58 = vunpack.i.h.bf16 %v3621_v55 }
 0x167   : > { %v2483_v40 = vunpack.i.h.bf16 %v3647_v54  ;;  %v5192_v2 = vunpack.i.l.bf16 %v3647_v54 }
 0x168   : > { %2740 = vrot.lane.b32.xlu0 %v2739_v32, %s3077_s13 }
 0x169   : > { %v3658_v16 = vpop.permute.xlu0 %2505  ;;  %v1108_v8 = vsel %vm5195_vm10, %v2483_v40, %v2477_v29 }
 0x16a   : > { %v3662_v10 = vpop.permute.xlu1 %2490  ;;  %v2507_v32 = vunpack.i.l.bf16 %v3658_v16 }
 0x16b   : > { %v5175_v4 = vunpack.i.l.bf16 %v3662_v10 }
 0x16c   : > { %2750 = vrot.lane.b32.xlu0 %v2749_v60, %s3077_s13  ;;  %v5184_v60 = vunpack.i.h.bf16 %v3635_v45 }
 0x16d   : > { %v3667_v35 = vpop.permute.xlu0 %2515  ;;  %v1140_v52 = vsel %vm5201_vm11, %v2488_v58, %v5175_v4  ;;  %v5322_v4 = vunpack.i.h.bf16 %v3658_v16 }
 0x16e   : > { %v3676_v23 = vpop.permute.xlu1 %2500  ;;  %v2759_v25 = vpack.i.bf16 %v1108_v8, %v1140_v52  ;;  %v2517_v20 = vunpack.i.l.bf16 %v3667_v35  ;;  %v5323_v52 = vunpack.i.h.bf16 %v3601_v15 }
 0x16f   : > { %v5183_v29 = vunpack.i.l.bf16 %v3676_v23  ;;  %v1079_v22 = vsel %vm5207_vm12, %v2507_v32, %v5322_v4  ;;  %v1169_v4 = vsel %vm5190_vm9, %v2467_v50, %v2468_v56  ;;  %v5327_v56 = vunpack.i.h.bf16 %v3667_v35 }
 0x170   : > { %2760 = vrot.lane.b32.xlu0 %v2759_v25, %s3077_s13  ;;  %v3707_v21 = vsel %vm5226_vm7, %v5324_v39, %v5323_v52  ;;  %vm1017_vm9 = vcmask 64512  }
 0x171   : > { %v3682_v40 = vpop.permute.xlu0 %2525  ;;  %v1049_v8 = vsel %vm1047_vm13, %v5184_v60, %v5183_v29  ;;  %5325 = vst [vmem:[#allocation54_spill] sm:$0xff] %v3707_v21 }
 0x172   : > { %v5185_v49 = vunpack.i.l.bf16 %v3682_v40  ;;  %v3699_v17 = vpop.permute.xlu1 %2510  ;;  %v2769_v51 = vpack.i.bf16 %v1079_v22, %v1049_v8  ;;  %v5193_v22 = vunpack.i.l.bf16 %v3617_v3  ;;  %v988_v8 = vsel %vm987_vm14, %v2517_v20, %v5327_v56 }
 0x173   : > { %v2513_v29 = vunpack.i.h.bf16 %v3699_v17 }
 0x174   : > { %v2724_v25 = vpack.i.bf16 %v3190_v47, %v5185_v49  ;;  %2770 = vrot.lane.b32.xlu0 %v2769_v51, %s3077_s13  ;;  %v2734_v47 = vpack.i.bf16 %v1169_v4, %v3707_v21  ;;  %v2252_v4 = vunpack.i.l.bf16 %v3295_v62 }
 0x175   : > { %v3711_v60 = vpop.permute.xlu0 %2535  ;;  %v1078_v49 = vsel %vm5207_vm12, %v2513_v29, %v2507_v32  ;;  %v2253_v29 = vunpack.i.h.bf16 %v3295_v62 }
 0x176   : > { %5326 = vst [vmem:[#allocation55_spill] sm:$0xff] %v3711_v60  ;;  %2725 = vrot.lane.b32.xlu1 %v2724_v25, %s3077_s13  ;;  %v3720_v39 = vpop.permute.xlu1 %2520  ;;  %v2779_v52 = vpack.i.bf16 %v988_v8, %v1078_v49  ;;  %v5328_v25 = vunpack.i.h.bf16 %v3578_v61  ;;  %v2487_v49 = vunpack.i.l.bf16 %v3621_v55  ;;  %v5200_v61 = vunpack.i.h.bf16 %v3682_v40 }
 0x177   : > { %v2493_v55 = vunpack.i.h.bf16 %v3662_v10 }
 0x178   : > { %2780 = vrot.lane.b32.xlu0 %v2779_v52, %s3077_s13  ;;  %v3734_v32 = vsel %vm5222_vm8, %v5328_v25, %v5193_v22 }
 0x179   : > { %v3725_v51 = vpop.permute.xlu0 %2545  ;;  %5329 = vst [vmem:[#allocation56_spill] sm:$0xff] %v3734_v32  ;;  %v2744_v13 = vpack.i.bf16 %v1168_v33, %v3734_v32  ;;  %v1139_v33 = vsel %vm5201_vm11, %v2487_v49, %v2488_v58 }
 0x17a   : > { %2735 = vrot.lane.b32.xlu1 %v2734_v47, %s3077_s13  ;;  %v3738_v50 = vpop.permute.xlu1 %2530  ;;  %v5330_v47 = vunpack.i.h.bf16 %v3604_v7  ;;  %v2537_v7 = vunpack.i.l.bf16 %v3711_v60 }
 0x17b   : > { %v5199_v8 = vunpack.i.l.bf16 %v3738_v50 }
 0x17c   : > { %v1110_v56 = vsel %vm5195_vm10, %v5330_v47, %v5192_v2  ;;  %v2497_v47 = vunpack.i.l.bf16 %v3635_v45  ;;  %vm944_vm10 = vcmask 719872  }
 0x17d   : > { %v3749_v52 = vpop.permute.xlu0 %2555  ;;  %v1019_v25 = vsel %vm1017_vm9, %v5200_v61, %v5199_v8  ;;  %v2754_v32 = vpack.i.bf16 %v1139_v33, %v1110_v56  ;;  %v1138_v8 = vsel %vm5201_vm11, %v2493_v55, %v2487_v49  ;;  %v2547_v56 = vunpack.i.l.bf16 %v3725_v51 }
 0x17e   : > { %2745 = vrot.lane.b32.xlu1 %v2744_v13, %s3077_s13  ;;  %v3762_v2 = vpop.permute.xlu1 %2540  ;;  %v2789_v22 = vpack.i.bf16 %v2517_v20, %v1019_v25  ;;  %v3765_v13 = vsel %vm397_vm15, %v2252_v4, %v2253_v29  ;;  %v5333_v33 = vunpack.i.h.bf16 %v3711_v60  ;;  %v5334_v49 = vunpack.i.h.bf16 %v3635_v45 }
 0x17f   : > { %5331 = vst [vmem:[#allocation57_spill] sm:$0xff] %v3762_v2  ;;  %5332 = vst [vmem:[#allocation58_spill] sm:$0xff] %v3765_v13  ;;  %v5204_v58 = vunpack.i.h.bf16 %v3762_v2  ;;  %v2542_v62 = vunpack.i.l.bf16 %v3762_v2  ;;  %vm827_vm11 = vcmask 818176   ;;  %v5335_v20 = vunpack.i.l.bf16 %v3277_v57 }
 0x180   : > { %2790 = vrot.lane.b32.xlu0 %v2789_v22, %s3077_s13  ;;  %v907_v25 = vsel %vm905_vm1, %v2537_v7, %v5333_v33  ;;  %v1048_v55 = vsel %vm1047_vm13, %v2497_v47, %v5334_v49  ;;  %v5338_v45 = vunpack.i.h.bf16 %v3284_v59 }
 0x181   : > { %v3769_v21 = vpop.permute.xlu0 %2565  ;;  %v946_v30 = vsel %vm944_vm10, %v2542_v62, %v5204_v58  ;;  %v3794_v60 = vsel %vm397_vm15, %v2253_v29, %v5335_v20  ;;  %v2764_v58 = vpack.i.bf16 %v1048_v55, %v1138_v8  ;;  %v5208_v20 = vunpack.i.l.bf16 %v3720_v39 }
 0x182   : > { %2755 = vrot.lane.b32.xlu1 %v2754_v32, %s3077_s13  ;;  %v3787_v61 = vpop.permute.xlu1 %2550  ;;  %v1666_v22 = vpack.c.bf16 %v946_v30, %v907_v25  ;;  %v2794_v32 = vpack.i.bf16 %v3765_v13, %v3192_v48  ;;  %5336 = vst [vmem:[#allocation59_spill] sm:$0xff] %v3794_v60  ;;  %v3802_v49 = vsel %vm397_vm15, %v5338_v45, %v2252_v4  ;;  %v5339_v25 = vunpack.i.l.bf16 %v3699_v17 }
 0x183   : > { %v2552_v33 = vunpack.i.l.bf16 %v3787_v61  ;;  %v5340_v13 = vunpack.i.h.bf16 %v3658_v16  ;;  %v2557_v55 = vunpack.i.l.bf16 %v3749_v52  ;;  %v906_v4 = vsel %vm905_vm1, %v2547_v56, %v2537_v7 }
 0x184   : > { %1766 = vmatprep.subr.bf16.mxu0 %v1666_v22  ;;  %2795 = vrot.lane.b32.xlu0 %v2794_v32, %s3077_s13  ;;  %v2799_v22 = vpack.i.bf16 %v3184_v44, %v3794_v60  ;;  %v5342_v56 = vunpack.i.h.bf16 %v3667_v35  ;;  %v2567_v30 = vunpack.i.l.bf16 %v3769_v21  ;;  %v5345_v32 = vunpack.i.l.bf16 %v3682_v40 }
 0x185   : > { %v3797_v2 = vpop.permute.xlu0 %2575  ;;  %v1080_v29 = vsel %vm5207_vm12, %v5340_v13, %v5339_v25  ;;  %v945_v45 = vsel %vm944_vm10, %v2552_v33, %v2542_v62  ;;  %vm788_vm12 = vcmask 900096   ;;  %v5348_v60 = vunpack.i.l.bf16 %v3436_v31 }
 0x186   : > { %5337 = vst [vmem:[#allocation60_spill] sm:$0xff] %v3797_v2  ;;  %2765 = vrot.lane.b32.xlu1 %v2764_v58, %s3077_s13  ;;  %v3818_v16 = vpop.permute.xlu1 %2560  ;;  %v1665_v13 = vpack.c.bf16 %v945_v45, %v906_v4  ;;  %v2774_v7 = vpack.i.bf16 %v2497_v47, %v1080_v29  ;;  %v989_v33 = vsel %vm987_vm14, %v5342_v56, %v5208_v20  ;;  %v2577_v45 = vunpack.i.l.bf16 %v3797_v2 }
 0x187   : > { %5341 = vst [vmem:[#allocation61_spill] sm:$0xff] %v3818_v16  ;;  %v5211_v25 = vunpack.i.h.bf16 %v3818_v16  ;;  %v2562_v8 = vunpack.i.l.bf16 %v3818_v16  ;;  %v5343_v47 = vunpack.i.h.bf16 %v3749_v52  ;;  %v5213_v20 = vunpack.i.h.bf16 %v3396_v18 }
 0x188   : > { %1767 = vmatpush1.bf16.msra.mxu0 %v1665_v13  ;;  %v5344_v13 = vunpack.i.h.bf16 %v3682_v40  ;;  %v2423_v40 = vunpack.i.h.bf16 %v3561_v42  ;;  %v2568_v19 = vunpack.i.h.bf16 %v3769_v21 }
 0x189   : > { %v3825_v58 = vpop.permute.xlu0 %2585  ;;  %v829_v29 = vsel %vm827_vm11, %v2557_v55, %v5343_v47  ;;  %v868_v35 = vsel %vm866_vm0, %v2562_v8, %v5211_v25  ;;  %v828_v47 = vsel %vm827_vm11, %v2567_v30, %v2557_v55  ;;  %v2373_v30 = vunpack.i.h.bf16 %v3472_v53 }
 0x18a   : > { %2775 = vrot.lane.b32.xlu1 %v2774_v7, %s3077_s13  ;;  %v1018_v62 = vsel %vm1017_vm9, %v5345_v32, %v5344_v13  ;;  %v3851_v4 = vpop.permute.xlu1 %2570  ;;  %v1657_v7 = vpack.c.bf16 %v868_v35, %v829_v29  ;;  %v5346_v32 = vunpack.i.h.bf16 %v3797_v2  ;;  %v2587_v13 = vunpack.i.l.bf16 %v3825_v58 }
 0x18b   : > { %v2572_v48 = vunpack.i.l.bf16 %v3851_v4  ;;  %v2784_v56 = vpack.i.bf16 %v1018_v62, %v989_v33  ;;  %v3872_v33 = vld [vmem:[%s5112_s3] sm:$0xff] }
 0x18c   : > { %1768 = vmatprep.subr.bf16.mxu0 %v1657_v7  ;;  %v790_v29 = vsel %vm788_vm12, %v2577_v45, %v5346_v32  ;;  %5347 = vst [vmem:[#allocation62_spill] sm:$0xff] %v3872_v33  ;;  %v2397_v7 = vunpack.i.l.bf16 %v3480_v41 }
 0x18d   : > { %v3856_v25 = vpop.permute.xlu0 %2595  ;;  %v867_v62 = vsel %vm866_vm0, %v2572_v48, %v2562_v8  ;;  %v3886_v48 = vcombine.high %v3872_v33, %v3872_v33  ;;  %v1648_v35 = vpack.c.bf16 %v790_v29, %v3610_v6  ;;  %v2422_v8 = vunpack.i.l.bf16 %v3561_v42 }
 0x18e   : > { %2785 = vrot.lane.b32.xlu1 %v2784_v56, %s3077_s13  ;;  %v3875_v16 = vpop.permute.xlu1 %2580  ;;  %v1656_v32 = vpack.c.bf16 %v867_v62, %v828_v47  ;;  %v3882_v56 = vsel %vm5223_vm3, %v5213_v20, %v5348_v60  ;;  %v2398_v62 = vunpack.i.h.bf16 %v3480_v41  ;;  %v5350_v20 = vunpack.i.l.bf16 %v3523_v24 }
 0x18f   : > { %5349 = vst [vmem:[#allocation63_spill] sm:$0xff] %v3886_v48  ;;  %v2582_v55 = vunpack.i.l.bf16 %v3875_v16  ;;  %2198 = vmatprep.mubr.msk.bf16.mxu0 %vm944_vm10, %v3886_v48  ;;  %v5351_v6 = vunpack.i.h.bf16 %v3875_v16  ;;  %v5352_v29 = vunpack.i.h.bf16 %v3601_v15  ;;  %v5353_v41 = vunpack.i.l.bf16 %v3569_v0  ;;  %2200 = vmatprep.mubr.msk.bf16.mxu1 %vm944_vm10, %v3886_v48 }
 0x190   : > { %1769 = vmatpush1.bf16.msra.mxu0 %v1656_v32  ;;  %v672_v33 = vsel %vm670_vm6, %v2423_v40, %v5350_v20  ;;  %v789_v20 = vsel %vm788_vm12, %v2587_v13, %v2577_v45  ;;  %v2443_v60 = vunpack.i.h.bf16 %v3593_v1  ;;  %v2442_v42 = vunpack.i.l.bf16 %v3593_v1 }
 0x191   : > { %v3892_v47 = vpop.permute.xlu0 %2605  ;;  %v3908_v31 = vsel %vm5226_vm7, %v5352_v29, %v5351_v6  ;;  %1770 = vmatprep.subr.bf16.mxu0 %v1648_v35  ;;  %v750_v32 = vsel %vm5226_vm7, %v2582_v55, %v5353_v41  ;;  %v1639_v55 = vpack.c.bf16 %v3656_v12, %v672_v33  ;;  %v5354_v13 = vunpack.i.l.bf16 %v3438_v34 }
 0x192   : > { %2800 = vrot.lane.b32.xlu1 %v2799_v22, %s3077_s13  ;;  %v2591_v2 = vpop.permute.xlu1 %2590  ;;  %v1647_v24 = vpack.c.bf16 %v789_v20, %v750_v32  ;;  %v2804_v15 = vpack.i.bf16 %v3908_v31, %v3802_v49  ;;  %v2372_v22 = vunpack.i.l.bf16 %v3472_v53  ;;  %v5355_v41 = vunpack.i.l.bf16 %v3521_v37 }
 0x193   : > { %v2593_v35 = vunpack.i.h.bf16 %v2591_v2  ;;  %v2592_v0 = vunpack.i.l.bf16 %v2591_v2  ;;  %v594_v29 = vsel %vm592_vm4, %v2373_v30, %v5354_v13  ;;  %v5356_v2 = vunpack.i.l.bf16 %v3617_v3 }
 0x194   : > { %1771 = vmatpush1.bf16.msra.mxu0 %v1647_v24  ;;  %2805 = vrot.lane.b32.xlu0 %v2804_v15, %s3077_s13  ;;  %v633_v53 = vsel %vm631_vm5, %v2398_v62, %v5355_v41  ;;  %v671_v24 = vsel %vm670_vm6, %v2422_v8, %v2423_v40  ;;  %v5357_v33 = vunpack.i.h.bf16 %v3617_v3  ;;  %v632_v20 = vsel %vm631_vm5, %v2397_v7, %v2398_v62 }
 0x195   : > { %v3923_v6 = vpop.permute.xlu0 %2615  ;;  %v3937_v12 = vsel %vm5222_vm8, %v5356_v2, %v2593_v35  ;;  %1772 = vmatprep.subr.bf16.mxu0 %v1639_v55  ;;  %v3945_v15 = vsel %vm670_vm6, %v2442_v42, %v2443_v60  ;;  %v1630_v3 = vpack.c.bf16 %v633_v53, %v594_v29  ;;  %v2322_v62 = vunpack.i.l.bf16 %v3388_v5 }
 0x196   : > { %v5225_v1 = vunpack.i.h.bf16 %v3923_v6  ;;  %v2617_v45 = vunpack.i.l.bf16 %v3923_v6  ;;  %v711_v32 = vsel %vm5222_vm8, %v2592_v0, %v5357_v33  ;;  %5358 = vst [vmem:[#allocation64_spill] sm:$0xff] %v3945_v15  ;;  %v2601_v41 = vpop.permute.xlu1 %2600  ;;  %v593_v60 = vsel %vm592_vm4, %v2372_v22, %v2373_v30 }
 0x197   : > { %v1638_v2 = vpack.c.bf16 %v711_v32, %v671_v24  ;;  %v2603_v40 = vunpack.i.h.bf16 %v2601_v41  ;;  %v2602_v8 = vunpack.i.l.bf16 %v2601_v41  ;;  %v5359_v0 = vunpack.i.l.bf16 %v3361_v28 }
 0x198   : > { %v3950_v13 = vsel %vm5222_vm8, %v2617_v45, %v5225_v1  ;;  %v5360_v24 = vunpack.i.h.bf16 %v3388_v5  ;;  %v5361_v32 = vunpack.i.h.bf16 %v3396_v18  ;;  %v5362_v29 = vunpack.i.l.bf16 %v3396_v18 }
 0x199   : > { %v3954_v48 = vpop.permute.xlu0 %2625  ;;  %1773 = vmatpush1.bf16.msra.mxu0 %v1638_v2  ;;  %v2597_v41 = vunpack.i.l.bf16 %v3856_v25  ;;  %v3972_v7 = vsel %vm5222_vm8, %v2603_v40, %v2617_v45  ;;  %v3975_v2 = vsel %vm5222_vm8, %v2593_v35, %v2602_v8  ;;  %v3978_v30 = vsel %vm5222_vm8, %v2602_v8, %v2603_v40 }
 0x19a   : > { %v516_v33 = vsel %vm5224_vm2, %v5360_v24, %v5359_v0  ;;  %v554_v53 = vsel %vm5223_vm3, %v5362_v29, %v5361_v32  ;;  %5363 = vst [vmem:[#allocation65_spill] sm:$0xff] %v3972_v7  ;;  %5364 = vst [vmem:[#allocation66_spill] sm:$0xff] %v3978_v30  ;;  %1774 = vmatprep.subr.bf16.mxu0 %v1630_v3  ;;  %v2611_v22 = vpop.permute.xlu1 %2610  ;;  %v1629_v0 = vpack.c.bf16 %v632_v20, %v593_v60  ;;  %vm5372_vm8 = vcmask 1031168  }
 0x19b   : > { %v1621_v24 = vpack.c.bf16 %v3882_v56, %v516_v33  ;;  %v5365_v18 = vunpack.i.l.bf16 %v3531_v43  ;;  %v5366_v32 = vunpack.i.h.bf16 %v3574_v26  ;;  %v5367_v45 = vunpack.i.h.bf16 %v3531_v43 }
 0x19c   : > { %v2613_v55 = vunpack.i.h.bf16 %v2611_v22  ;;  %v2612_v40 = vunpack.i.l.bf16 %v2611_v22  ;;  %v5369_v3 = vunpack.i.h.bf16 %v3388_v5  ;;  %v5370_v43 = vunpack.i.l.bf16 %v3297_v63 }
 0x19d   : > { %v3986_v29 = vsel %vm670_vm6, %v5366_v32, %v5365_v18  ;;  %v3991_v35 = vsel %vm670_vm6, %v5367_v45, %v2442_v42  ;;  %v3993_v8 = vpop.permute.xlu0 %2635  ;;  %1775 = vmatpush1.bf16.msra.mxu0 %v1629_v0  ;;  %v5371_v42 = vunpack.i.h.bf16 %v3312_v9  ;;  %v5373_v22 = vunpack.i.l.bf16 %v3359_v38 }
 0x19e   : > { %5368 = vst [vmem:[#allocation67_spill] sm:$0xff] %v3991_v35  ;;  %v515_v60 = vsel %vm5224_vm2, %v2322_v62, %v5369_v3  ;;  %v5374_v18 = vunpack.i.h.bf16 %v3315_v11  ;;  %vm5375_vm3 = vcmask 949248   ;;  %v5376_v0 = vunpack.i.h.bf16 %v3875_v16  ;;  %1776 = vmatprep.subr.bf16.mxu0 %v1621_v24 }
 0x19f   : > { %v438_v33 = vsel %vm5372_vm8, %v5371_v42, %v5370_v43  ;;  %v5229_v62 = vunpack.i.l.bf16 %v3892_v47  ;;  %v5377_v3 = vunpack.i.l.bf16 %v3629_v14  ;;  %vm5378_vm2 = vcmask 924672  }
 0x1a0   : > { %v477_v32 = vsel %vm5375_vm3, %v5374_v18, %v5373_v22  ;;  %v4017_v5 = vsel %vm5226_vm7, %v5376_v0, %v2597_v41  ;;  %vm5379_vm8 = vmmov %vm5378_vm2  ;;  %v2598_v56 = vunpack.i.h.bf16 %v3856_v25  ;;  %v4025_v22 = vpop.permute.xlu1 %2620  ;;  %v1620_v18 = vpack.c.bf16 %v554_v53, %v515_v60 }
 0x1a1   : > { %v1171_v43 = vsel %vm5378_vm2, %v5377_v3, %v2612_v40  ;;  %v1172_v42 = vsel %vm5379_vm8, %v2612_v40, %v2613_v55  ;;  %v2247_v0 = vunpack.i.l.bf16 %v3284_v59  ;;  %v2622_v20 = vunpack.i.l.bf16 %v4025_v22  ;;  %v4031_v14 = vpop.permute.xlu0 %2645  ;;  %vm5382_vm2 = vmmov %vm5375_vm3 }
 0x1a2   : > { %v2814_v45 = vpack.i.bf16 %v3937_v12, %v1172_v42  ;;  %v2809_v16 = vpack.i.bf16 %v1171_v43, %v4017_v5  ;;  %v1612_v1 = vpack.c.bf16 %v477_v32, %v438_v33  ;;  %v5380_v3 = vunpack.i.h.bf16 %v3315_v11  ;;  %1777 = vmatpush1.bf16.msra.mxu0 %v1620_v18 }
 0x1a3   : > { %v5381_v24 = vunpack.i.l.bf16 %v3315_v11  ;;  %v2623_v40 = vunpack.i.h.bf16 %v4025_v22  ;;  %v5383_v53 = vunpack.i.h.bf16 %v3312_v9  ;;  %v5384_v60 = vunpack.i.l.bf16 %v3312_v9 }
 0x1a4   : > { %2815 = vrot.lane.b32.xlu1 %v2814_v45, %s3077_s13  ;;  %vm5385_vm3 = vcmask 1031168   ;;  %v4048_v33 = vsel %vm5226_vm7, %v2598_v56, %v5229_v62  ;;  %v5232_v11 = vunpack.i.h.bf16 %v3954_v48  ;;  %v2627_v32 = vunpack.i.l.bf16 %v3954_v48  ;;  %2810 = vrot.lane.b32.xlu0 %v2809_v16, %s3077_s13  ;;  %v4059_v45 = vpop.permute.xlu1 %2630 }
 0x1a5   : > { %v476_v25 = vsel %vm5382_vm2, %v5381_v24, %v5380_v3  ;;  %v437_v43 = vsel %vm5385_vm3, %v5384_v60, %v5383_v53  ;;  %5386 = vst [vmem:[#allocation68_spill] sm:$0xff] %v4048_v33  ;;  %v5387_v42 = vunpack.i.l.bf16 %v3647_v54  ;;  %vm5388_vm8 = vcmask 1014784   ;;  %1778 = vmatprep.subr.bf16.mxu0 %v1612_v1 }
 0x1a6   : > { %v4057_v9 = vsel %vm5226_vm7, %v2597_v41, %v2598_v56  ;;  %v1611_v3 = vpack.c.bf16 %v476_v25, %v437_v43  ;;  %v2632_v53 = vunpack.i.l.bf16 %v4059_v45  ;;  %v1603_v54 = vpack.c.bf16 %v3802_v49, %v3184_v44  ;;  %vm5391_vm2 = vmmov %vm5388_vm8 }
 0x1a7   : > { %v1111_v18 = vsel %vm5388_vm8, %v5387_v42, %v2622_v20  ;;  %5389 = vst [vmem:[#allocation69_spill] sm:$0xff] %v4057_v9  ;;  %v2819_v60 = vpack.i.bf16 %v4057_v9, %v3975_v2  ;;  %v4067_v42 = vpop.permute.xlu0 %2660  ;;  %v5390_v1 = vunpack.i.h.bf16 %v3284_v59  ;;  %v1112_v56 = vsel %vm5391_vm2, %v2622_v20, %v2623_v40 }
 0x1a8   : > { %v2824_v24 = vpack.i.bf16 %v1111_v18, %v4048_v33  ;;  %v5228_v16 = vunpack.i.h.bf16 %v4059_v45  ;;  %1779 = vmatpush1.bf16.msra.mxu0 %v1611_v3  ;;  %v2503_v25 = vunpack.i.h.bf16 %v3676_v23  ;;  %vm5392_vm3 = vcmask 1006592   ;;  %v4086_v43 = vpop.permute.xlu1 %2640 }
 0x1a9   : > { %v398_v41 = vsel %vm397_vm15, %v2247_v0, %v5390_v1  ;;  %v1142_v44 = vsel %vm5392_vm3, %v2627_v32, %v5232_v11  ;;  %vm5393_vm8 = vcmask 924672   ;;  %2820 = vrot.lane.b32.xlu0 %v2819_v60, %s3077_s13  ;;  %1780 = vmatprep.subr.bf16.mxu0 %v1603_v54  ;;  %v5394_v59 = vunpack.i.l.bf16 %v3662_v10  ;;  %vm5395_vm7 = vmmov %vm5392_vm3 }
 0x1aa   : > { %2825 = vrot.lane.b32.xlu1 %v2824_v24, %s3077_s13  ;;  %v1173_v49 = vsel %vm5393_vm8, %v2613_v55, %v2632_v53  ;;  %v5396_v18 = vmax.f32 %v3171_v36, 0.0  ;;  %vm5397_vm2 = vmmov %vm5393_vm8  ;;  %v5398_v10 = vunpack.i.l.bf16 %v3676_v23  ;;  %vm5403_vm8 = vcmask 1014784  }
 0x1ab   : > { %v1141_v20 = vsel %vm5395_vm7, %v5394_v59, %v2627_v32  ;;  %v2834_v0 = vpack.i.bf16 %v1173_v49, %v1142_v44  ;;  %v4090_v1 = vpop.permute.xlu0 %2670  ;;  %v1174_v55 = vsel %vm5397_vm2, %v2632_v53, %v5228_v16  ;;  %v2647_v49 = vunpack.i.l.bf16 %v4031_v14 }
 0x1ac   : > { %v1602_v3 = vpack.c.bf16 %v398_v41, %v5396_v18  ;;  %v2829_v24 = vpack.i.bf16 %v1141_v20, %v1112_v56  ;;  %v1050_v32 = vsel %vm1047_vm13, %v5398_v10, %v2503_v25  ;;  %v4100_v60 = vpop.permute.xlu1 %2650  ;;  %v2839_v54 = vpack.i.bf16 %v3978_v30, %v1174_v55 }
 0x1ad   : > { %v2844_v36 = vpack.i.bf16 %v1050_v32, %v3972_v7  ;;  %v5231_v41 = vunpack.i.h.bf16 %v4086_v43  ;;  %v2642_v56 = vunpack.i.l.bf16 %v4086_v43  ;;  %v5235_v59 = vunpack.i.l.bf16 %v3993_v8 }
 0x1ae   : > { %2835 = vrot.lane.b32.xlu1 %v2834_v0, %s3077_s13  ;;  %1781 = vmatpush1.bf16.msra.mxu0 %v1602_v3  ;;  %vm5400_vm7 = vcmask 1022976   ;;  %v5234_v3 = vunpack.i.h.bf16 %v4100_v60  ;;  %v5401_v10 = vunpack.i.l.bf16 %v3699_v17  ;;  %v1113_v16 = vsel %vm5403_vm8, %v2623_v40, %v2647_v49 }
 0x1af   : > { %2830 = vrot.lane.b32.xlu0 %v2829_v24, %s3077_s13  ;;  %v4106_v53 = vpop.permute.xlu0 %2675  ;;  %v1082_v18 = vsel %vm5400_vm7, %v2642_v56, %v5231_v41  ;;  %v2652_v24 = vunpack.i.l.bf16 %v4100_v60  ;;  %vm5402_vm3 = vmmov %vm5400_vm7  ;;  %v1051_v17 = vsel %vm1047_vm13, %v2503_v25, %v5235_v59  ;;  %vm5405_vm2 = vcmask 1006592  }
 0x1b0   : > { %v5227_v23 = vunpack.i.h.bf16 %v4106_v53  ;;  %v5230_v44 = vunpack.i.l.bf16 %v4106_v53  ;;  %v4121_v0 = vpop.permute.xlu1 %2655  ;;  %v1081_v32 = vsel %vm5402_vm3, %v5401_v10, %v2642_v56  ;;  %v2864_v10 = vpack.i.bf16 %v1113_v16, %v1082_v18  ;;  %vm5407_vm7 = vmmov %vm5405_vm2 }
 0x1b1   : > { %v2859_v22 = vpack.i.bf16 %v1081_v32, %v1051_v17  ;;  %v1144_v40 = vsel %vm5405_vm2, %v2652_v24, %v5234_v3  ;;  %v5406_v16 = vunpack.i.h.bf16 %v3954_v48  ;;  %v5408_v17 = vunpack.i.l.bf16 %v3720_v39  ;;  %vm5411_vm3 = vmmov %vm5403_vm8 }
 0x1b2   : > { %2845 = vrot.lane.b32.xlu1 %v2844_v36, %s3077_s13  ;;  %v4119_v20 = vsel %vm987_vm14, %v5230_v44, %v5227_v23  ;;  %v2523_v23 = vunpack.i.h.bf16 %v3720_v39  ;;  %v2548_v59 = vunpack.i.h.bf16 %v3725_v51  ;;  %v2553_v56 = vunpack.i.h.bf16 %v3787_v61 }
 0x1b3   : > { %2840 = vrot.lane.b32.xlu0 %v2839_v54, %s3077_s13  ;;  %5399 = vst [vmem:[#allocation70_spill] sm:$0xff] %v4119_v20  ;;  %v4128_v55 = vpop.permute.xlu0 %2685  ;;  %v1143_v18 = vsel %vm5407_vm7, %v5406_v16, %v2652_v24  ;;  %v5410_v24 = vunpack.i.h.bf16 %v4031_v14  ;;  %v5246_v16 = vunpack.i.l.bf16 %v4067_v42  ;;  %vm5424_vm8 = vcmask 1022976  }
 0x1b4   : > { %v5233_v36 = vunpack.i.h.bf16 %v4128_v55  ;;  %v2687_v54 = vunpack.i.l.bf16 %v4128_v55  ;;  %v4152_v44 = vpop.permute.xlu1 %2665  ;;  %v990_v3 = vsel %vm987_vm14, %v5408_v17, %v2523_v23  ;;  %vm5429_vm2 = vmmov %vm5424_vm8  ;;  %vm5469_vm7 = vcmask 908288  }
 0x1b5   : > { %5404 = vst [vmem:[#allocation71_spill] sm:$0xff] %v4152_v44  ;;  %v5236_v41 = vunpack.i.h.bf16 %v4152_v44  ;;  %v2667_v11 = vunpack.i.l.bf16 %v4152_v44  ;;  %v2874_v39 = vpack.i.bf16 %v990_v3, %v1144_v40  ;;  %v2638_v40 = vunpack.i.h.bf16 %v3993_v8  ;;  %v5415_v3 = vld [vmem:[#allocation57_spill] sm:$0xff] }
 0x1b6   : > { %2855 = vrot.lane.b32.xlu1 %v3581_v27, %s3069_s27  ;;  %v4150_v62 = vsel %vm905_vm1, %v2687_v54, %v5233_v36  ;;  %v5416_v30 = vunpack.i.h.bf16 %v5415_v3 }
 0x1b7   : > { %2850 = vrot.lane.b32.xlu0 %v3581_v27, %s3068_s26  ;;  %v4159_v25 = vpop.permute.xlu0 %2700  ;;  %v4175_v48 = vsel %vm1047_vm13, %v2667_v11, %v5236_v41 }
 0x1b8   : > { %v5239_v36 = vunpack.i.h.bf16 %v4159_v25  ;;  %v2702_v32 = vunpack.i.l.bf16 %v4159_v25  ;;  %5409 = vst [vmem:[#allocation72_spill] sm:$0xff] %v4175_v48  ;;  %v4187_v61 = vpop.permute.xlu1 %2680  ;;  %v947_v35 = vsel %vm944_vm10, %v5416_v30, %v2553_v56  ;;  %v5419_v30 = vunpack.i.h.bf16 %v3749_v52 }
 0x1b9   : > { %v5242_v41 = vunpack.i.h.bf16 %v4187_v61  ;;  %v5243_v15 = vunpack.i.l.bf16 %v4187_v61 }
 0x1ba   : > { %2865 = vrot.lane.b32.xlu1 %v2864_v10, %s3077_s13  ;;  %v1114_v10 = vsel %vm5411_vm3, %v2647_v49, %v5410_v24  ;;  %v4185_v51 = vsel %vm866_vm0, %v2702_v32, %v5239_v36  ;;  %v2573_v49 = vunpack.i.h.bf16 %v3851_v4  ;;  %v5417_v24 = vunpack.i.l.bf16 %v3738_v50 }
 0x1bb   : > { %2860 = vrot.lane.b32.xlu0 %v2859_v22, %s3077_s13  ;;  %v2869_v17 = vpack.i.bf16 %v1143_v18, %v1114_v10  ;;  %v2533_v22 = vunpack.i.h.bf16 %v3738_v50  ;;  %v4202_v18 = vsel %vm1017_vm9, %v5243_v15, %v5242_v41  ;;  %v5413_v10 = vld [vmem:[#allocation55_spill] sm:$0xff]  ;;  %v2672_v15 = vunpack.i.l.bf16 %v4090_v1  ;;  %v4223_v9 = vpop.permute.xlu0 %936 }
 0x1bc   : > { %5412 = vst [vmem:[#allocation73_spill] sm:$0xff] %v4202_v18  ;;  %v2691_v4 = vpop.permute.xlu1 %2690  ;;  %v830_v3 = vsel %vm827_vm11, %v5419_v30, %v2568_v19  ;;  %v5422_v50 = vunpack.i.l.bf16 %v3993_v8  ;;  %v5423_v8 = vunpack.i.h.bf16 %v4090_v1 }
 0x1bd   : > { %v1021_v21 = vsel %vm1017_vm9, %v2533_v22, %v5246_v16  ;;  %v2692_v7 = vunpack.i.l.bf16 %v2691_v4  ;;  %v1020_v33 = vsel %vm1017_vm9, %v5417_v24, %v2533_v22  ;;  %v5418_v16 = vunpack.i.l.bf16 %v4121_v0 }
 0x1be   : > { %2875 = vrot.lane.b32.xlu1 %v2874_v39, %s3077_s13  ;;  %v5414_v39 = vunpack.i.h.bf16 %v5413_v10  ;;  %v1052_v22 = vsel %vm1047_vm13, %v5422_v50, %v2638_v40  ;;  %v1084_v50 = vsel %vm5424_vm8, %v2672_v15, %v5423_v8 }
 0x1bf   : > { %2870 = vrot.lane.b32.xlu0 %v2869_v17, %s3077_s13  ;;  %v2693_v17 = vunpack.i.h.bf16 %v2691_v4  ;;  %v991_v10 = vsel %vm987_vm14, %v2523_v23, %v5418_v16  ;;  %v909_v23 = vsel %vm905_vm1, %v2548_v59, %v2687_v54  ;;  %v948_v52 = vsel %vm944_vm10, %v2553_v56, %v2692_v7 }
 0x1c0   : > { %v908_v36 = vsel %vm905_vm1, %v5414_v39, %v2548_v59  ;;  %v5420_v39 = vld [vmem:[#allocation61_spill] sm:$0xff]  ;;  %v2894_v16 = vpack.i.bf16 %v1052_v22, %v1021_v21  ;;  %v2889_v18 = vpack.i.bf16 %v1020_v33, %v991_v10  ;;  %v5426_v59 = vunpack.i.l.bf16 %v3277_v57  ;;  %v5427_v10 = vld [vmem:[#allocation2_spill] sm:$0xff] }
 0x1c1   : > { %v5421_v41 = vunpack.i.h.bf16 %v5420_v39  ;;  %v4237_v24 = vsel %vm944_vm10, %v2692_v7, %v2693_v17  ;;  %v2696_v39 = vpop.permute.xlu1 %2695  ;;  %v1667_v20 = vpack.c.bf16 %v947_v35, %v908_v36  ;;  %v1053_v54 = vsel %vm1047_vm13, %v2638_v40, %v2667_v11 }
 0x1c2   : > { %2885 = vrot.lane.b32.xlu1 %v3581_v27, %s3071_s29  ;;  %v2698_v48 = vunpack.i.h.bf16 %v2696_v39  ;;  %v2697_v44 = vunpack.i.l.bf16 %v2696_v39  ;;  %v2588_v36 = vunpack.i.h.bf16 %v3825_v58  ;;  %v870_v21 = vsel %vm866_vm0, %v2573_v49, %v2702_v32 }
 0x1c3   : > { %v869_v4 = vsel %vm866_vm0, %v5421_v41, %v2573_v49  ;;  %2880 = vrot.lane.b32.xlu0 %v3581_v27, %s3070_s28  ;;  %v1668_v41 = vpack.c.bf16 %v948_v52, %v909_v23  ;;  %v5425_v27 = vunpack.i.h.bf16 %v3277_v57  ;;  %v2904_v22 = vpack.i.bf16 %v5427_v10, %v1084_v50  ;;  %v4268_v23 = vpop.permute.xlu0 %819  ;;  %s295_s28 = scalar_lea.vmem %s5115_s6, %s2193_s23 }
 0x1c4   : > { %v1658_v35 = vpack.c.bf16 %v869_v4, %v830_v3  ;;  %v4259_v56 = vsel %vm827_vm11, %v2697_v44, %v2698_v48  ;;  %v831_v33 = vsel %vm827_vm11, %v2568_v19, %v2697_v44  ;;  %v5428_v11 = vunpack.i.h.bf16 %v4086_v43  ;;  %v5431_v43 = vld [vmem:[#allocation11_spill] sm:$0xff] }
 0x1c5   : > { %v4253_v7 = vsel %vm397_vm15, %v5426_v59, %v5425_v27  ;;  %1807 = vmatprep.subr.bf16.mxu1 %v1668_v41  ;;  %v4272_v3 = vpop.permute.xlu1 %897  ;;  %v1659_v4 = vpack.c.bf16 %v870_v21, %v831_v33  ;;  %v5430_v19 = vunpack.i.h.bf16 %v4128_v55  ;;  %v2262_v32 = vunpack.i.l.bf16 %v5431_v43  ;;  %v5435_v33 = vld [vmem:[#allocation60_spill] sm:$0xff] }
 0x1c6   : > { %2895 = vrot.lane.b32.xlu1 %v2894_v16, %s3077_s13  ;;  %1808 = vmatpush1.bf16.msra.mxu1 %v1667_v20  ;;  %v1083_v40 = vsel %vm5429_vm2, %v5428_v11, %v2672_v15  ;;  %v2658_v20 = vunpack.i.h.bf16 %v4121_v0  ;;  %v4283_v15 = vsel %vm944_vm10, %v2693_v17, %v4223_v9  ;;  %v2663_v52 = vunpack.i.h.bf16 %v4067_v42  ;;  %v5432_v16 = vld [vmem:[#allocation45_spill] sm:$0xff]  ;;  %v5433_v17 = vld [vmem:[#allocation3_spill] sm:$0xff] }
 0x1c7   : > { %2890 = vrot.lane.b32.xlu0 %v2889_v18, %s3077_s13  ;;  %v2899_v18 = vpack.i.bf16 %v1083_v40, %v1053_v54  ;;  %v4279_v44 = vsel %vm905_vm1, %v5430_v19, %v4272_v3  ;;  %1809 = vmatprep.subr.bf16.mxu1 %v1659_v4  ;;  %v5249_v55 = vunpack.i.h.bf16 %v5431_v43  ;;  %v2428_v39 = vunpack.i.h.bf16 %v5432_v16  ;;  %v4310_v19 = vpop.permute.xlu0 %780 }
 0x1c8   : > { %v2909_v8 = vpack.i.bf16 %v4253_v7, %v5433_v17  ;;  %v5434_v50 = vunpack.i.l.bf16 %v4106_v53  ;;  %v5436_v21 = vunpack.i.h.bf16 %v5435_v33  ;;  %v2403_v40 = vunpack.i.h.bf16 %v3521_v37  ;;  %5439 = vst [vmem:[#allocation55_spill] sm:$0xff] %v4310_v19 }
 0x1c9   : > { %v2706_v41 = vpop.permute.xlu1 %2705  ;;  %v5438_v4 = vunpack.i.l.bf16 %v4121_v0  ;;  %v5441_v33 = vunpack.i.l.bf16 %v4067_v42  ;;  %v5443_v42 = vld [vmem:[#allocation54_spill] sm:$0xff]  ;;  %v4338_v49 = vsel %vm827_vm11, %v2698_v48, %v4268_v23  ;;  %v5447_v48 = vld [vmem:[#allocation56_spill] sm:$0xff]  ;;  %vm5481_vm2 = vcmask 1031168  }
 0x1ca   : > { %2905 = vrot.lane.b32.xlu1 %v2904_v22, %s3077_s13  ;;  %1810 = vmatpush1.bf16.msra.mxu1 %v1658_v35  ;;  %v993_v27 = vsel %vm987_vm14, %v2658_v20, %v5434_v50  ;;  %v2708_v59 = vunpack.i.h.bf16 %v2706_v41  ;;  %v2707_v54 = vunpack.i.l.bf16 %v2706_v41  ;;  %v791_v22 = vsel %vm788_vm12, %v5436_v21, %v2588_v36 }
 0x1cb   : > { %2900 = vrot.lane.b32.xlu0 %v2899_v18, %s3077_s13  ;;  %v5437_v35 = vunpack.i.h.bf16 %v3277_v57  ;;  %v992_v18 = vsel %vm987_vm14, %v5438_v4, %v2658_v20  ;;  %v5440_v41 = vunpack.i.l.bf16 %v3574_v26  ;;  %v1022_v57 = vsel %vm1017_vm9, %v5441_v33, %v2663_v52  ;;  %v5444_v33 = vld [vmem:[#allocation52_spill] sm:$0xff] }
 0x1cc   : > { %v4320_v21 = vsel %vm788_vm12, %v2707_v54, %v2708_v59  ;;  %v792_v0 = vsel %vm788_vm12, %v2588_v36, %v2707_v54  ;;  %v4327_v20 = vsel %vm788_vm12, %v2708_v59, %v4310_v19  ;;  %v1649_v58 = vpack.c.bf16 %v791_v22, %v5444_v33  ;;  %v5449_v33 = vld [vmem:[#allocation40_spill] sm:$0xff]  ;;  %v5455_v59 = vld [vmem:[#allocation39_spill] sm:$0xff]  ;;  %v5467_v19 = vld [vmem:[#allocation10_spill] sm:$0xff] }
 0x1cd   : > { %v4304_v11 = vsel %vm397_vm15, %v5437_v35, %v2262_v32  ;;  %v674_v50 = vsel %vm670_vm6, %v2428_v39, %v5440_v41  ;;  %v5442_v35 = vld [vmem:[#allocation14_spill] sm:$0xff]  ;;  %v4331_v4 = vpop.permute.xlu1 %858  ;;  %v1650_v41 = vpack.c.bf16 %v792_v0, %v5443_v42  ;;  %v5445_v36 = vunpack.i.h.bf16 %v4159_v25  ;;  %v5448_v0 = vld [vmem:[#allocation32_spill] sm:$0xff] }
 0x1ce   : > { %2910 = vrot.lane.b32.xlu1 %v2909_v8, %s3077_s13  ;;  %v2919_v8 = vpack.i.bf16 %v1022_v57, %v993_v27  ;;  %v2914_v30 = vpack.i.bf16 %v992_v18, %v4304_v11  ;;  %v5446_v54 = vunpack.i.l.bf16 %v4187_v61  ;;  %v1641_v18 = vpack.c.bf16 %v5447_v48, %v674_v50  ;;  %v4370_v48 = vpop.permute.xlu0 %1177 }
 0x1cf   : > { %963 = vrot.lane.b32.xlu0 %v5442_v35, %s3055_s11  ;;  %v4344_v27 = vsel %vm866_vm0, %v5445_v36, %v4331_v4  ;;  %1811 = vmatprep.subr.bf16.mxu1 %v1650_v41  ;;  %v2353_v25 = vunpack.i.h.bf16 %v5448_v0  ;;  %v2378_v42 = vunpack.i.h.bf16 %v3438_v34  ;;  %v5450_v36 = vunpack.i.l.bf16 %v5449_v33  ;;  %s2210_s11 = smul.u32 72, %s5599_s25 }
 0x1d0   : > { %v1023_v57 = vsel %vm1017_vm9, %v2663_v52, %v5446_v54  ;;  %1812 = vmatpush1.bf16.msra.mxu1 %v1649_v58  ;;  %v5451_v52 = vunpack.i.l.bf16 %v5432_v16  ;;  %v4367_v50 = vsel %vm397_vm15, %v2262_v32, %v5249_v55  ;;  %v5456_v33 = vunpack.i.l.bf16 %v5455_v59  ;;  %v5457_v16 = vld [vmem:[#allocation7_spill] sm:$0xff] }
 0x1d1   : > { %v635_v26 = vsel %vm631_vm5, %v2403_v40, %v5450_v36  ;;  %1813 = vmatprep.subr.bf16.mxu1 %v1641_v18  ;;  %5452 = vst [vmem:[#allocation57_spill] sm:$0xff] %v4367_v50  ;;  %v2608_v18 = vunpack.i.h.bf16 %v3892_v47  ;;  %v2328_v22 = vunpack.i.h.bf16 %v3361_v28  ;;  %v5459_v59 = vld [vmem:[#allocation27_spill] sm:$0xff]  ;;  %s5085_s20 = scalar_lea.vmem %s5114_s5, %s2210_s11 }
 0x1d2   : > { %2920 = vrot.lane.b32.xlu1 %v2919_v8, %s3077_s13  ;;  %v673_v41 = vsel %vm670_vm6, %v5451_v52, %v2428_v39  ;;  %v5453_v8 = vld [vmem:[#allocation8_spill] sm:$0xff]  ;;  %v596_v36 = vsel %vm592_vm4, %v2378_v42, %v5456_v33  ;;  %v5458_v52 = vunpack.i.l.bf16 %v3521_v37  ;;  %vm5461_vm6 = vcmask 932864   ;;  %v5462_v33 = vld [vmem:[#allocation9_spill] sm:$0xff] }
 0x1d3   : > { %2915 = vrot.lane.b32.xlu0 %v2914_v30, %s3077_s13  ;;  %v2924_v54 = vpack.i.bf16 %v5453_v8, %v1023_v57  ;;  %v5454_v30 = vld [vmem:[#allocation53_spill] sm:$0xff]  ;;  %v1632_v39 = vpack.c.bf16 %v635_v26, %v596_v36  ;;  %v2303_v57 = vunpack.i.h.bf16 %v3359_v38  ;;  %v2939_v55 = vpack.i.bf16 %v4367_v50, %v5462_v33  ;;  %v5464_v36 = vld [vmem:[#allocation26_spill] sm:$0xff]  ;;  %vm5471_vm3 = vmmov %vm5461_vm6 }
 0x1d4   : > { %v1640_v58 = vpack.c.bf16 %v5454_v30, %v673_v41  ;;  %v634_v32 = vsel %vm631_vm5, %v5458_v52, %v2403_v40  ;;  %v5460_v41 = vunpack.i.l.bf16 %v5459_v59  ;;  %v5463_v26 = vunpack.i.l.bf16 %v3438_v34 }
 0x1d5   : > { %v5465_v52 = vunpack.i.l.bf16 %v5464_v36  ;;  %vm5466_vm5 = vcmask 941056  }
 0x1d6   : > { %2930 = vrot.lane.b32.xlu1 %v5457_v16, %s3072_s30  ;;  %1814 = vmatpush1.bf16.msra.mxu1 %v1640_v58  ;;  %v557_v30 = vsel %vm5461_vm6, %v2353_v25, %v5460_v41  ;;  %v595_v37 = vsel %vm592_vm4, %v5463_v26, %v2378_v42  ;;  %v5468_v58 = vunpack.i.l.bf16 %v3892_v47  ;;  %v5470_v41 = vunpack.i.l.bf16 %v5448_v0  ;;  %v5472_v26 = vld [vmem:[#allocation15_spill] sm:$0xff]  ;;  %vm5478_vm8 = vmmov %vm5466_vm5 }
 0x1d7   : > { %2925 = vrot.lane.b32.xlu0 %v2924_v54, %s3077_s13  ;;  %1815 = vmatprep.subr.bf16.mxu1 %v1632_v39  ;;  %v1631_v40 = vpack.c.bf16 %v634_v32, %v595_v37  ;;  %v518_v8 = vsel %vm5466_vm5, %v2328_v22, %v5465_v52  ;;  %v5251_v54 = vunpack.i.l.bf16 %v5467_v19  ;;  %v2278_v42 = vunpack.i.h.bf16 %v3297_v63  ;;  %v4407_v32 = vpop.permute.xlu0 %2715  ;;  %v5479_v52 = vld [vmem:[#allocation13_spill] sm:$0xff]  ;;  %vm5485_vm5 = vmmov %vm5481_vm2 }
 0x1d8   : > { %v4400_v59 = vsel %vm5469_vm7, %v5468_v58, %v2608_v18  ;;  %v1623_v39 = vpack.c.bf16 %v557_v30, %v518_v8  ;;  %v556_v34 = vsel %vm5471_vm3, %v5470_v41, %v2353_v25  ;;  %v5473_v47 = vunpack.i.l.bf16 %v5472_v26  ;;  %v1181_v25 = vpop.permute.xlu1 %1180 }
 0x1d9   : > { %vm5474_vm4 = vcmask 949248   ;;  %v5477_v8 = vunpack.i.l.bf16 %v3361_v28  ;;  %v5480_v58 = vunpack.i.l.bf16 %v5479_v52  ;;  %v5482_v26 = vunpack.i.l.bf16 %v3359_v38 }
 0x1da   : > { %2940 = vrot.lane.b32.xlu1 %v2939_v55, %s3077_s13  ;;  %1816 = vmatpush1.bf16.msra.mxu1 %v1631_v40  ;;  %v479_v37 = vsel %vm5474_vm4, %v2303_v57, %v5473_v47  ;;  %v5475_v55 = vunpack.i.h.bf16 %v5431_v43  ;;  %vm5483_vm6 = vmmov %vm5474_vm4  ;;  %v5484_v28 = vunpack.i.l.bf16 %v3297_v63  ;;  %v5490_v52 = vunpack.i.h.bf16 %v4059_v45 }
 0x1db   : > { %2935 = vrot.lane.b32.xlu0 %v5457_v16, %s3074_s9  ;;  %1817 = vmatprep.subr.bf16.mxu1 %v1623_v39  ;;  %v517_v30 = vsel %vm5478_vm8, %v5477_v8, %v2328_v22  ;;  %v440_v41 = vsel %vm5481_vm2, %v2278_v42, %v5480_v58  ;;  %v478_v39 = vsel %vm5483_vm6, %v5482_v26, %v2303_v57  ;;  %v2731_v47 = vpop.permute.xlu0 %2730  ;;  %v5487_v8 = vld [vmem:[#allocation59_spill] sm:$0xff]  ;;  %v5488_v57 = vld [vmem:[#allocation5_spill] sm:$0xff]  ;;  %vm5491_vm7 = vcmask 924672  }
 0x1dc   : > { %v4419_v0 = vsel %vm397_vm15, %v5475_v55, %v5251_v54  ;;  %v1622_v36 = vpack.c.bf16 %v556_v34, %v517_v30  ;;  %v1614_v43 = vpack.c.bf16 %v479_v37, %v440_v41  ;;  %v439_v22 = vsel %vm5485_vm5, %v5484_v28, %v2278_v42  ;;  %v4438_v55 = vpop.permute.xlu1 %2710  ;;  %v5486_v37 = vld [vmem:[#allocation6_spill] sm:$0xff]  ;;  %vm5493_vm8 = vmmov %vm5491_vm7 }
 0x1dd   : > { %5476 = vst [vmem:[#allocation61_spill] sm:$0xff] %v4419_v0  ;;  %v2944_v40 = vpack.i.bf16 %v4400_v59, %v4419_v0  ;;  %v1613_v34 = vpack.c.bf16 %v478_v39, %v439_v22  ;;  %v1605_v38 = vpack.c.bf16 %v5487_v8, %v5486_v37  ;;  %v2712_v63 = vunpack.i.l.bf16 %v4438_v55  ;;  %v5489_v42 = vld [vmem:[#allocation58_spill] sm:$0xff] }
 0x1de   : > { %2950 = vrot.lane.b32.xlu1 %v5457_v16, %s3073_s8  ;;  %1818 = vmatpush1.bf16.msra.mxu1 %v1622_v36  ;;  %vm5492_vm3 = vcmask 908288   ;;  %v2733_v39 = vunpack.i.h.bf16 %v2731_v47  ;;  %v2732_v28 = vunpack.i.l.bf16 %v2731_v47  ;;  %vm1403_vm4 = vcmask 711680  }
 0x1df   : > { %2945 = vrot.lane.b32.xlu0 %v2944_v40, %s3077_s13  ;;  %1819 = vmatprep.subr.bf16.mxu1 %v1614_v43  ;;  %v4444_v30 = vpop.permute.xlu0 %2740  ;;  %v1604_v40 = vpack.c.bf16 %v5489_v42, %v5488_v57  ;;  %v1175_v58 = vsel %vm5491_vm7, %v5490_v52, %v2712_v63  ;;  %v2713_v43 = vunpack.i.h.bf16 %v4438_v55  ;;  %v1182_v26 = vsel %vm5492_vm3, %v2608_v18, %v1181_v25 }
 0x1e0   : > { %v4455_v36 = vpop.permute.xlu1 %2720  ;;  %v2964_v22 = vpack.i.bf16 %v1175_v58, %v1182_v26  ;;  %v5253_v55 = vunpack.i.h.bf16 %v4407_v32  ;;  %v2717_v8 = vunpack.i.l.bf16 %v4407_v32  ;;  %v5494_v18 = vunpack.i.h.bf16 %v3923_v6 }
 0x1e1   : > { %v5252_v45 = vunpack.i.h.bf16 %v4455_v36  ;;  %v2722_v37 = vunpack.i.l.bf16 %v4455_v36  ;;  %vm5495_vm2 = vcmask 916480   ;;  %v1494_v42 = vsel %vm1403_vm4, %v2732_v28, %v2733_v39 }
 0x1e2   : > { %903 = vrot.lane.b32.xlu1 %v5442_v35, %s3072_s30  ;;  %1820 = vmatpush1.bf16.msra.mxu1 %v1613_v34  ;;  %v1179_v47 = vsel %vm5495_vm2, %v5494_v18, %v4370_v48  ;;  %vm5497_vm6 = vcmask 1006592   ;;  %v5499_v18 = vunpack.i.h.bf16 %v4031_v14  ;;  %vm5500_vm7 = vcmask 1014784  }
 0x1e3   : > { %2955 = vrot.lane.b32.xlu0 %v5457_v16, %s3076_s12  ;;  %1821 = vmatprep.subr.bf16.mxu1 %v1605_v38  ;;  %v4460_v41 = vpop.permute.xlu0 %2750  ;;  %v1176_v38 = vsel %vm5493_vm8, %v2712_v63, %v2713_v43  ;;  %v5496_v63 = vunpack.i.h.bf16 %v4100_v60  ;;  %vm5498_vm5 = vmmov %vm5497_vm6  ;;  %v1719_v60 = vpack.c.bf16 %v1494_v42, %v1494_v42  ;;  %vm1738_vm8 = vcmask 1043456  }
 0x1e4   : > { %v2969_v58 = vpack.i.bf16 %v3950_v13, %v1176_v38  ;;  %v1146_v6 = vsel %vm5498_vm5, %v2722_v37, %v5252_v45  ;;  %v1115_v54 = vsel %vm5500_vm7, %v5499_v18, %v2717_v8  ;;  %vm5501_vm3 = vmmov %vm5500_vm7  ;;  %v2752_v28 = vunpack.i.l.bf16 %v4460_v41 }
 0x1e5   : > { %v1145_v26 = vsel %vm5497_vm6, %v5496_v63, %v2722_v37  ;;  %v5254_v45 = vunpack.i.l.bf16 %v4444_v30  ;;  %vm5530_vm2 = vcmask 1022976  }
 0x1e6   : > { %2960 = vrot.lane.b32.xlu1 %v5457_v16, %s3075_s10  ;;  %1822 = vmatpush1.bf16.msra.mxu1 %v1604_v40  ;;  %v2974_v40 = vpack.i.bf16 %v1181_v25, %v1179_v47  ;;  %v1116_v25 = vsel %vm5501_vm3, %v2717_v8, %v5253_v55  ;;  %v2984_v14 = vpack.i.bf16 %v1146_v6, %v1145_v26  ;;  %v2743_v47 = vunpack.i.h.bf16 %v4444_v30  ;;  %vm5531_vm6 = vmmov %vm5530_vm2 }
 0x1e7   : > { %942 = vrot.lane.b32.xlu0 %v5442_v35, %s3074_s9  ;;  %v4480_v57 = vpop.permute.xlu0 %2760  ;;  %v2979_v8 = vpack.i.bf16 %v1116_v25, %v1115_v54 }
 0x1e8   : > { %v4468_v34 = vpop.permute.xlu1 %2725  ;;  %v1485_v26 = vsel %vm1403_vm4, %v2752_v28, %v2743_v47  ;;  %v2753_v28 = vunpack.i.h.bf16 %v4460_v41  ;;  %v2763_v41 = vunpack.i.h.bf16 %v4480_v57 }
 0x1ea   : > { %864 = vrot.lane.b32.xlu1 %v5442_v35, %s3076_s12 }
 0x1eb   : > { %825 = vrot.lane.b32.xlu0 %v5442_v35, %s3073_s8  ;;  %s299_s8 = scalar_lea.vmem %s5116_s7, %s2193_s23 }
 0x1ec   : > { %v4485_v52 = vpop.permute.xlu1 %2735 }
 0x1ed   : > { %v2738_v38 = vunpack.i.h.bf16 %v4485_v52 }
 0x1ee   : > { %2965 = vrot.lane.b32.xlu1 %v2964_v22, %s3077_s13  ;;  %v5258_v22 = vunpack.i.l.bf16 %v4485_v52 }
 0x1ef   : > { %786 = vrot.lane.b32.xlu0 %v5442_v35, %s3075_s10  ;;  %v1477_v54 = vsel %vm1403_vm4, %v2738_v38, %v5254_v45 }
 0x1f0   : > { %v1495_v37 = vsel %vm1403_vm4, %v2733_v39, %v5258_v22  ;;  %v4509_v18 = vpop.permute.xlu1 %2745  ;;  %v1740_v39 = vsel %vm1738_vm8, %v1719_v60, 0 }
 0x1f1   : > { %v1720_v63 = vpack.c.bf16 %v1495_v37, %v1495_v37  ;;  %v2748_v42 = vunpack.i.h.bf16 %v4509_v18  ;;  %v2989_v37 = vpack.i.bf16 %v4370_v48, %v2713_v43 }
 0x1f2   : > { %2975 = vrot.lane.b32.xlu1 %v2974_v40, %s3077_s13  ;;  %v4512_v40 = vpop.permute.xlu0 %2770 }
 0x1f3   : > { %2970 = vrot.lane.b32.xlu0 %v2969_v58, %s3077_s13  ;;  %v5257_v58 = vunpack.i.l.bf16 %v4509_v18  ;;  %2197 = vmatprep.subr.msk.bf16.mxu0 %vm1738_vm8, %v1720_v63  ;;  %v1476_v25 = vsel %vm1403_vm4, %v2748_v42, %v2738_v38 }
 0x1f4   : > { %1787 = vmatpush2.bf16.msra.mxu0 %v1740_v39  ;;  %v1710_v63 = vpack.c.bf16 %v1485_v26, %v1476_v25  ;;  %v1458_v25 = vsel %vm1403_vm4, %v2763_v41, %v2753_v28 }
 0x1f5   : > { %v1486_v6 = vsel %vm1403_vm4, %v2743_v47, %v5257_v58 }
 0x1f6   : > { %2985 = vrot.lane.b32.xlu1 %v2984_v14, %s3077_s13  ;;  %v4529_v14 = vpop.permute.xlu1 %2755  ;;  %v1711_v60 = vpack.c.bf16 %v1486_v6, %v1477_v54  ;;  %v2781_v45 = vpop.permute.xlu0 %2780 }
 0x1f7   : > { %2980 = vrot.lane.b32.xlu0 %v2979_v8, %s3077_s13  ;;  %v5256_v8 = vunpack.i.l.bf16 %v4480_v57  ;;  %v2758_v39 = vunpack.i.h.bf16 %v4529_v14  ;;  %v5255_v55 = vunpack.i.l.bf16 %v4529_v14  ;;  %v2782_v54 = vunpack.i.l.bf16 %v2781_v45 }
 0x1f8   : > { %1788 = vmatprep.subr.bf16.mxu0 %v1711_v60 }
 0x1f9   : > { %1789 = vmatpush2.bf16.msra.mxu0 %v1710_v63  ;;  %v1459_v48 = vsel %vm1403_vm4, %v2753_v28, %v5255_v55  ;;  %v1468_v43 = vsel %vm1403_vm4, %v2758_v39, %v5256_v8  ;;  %v2773_v55 = vunpack.i.h.bf16 %v4512_v40  ;;  %v5260_v8 = vunpack.i.l.bf16 %v4512_v40 }
 0x1fa   : > { %v1702_v38 = vpack.c.bf16 %v1468_v43, %v1459_v48  ;;  %v2766_v47 = vpop.permute.xlu1 %2765  ;;  %v4543_v26 = vpop.permute.xlu0 %2790 }
 0x1fb   : > { %2990 = vrot.lane.b32.xlu0 %v2989_v37, %s3077_s13  ;;  %v2767_v42 = vunpack.i.l.bf16 %v2766_v47  ;;  %v2768_v6 = vunpack.i.h.bf16 %v2766_v47  ;;  %v1449_v47 = vsel %vm1403_vm4, %v2782_v54, %v2773_v55  ;;  %v5262_v50 = vunpack.i.l.bf16 %v4543_v26 }
 0x1fc   : > { %1790 = vmatprep.subr.bf16.mxu0 %v1702_v38  ;;  %v2793_v38 = vunpack.i.h.bf16 %v4543_v26 }
 0x1fd   : > { %v1467_v37 = vsel %vm1403_vm4, %v2767_v42, %v2758_v39  ;;  %v1441_v28 = vsel %vm1403_vm4, %v2768_v6, %v5260_v8  ;;  %v2783_v42 = vunpack.i.h.bf16 %v2781_v45 }
 0x1fe   : > { %v4547_v60 = vpop.permute.xlu1 %2775  ;;  %v1701_v63 = vpack.c.bf16 %v1467_v37, %v1458_v25  ;;  %v4562_v25 = vpop.permute.xlu0 %2795 }
 0x1ff   : > { %v2778_v48 = vunpack.i.h.bf16 %v4547_v60  ;;  %v2777_v43 = vunpack.i.l.bf16 %v4547_v60 }
 0x200   : > { %1791 = vmatpush2.bf16.msra.mxu0 %v1701_v63  ;;  %v2727_v63 = vunpack.i.l.bf16 %v4468_v34 }
 0x201   : > { %v1450_v39 = vsel %vm1403_vm4, %v2773_v55, %v2777_v43  ;;  %v1440_v41 = vsel %vm1403_vm4, %v2778_v48, %v2768_v6  ;;  %v1422_v6 = vsel %vm1403_vm4, %v2793_v38, %v2783_v42  ;;  %v5263_v55 = vunpack.i.l.bf16 %v4562_v25 }
 0x202   : > { %v4564_v37 = vpop.permute.xlu1 %2785  ;;  %v1693_v58 = vpack.c.bf16 %v1450_v39, %v1441_v28  ;;  %v1692_v22 = vpack.c.bf16 %v1449_v47, %v1440_v41  ;;  %v2798_v38 = vunpack.i.h.bf16 %v4562_v25 }
 0x203   : > { %v2788_v8 = vunpack.i.h.bf16 %v4564_v37  ;;  %v2787_v0 = vunpack.i.l.bf16 %v4564_v37  ;;  %v5548_v37 = vunpack.i.l.bf16 %v4543_v26 }
 0x204   : > { %1792 = vmatprep.subr.bf16.mxu0 %v1693_v58  ;;  %v2728_v58 = vunpack.i.h.bf16 %v4468_v34 }
 0x205   : > { %1793 = vmatpush2.bf16.msra.mxu0 %v1692_v22  ;;  %v1423_v45 = vsel %vm1403_vm4, %v2783_v42, %v2787_v0  ;;  %v1432_v54 = vsel %vm1403_vm4, %v2788_v8, %v5262_v50  ;;  %v1431_v48 = vsel %vm1403_vm4, %v2727_v63, %v2788_v8 }
 0x206   : > { %v4579_v28 = vpop.permute.xlu1 %2800  ;;  %v1684_v39 = vpack.c.bf16 %v1432_v54, %v1423_v45  ;;  %v1683_v41 = vpack.c.bf16 %v1431_v48, %v1422_v6  ;;  %v2806_v42 = vpop.permute.xlu0 %2805  ;;  %v1405_v50 = vsel %vm1403_vm4, %v2728_v58, %v5263_v55  ;;  %v5502_v48 = vld [vmem:[#allocation62_spill] sm:$0xff] }
 0x207   : > { %v2803_v22 = vunpack.i.h.bf16 %v4579_v28  ;;  %v5265_v47 = vunpack.i.l.bf16 %v4579_v28  ;;  %v2807_v63 = vunpack.i.l.bf16 %v2806_v42  ;;  %v2808_v55 = vunpack.i.h.bf16 %v2806_v42 }
 0x208   : > { %1794 = vmatprep.subr.bf16.mxu0 %v1684_v39  ;;  %v4595_v39 = vcombine.low %v5502_v48, %v5502_v48 }
 0x209   : > { %1795 = vmatpush2.bf16.msra.mxu0 %v1683_v41  ;;  %v1414_v8 = vsel %vm1403_vm4, %v2798_v38, %v5265_v47  ;;  %v1404_v34 = vsel %vm1403_vm4, %v2803_v22, %v2728_v58  ;;  %v1413_v45 = vsel %vm1403_vm4, %v2807_v63, %v2798_v38  ;;  %v5503_v41 = vpack.c.bf16 %v4283_v15, %v4279_v44  ;;  %v5505_v58 = vld [vmem:[#allocation63_spill] sm:$0xff] }
 0x20a   : > { %v1675_v6 = vpack.c.bf16 %v1414_v8, %v1405_v50  ;;  %v1674_v54 = vpack.c.bf16 %v1413_v45, %v1404_v34  ;;  %v5504_v50 = vpack.c.bf16 %v4237_v24, %v4150_v62  ;;  %v5506_v38 = vpack.c.bf16 %v4344_v27, %v4338_v49 }
 0x20b   : > { %v5507_v8 = vunpack.i.l.bf16 %v4485_v52  ;;  %v5508_v62 = vpack.c.bf16 %v4185_v51, %v4259_v56  ;;  %v5509_v49 = vpack.c.bf16 %v4327_v20, %v4017_v5  ;;  %v5510_v56 = vpack.c.bf16 %v4320_v21, %v3908_v31 }
 0x20c   : > { %1796 = vmatprep.subr.bf16.mxu0 %v1675_v6  ;;  %v5511_v20 = vpack.c.bf16 %v3975_v2, %v3986_v29 }
 0x20d   : > { %1797 = vmatpush2.bf16.msra.mxu0 %v1674_v54  ;;  %v1496_v44 = vsel %vm1403_vm4, %v5507_v8, %v2808_v55 }
 0x20e   : > { %1848 = vmatprep.subr.bf16.mxu0 %v5503_v41  ;;  %v1721_v27 = vpack.c.bf16 %v1496_v44, %v1496_v44  ;;  %v5513_v41 = vunpack.i.l.bf16 %v4509_v18 }
 0x210   : > { %1799 = vmatmul.mubr.bf16.vlgmr.msra.gmra.mxu0 %v4595_v39  ;;  %v1746_v5 = vsel %vm1738_vm8, %v1721_v27, 0 }
 0x211   : > { %1849 = vmatpush1.bf16.msra.mxu0 %v5504_v50  ;;  %2202 = vmatprep.mubr.msk.bf16.mxu0 %vm944_vm10, %v5505_v58 }
 0x212   : > { %1850 = vmatprep.subr.bf16.mxu0 %v5506_v38 }
 0x215   : > { %1851 = vmatpush1.bf16.msra.mxu0 %v5508_v62 }
 0x216   : > { %v4609_v22 = vpop.permute.xlu1 %2815  ;;  %v4614_v15 = vpop.permute.xlu0 %2810  ;;  %1852 = vmatprep.subr.bf16.mxu0 %v5509_v49  ;;  %v5516_v49 = vld [vmem:[#allocation46_spill] sm:$0xff] }
 0x217   : > { %v2812_v42 = vunpack.i.l.bf16 %v4614_v15  ;;  %v2818_v24 = vunpack.i.h.bf16 %v4609_v22  ;;  %v2813_v63 = vunpack.i.h.bf16 %v4614_v15  ;;  %v2817_v52 = vunpack.i.l.bf16 %v4609_v22 }
 0x218   : > { %v5514_v15 = vpack.c.bf16 %v3937_v12, %v3589_v46  ;;  %v5518_v46 = vunpack.i.l.bf16 %v4529_v14 }
 0x219   : > { %v1497_v6 = vsel %vm1403_vm4, %v2808_v55, %v2812_v42  ;;  %1853 = vmatpush1.bf16.msra.mxu0 %v5510_v56  ;;  %v5512_v55 = vunpack.i.l.bf16 %v4444_v30  ;;  %v1487_v50 = vsel %vm1403_vm4, %v5513_v41, %v2818_v24  ;;  %v1479_v21 = vsel %vm1403_vm4, %v2813_v63, %v2817_v52  ;;  %v5520_v41 = vld [vmem:[#allocation42_spill] sm:$0xff] }
 0x21a   : > { %v1722_v45 = vpack.c.bf16 %v1497_v6, %v1497_v6  ;;  %1854 = vmatprep.subr.bf16.mxu0 %v5511_v20  ;;  %v5519_v56 = vunpack.i.l.bf16 %v4480_v57 }
 0x21b   : > { %v4629_v54 = vpop.permute.xlu0 %2820  ;;  %v1478_v48 = vsel %vm1403_vm4, %v5512_v55, %v2813_v63  ;;  %v5515_v63 = vld [vmem:[#allocation48_spill] sm:$0xff] }
 0x21c   : > { %v4627_v34 = vpop.permute.xlu1 %2825  ;;  %v2822_v51 = vunpack.i.l.bf16 %v4629_v54  ;;  %2199 = vmatprep.subr.msk.bf16.mxu1 %vm1738_vm8, %v1722_v45  ;;  %v1712_v62 = vpack.c.bf16 %v1487_v50, %v1478_v48  ;;  %v5517_v27 = vpack.c.bf16 %v5515_v63, %v5516_v49  ;;  %v5521_v50 = vld [vmem:[#allocation41_spill] sm:$0xff]  ;;  %v2823_v14 = vunpack.i.h.bf16 %v4629_v54 }
 0x21d   : > { %v2828_v38 = vunpack.i.h.bf16 %v4627_v34  ;;  %1828 = vmatpush2.bf16.msra.mxu1 %v1746_v5  ;;  %1855 = vmatpush1.bf16.msra.mxu0 %v5514_v15  ;;  %v5264_v57 = vunpack.i.l.bf16 %v4627_v34 }
 0x21e   : > { %v1488_v2 = vsel %vm1403_vm4, %v2818_v24, %v2822_v51  ;;  %1856 = vmatprep.subr.bf16.mxu0 %v5517_v27  ;;  %v5526_v27 = vld [vmem:[#allocation29_spill] sm:$0xff] }
 0x21f   : > { %v1713_v18 = vpack.c.bf16 %v1488_v2, %v1479_v21  ;;  %v1460_v12 = vsel %vm1403_vm4, %v5518_v46, %v2828_v38  ;;  %v5522_v21 = vpack.c.bf16 %v5520_v41, %v5521_v50  ;;  %v5523_v2 = vld [vmem:[#allocation35_spill] sm:$0xff]  ;;  %v5529_v46 = vunpack.i.h.bf16 %v4090_v1 }
 0x220   : > { %v4647_v31 = vpop.permute.xlu1 %2835  ;;  %v1607_v41 = vpack.c.bf16 %v4304_v11, %v5433_v17  ;;  %v5537_v17 = vld [vmem:[#allocation72_spill] sm:$0xff] }
 0x221   : > { %v2837_v29 = vunpack.i.l.bf16 %v4647_v31  ;;  %v4656_v30 = vpop.permute.xlu0 %2830  ;;  %1829 = vmatprep.subr.bf16.mxu1 %v1713_v18  ;;  %1857 = vmatpush1.bf16.msra.mxu0 %v5522_v21  ;;  %v5524_v18 = vld [vmem:[#allocation33_spill] sm:$0xff] }
 0x222   : > { %v2833_v8 = vunpack.i.h.bf16 %v4656_v30  ;;  %v2832_v44 = vunpack.i.l.bf16 %v4656_v30  ;;  %1830 = vmatpush2.bf16.msra.mxu1 %v1712_v62  ;;  %v5525_v15 = vpack.c.bf16 %v5523_v2, %v5524_v18  ;;  %v5535_v2 = vld [vmem:[#allocation71_spill] sm:$0xff] }
 0x223   : > { %v5536_v1 = vunpack.i.h.bf16 %v5535_v2  ;;  %v5541_v2 = vunpack.i.h.bf16 %v4407_v32 }
 0x224   : > { %v4666_v24 = vpop.permute.xlu1 %2845  ;;  %v1461_v6 = vsel %vm1403_vm4, %v2828_v38, %v2832_v44  ;;  %v1470_v45 = vsel %vm1403_vm4, %v2833_v8, %v2837_v29  ;;  %v1469_v5 = vsel %vm1403_vm4, %v5519_v56, %v2833_v8  ;;  %1858 = vmatprep.subr.bf16.mxu0 %v5525_v15 }
 0x225   : > { %v4680_v20 = vpop.permute.xlu0 %2840  ;;  %v1704_v55 = vpack.c.bf16 %v1470_v45, %v1461_v6  ;;  %v1703_v48 = vpack.c.bf16 %v1469_v5, %v1460_v12  ;;  %v5527_v6 = vld [vmem:[#allocation28_spill] sm:$0xff]  ;;  %v5532_v5 = vld [vmem:[#allocation22_spill] sm:$0xff]  ;;  %v2848_v50 = vunpack.i.h.bf16 %v4666_v24 }
 0x226   : > { %v5528_v45 = vpack.c.bf16 %v5526_v27, %v5527_v6  ;;  %v1499_v27 = vsel %vm1403_vm4, %v2823_v14, %v5264_v57  ;;  %v2842_v6 = vunpack.i.l.bf16 %v4680_v20  ;;  %v1606_v57 = vpack.c.bf16 %v4253_v7, %v5427_v10 }
 0x227   : > { %1831 = vmatprep.subr.bf16.mxu1 %v1704_v55  ;;  %v5533_v55 = vld [vmem:[#allocation20_spill] sm:$0xff]  ;;  %v1724_v7 = vpack.c.bf16 %v1499_v27, %v1499_v27 }
 0x228   : > { %1832 = vmatpush2.bf16.msra.mxu1 %v1703_v48  ;;  %v4689_v38 = vpop.permute.xlu1 %2855  ;;  %1859 = vmatpush1.bf16.msra.mxu0 %v5528_v45  ;;  %v5534_v48 = vpack.c.bf16 %v5532_v5, %v5533_v55  ;;  %v5538_v55 = vld [vmem:[#allocation17_spill] sm:$0xff] }
 0x229   : > { %v5266_v8 = vunpack.i.h.bf16 %v4689_v38  ;;  %v2857_v62 = vunpack.i.l.bf16 %v4689_v38  ;;  %v4694_v63 = vpop.permute.xlu0 %2850 }
 0x22a   : > { %v2852_v49 = vunpack.i.l.bf16 %v4694_v63  ;;  %1860 = vmatprep.subr.bf16.mxu0 %v5534_v48 }
 0x22b   : > { %v1085_v12 = vsel %vm5530_vm2, %v5529_v46, %v2857_v62  ;;  %v1086_v56 = vsel %vm5531_vm6, %v2857_v62, %v5266_v8  ;;  %v1498_v62 = vsel %vm1403_vm4, %v2812_v42, %v2823_v14  ;;  %v5539_v14 = vld [vmem:[#allocation16_spill] sm:$0xff] }
 0x22c   : > { %v2999_v21 = vpack.i.bf16 %v1086_v56, %v1085_v12  ;;  %v1055_v18 = vsel %vm1047_vm13, %v5536_v1, %v2852_v49  ;;  %v4717_v15 = vpop.permute.xlu1 %2865  ;;  %v2847_v12 = vunpack.i.l.bf16 %v4666_v24  ;;  %v2843_v56 = vunpack.i.h.bf16 %v4680_v20 }
 0x22d   : > { %v2994_v11 = vpack.i.bf16 %v1055_v18, %v5537_v17  ;;  %v2867_v45 = vunpack.i.l.bf16 %v4717_v15  ;;  %v4726_v46 = vpop.permute.xlu0 %2860  ;;  %v5540_v48 = vpack.c.bf16 %v5538_v55, %v5539_v14  ;;  %v5542_v1 = vunpack.i.h.bf16 %v4455_v36 }
 0x22e   : > { %v2863_v5 = vunpack.i.h.bf16 %v4726_v46  ;;  %v2862_v42 = vunpack.i.l.bf16 %v4726_v46  ;;  %3000 = vrot.lane.b32.xlu0 %v2999_v21, %s3077_s13  ;;  %v2838_v17 = vunpack.i.h.bf16 %v4647_v31  ;;  %v1723_v47 = vpack.c.bf16 %v1498_v62, %v1498_v62 }
 0x22f   : > { %1861 = vmatpush1.bf16.msra.mxu0 %v5540_v48  ;;  %v3004_v18 = vpack.i.bf16 %v5542_v1, %v5541_v2  ;;  %2995 = vrot.lane.b32.xlu1 %v2994_v11, %s3077_s13  ;;  %v5543_v36 = vunpack.i.l.bf16 %v4512_v40  ;;  %v1490_v60 = vsel %vm1403_vm4, %v2843_v56, %v2847_v12 }
 0x230   : > { %1862 = vmatprep.subr.bf16.mxu0 %v1607_v41  ;;  %v4744_v8 = vpop.permute.xlu1 %2875  ;;  %v1443_v21 = vsel %vm1403_vm4, %v2848_v50, %v2862_v42  ;;  %v1452_v32 = vsel %vm1403_vm4, %v2863_v5, %v2867_v45  ;;  %v1451_v41 = vsel %vm1403_vm4, %v2777_v43, %v2863_v5  ;;  %v1481_v14 = vsel %vm1403_vm4, %v2838_v17, %v2842_v6 }
 0x231   : > { %v1442_v55 = vsel %vm1403_vm4, %v5543_v36, %v2848_v50  ;;  %v4758_v10 = vpop.permute.xlu0 %2870  ;;  %v1695_v62 = vpack.c.bf16 %v1452_v32, %v1443_v21  ;;  %v2877_v48 = vunpack.i.l.bf16 %v4744_v8  ;;  %v2868_v43 = vunpack.i.h.bf16 %v4717_v15 }
 0x232   : > { %v1694_v11 = vpack.c.bf16 %v1451_v41, %v1442_v55  ;;  %v2873_v2 = vunpack.i.h.bf16 %v4758_v10  ;;  %v5267_v40 = vunpack.i.l.bf16 %v4758_v10  ;;  %v1752_v27 = vsel %vm1738_vm8, %v1723_v47, 0 }
 0x233   : > { %1863 = vmatpush1.bf16.msra.mxu0 %v1606_v57  ;;  %3005 = vrot.lane.b32.xlu1 %v3004_v18, %s3077_s13  ;;  %v1489_v5 = vsel %vm1403_vm4, %v2822_v51, %v2843_v56  ;;  %v2853_v57 = vunpack.i.h.bf16 %v4694_v63  ;;  %v1715_v32 = vpack.c.bf16 %v1490_v60, %v1481_v14  ;;  %v2878_v18 = vunpack.i.h.bf16 %v4744_v8  ;;  %v5545_v14 = vld [vmem:[#allocation73_spill] sm:$0xff]  ;;  %v5582_v8 = vld [vmem:[#allocation43_spill] sm:$0xff] }
 0x234   : > { %1833 = vmatprep.subr.bf16.mxu1 %v1695_v62  ;;  %2201 = vmatprep.subr.msk.bf16.mxu0 %vm1738_vm8, %v1724_v7  ;;  %v2886_v50 = vpop.permute.xlu1 %2885  ;;  %v1463_v55 = vsel %vm1403_vm4, %v2868_v43, %v5267_v40  ;;  %v1472_v47 = vsel %vm1403_vm4, %v2873_v2, %v2877_v48  ;;  %v1480_v54 = vsel %vm1403_vm4, %v2817_v52, %v2838_v17  ;;  %v5544_v56 = vunpack.i.h.bf16 %v4187_v61  ;;  %v5547_v52 = vld [vmem:[#allocation70_spill] sm:$0xff] }
 0x235   : > { %1834 = vmatpush2.bf16.msra.mxu1 %v1694_v11  ;;  %v2887_v1 = vunpack.i.l.bf16 %v2886_v50  ;;  %v2881_v21 = vpop.permute.xlu0 %2880  ;;  %v2888_v51 = vunpack.i.h.bf16 %v2886_v50  ;;  %v1714_v62 = vpack.c.bf16 %v1489_v5, %v1480_v54  ;;  %v1471_v11 = vsel %vm1403_vm4, %v2837_v29, %v2873_v2 }
 0x236   : > { %v2882_v36 = vunpack.i.l.bf16 %v2881_v21  ;;  %v2883_v7 = vunpack.i.h.bf16 %v2881_v21  ;;  %v1056_v61 = vsel %vm1047_vm13, %v2852_v49, %v2853_v57  ;;  %v1706_v31 = vpack.c.bf16 %v1472_v47, %v1463_v55 }
 0x237   : > { %1869 = vmatpush2.bf16.msra.mxu0 %v1752_v27  ;;  %v1025_v41 = vsel %vm1017_vm9, %v5544_v56, %v2887_v1  ;;  %v5546_v27 = vunpack.i.h.bf16 %v4106_v53  ;;  %v1462_v29 = vsel %vm1403_vm4, %v2832_v44, %v2868_v43  ;;  %v1424_v63 = vsel %vm1403_vm4, %v2787_v0, %v2878_v18 }
 0x238   : > { %1870 = vmatprep.subr.bf16.mxu0 %v1715_v32  ;;  %v3014_v60 = vpack.i.bf16 %v1025_v41, %v5545_v14  ;;  %v4797_v40 = vpop.permute.xlu1 %2895  ;;  %v1705_v49 = vpack.c.bf16 %v1471_v11, %v1462_v29  ;;  %v1026_v57 = vsel %vm1017_vm9, %v2887_v1, %v2888_v51  ;;  %v996_v21 = vsel %vm987_vm14, %v2882_v36, %v2883_v7 }
 0x239   : > { %v995_v22 = vsel %vm987_vm14, %v5546_v27, %v2882_v36  ;;  %v2897_v50 = vunpack.i.l.bf16 %v4797_v40  ;;  %v4804_v5 = vpop.permute.xlu0 %2890  ;;  %v2898_v30 = vunpack.i.h.bf16 %v4797_v40  ;;  %v5549_v32 = vunpack.i.h.bf16 %v4689_v38 }
 0x23a   : > { %v3009_v17 = vpack.i.bf16 %v995_v22, %v5547_v52  ;;  %v2893_v53 = vunpack.i.h.bf16 %v4804_v5  ;;  %v2892_v2 = vunpack.i.l.bf16 %v4804_v5  ;;  %3015 = vrot.lane.b32.xlu1 %v3014_v60, %s3077_s13  ;;  %v2268_v56 = vunpack.i.h.bf16 %v5467_v19 }
 0x23b   : > { %1871 = vmatpush2.bf16.msra.mxu0 %v1714_v62  ;;  %v3019_v36 = vpack.i.bf16 %v5549_v32, %v1056_v61  ;;  %v3034_v26 = vpack.i.bf16 %v1026_v57, %v996_v21  ;;  %v1444_v38 = vsel %vm1403_vm4, %v2862_v42, %v2898_v30  ;;  %v5550_v42 = vunpack.i.l.bf16 %v5467_v19 }
 0x23c   : > { %3010 = vrot.lane.b32.xlu0 %v3009_v17, %s3077_s13  ;;  %1872 = vmatprep.subr.bf16.mxu0 %v1706_v31  ;;  %v4819_v44 = vpop.permute.xlu1 %2905  ;;  %v1425_v43 = vsel %vm1403_vm4, %v2878_v18, %v2892_v2  ;;  %v1434_v0 = vsel %vm1403_vm4, %v2893_v53, %v2897_v50  ;;  %v1433_v1 = vsel %vm1403_vm4, %v5548_v37, %v2893_v53 }
 0x23d   : > { %v2907_v55 = vunpack.i.l.bf16 %v4819_v44  ;;  %v4833_v47 = vpop.permute.xlu0 %2900  ;;  %v1686_v54 = vpack.c.bf16 %v1434_v0, %v1425_v43  ;;  %v1685_v51 = vpack.c.bf16 %v1433_v1, %v1424_v63  ;;  %v4858_v15 = vsel %vm397_vm15, %v5550_v42, %v2268_v56 }
 0x23e   : > { %v2903_v18 = vunpack.i.h.bf16 %v4833_v47  ;;  %v2902_v41 = vunpack.i.l.bf16 %v4833_v47  ;;  %3025 = vrot.lane.b32.xlu1 %v5457_v16, %s3077_s13  ;;  %v2908_v17 = vunpack.i.h.bf16 %v4819_v44  ;;  %v5552_v1 = vunpack.i.l.bf16 %v4562_v25 }
 0x23f   : > { %1873 = vmatpush2.bf16.msra.mxu0 %v1705_v49  ;;  %1835 = vmatprep.subr.bf16.mxu1 %v1686_v54  ;;  %v5551_v49 = vunpack.i.l.bf16 %v4579_v28 }
 0x240   : > { %3020 = vrot.lane.b32.xlu0 %v3019_v36, %s3077_s13  ;;  %v1453_v7 = vsel %vm1403_vm4, %v2867_v45, %v2903_v18  ;;  %1836 = vmatpush2.bf16.msra.mxu1 %v1685_v51  ;;  %v4847_v62 = vpop.permute.xlu1 %2910  ;;  %v1445_v16 = vsel %vm1403_vm4, %v2898_v30, %v2902_v41  ;;  %v1454_v11 = vsel %vm1403_vm4, %v2903_v18, %v2907_v55 }
 0x241   : > { %v1696_v14 = vpack.c.bf16 %v1453_v7, %v1444_v38  ;;  %v964_v60 = vpop.permute.xlu0 %963  ;;  %v1697_v46 = vpack.c.bf16 %v1454_v11, %v1445_v16  ;;  %v2913_v27 = vunpack.i.h.bf16 %v4847_v62  ;;  %v2912_v61 = vunpack.i.l.bf16 %v4847_v62 }
 0x242   : > { %v965_v45 = vsel %vm397_vm15, %v2268_v56, %v964_v60  ;;  %3035 = vrot.lane.b32.xlu1 %v3034_v26, %s3077_s13  ;;  %v3039_v29 = vpack.i.bf16 %v964_v60, %v5442_v35  ;;  %v1406_v32 = vsel %vm1403_vm4, %v5552_v1, %v2908_v17 }
 0x243   : > { %v3029_v22 = vpack.i.bf16 %v965_v45, %v4858_v15  ;;  %1874 = vmatprep.subr.bf16.mxu0 %v1697_v46  ;;  %v1415_v57 = vsel %vm1403_vm4, %v5551_v49, %v2913_v27  ;;  %v1407_v43 = vsel %vm1403_vm4, %v2908_v17, %v2912_v61 }
 0x244   : > { %1875 = vmatpush2.bf16.msra.mxu0 %v1696_v14  ;;  %v4865_v52 = vpop.permute.xlu1 %2920  ;;  %v1676_v36 = vpack.c.bf16 %v1415_v57, %v1406_v32 }
 0x245   : > { %v2916_v19 = vpop.permute.xlu0 %2915  ;;  %3030 = vrot.lane.b32.xlu0 %v3029_v22, %s3077_s13  ;;  %v2923_v53 = vunpack.i.h.bf16 %v4865_v52  ;;  %v2922_v21 = vunpack.i.l.bf16 %v4865_v52 }
 0x246   : > { %v2917_v31 = vunpack.i.l.bf16 %v2916_v19  ;;  %v2918_v63 = vunpack.i.h.bf16 %v2916_v19 }
 0x247   : > { %v1435_v54 = vsel %vm1403_vm4, %v2897_v50, %v2923_v53 }
 0x248   : > { %v4875_v30 = vpop.permute.xlu1 %2930  ;;  %v1416_v0 = vsel %vm1403_vm4, %v2913_v27, %v2917_v31  ;;  %v1426_v51 = vsel %vm1403_vm4, %v2892_v2, %v2918_v63  ;;  %v1427_v26 = vsel %vm1403_vm4, %v2918_v63, %v2922_v21 }
 0x249   : > { %v4879_v37 = vpop.permute.xlu0 %2925  ;;  %3040 = vrot.lane.b32.xlu0 %v3039_v29, %s3077_s13  ;;  %v1677_v35 = vpack.c.bf16 %v1416_v0, %v1407_v43  ;;  %v2932_v56 = vunpack.i.l.bf16 %v4875_v30  ;;  %v2933_v18 = vunpack.i.h.bf16 %v4875_v30  ;;  %v1687_v38 = vpack.c.bf16 %v1435_v54, %v1426_v51 }
 0x24a   : > { %v2927_v28 = vunpack.i.l.bf16 %v4879_v37 }
 0x24b   : > { %1837 = vmatprep.subr.bf16.mxu1 %v1677_v35  ;;  %v912_v62 = vsel %vm905_vm1, %v4272_v3, %v2932_v56  ;;  %v913_v46 = vsel %vm905_vm1, %v2932_v56, %v2933_v18  ;;  %v2928_v3 = vunpack.i.h.bf16 %v4879_v37 }
 0x24c   : > { %1838 = vmatpush2.bf16.msra.mxu1 %v1676_v36  ;;  %v4894_v25 = vpop.permute.xlu1 %2940  ;;  %v1436_v40 = vsel %vm1403_vm4, %v2923_v53, %v2927_v28 }
 0x24d   : > { %v2936_v50 = vpop.permute.xlu0 %2935  ;;  %v1688_v5 = vpack.c.bf16 %v1436_v40, %v1427_v26  ;;  %v2943_v16 = vunpack.i.h.bf16 %v4894_v25  ;;  %v2942_v11 = vunpack.i.l.bf16 %v4894_v25  ;;  %v1408_v57 = vsel %vm1403_vm4, %v2912_v61, %v2928_v3 }
 0x24e   : > { %v2938_v2 = vunpack.i.h.bf16 %v2936_v50  ;;  %v2937_v7 = vunpack.i.l.bf16 %v2936_v50 }
 0x24f   : > { %1876 = vmatprep.subr.bf16.mxu0 %v1688_v5  ;;  %1840 = vmatmul.mubr.bf16.vlgmr.msra.gmra.mxu1 %v4595_v39  ;;  %v1417_v19 = vsel %vm1403_vm4, %v2917_v31, %v2943_v16  ;;  %v1409_v63 = vsel %vm1403_vm4, %v2928_v3, %v2942_v11  ;;  %v5553_v5 = vmov 0  }
 0x250   : > { %v951_v14 = vsel %vm944_vm10, %v4223_v9, %v2937_v7  ;;  %1877 = vmatpush2.bf16.msra.mxu0 %v1687_v38  ;;  %v2951_v60 = vpop.permute.xlu1 %2950  ;;  %v952_v42 = vsel %vm944_vm10, %v2937_v7, %v2938_v2  ;;  %2204 = vmatprep.mubr.msk.bf16.mxu1 %vm944_vm10, %v5505_v58  ;;  %v1678_v0 = vpack.c.bf16 %v1417_v19, %v1408_v57  ;;  %v5554_v7 = vld [vmem:[#allocation55_spill] sm:$0xff] }
 0x251   : > { %v1671_v45 = vpack.c.bf16 %v951_v14, %v912_v62  ;;  %v4914_v27 = vpop.permute.xlu0 %2945  ;;  %v1672_v22 = vpack.c.bf16 %v952_v42, %v913_v46  ;;  %v2953_v9 = vunpack.i.h.bf16 %v2951_v60  ;;  %v2952_v29 = vunpack.i.l.bf16 %v2951_v60  ;;  %v5555_v14 = vld [vmem:[#allocation69_spill] sm:$0xff]  ;;  %v5556_v42 = vld [vmem:[#allocation68_spill] sm:$0xff] }
 0x252   : > { %v2947_v17 = vunpack.i.l.bf16 %v4914_v27 }
 0x253   : > { %1889 = vmatprep.subr.bf16.mxu1 %v1672_v22  ;;  %v834_v1 = vsel %vm827_vm11, %v4268_v23, %v2952_v29  ;;  %v835_v54 = vsel %vm827_vm11, %v2952_v29, %v2953_v9 }
 0x254   : > { %1890 = vmatpush1.bf16.msra.mxu1 %v1671_v45  ;;  %v904_v53 = vpop.permute.xlu1 %903  ;;  %v1418_v49 = vsel %vm1403_vm4, %v2943_v16, %v2947_v17 }
 0x255   : > { %v2956_v30 = vpop.permute.xlu0 %2955  ;;  %v1679_v43 = vpack.c.bf16 %v1418_v49, %v1409_v63  ;;  %v914_v38 = vsel %vm905_vm1, %v2933_v18, %v904_v53  ;;  %v5557_v53 = vld [vmem:[#allocation65_spill] sm:$0xff]  ;;  %v5558_v63 = vld [vmem:[#allocation67_spill] sm:$0xff] }
 0x256   : > { %v2958_v35 = vunpack.i.h.bf16 %v2956_v30  ;;  %v2957_v31 = vunpack.i.l.bf16 %v2956_v30  ;;  %v5559_v49 = vpack.c.bf16 %v5557_v53, %v5558_v63 }
 0x257   : > { %1878 = vmatprep.subr.bf16.mxu0 %v1679_v43  ;;  %v5561_v43 = vld [vmem:[#allocation51_spill] sm:$0xff] }
 0x258   : > { %v873_v32 = vsel %vm866_vm0, %v4331_v4, %v2957_v31  ;;  %1879 = vmatpush2.bf16.msra.mxu0 %v1678_v0  ;;  %v2961_v36 = vpop.permute.xlu1 %2960  ;;  %v874_v51 = vsel %vm866_vm0, %v2957_v31, %v2958_v35 }
 0x259   : > { %v1662_v56 = vpack.c.bf16 %v873_v32, %v834_v1  ;;  %v2963_v61 = vunpack.i.h.bf16 %v2961_v36  ;;  %v2962_v26 = vunpack.i.l.bf16 %v2961_v36  ;;  %v943_v40 = vpop.permute.xlu0 %942  ;;  %v1663_v50 = vpack.c.bf16 %v874_v51, %v835_v54  ;;  %1930 = vmatprep.subr.bf16.mxu0 %v5553_v5  ;;  %v5563_v1 = vld [vmem:[#allocation50_spill] sm:$0xff]  ;;  %v5564_v32 = vld [vmem:[#allocation49_spill] sm:$0xff] }
 0x25a   : > { %v953_v23 = vsel %vm944_vm10, %v2938_v2, %v943_v40  ;;  %v5565_v36 = vpack.c.bf16 %v5563_v1, %v5564_v32  ;;  %v5589_v32 = vld [vmem:[#allocation31_spill] sm:$0xff] }
 0x25b   : > { %v795_v4 = vsel %vm788_vm12, %v5554_v7, %v2962_v26  ;;  %v1673_v62 = vpack.c.bf16 %v953_v23, %v914_v38  ;;  %1891 = vmatprep.subr.bf16.mxu1 %v1663_v50  ;;  %1881 = vmatmul.mubr.bf16.vlgmr.msra.gmra.mxu0 %v4595_v39  ;;  %v796_v16 = vsel %vm788_vm12, %v2962_v26, %v2963_v61  ;;  %v5569_v7 = vld [vmem:[#allocation37_spill] sm:$0xff] }
 0x25c   : > { %v1653_v60 = vpack.c.bf16 %v795_v4, %v5555_v14  ;;  %1892 = vmatpush1.bf16.msra.mxu1 %v1662_v56  ;;  %v865_v46 = vpop.permute.xlu1 %864  ;;  %v1654_v3 = vpack.c.bf16 %v796_v16, %v5556_v42  ;;  %2205 = vmatprep.mubr.msk.bf16.mxu0 %vm944_vm10, %v5505_v58  ;;  %v5566_v56 = vld [vmem:[#allocation47_spill] sm:$0xff]  ;;  %v5570_v4 = vld [vmem:[#allocation36_spill] sm:$0xff]  ;;  %v2948_v16 = vunpack.i.h.bf16 %v4914_v27  ;;  %v5575_v42 = vld [vmem:[#allocation34_spill] sm:$0xff] }
 0x25d   : > { %v875_v18 = vsel %vm866_vm0, %v2958_v35, %v865_v46  ;;  %v826_v2 = vpop.permute.xlu0 %825  ;;  %1931 = vmatpush1.bf16.msra.mxu0 %v1673_v62  ;;  %v5571_v20 = vpack.c.bf16 %v5569_v7, %v5570_v4  ;;  %vm2047_vm0 = vcmask 7168  }
 0x25e   : > { %v836_v45 = vsel %vm827_vm11, %v2953_v9, %v826_v2  ;;  %1893 = vmatprep.subr.bf16.mxu1 %v1654_v3  ;;  %1932 = vmatprep.subr.bf16.mxu0 %v5553_v5  ;;  %v5560_v9 = vld [vmem:[#allocation66_spill] sm:$0xff]  ;;  %v5576_v3 = vld [vmem:[#allocation25_spill] sm:$0xff]  ;;  %v5578_v2 = vld [vmem:[#allocation24_spill] sm:$0xff] }
 0x25f   : > { %v1664_v22 = vpack.c.bf16 %v875_v18, %v836_v45  ;;  %v5562_v0 = vpack.c.bf16 %v5560_v9, %v5561_v43  ;;  %v5577_v18 = vpack.c.bf16 %v5575_v42, %v5576_v3  ;;  %v5579_v45 = vld [vmem:[#allocation23_spill] sm:$0xff]  ;;  %v5586_v9 = vld [vmem:[#allocation12_spill] sm:$0xff] }
 0x260   : > { %1894 = vmatpush1.bf16.msra.mxu1 %v1653_v60  ;;  %v2966_v19 = vpop.permute.xlu1 %2965  ;;  %v5574_v60 = vunpack.i.l.bf16 %v4758_v10  ;;  %v5584_v10 = vld [vmem:[#allocation61_spill] sm:$0xff] }
 0x261   : > { %v787_v29 = vpop.permute.xlu0 %786  ;;  %1895 = vmatprep.subr.bf16.mxu1 %v5559_v49  ;;  %1933 = vmatpush1.bf16.msra.mxu0 %v1664_v22  ;;  %v2968_v30 = vunpack.i.h.bf16 %v2966_v19  ;;  %v2967_v14 = vunpack.i.l.bf16 %v2966_v19  ;;  %v5580_v22 = vpack.c.bf16 %v5578_v2, %v5579_v45  ;;  %v1609_v19 = vpack.c.bf16 %v5584_v10, %v5462_v33  ;;  %v5592_v33 = vld [vmem:[#allocation8_spill] sm:$0xff] }
 0x262   : > { %v797_v58 = vsel %vm788_vm12, %v2963_v61, %v787_v29  ;;  %1934 = vmatprep.subr.bf16.mxu0 %v5553_v5  ;;  %v5567_v61 = vld [vmem:[#allocation38_spill] sm:$0xff]  ;;  %v5581_v29 = vld [vmem:[#allocation44_spill] sm:$0xff] }
 0x263   : > { %v1655_v57 = vpack.c.bf16 %v797_v58, %v4400_v59  ;;  %v1482_v59 = vsel %vm1403_vm4, %v2842_v6, %v2968_v30  ;;  %v5568_v26 = vpack.c.bf16 %v5566_v56, %v5567_v61  ;;  %v5572_v6 = vld [vmem:[#allocation64_spill] sm:$0xff]  ;;  %v5583_v53 = vpack.c.bf16 %v5581_v29, %v5582_v8 }
 0x264   : > { %1896 = vmatpush1.bf16.msra.mxu1 %v5562_v0  ;;  %v4954_v35 = vpop.permute.xlu1 %2975  ;;  %v5573_v24 = vpack.c.bf16 %v3950_v13, %v5572_v6  ;;  %v1501_v63 = vsel %vm1403_vm4, %v2948_v16, %v2967_v14  ;;  %v5588_v0 = vunpack.i.l.bf16 %v4627_v34  ;;  %v5594_v6 = vld [vmem:[#allocation19_spill] sm:$0xff] }
 0x265   : > { %v4956_v31 = vpop.permute.xlu0 %2970  ;;  %1897 = vmatprep.subr.bf16.mxu1 %v5565_v36  ;;  %1935 = vmatpush1.bf16.msra.mxu0 %v1655_v57  ;;  %v2977_v49 = vunpack.i.l.bf16 %v4954_v35  ;;  %v5585_v57 = vld [vmem:[#allocation21_spill] sm:$0xff]  ;;  %v5590_v36 = vld [vmem:[#allocation30_spill] sm:$0xff] }
 0x266   : > { %v2973_v54 = vunpack.i.h.bf16 %v4956_v31  ;;  %1936 = vmatprep.subr.bf16.mxu0 %v5553_v5  ;;  %v2972_v58 = vunpack.i.l.bf16 %v4956_v31  ;;  %v5587_v43 = vpack.c.bf16 %v5585_v57, %v5586_v9  ;;  %v1500_v1 = vsel %vm1403_vm4, %v5588_v0, %v2948_v16  ;;  %v5597_v16 = vld [vmem:[#allocation4_spill] sm:$0xff] }
 0x267   : > { %v1725_v31 = vpack.c.bf16 %v1500_v1, %v1500_v1 }
 0x268   : > { %v1491_v51 = vsel %vm1403_vm4, %v2847_v12, %v2973_v54  ;;  %1898 = vmatpush1.bf16.msra.mxu1 %v5568_v26  ;;  %v4972_v40 = vpop.permute.xlu1 %2985  ;;  %v1483_v7 = vsel %vm1403_vm4, %v2968_v30, %v2972_v58  ;;  %v1492_v4 = vsel %vm1403_vm4, %v2973_v54, %v2977_v49 }
 0x269   : > { %v1716_v50 = vpack.c.bf16 %v1491_v51, %v1482_v59  ;;  %v2987_v38 = vunpack.i.l.bf16 %v4972_v40  ;;  %v4975_v23 = vpop.permute.xlu0 %2980  ;;  %1899 = vmatprep.subr.bf16.mxu1 %v5571_v20  ;;  %1937 = vmatpush1.bf16.msra.mxu0 %v5573_v24  ;;  %v5591_v59 = vpack.c.bf16 %v5589_v32, %v5590_v36  ;;  %v5593_v51 = vld [vmem:[#allocation57_spill] sm:$0xff]  ;;  %v2988_v26 = vunpack.i.h.bf16 %v4972_v40  ;;  %v5595_v24 = vld [vmem:[#allocation18_spill] sm:$0xff] }
 0x26a   : > { %v2982_v12 = vunpack.i.l.bf16 %v4975_v23  ;;  %1938 = vmatprep.subr.bf16.mxu0 %v5553_v5  ;;  %v1608_v56 = vpack.c.bf16 %v5593_v51, %v5592_v33  ;;  %v2983_v34 = vunpack.i.h.bf16 %v4975_v23  ;;  %v1758_v40 = vsel %vm1738_vm8, %v1725_v31, 0 }
 0x26b   : > { %v1473_v62 = vsel %vm1403_vm4, %v2877_v48, %v2987_v38  ;;  %v2978_v48 = vunpack.i.h.bf16 %v4954_v35  ;;  %v1726_v35 = vpack.c.bf16 %v1501_v63, %v1501_v63  ;;  %v1717_v23 = vpack.c.bf16 %v1492_v4, %v1483_v7 }
 0x26c   : > { %v1464_v46 = vsel %vm1403_vm4, %v5574_v60, %v2982_v12  ;;  %1900 = vmatpush1.bf16.msra.mxu1 %v5577_v18  ;;  %v1465_v54 = vsel %vm1403_vm4, %v2982_v12, %v2983_v34  ;;  %v1474_v42 = vsel %vm1403_vm4, %v2987_v38, %v2988_v26 }
 0x26d   : > { %v1707_v13 = vpack.c.bf16 %v1473_v62, %v1464_v46  ;;  %1901 = vmatprep.subr.bf16.mxu1 %v5580_v22  ;;  %1939 = vmatpush1.bf16.msra.mxu0 %v5583_v53  ;;  %v1502_v61 = vsel %vm1403_vm4, %v2967_v14, %v2978_v48  ;;  %v2991_v20 = vpop.permute.xlu0 %2990  ;;  %v5596_v62 = vpack.c.bf16 %v5594_v6, %v5595_v24 }
 0x26e   : > { %1940 = vmatprep.subr.bf16.mxu0 %v5553_v5  ;;  %v1610_v14 = vpack.c.bf16 %v4858_v15, %v5597_v16  ;;  %v1727_v60 = vpack.c.bf16 %v1502_v61, %v1502_v61  ;;  %v2993_v46 = vunpack.i.h.bf16 %v2991_v20  ;;  %v2992_v30 = vunpack.i.l.bf16 %v2991_v20 }
 0x26f   : > { %v1708_v3 = vpack.c.bf16 %v1474_v42, %v1465_v54 }
 0x270   : > { %1902 = vmatpush1.bf16.msra.mxu1 %v5587_v43  ;;  %v1493_v18 = vsel %vm1403_vm4, %v2977_v49, %v2993_v46  ;;  %v1484_v15 = vsel %vm1403_vm4, %v2972_v58, %v2992_v30  ;;  %v1764_v2 = vsel %vm1738_vm8, %v1727_v60, 0 }
 0x271   : > { %1903 = vmatprep.subr.bf16.mxu1 %v1609_v19  ;;  %1941 = vmatpush1.bf16.msra.mxu0 %v5591_v59  ;;  %v1718_v45 = vpack.c.bf16 %v1493_v18, %v1484_v15 }
 0x272   : > { %1942 = vmatprep.subr.bf16.mxu0 %v5553_v5 }
 0x274   : > { %1904 = vmatpush1.bf16.msra.mxu1 %v1608_v56 }
 0x275   : > { %2203 = vmatprep.subr.msk.bf16.mxu1 %vm1738_vm8, %v1726_v35  ;;  %1943 = vmatpush1.bf16.msra.mxu0 %v5596_v62 }
 0x276   : > { %1944 = vmatprep.subr.bf16.mxu0 %v5553_v5 }
 0x278   : > { %1910 = vmatpush2.bf16.msra.mxu1 %v1758_v40 }
 0x279   : > { %1911 = vmatprep.subr.bf16.mxu1 %v1717_v23  ;;  %1945 = vmatpush1.bf16.msra.mxu0 %v1610_v14 }
 0x27a   : > { %1950 = vmatprep.subr.bf16.mxu0 %v5553_v5 }
 0x27c   : > { %1912 = vmatpush2.bf16.msra.mxu1 %v1716_v50 }
 0x27d   : > { %1913 = vmatprep.subr.bf16.mxu1 %v1708_v3  ;;  %1951 = vmatpush2.bf16.msra.mxu0 %v1764_v2 }
 0x27e   : > { %1952 = vmatprep.subr.bf16.mxu0 %v5553_v5 }
 0x280   : > { %1914 = vmatpush2.bf16.msra.mxu1 %v1707_v13 }
 0x281   : > { %1953 = vmatpush2.bf16.msra.mxu0 %v1718_v45 }
 0x282   : > { %1954 = vmatprep.subr.bf16.mxu0 %v5553_v5 }
 0x2a0   : > { %v3001_v38 = vpop.permute.xlu0 %3000 }
 0x2a1   : > { %v3003_v12 = vunpack.i.h.bf16 %v3001_v38  ;;  %v3002_v22 = vunpack.i.l.bf16 %v3001_v38  ;;  %v2996_v29 = vpop.permute.xlu1 %2995 }
 0x2a2   : > { %v2998_v8 = vunpack.i.h.bf16 %v2996_v29  ;;  %v2997_v53 = vunpack.i.l.bf16 %v2996_v29 }
 0x2a3   : > { %v1455_v50 = vsel %vm1403_vm4, %v2907_v55, %v3002_v22  ;;  %v1456_v48 = vsel %vm1403_vm4, %v3002_v22, %v3003_v12 }
 0x2a4   : > { %v1446_v10 = vsel %vm1403_vm4, %v2902_v41, %v2997_v53  ;;  %v1447_v13 = vsel %vm1403_vm4, %v2997_v53, %v2998_v8 }
 0x2a5   : > { %v1698_v19 = vpack.c.bf16 %v1455_v50, %v1446_v10  ;;  %v3006_v63 = vpop.permute.xlu1 %3005  ;;  %v1699_v49 = vpack.c.bf16 %v1456_v48, %v1447_v13 }
 0x2a6   : > { %v3008_v58 = vunpack.i.h.bf16 %v3006_v63  ;;  %v3007_v57 = vunpack.i.l.bf16 %v3006_v63 }
 0x2a7   : > { %1915 = vmatprep.subr.bf16.mxu1 %v1699_v49 }
 0x2a8   : > { %v1475_v9 = vsel %vm1403_vm4, %v2988_v26, %v3008_v58  ;;  %v1466_v44 = vsel %vm1403_vm4, %v2983_v34, %v3007_v57  ;;  %1916 = vmatpush2.bf16.msra.mxu1 %v1698_v19 }
 0x2a9   : > { %v1709_v55 = vpack.c.bf16 %v1475_v9, %v1466_v44 }
 0x2ab   : > { %1955 = vmatpush2.bf16.msra.mxu0 %v1709_v55 }
 0x2ac   : > { %v3016_v43 = vpop.permute.xlu1 %3015  ;;  %1956 = vmatprep.subr.bf16.mxu0 %v5553_v5 }
 0x2ad   : > { %v3018_v41 = vunpack.i.h.bf16 %v3016_v43  ;;  %v3017_v0 = vunpack.i.l.bf16 %v3016_v43 }
 0x2ae   : > { %v3011_v47 = vpop.permute.xlu0 %3010 }
 0x2af   : > { %v3013_v1 = vunpack.i.h.bf16 %v3011_v47  ;;  %v3012_v32 = vunpack.i.l.bf16 %v3011_v47  ;;  %v1437_v36 = vsel %vm1403_vm4, %v2927_v28, %v3017_v0  ;;  %v1438_v59 = vsel %vm1403_vm4, %v3017_v0, %v3018_v41 }
 0x2b0   : > { %v3026_v51 = vpop.permute.xlu1 %3025 }
 0x2b1   : > { %v1428_v33 = vsel %vm1403_vm4, %v2922_v21, %v3012_v32  ;;  %v1429_v56 = vsel %vm1403_vm4, %v3012_v32, %v3013_v1  ;;  %v3028_v6 = vunpack.i.h.bf16 %v3026_v51  ;;  %v3027_v21 = vunpack.i.l.bf16 %v3026_v51 }
 0x2b2   : > { %v1689_v35 = vpack.c.bf16 %v1437_v36, %v1428_v33  ;;  %v3021_v31 = vpop.permute.xlu0 %3020  ;;  %v1690_v61 = vpack.c.bf16 %v1438_v59, %v1429_v56 }
 0x2b3   : > { %v3023_v26 = vunpack.i.h.bf16 %v3021_v31  ;;  %v3022_v34 = vunpack.i.l.bf16 %v3021_v31  ;;  %v1410_v60 = vsel %vm1403_vm4, %v2942_v11, %v3027_v21  ;;  %v1411_v30 = vsel %vm1403_vm4, %v3027_v21, %v3028_v6 }
 0x2b4   : > { %1917 = vmatprep.subr.bf16.mxu1 %v1690_v61  ;;  %v3036_v28 = vpop.permute.xlu1 %3035 }
 0x2b5   : > { %v1457_v7 = vsel %vm1403_vm4, %v3003_v12, %v3023_v26  ;;  %v1448_v37 = vsel %vm1403_vm4, %v2998_v8, %v3022_v34  ;;  %1918 = vmatpush2.bf16.msra.mxu1 %v1689_v35  ;;  %v3038_v20 = vunpack.i.h.bf16 %v3036_v28  ;;  %v3037_v52 = vunpack.i.l.bf16 %v3036_v28 }
 0x2b6   : > { %v1700_v4 = vpack.c.bf16 %v1457_v7, %v1448_v37 }
 0x2b7   : > { %v1430_v24 = vsel %vm1403_vm4, %v3013_v1, %v3037_v52  ;;  %v1439_v62 = vsel %vm1403_vm4, %v3018_v41, %v3038_v20  ;;  %v3031_v16 = vpop.permute.xlu0 %3030 }
 0x2b8   : > { %1957 = vmatpush2.bf16.msra.mxu0 %v1700_v4  ;;  %v1691_v14 = vpack.c.bf16 %v1439_v62, %v1430_v24  ;;  %v3033_v40 = vunpack.i.h.bf16 %v3031_v16  ;;  %v3032_v23 = vunpack.i.l.bf16 %v3031_v16 }
 0x2b9   : > { %1958 = vmatprep.subr.bf16.mxu0 %v5553_v5 }
 0x2ba   : > { %v1419_v46 = vsel %vm1403_vm4, %v2947_v17, %v3032_v23  ;;  %v1420_v54 = vsel %vm1403_vm4, %v3032_v23, %v3033_v40  ;;  %v1983_v17 = vlaneseq }
 0x2bb   : > { %v1680_v42 = vpack.c.bf16 %v1419_v46, %v1410_v60  ;;  %v3041_v3 = vpop.permute.xlu0 %3040  ;;  %v1681_v18 = vpack.c.bf16 %v1420_v54, %v1411_v30  ;;  %v2206_v54 = vld [vmem:[%s5113_s4 + $0x8] ss:$0 sm:$0xff] }
 0x2bc   : > { %1959 = vmatpush2.bf16.msra.mxu0 %v1691_v14  ;;  %v3043_v15 = vunpack.i.h.bf16 %v3041_v3  ;;  %v3042_v2 = vunpack.i.l.bf16 %v3041_v3  ;;  %v1984_v45 = vshrl.u32 %v1983_v17, 7 }
 0x2bd   : > { %1960 = vmatprep.subr.bf16.mxu0 %v5553_v5  ;;  %1919 = vmatprep.subr.bf16.mxu1 %v1681_v18  ;;  %v1979_v5 = vld [vmem:[%s5113_s4] sm:$0xff] }
 0x2be   : > { %v1412_v25 = vsel %vm1403_vm4, %v3028_v6, %v3042_v2  ;;  %v1421_v11 = vsel %vm1403_vm4, %v3033_v40, %v3043_v15  ;;  %1920 = vmatpush2.bf16.msra.mxu1 %v1680_v42  ;;  %v1985_v38 = vsub.s32 0, %v1984_v45  ;;  %v1989_v12 = vsub.s32 1, %v1984_v45 }
 0x2bf   : > { %v1682_v27 = vpack.c.bf16 %v1421_v11, %v1412_v25  ;;  %v1993_v58 = vsub.s32 2, %v1984_v45  ;;  %v1997_v57 = vsub.s32 3, %v1984_v45  ;;  %v2001_v51 = vsub.s32 4, %v1984_v45 }
 0x2c0   : > { %v1986_v22 = vrot.slane %v1979_v5, %v1985_v38  ;;  %v1990_v29 = vrot.slane %v1979_v5, %v1989_v12  ;;  %v2005_v31 = vsub.s32 5, %v1984_v45  ;;  %v2009_v14 = vsub.s32 6, %v1984_v45 }
 0x2c1   : > { %1922 = vmatmul.mubr.bf16.vlgmr.msra.gmra.mxu1 %v4595_v39  ;;  %1961 = vmatpush2.bf16.msra.mxu0 %v1682_v27  ;;  %v1994_v9 = vrot.slane %v1979_v5, %v1993_v58  ;;  %v1998_v44 = vrot.slane %v1979_v5, %v1997_v57  ;;  %v2002_v61 = vrot.slane %v1979_v5, %v2001_v51  ;;  %v2013_v40 = vsub.s32 7, %v1984_v45 }
 0x2c2   : > { %v2006_v26 = vrot.slane %v1979_v5, %v2005_v31  ;;  %v2010_v23 = vrot.slane %v1979_v5, %v2009_v14 }
 0x2c3   : > { %v2014_v60 = vrot.slane %v1979_v5, %v2013_v40 }
 0x2c4   : > { %1963 = vmatmul.mubr.bf16.vlgmr.msra.gmra.mxu0 %v4595_v39 }
 0x2d0   : > { %v1800_v8 = vpop.f32.mrf.mxu0 }
 0x2d1   : > { %1970 = vst [vmem:[%s5085_s20] sm:$0xff] %v1800_v8  ;;  %v2028_v39 = vmul.f32 %v1986_v22, %v1800_v8 }
 0x2d2   : > { %v1802_v53 = vpop.f32.mrf.mxu0 }
 0x2d3   : > { %v2049_v50 = vmul.f32 %v2028_v39, %v2028_v39  ;;  %1971 = vst [vmem:[%s5085_s20 + $0x8] sm:$0xff] %v1802_v53  ;;  %v2029_v48 = vmul.f32 %v1990_v29, %v1802_v53 }
 0x2d4   : > { %v1804_v10 = vpop.f32.mrf.mxu0 }
 0x2d5   : > { %v2037_v13 = vadd.f32 %v2029_v48, %v2028_v39  ;;  %v2050_v19 = vmul.f32 %v2029_v48, %v2029_v48 }
 0x2d6   : > { %v1805_v63 = vpop.f32.mrf.mxu0 }
 0x2d7   : > { %v2058_v49 = vadd.f32 %v2050_v19, %v2049_v50 }
 0x30f   : > { %v1841_v55 = vpop.f32.mrf.mxu1 }
 0x310   : > { %1972 = vst [vmem:[%s5085_s20 + $0x10] sm:$0xff] %v1841_v55  ;;  %v2030_v43 = vmul.f32 %v1994_v9, %v1841_v55 }
 0x311   : > { %v1843_v47 = vpop.f32.mrf.mxu1 }
 0x312   : > { %v2038_v41 = vadd.f32 %v2037_v13, %v2030_v43  ;;  %v2051_v0 = vmul.f32 %v2030_v43, %v2030_v43  ;;  %1973 = vst [vmem:[%s5085_s20 + $0x18] sm:$0xff] %v1843_v47  ;;  %v2031_v1 = vmul.f32 %v1998_v44, %v1843_v47 }
 0x313   : > { %v1845_v32 = vpop.f32.mrf.mxu1 }
 0x314   : > { %v2059_v36 = vadd.f32 %v2058_v49, %v2051_v0  ;;  %v2039_v59 = vadd.f32 %v2038_v41, %v2031_v1  ;;  %v2052_v33 = vmul.f32 %v2031_v1, %v2031_v1 }
 0x315   : > { %v1846_v56 = vpop.f32.mrf.mxu1 }
 0x316   : > { %v2060_v35 = vadd.f32 %v2059_v36, %v2052_v33 }
 0x31b   : > { %v1882_v34 = vpop.f32.mrf.mxu0 }
 0x31c   : > { %1974 = vst [vmem:[%s5085_s20 + $0x20] sm:$0xff] %v1882_v34  ;;  %v2032_v7 = vmul.f32 %v2002_v61, %v1882_v34 }
 0x31d   : > { %v1884_v37 = vpop.f32.mrf.mxu0 }
 0x31e   : > { %v2040_v28 = vadd.f32 %v2039_v59, %v2032_v7  ;;  %v2053_v4 = vmul.f32 %v2032_v7, %v2032_v7  ;;  %1975 = vst [vmem:[%s5085_s20 + $0x28] sm:$0xff] %v1884_v37  ;;  %v2033_v20 = vmul.f32 %v2006_v26, %v1884_v37 }
 0x31f   : > { %v1886_v52 = vpop.f32.mrf.mxu0 }
 0x320   : > { %v2061_v6 = vadd.f32 %v2060_v35, %v2053_v4  ;;  %v2041_v21 = vadd.f32 %v2040_v28, %v2033_v20  ;;  %v2054_v24 = vmul.f32 %v2033_v20, %v2033_v20 }
 0x321   : > { %v1887_v62 = vpop.f32.mrf.mxu0 }
 0x322   : > { %v2062_v16 = vadd.f32 %v2061_v6, %v2054_v24 }
 0x381   : > { %v1923_v46 = vpop.f32.mrf.mxu1 }
 0x382   : > { %1976 = vst [vmem:[%s5085_s20 + $0x30] sm:$0xff] %v1923_v46  ;;  %v2034_v30 = vmul.f32 %v2010_v23, %v1923_v46 }
 0x383   : > { %v1925_v42 = vpop.f32.mrf.mxu1 }
 0x384   : > { %v2042_v3 = vadd.f32 %v2041_v21, %v2034_v30  ;;  %v2055_v18 = vmul.f32 %v2034_v30, %v2034_v30  ;;  %1977 = vst [vmem:[%s5085_s20 + $0x38] sm:$0xff] %v1925_v42  ;;  %v2035_v15 = vmul.f32 %v2014_v60, %v1925_v42  ;;  %v1964_v2 = vpop.f32.mrf.mxu0 }
 0x385   : > { %1978 = vst [vmem:[%s5085_s20 + $0x40] sm:$0xff] %v1964_v2  ;;  %v2036_v25 = vmul.f32 %v2206_v54, %v1964_v2  ;;  %v1927_v11 = vpop.f32.mrf.mxu1 }
 0x386   : > { %v2063_v27 = vadd.f32 %v2062_v16, %v2055_v18  ;;  %v2043_v17 = vadd.f32 %v2042_v3, %v2035_v15  ;;  %v2056_v45 = vmul.f32 %v2035_v15, %v2035_v15  ;;  %v1966_v38 = vpop.f32.mrf.mxu0 }
 0x387   : > { %v2057_v5 = vmul.f32 %v2036_v25, %v2036_v25  ;;  %v1928_v12 = vpop.f32.mrf.mxu1 }
 0x388   : > { %v2064_v22 = vadd.f32 %v2063_v27, %v2056_v45  ;;  %v2044_v29 = vadd.f32 %v2043_v17, %v2036_v25  ;;  %v1967_v8 = vpop.f32.mrf.mxu0 }
 0x38a   : > { %2045 = vadd.xlane.f32.xlu1 %v2044_v29  ;;  %v1968_v39 = vpop.f32.mrf.mxu0  ;;  %v2065_v53 = vadd.f32 %v2064_v22, %v2057_v5 }
 0x38c   : > { %2066 = vadd.xlane.f32.xlu0 %v2065_v53 }
 0x413   : > { %v2046_v50 = vpop.xlane.xlu1 %2045 }
 0x414   : > { %2048 = vst.msk [vmem:[%s295_s28] sm:$0xff] %vm2047_vm0, %v2046_v50 }
 0x415   : > { %v2067_v48 = vpop.xlane.xlu0 %2066 }
 0x416   : > { %2068 = vst.msk [vmem:[%s299_s8] sm:$0xff] %vm2047_vm0, %v2067_v48 }
 0x417 PF: > { %s18_s24 = sadd.s32 1, %s3052_s24  }
 0x418   : > { %p15_p4 = scmp.ge.s32.totalorder %s18_s24, 4  }
 0x41a   :  { %17 = sbr.rel (!%p15_p4) target bundleno = 1 (0x1), region = 94 }

// kernel: res_block_forward.5
= control target key start
LH: loop header
LB: loop body
LE: loop exit
PB: predicated region body
PF: predicated region fallthrough
CT: control target
= control target key end

     0   :  { %s415_s15 = smov 0   ;;  %s457_s0 = inlined_call_operand.vmem [shape: f32[2,8,1152], index: 0, kind: input, shape index: {}]   ;;  %s458_s1 = inlined_call_operand.vmem [shape: f32[8,1], index: 1, kind: input, shape index: {}]   ;;  %s459_s2 = inlined_call_operand.vmem [shape: f32[8,1], index: 2, kind: input, shape index: {}]   ;;  %s460_s3 = inlined_call_operand.vmem [shape: f32[2,8,1152], index: 3, kind: input, shape index: {}]   ;;  %s461_s4 = inlined_call_operand.vmem [shape: f32[2,8,1152], index: 4, kind: output, shape index: {}]  }
   0x1 LB: > { %s360_s16 = sadd.s32 4294967295, %s387_s15   ;;  %p364_p0 = scmp.ge.s32.totalorder %s387_s15, 1  ;;  %s387_s15 = sphi %s415_s15, %s14_s15  }
   0x2   : > { %p172_p1 = scmp.lt.s32.totalorder %s387_s15, 3 }
   0x4   : > { %p173_p2 = pnand %p364_p0, %p172_p1 }
   0x5   : > { %p203_p3 = scmp.lt.s32.totalorder (!%p173_p2), %s360_s16, 1 }
   0x6   : > { %176 = sbr.rel (%p173_p2) target bundleno = 152 (0x98), region = 36 }
   0xb   : > { %v227_v0 = vld [vmem:[%s458_s1] sm:$0xff]  ;;  %v389_v1 = vmov 0   ;;  %s463_s16 = smov (!%p203_p3, %s360_s16), 1 }
   0xc   : > { %380 = vset.pattern.permute.xlu0 %v389_v1  ;;  %v242_v2 = vld [vmem:[%s459_s2] sm:$0xff]  ;;  %s429_s21 = smul.u32 72, %s463_s16 }
   0xd   : > { %230 = vperm.xlu0 %380, %v227_v0  }
   0xe   : > { %s207_s24 = scalar_lea.vmem %s457_s0, %s429_s21  ;;  %s439_s27 = scalar_lea.vmem %s460_s3, %s429_s21 }
   0xf   : > { %v218_v3 = vld [vmem:[%s207_s24] sm:$0xff]  ;;  %v219_v4 = vld [vmem:[%s207_s24 + $0x8] sm:$0xff]  ;;  %v220_v5 = vld [vmem:[%s207_s24 + $0x10] sm:$0xff]  ;;  %s217_s30 = scalar_lea.vmem %s461_s4, %s429_s21 }
  0x10   : > { %v221_v7 = vld [vmem:[%s207_s24 + $0x18] sm:$0xff]  ;;  %v222_v8 = vld [vmem:[%s207_s24 + $0x20] sm:$0xff]  ;;  %v223_v9 = vld [vmem:[%s207_s24 + $0x28] sm:$0xff] }
  0x11   : > { %245 = vperm.xlu0 %380, %v242_v2   ;;  %v224_v10 = vld [vmem:[%s207_s24 + $0x30] sm:$0xff]  ;;  %v225_v11 = vld [vmem:[%s207_s24 + $0x38] sm:$0xff]  ;;  %v226_v12 = vld [vmem:[%s207_s24 + $0x40] sm:$0xff] }
  0x12   : > { %v257_v18 = vld [vmem:[%s439_s27] sm:$0xff]  ;;  %v258_v24 = vld [vmem:[%s439_s27 + $0x8] sm:$0xff]  ;;  %v259_v25 = vld [vmem:[%s439_s27 + $0x10] sm:$0xff] }
  0x13   : > { %v260_v26 = vld [vmem:[%s439_s27 + $0x18] sm:$0xff]  ;;  %v261_v31 = vld [vmem:[%s439_s27 + $0x20] sm:$0xff]  ;;  %v262_v32 = vld [vmem:[%s439_s27 + $0x28] sm:$0xff] }
  0x14   : > { %v263_v33 = vld [vmem:[%s439_s27 + $0x30] sm:$0xff]  ;;  %v264_v38 = vld [vmem:[%s439_s27 + $0x38] sm:$0xff]  ;;  %v265_v39 = vld [vmem:[%s439_s27 + $0x40] sm:$0xff] }
  0x88   : > { %v231_v6 = vpop.permute.xlu0 %230 }
  0x89   : > { %v233_v13 = vmul.f32 %v231_v6, %v218_v3  ;;  %v234_v14 = vmul.f32 %v231_v6, %v219_v4  ;;  %v235_v15 = vmul.f32 %v231_v6, %v220_v5  ;;  %v236_v16 = vmul.f32 %v231_v6, %v221_v7 }
  0x8a   : > { %v237_v17 = vmul.f32 %v231_v6, %v222_v8  ;;  %v238_v20 = vmul.f32 %v231_v6, %v223_v9  ;;  %v239_v21 = vmul.f32 %v231_v6, %v224_v10  ;;  %v240_v22 = vmul.f32 %v231_v6, %v225_v11 }
  0x8b   : > { %v241_v23 = vmul.f32 %v231_v6, %v226_v12 }
  0x8c   : > { %v246_v19 = vpop.permute.xlu0 %245 }
  0x8d   : > { %v248_v27 = vadd.f32 %v246_v19, %v233_v13  ;;  %v249_v28 = vadd.f32 %v246_v19, %v234_v14  ;;  %v250_v29 = vadd.f32 %v246_v19, %v235_v15  ;;  %v251_v30 = vadd.f32 %v246_v19, %v236_v16 }
  0x8e   : > { %v252_v34 = vadd.f32 %v246_v19, %v237_v17  ;;  %v253_v35 = vadd.f32 %v246_v19, %v238_v20  ;;  %v254_v36 = vadd.f32 %v246_v19, %v239_v21  ;;  %v255_v37 = vadd.f32 %v246_v19, %v240_v22 }
  0x8f   : > { %v256_v40 = vadd.f32 %v246_v19, %v241_v23  ;;  %v266_v41 = vadd.f32 %v257_v18, %v248_v27  ;;  %v267_v42 = vadd.f32 %v258_v24, %v249_v28  ;;  %v268_v43 = vadd.f32 %v259_v25, %v250_v29 }
  0x90   : > { %v269_v44 = vadd.f32 %v260_v26, %v251_v30  ;;  %v270_v45 = vadd.f32 %v261_v31, %v252_v34  ;;  %v271_v46 = vadd.f32 %v262_v32, %v253_v35  ;;  %v272_v47 = vadd.f32 %v263_v33, %v254_v36 }
  0x91   : > { %v273_v48 = vadd.f32 %v264_v38, %v255_v37  ;;  %v274_v49 = vadd.f32 %v265_v39, %v256_v40  ;;  %v275_v50 = vmax.f32 %v266_v41, 0.0  ;;  %v276_v51 = vmax.f32 %v267_v42, 0.0 }
  0x92   : > { %v277_v52 = vmax.f32 %v268_v43, 0.0  ;;  %v278_v53 = vmax.f32 %v269_v44, 0.0  ;;  %v279_v54 = vmax.f32 %v270_v45, 0.0  ;;  %v280_v55 = vmax.f32 %v271_v46, 0.0 }
  0x93   : > { %v281_v56 = vmax.f32 %v272_v47, 0.0  ;;  %v282_v57 = vmax.f32 %v273_v48, 0.0  ;;  %v283_v58 = vmax.f32 %v274_v49, 0.0  ;;  %284 = vst [vmem:[%s217_s30] sm:$0xff] %v275_v50  ;;  %285 = vst [vmem:[%s217_s30 + $0x8] sm:$0xff] %v276_v51 }
  0x94   : > { %286 = vst [vmem:[%s217_s30 + $0x10] sm:$0xff] %v277_v52  ;;  %287 = vst [vmem:[%s217_s30 + $0x18] sm:$0xff] %v278_v53 }
  0x95   : > { %288 = vst [vmem:[%s217_s30 + $0x20] sm:$0xff] %v279_v54  ;;  %289 = vst [vmem:[%s217_s30 + $0x28] sm:$0xff] %v280_v55 }
  0x96   : > { %290 = vst [vmem:[%s217_s30 + $0x30] sm:$0xff] %v281_v56  ;;  %291 = vst [vmem:[%s217_s30 + $0x38] sm:$0xff] %v282_v57 }
  0x97   : > { %292 = vst [vmem:[%s217_s30 + $0x40] sm:$0xff] %v283_v58 }
  0x98 PF: > { %s14_s15 = sadd.s32 1, %s387_s15  }
  0x99   : > { %p11_p4 = scmp.ge.s32.totalorder %s14_s15, 4  }
  0x9b   :  { %13 = sbr.rel (!%p11_p4) target bundleno = 1 (0x1), region = 69 }

</bundles_post_ra>
